<compile_context>
chip_gen: v7x
topology: tpu7x:2x2x1
jax: 0.10.0
libtpu: 0.0.40
codegen_flags: <defaults>
</compile_context>

<pallas_src>
import jax
import jax.numpy as jnp
from jax import lax
from jax.experimental import pallas as pl
from jax.experimental.pallas import tpu as pltpu

LOGIT_PAD = 128  # pad the tiny num_classes dim to a full lane width


# ----------------------------------------------------------------------------
# In-kernel building blocks
# ----------------------------------------------------------------------------
def _bias_relu_pool(acc, bias, bn, H, W):
    """Bias add + ReLU on (bn*H*W, C) f32 rows, then 2x2 max-pool.

    Rows are (n, h, w)-ordered.  The pool uses only minor-preserving reshapes,
    contiguous static slices and size-1 indexing (no strided slices, no
    middle-axis reductions) so it lowers cleanly on Mosaic.
    """
    C = acc.shape[-1]
    Ho, Wo = H // 2, W // 2
    y = jnp.maximum(acc + bias, 0.0)                      # (bn*H*W, C) f32
    # max over the two h-neighbours: adjacent h differ by W rows.
    y = y.reshape(bn * Ho, 2 * W, C)
    y = jnp.maximum(y[:, :W, :], y[:, W:, :])             # rows (n, ho, w)
    # max over the two w-neighbours: adjacent rows.
    y = y.reshape(bn * Ho * Wo, 2, C)
    y = jnp.maximum(y[:, 0, :], y[:, 1, :])               # rows (n, ho, wo)
    return y.reshape(bn, Ho, Wo, C).astype(jnp.bfloat16)


def _conv3x3_bn_relu_pool(x, pad_ref, w_ref, b_ref):
    """3x3 conv (pad=1) with BN folded into w/b, + ReLU + 2x2 max-pool.

    x       : (bn, H, W, Cin) bf16 value (resident in VMEM)
    pad_ref : (bn, H+2, W+2, Cin) bf16 VMEM scratch (zero-padded copy of x)
    w_ref   : (9, Cin, Cout) bf16, tap-major (tap = 3*ky + kx)
    b_ref   : (1, Cout) f32 folded bias
    returns : (bn, H//2, W//2, Cout) bf16
    """
    bn, H, W, Cin = x.shape
    Cout = w_ref.shape[-1]

    # Zero-pad inside the kernel (no XLA pad op / HBM round trip).
    pad_ref[...] = jnp.zeros(pad_ref.shape, pad_ref.dtype)
    pad_ref[:, 1:H + 1, 1:W + 1, :] = x

    # Conv as 9 accumulating (bn*H*W, Cin) x (Cin, Cout) bf16 matmuls, f32 acc.
    # NOTE: a further win would fold the 9 taps into K=9*Cin for conv2
    # (Cin=64), but that needs an in-kernel minor-dim concat; kept 9-tap here.
    acc = jnp.zeros((bn * H * W, Cout), jnp.float32)
    for ky in range(3):
        for kx in range(3):
            win = pad_ref[:, ky:ky + H, kx:kx + W, :].reshape(bn * H * W, Cin)
            acc = acc + jnp.dot(win, w_ref[3 * ky + kx],
                                preferred_element_type=jnp.float32)
    return _bias_relu_pool(acc, b_ref[...], bn, H, W)


def _fused_net_kernel(xp1_ref,
                      w1_ref, b1_ref, w2_ref, b2_ref, w3_ref, b3_ref,
                      w4_ref, b4_ref,
                      l1w_ref, l1b_ref, l2w_ref, l2b_ref, l3w_ref, l3b_ref,
                      feat_ref, logit_ref,
                      pad2_ref, pad3_ref, pad4_ref):
    """Whole SimpleCifarNetMoon forward for one batch tile, resident in VMEM."""
    bn, H, W, K1 = xp1_ref.shape

    # conv1 (+BN+ReLU+pool): the 3x3 taps are pre-folded into the input
    # channels (K = 27), so it is a single MXU matmul over bn*H*W rows.
    a1 = jnp.dot(xp1_ref[...].reshape(bn * H * W, K1), w1_ref[...],
                 preferred_element_type=jnp.float32)
    x1 = _bias_relu_pool(a1, b1_ref[...], bn, H, W)              # (bn, H/2,  W/2,  64)

    x2 = _conv3x3_bn_relu_pool(x1, pad2_ref, w2_ref, b2_ref)     # (bn, H/4,  W/4,  128)
    x3 = _conv3x3_bn_relu_pool(x2, pad3_ref, w3_ref, b3_ref)     # (bn, H/8,  W/8,  256)
    x4 = _conv3x3_bn_relu_pool(x3, pad4_ref, w4_ref, b4_ref)     # (bn, H/16, W/16, 512)

    # Global average pool (AdaptiveAvgPool2d((1,1))) fused in, f32 reduction.
    _, Hf, Wf, Cf = x4.shape
    g = jnp.mean(x4.reshape(bn, Hf * Wf, Cf).astype(jnp.float32), axis=1)

    # 3-layer MLP head: x -> relu(l1) -> l2 (=feat) -> l3 (=logits).
    h = jnp.dot(g.astype(l1w_ref.dtype), l1w_ref[...],
                preferred_element_type=jnp.float32) + l1b_ref[...]
    h = jnp.maximum(h, 0.0)
    f = jnp.dot(h.astype(l2w_ref.dtype), l2w_ref[...],
                preferred_element_type=jnp.float32) + l2b_ref[...]
    z = jnp.dot(f.astype(l3w_ref.dtype), l3w_ref[...],
                preferred_element_type=jnp.float32) + l3b_ref[...]
    feat_ref[...] = f
    logit_ref[...] = z


# ----------------------------------------------------------------------------
# Host-side wrappers
# ----------------------------------------------------------------------------
def _conv1_patches(x_nhwc):
    """Fold conv1's 3x3 taps into the channel dim (K = 9*3 = 27) once in XLA.

    The 3-channel input is tiny, so the 9x expansion costs only a few KB per
    image and turns conv1 into a single K=27 MXU matmul inside the kernel.
    """
    N, H, W, C = x_nhwc.shape
    xp = jnp.pad(x_nhwc, ((0, 0), (1, 1), (1, 1), (0, 0)))
    taps = [xp[:, ky:ky + H, kx:kx + W, :] for ky in range(3) for kx in range(3)]
    return jnp.concatenate(taps, axis=-1)                 # (N, H, W, 27)


def _pick_batch_tile(N):
    """Batch tile: large enough to feed the MXU, a divisor of N, multiple of 8
    (or the full batch), and <= N//2 when possible so >=2 grid steps exist for
    megacore sharding."""
    if N <= 16:
        return N
    for bn in (64, 32, 16, 8):
        if N % bn == 0 and bn <= N // 2:
            return bn
    return N


def simple_cifar_net_moon_forward(x_nchw, params, num_classes=10):
    """Returns (feat_after_l2, logits) exactly like the PyTorch module."""
    N, C, H, W = x_nchw.shape
    assert C == 3 and H % 16 == 0 and W % 16 == 0, "need 3 channels, spatial % 16 == 0"

    x = jnp.transpose(x_nchw, (0, 2, 3, 1)).astype(jnp.bfloat16)   # NCHW -> NHWC
    xp1 = _conv1_patches(x)                                        # (N, H, W, 27)

    bn = _pick_batch_tile(N)
    assert N % bn == 0
    grid = (N // bn,)

    c2 = params["conv2_w"].shape[1]   # 64
    c3 = params["conv3_w"].shape[1]   # 128
    c4 = params["conv4_w"].shape[1]   # 256

    def _full(arr):
        shp = tuple(arr.shape)
        return pl.BlockSpec(shp, lambda i, _r=len(shp): (0,) * _r)

    feat, logits = pl.pallas_call(
        _fused_net_kernel,
        out_shape=(jax.ShapeDtypeStruct((N, 256), jnp.float32),
                   jax.ShapeDtypeStruct((N, LOGIT_PAD), jnp.float32)),
        grid=grid,
        in_specs=[
            pl.BlockSpec((bn, H, W, 27), lambda i: (i, 0, 0, 0)),
            _full(params["conv1_w"]), _full(params["conv1_b"]),
            _full(params["conv2_w"]), _full(params["conv2_b"]),
            _full(params["conv3_w"]), _full(params["conv3_b"]),
            _full(params["conv4_w"]), _full(params["conv4_b"]),
            _full(params["l1_wT"]), _full(params["l1_b"]),
            _full(params["l2_wT"]), _full(params["l2_b"]),
            _full(params["l3_wT"]), _full(params["l3_b"]),
        ],
        out_specs=(pl.BlockSpec((bn, 256), lambda i: (i, 0)),
                   pl.BlockSpec((bn, LOGIT_PAD), lambda i: (i, 0))),
        scratch_shapes=[
            pltpu.VMEM((bn, H // 2 + 2, W // 2 + 2, c2), jnp.bfloat16),
            pltpu.VMEM((bn, H // 4 + 2, W // 4 + 2, c3), jnp.bfloat16),
            pltpu.VMEM((bn, H // 8 + 2, W // 8 + 2, c4), jnp.bfloat16),
        ],
        compiler_params=pltpu.CompilerParams(
            dimension_semantics=("parallel",),
            vmem_limit_bytes=64 * 1024 * 1024),
    )(xp1,
      params["conv1_w"], params["conv1_b"], params["conv2_w"], params["conv2_b"],
      params["conv3_w"], params["conv3_b"], params["conv4_w"], params["conv4_b"],
      params["l1_wT"], params["l1_b"], params["l2_wT"], params["l2_b"],
      params["l3_wT"], params["l3_b"])
    return feat, logits[:, :num_classes]


# ----------------------------------------------------------------------------
# Parameter construction (deterministic) and one-time inference prep
# ----------------------------------------------------------------------------
def init_params(key, num_classes=10):
    """Raw PyTorch-layout parameters (conv OIHW, linear (out,in), BN stats)."""
    params = {}
    keys = iter(jax.random.split(key, 32))
    conv_dims = [(3, 64), (64, 128), (128, 256), (256, 512)]
    for i, (cin, cout) in enumerate(conv_dims, start=1):
        fan_in = 9 * cin
        params[f"conv{i}_w"] = jax.random.normal(next(keys), (cout, cin, 3, 3),
                                                 jnp.float32) / jnp.sqrt(float(fan_in))
        params[f"conv{i}_b"] = 0.01 * jax.random.normal(next(keys), (cout,), jnp.float32)
        params[f"bn{i}_gamma"] = 1.0 + 0.1 * jax.random.normal(next(keys), (cout,), jnp.float32)
        params[f"bn{i}_beta"] = 0.1 * jax.random.normal(next(keys), (cout,), jnp.float32)
        params[f"bn{i}_mean"] = 0.1 * jax.random.normal(next(keys), (cout,), jnp.float32)
        params[f"bn{i}_var"] = 1.0 + 0.1 * jnp.abs(jax.random.normal(next(keys), (cout,), jnp.float32))
    fc_dims = [(512, 512), (512, 256), (256, num_classes)]
    for i, (fin, fout) in enumerate(fc_dims, start=1):
        params[f"l{i}_w"] = jax.random.normal(next(keys), (fout, fin),
                                              jnp.float32) / jnp.sqrt(float(fin))
        params[f"l{i}_b"] = 0.01 * jax.random.normal(next(keys), (fout,), jnp.float32)
    return params


def prepare_params(raw, eps=1e-5):
    """One-time host-side prep: fold inference-mode BN into conv weights/bias,
    transpose + bf16-cast all matmul weights, fold conv1's taps into K, and
    pad the logits dim to a full lane width."""
    # TODO(synk): training-mode BatchNorm (per-batch statistics / running-stat
    # updates) has no clean fused-inference equivalent; BN is folded eval-mode.
    p = {}
    for i, fold_taps in ((1, True), (2, False), (3, False), (4, False)):
        w = raw[f"conv{i}_w"]                               # (Cout, Cin, 3, 3)
        cout, cin = w.shape[0], w.shape[1]
        scale = raw[f"bn{i}_gamma"] / jnp.sqrt(raw[f"bn{i}_var"] + eps)
        w9 = jnp.transpose(w, (2, 3, 1, 0)).reshape(9, cin, cout) * scale[None, None, :]
        if fold_taps:                                       # conv1: (9*Cin, Cout)
            w9 = w9.reshape(9 * cin, cout)
        p[f"conv{i}_w"] = w9.astype(jnp.bfloat16)
        bias = scale * (raw[f"conv{i}_b"] - raw[f"bn{i}_mean"]) + raw[f"bn{i}_beta"]
        p[f"conv{i}_b"] = bias.reshape(1, cout).astype(jnp.float32)

    p["l1_wT"] = raw["l1_w"].T.astype(jnp.bfloat16)          # (512, 512)
    p["l1_b"] = raw["l1_b"].reshape(1, -1).astype(jnp.float32)
    p["l2_wT"] = raw["l2_w"].T.astype(jnp.bfloat16)          # (512, 256)
    p["l2_b"] = raw["l2_b"].reshape(1, -1).astype(jnp.float32)

    nc = raw["l3_w"].shape[0]
    assert nc <= LOGIT_PAD
    p["l3_wT"] = jnp.pad(raw["l3_w"].T, ((0, 0), (0, LOGIT_PAD - nc))).astype(jnp.bfloat16)
    p["l3_b"] = jnp.pad(raw["l3_b"], (0, LOGIT_PAD - nc)).reshape(1, -1).astype(jnp.float32)
    return p


# ----------------------------------------------------------------------------
# Pure-JAX f32 reference (for a loose bf16-tolerance correctness check)
# ----------------------------------------------------------------------------
def reference_forward(x_nchw, raw, eps=1e-5):
    x = jnp.transpose(x_nchw, (0, 2, 3, 1))
    for i in (1, 2, 3, 4):
        w = jnp.transpose(raw[f"conv{i}_w"], (2, 3, 1, 0))   # HWIO
        x = lax.conv_general_dilated(x, w, (1, 1), "SAME",
                                     dimension_numbers=("NHWC", "HWIO", "NHWC"))
        x = x + raw[f"conv{i}_b"]
        x = ((x - raw[f"bn{i}_mean"]) / jnp.sqrt(raw[f"bn{i}_var"] + eps)
             * raw[f"bn{i}_gamma"] + raw[f"bn{i}_beta"])
        x = jnp.maximum(x, 0.0)
        N, H, W, C = x.shape
        x = x.reshape(N, H // 2, 2, W // 2, 2, C).max(axis=(2, 4))
    x = jnp.mean(x, axis=(1, 2))
    h = jnp.maximum(x @ raw["l1_w"].T + raw["l1_b"], 0.0)
    f = h @ raw["l2_w"].T + raw["l2_b"]
    z = f @ raw["l3_w"].T + raw["l3_b"]
    return f, z


if __name__ == "__main__":
    raw = init_params(jax.random.PRNGKey(0), num_classes=10)
    params = prepare_params(raw)
    x = jax.random.normal(jax.random.PRNGKey(0), (2, 3, 16, 16), jnp.float32)

    fwd = jax.jit(simple_cifar_net_moon_forward, static_argnames=("num_classes",))
    feat, logits = fwd(x, params, num_classes=10)
    jax.block_until_ready((feat, logits))

    assert feat.shape == (2, 256) and feat.dtype == jnp.float32
    assert logits.shape == (2, 10) and logits.dtype == jnp.float32
    assert bool(jnp.all(jnp.isfinite(feat))) and bool(jnp.all(jnp.isfinite(logits)))

    # Loose, scale-relative check against the f32 reference (bf16 activations
    # / weights in the kernel => expect ~1% deviation, allow 10%).
    ref_feat, ref_logits = reference_forward(x, raw)

    def _close(a, b):
        scale = float(jnp.max(jnp.abs(b))) + 1e-6
        return float(jnp.max(jnp.abs(a - b))) <= 0.1 * scale

    assert _close(feat, ref_feat), "feature mismatch vs f32 reference"
    assert _close(logits, ref_logits), "logit mismatch vs f32 reference"

    print("KERNEL_OK")
</pallas_src>

<mosaic_0001>
module attributes {stable_mosaic.version = 11 : i64} {
  func.func @_fused_net_kernel(%arg0: i32, %arg1: memref<2x16x16x27xbf16, #tpu.memory_space<vmem>>, %arg2: memref<27x64xbf16, #tpu.memory_space<vmem>>, %arg3: memref<1x64xf32, #tpu.memory_space<vmem>>, %arg4: memref<9x64x128xbf16, #tpu.memory_space<vmem>>, %arg5: memref<1x128xf32, #tpu.memory_space<vmem>>, %arg6: memref<9x128x256xbf16, #tpu.memory_space<vmem>>, %arg7: memref<1x256xf32, #tpu.memory_space<vmem>>, %arg8: memref<9x256x512xbf16, #tpu.memory_space<vmem>>, %arg9: memref<1x512xf32, #tpu.memory_space<vmem>>, %arg10: memref<512x512xbf16, #tpu.memory_space<vmem>>, %arg11: memref<1x512xf32, #tpu.memory_space<vmem>>, %arg12: memref<512x256xbf16, #tpu.memory_space<vmem>>, %arg13: memref<1x256xf32, #tpu.memory_space<vmem>>, %arg14: memref<256x128xbf16, #tpu.memory_space<vmem>>, %arg15: memref<1x128xf32, #tpu.memory_space<vmem>>, %arg16: memref<2x256xf32, #tpu.memory_space<vmem>>, %arg17: memref<2x128xf32, #tpu.memory_space<vmem>>, %arg18: memref<2x10x10x64xbf16, #tpu.memory_space<vmem>>, %arg19: memref<2x6x6x128xbf16, #tpu.memory_space<vmem>>, %arg20: memref<2x4x4x256xbf16, #tpu.memory_space<vmem>>) attributes {dimension_semantics = [#tpu.dimension_semantics<parallel>], iteration_bounds = array<i64: 1>, scalar_prefetch = 0 : i64, scratch_operands = 3 : i64, tpu.core_type = #tpu.core_type<tc>, window_params = [{transform_indices = @transform_0, window_bounds = array<i64: 2, 16, 16, 27>}, {pipeline_mode = #tpu.pipeline_mode<synchronous>, transform_indices = @transform_1, window_bounds = array<i64: 27, 64>}, {pipeline_mode = #tpu.pipeline_mode<synchronous>, transform_indices = @transform_2, window_bounds = array<i64: 1, 64>}, {pipeline_mode = #tpu.pipeline_mode<synchronous>, transform_indices = @transform_3, window_bounds = array<i64: 9, 64, 128>}, {pipeline_mode = #tpu.pipeline_mode<synchronous>, transform_indices = @transform_4, window_bounds = array<i64: 1, 128>}, {pipeline_mode = #tpu.pipeline_mode<synchronous>, transform_indices = @transform_5, window_bounds = array<i64: 9, 128, 256>}, {pipeline_mode = #tpu.pipeline_mode<synchronous>, transform_indices = @transform_6, window_bounds = array<i64: 1, 256>}, {pipeline_mode = #tpu.pipeline_mode<synchronous>, transform_indices = @transform_7, window_bounds = array<i64: 9, 256, 512>}, {pipeline_mode = #tpu.pipeline_mode<synchronous>, transform_indices = @transform_8, window_bounds = array<i64: 1, 512>}, {pipeline_mode = #tpu.pipeline_mode<synchronous>, transform_indices = @transform_9, window_bounds = array<i64: 512, 512>}, {pipeline_mode = #tpu.pipeline_mode<synchronous>, transform_indices = @transform_10, window_bounds = array<i64: 1, 512>}, {pipeline_mode = #tpu.pipeline_mode<synchronous>, transform_indices = @transform_11, window_bounds = array<i64: 512, 256>}, {pipeline_mode = #tpu.pipeline_mode<synchronous>, transform_indices = @transform_12, window_bounds = array<i64: 1, 256>}, {pipeline_mode = #tpu.pipeline_mode<synchronous>, transform_indices = @transform_13, window_bounds = array<i64: 256, 128>}, {pipeline_mode = #tpu.pipeline_mode<synchronous>, transform_indices = @transform_14, window_bounds = array<i64: 1, 128>}, {transform_indices = @transform_15, window_bounds = array<i64: 2, 256>}, {transform_indices = @transform_16, window_bounds = array<i64: 2, 128>}]} {
    %c0 = arith.constant 0 : index
    %c0_0 = arith.constant 0 : index
    %c0_1 = arith.constant 0 : index
    %c0_2 = arith.constant 0 : index
    %0 = vector.load %arg1[%c0, %c0_0, %c0_1, %c0_2] : memref<2x16x16x27xbf16, #tpu.memory_space<vmem>>, vector<2x16x16x27xbf16>
    %1 = vector.shape_cast %0 : vector<2x16x16x27xbf16> to vector<512x27xbf16>
    %c0_3 = arith.constant 0 : index
    %c0_4 = arith.constant 0 : index
    %2 = vector.load %arg2[%c0_3, %c0_4] : memref<27x64xbf16, #tpu.memory_space<vmem>>, vector<27x64xbf16>
    %cst = arith.constant dense<0.000000e+00> : vector<512x64xf32>
    %3 = tpu.matmul %1, %2, %cst {dimension_numbers = #tpu.dot_dimension_numbers<[1], [0], [0], [1], [0, 0, 1, 1], [], []>} : vector<512x27xbf16>, vector<27x64xbf16>, vector<512x64xf32> -> vector<512x64xf32>
    %c0_5 = arith.constant 0 : index
    %c0_6 = arith.constant 0 : index
    %4 = vector.load %arg3[%c0_5, %c0_6] : memref<1x64xf32, #tpu.memory_space<vmem>>, vector<1x64xf32>
    %5 = vector.broadcast %4 : vector<1x64xf32> to vector<512x64xf32>
    %6 = arith.addf %3, %5 : vector<512x64xf32>
    %cst_7 = arith.constant 0.000000e+00 : f32
    %7 = vector.broadcast %cst_7 : f32 to vector<512x64xf32>
    %8 = arith.maximumf %6, %7 : vector<512x64xf32>
    %9 = vector.shape_cast %8 : vector<512x64xf32> to vector<16x32x64xf32>
    %10 = vector.extract_strided_slice %9 {offsets = [0, 0, 0], sizes = [16, 16, 64], strides = [1, 1, 1]} : vector<16x32x64xf32> to vector<16x16x64xf32>
    %11 = vector.extract_strided_slice %9 {offsets = [0, 16, 0], sizes = [16, 16, 64], strides = [1, 1, 1]} : vector<16x32x64xf32> to vector<16x16x64xf32>
    %12 = arith.maximumf %10, %11 : vector<16x16x64xf32>
    %13 = vector.shape_cast %12 : vector<16x16x64xf32> to vector<128x2x64xf32>
    %14 = vector.extract_strided_slice %13 {offsets = [0, 0, 0], sizes = [128, 1, 64], strides = [1, 1, 1]} : vector<128x2x64xf32> to vector<128x1x64xf32>
    %15 = vector.shape_cast %14 : vector<128x1x64xf32> to vector<128x64xf32>
    %16 = vector.extract_strided_slice %13 {offsets = [0, 1, 0], sizes = [128, 1, 64], strides = [1, 1, 1]} : vector<128x2x64xf32> to vector<128x1x64xf32>
    %17 = vector.shape_cast %16 : vector<128x1x64xf32> to vector<128x64xf32>
    %18 = arith.maximumf %15, %17 : vector<128x64xf32>
    %19 = vector.shape_cast %18 : vector<128x64xf32> to vector<2x8x8x64xf32>
    %20 = arith.truncf %19 : vector<2x8x8x64xf32> to vector<2x8x8x64xbf16>
    %cst_8 = arith.constant 0.000000e+00 : bf16
    %21 = vector.broadcast %cst_8 : bf16 to vector<2x10x10x64xbf16>
    %c0_9 = arith.constant 0 : index
    %c0_10 = arith.constant 0 : index
    %c0_11 = arith.constant 0 : index
    %c0_12 = arith.constant 0 : index
    %22 = vector.load %arg18[%c0_9, %c0_10, %c0_11, %c0_12] : memref<2x10x10x64xbf16, #tpu.memory_space<vmem>>, vector<2x10x10x64xbf16>
    tpu.vector_store %arg18[%c0_9, %c0_10, %c0_11, %c0_12], %21 {strides = array<i32>} : memref<2x10x10x64xbf16, #tpu.memory_space<vmem>>, vector<2x10x10x64xbf16>,
    %c0_13 = arith.constant 0 : index
    %c1 = arith.constant 1 : index
    %c1_14 = arith.constant 1 : index
    %c0_15 = arith.constant 0 : index
    %23 = vector.load %arg18[%c0_13, %c1, %c1_14, %c0_15] : memref<2x10x10x64xbf16, #tpu.memory_space<vmem>>, vector<2x8x8x64xbf16>
    tpu.vector_store %arg18[%c0_13, %c1, %c1_14, %c0_15], %20 {strides = array<i32>} : memref<2x10x10x64xbf16, #tpu.memory_space<vmem>>, vector<2x8x8x64xbf16>,
    %cst_16 = arith.constant 0.000000e+00 : f32
    %24 = vector.broadcast %cst_16 : f32 to vector<128x128xf32>
    %c0_17 = arith.constant 0 : index
    %c0_18 = arith.constant 0 : index
    %c0_19 = arith.constant 0 : index
    %c0_20 = arith.constant 0 : index
    %25 = vector.load %arg18[%c0_17, %c0_18, %c0_19, %c0_20] : memref<2x10x10x64xbf16, #tpu.memory_space<vmem>>, vector<2x8x8x64xbf16>
    %26 = vector.shape_cast %25 : vector<2x8x8x64xbf16> to vector<128x64xbf16>
    %c0_21 = arith.constant 0 : index
    %c0_22 = arith.constant 0 : index
    %c0_23 = arith.constant 0 : index
    %27 = vector.load %arg4[%c0_21, %c0_22, %c0_23] : memref<9x64x128xbf16, #tpu.memory_space<vmem>>, vector<1x64x128xbf16>
    %28 = vector.shape_cast %27 : vector<1x64x128xbf16> to vector<64x128xbf16>
    %cst_24 = arith.constant dense<0.000000e+00> : vector<128x128xf32>
    %29 = tpu.matmul %26, %28, %cst_24 {dimension_numbers = #tpu.dot_dimension_numbers<[1], [0], [0], [1], [0, 0, 1, 1], [], []>} : vector<128x64xbf16>, vector<64x128xbf16>, vector<128x128xf32> -> vector<128x128xf32>
    %30 = arith.addf %24, %29 : vector<128x128xf32>
    %c0_25 = arith.constant 0 : index
    %c0_26 = arith.constant 0 : index
    %c1_27 = arith.constant 1 : index
    %c0_28 = arith.constant 0 : index
    %31 = vector.load %arg18[%c0_25, %c0_26, %c1_27, %c0_28] : memref<2x10x10x64xbf16, #tpu.memory_space<vmem>>, vector<2x8x8x64xbf16>
    %32 = vector.shape_cast %31 : vector<2x8x8x64xbf16> to vector<128x64xbf16>
    %c1_29 = arith.constant 1 : index
    %c0_30 = arith.constant 0 : index
    %c0_31 = arith.constant 0 : index
    %33 = vector.load %arg4[%c1_29, %c0_30, %c0_31] : memref<9x64x128xbf16, #tpu.memory_space<vmem>>, vector<1x64x128xbf16>
    %34 = vector.shape_cast %33 : vector<1x64x128xbf16> to vector<64x128xbf16>
    %cst_32 = arith.constant dense<0.000000e+00> : vector<128x128xf32>
    %35 = tpu.matmul %32, %34, %cst_32 {dimension_numbers = #tpu.dot_dimension_numbers<[1], [0], [0], [1], [0, 0, 1, 1], [], []>} : vector<128x64xbf16>, vector<64x128xbf16>, vector<128x128xf32> -> vector<128x128xf32>
    %36 = arith.addf %30, %35 : vector<128x128xf32>
    %c0_33 = arith.constant 0 : index
    %c0_34 = arith.constant 0 : index
    %c2 = arith.constant 2 : index
    %c0_35 = arith.constant 0 : index
    %37 = vector.load %arg18[%c0_33, %c0_34, %c2, %c0_35] : memref<2x10x10x64xbf16, #tpu.memory_space<vmem>>, vector<2x8x8x64xbf16>
    %38 = vector.shape_cast %37 : vector<2x8x8x64xbf16> to vector<128x64xbf16>
    %c2_36 = arith.constant 2 : index
    %c0_37 = arith.constant 0 : index
    %c0_38 = arith.constant 0 : index
    %39 = vector.load %arg4[%c2_36, %c0_37, %c0_38] : memref<9x64x128xbf16, #tpu.memory_space<vmem>>, vector<1x64x128xbf16>
    %40 = vector.shape_cast %39 : vector<1x64x128xbf16> to vector<64x128xbf16>
    %cst_39 = arith.constant dense<0.000000e+00> : vector<128x128xf32>
    %41 = tpu.matmul %38, %40, %cst_39 {dimension_numbers = #tpu.dot_dimension_numbers<[1], [0], [0], [1], [0, 0, 1, 1], [], []>} : vector<128x64xbf16>, vector<64x128xbf16>, vector<128x128xf32> -> vector<128x128xf32>
    %42 = arith.addf %36, %41 : vector<128x128xf32>
    %c0_40 = arith.constant 0 : index
    %c1_41 = arith.constant 1 : index
    %c0_42 = arith.constant 0 : index
    %c0_43 = arith.constant 0 : index
    %43 = vector.load %arg18[%c0_40, %c1_41, %c0_42, %c0_43] : memref<2x10x10x64xbf16, #tpu.memory_space<vmem>>, vector<2x8x8x64xbf16>
    %44 = vector.shape_cast %43 : vector<2x8x8x64xbf16> to vector<128x64xbf16>
    %c3 = arith.constant 3 : index
    %c0_44 = arith.constant 0 : index
    %c0_45 = arith.constant 0 : index
    %45 = vector.load %arg4[%c3, %c0_44, %c0_45] : memref<9x64x128xbf16, #tpu.memory_space<vmem>>, vector<1x64x128xbf16>
    %46 = vector.shape_cast %45 : vector<1x64x128xbf16> to vector<64x128xbf16>
    %cst_46 = arith.constant dense<0.000000e+00> : vector<128x128xf32>
    %47 = tpu.matmul %44, %46, %cst_46 {dimension_numbers = #tpu.dot_dimension_numbers<[1], [0], [0], [1], [0, 0, 1, 1], [], []>} : vector<128x64xbf16>, vector<64x128xbf16>, vector<128x128xf32> -> vector<128x128xf32>
    %48 = arith.addf %42, %47 : vector<128x128xf32>
    %c0_47 = arith.constant 0 : index
    %c1_48 = arith.constant 1 : index
    %c1_49 = arith.constant 1 : index
    %c0_50 = arith.constant 0 : index
    %49 = vector.load %arg18[%c0_47, %c1_48, %c1_49, %c0_50] : memref<2x10x10x64xbf16, #tpu.memory_space<vmem>>, vector<2x8x8x64xbf16>
    %50 = vector.shape_cast %49 : vector<2x8x8x64xbf16> to vector<128x64xbf16>
    %c4 = arith.constant 4 : index
    %c0_51 = arith.constant 0 : index
    %c0_52 = arith.constant 0 : index
    %51 = vector.load %arg4[%c4, %c0_51, %c0_52] : memref<9x64x128xbf16, #tpu.memory_space<vmem>>, vector<1x64x128xbf16>
    %52 = vector.shape_cast %51 : vector<1x64x128xbf16> to vector<64x128xbf16>
    %cst_53 = arith.constant dense<0.000000e+00> : vector<128x128xf32>
    %53 = tpu.matmul %50, %52, %cst_53 {dimension_numbers = #tpu.dot_dimension_numbers<[1], [0], [0], [1], [0, 0, 1, 1], [], []>} : vector<128x64xbf16>, vector<64x128xbf16>, vector<128x128xf32> -> vector<128x128xf32>
    %54 = arith.addf %48, %53 : vector<128x128xf32>
    %c0_54 = arith.constant 0 : index
    %c1_55 = arith.constant 1 : index
    %c2_56 = arith.constant 2 : index
    %c0_57 = arith.constant 0 : index
    %55 = vector.load %arg18[%c0_54, %c1_55, %c2_56, %c0_57] : memref<2x10x10x64xbf16, #tpu.memory_space<vmem>>, vector<2x8x8x64xbf16>
    %56 = vector.shape_cast %55 : vector<2x8x8x64xbf16> to vector<128x64xbf16>
    %c5 = arith.constant 5 : index
    %c0_58 = arith.constant 0 : index
    %c0_59 = arith.constant 0 : index
    %57 = vector.load %arg4[%c5, %c0_58, %c0_59] : memref<9x64x128xbf16, #tpu.memory_space<vmem>>, vector<1x64x128xbf16>
    %58 = vector.shape_cast %57 : vector<1x64x128xbf16> to vector<64x128xbf16>
    %cst_60 = arith.constant dense<0.000000e+00> : vector<128x128xf32>
    %59 = tpu.matmul %56, %58, %cst_60 {dimension_numbers = #tpu.dot_dimension_numbers<[1], [0], [0], [1], [0, 0, 1, 1], [], []>} : vector<128x64xbf16>, vector<64x128xbf16>, vector<128x128xf32> -> vector<128x128xf32>
    %60 = arith.addf %54, %59 : vector<128x128xf32>
    %c0_61 = arith.constant 0 : index
    %c2_62 = arith.constant 2 : index
    %c0_63 = arith.constant 0 : index
    %c0_64 = arith.constant 0 : index
    %61 = vector.load %arg18[%c0_61, %c2_62, %c0_63, %c0_64] : memref<2x10x10x64xbf16, #tpu.memory_space<vmem>>, vector<2x8x8x64xbf16>
    %62 = vector.shape_cast %61 : vector<2x8x8x64xbf16> to vector<128x64xbf16>
    %c6 = arith.constant 6 : index
    %c0_65 = arith.constant 0 : index
    %c0_66 = arith.constant 0 : index
    %63 = vector.load %arg4[%c6, %c0_65, %c0_66] : memref<9x64x128xbf16, #tpu.memory_space<vmem>>, vector<1x64x128xbf16>
    %64 = vector.shape_cast %63 : vector<1x64x128xbf16> to vector<64x128xbf16>
    %cst_67 = arith.constant dense<0.000000e+00> : vector<128x128xf32>
    %65 = tpu.matmul %62, %64, %cst_67 {dimension_numbers = #tpu.dot_dimension_numbers<[1], [0], [0], [1], [0, 0, 1, 1], [], []>} : vector<128x64xbf16>, vector<64x128xbf16>, vector<128x128xf32> -> vector<128x128xf32>
    %66 = arith.addf %60, %65 : vector<128x128xf32>
    %c0_68 = arith.constant 0 : index
    %c2_69 = arith.constant 2 : index
    %c1_70 = arith.constant 1 : index
    %c0_71 = arith.constant 0 : index
    %67 = vector.load %arg18[%c0_68, %c2_69, %c1_70, %c0_71] : memref<2x10x10x64xbf16, #tpu.memory_space<vmem>>, vector<2x8x8x64xbf16>
    %68 = vector.shape_cast %67 : vector<2x8x8x64xbf16> to vector<128x64xbf16>
    %c7 = arith.constant 7 : index
    %c0_72 = arith.constant 0 : index
    %c0_73 = arith.constant 0 : index
    %69 = vector.load %arg4[%c7, %c0_72, %c0_73] : memref<9x64x128xbf16, #tpu.memory_space<vmem>>, vector<1x64x128xbf16>
    %70 = vector.shape_cast %69 : vector<1x64x128xbf16> to vector<64x128xbf16>
    %cst_74 = arith.constant dense<0.000000e+00> : vector<128x128xf32>
    %71 = tpu.matmul %68, %70, %cst_74 {dimension_numbers = #tpu.dot_dimension_numbers<[1], [0], [0], [1], [0, 0, 1, 1], [], []>} : vector<128x64xbf16>, vector<64x128xbf16>, vector<128x128xf32> -> vector<128x128xf32>
    %72 = arith.addf %66, %71 : vector<128x128xf32>
    %c0_75 = arith.constant 0 : index
    %c2_76 = arith.constant 2 : index
    %c2_77 = arith.constant 2 : index
    %c0_78 = arith.constant 0 : index
    %73 = vector.load %arg18[%c0_75, %c2_76, %c2_77, %c0_78] : memref<2x10x10x64xbf16, #tpu.memory_space<vmem>>, vector<2x8x8x64xbf16>
    %74 = vector.shape_cast %73 : vector<2x8x8x64xbf16> to vector<128x64xbf16>
    %c8 = arith.constant 8 : index
    %c0_79 = arith.constant 0 : index
    %c0_80 = arith.constant 0 : index
    %75 = vector.load %arg4[%c8, %c0_79, %c0_80] : memref<9x64x128xbf16, #tpu.memory_space<vmem>>, vector<1x64x128xbf16>
    %76 = vector.shape_cast %75 : vector<1x64x128xbf16> to vector<64x128xbf16>
    %cst_81 = arith.constant dense<0.000000e+00> : vector<128x128xf32>
    %77 = tpu.matmul %74, %76, %cst_81 {dimension_numbers = #tpu.dot_dimension_numbers<[1], [0], [0], [1], [0, 0, 1, 1], [], []>} : vector<128x64xbf16>, vector<64x128xbf16>, vector<128x128xf32> -> vector<128x128xf32>
    %78 = arith.addf %72, %77 : vector<128x128xf32>
    %c0_82 = arith.constant 0 : index
    %c0_83 = arith.constant 0 : index
    %79 = vector.load %arg5[%c0_82, %c0_83] : memref<1x128xf32, #tpu.memory_space<vmem>>, vector<1x128xf32>
    %80 = vector.broadcast %79 : vector<1x128xf32> to vector<128x128xf32>
    %81 = arith.addf %78, %80 : vector<128x128xf32>
    %cst_84 = arith.constant 0.000000e+00 : f32
    %82 = vector.broadcast %cst_84 : f32 to vector<128x128xf32>
    %83 = arith.maximumf %81, %82 : vector<128x128xf32>
    %84 = vector.shape_cast %83 : vector<128x128xf32> to vector<8x16x128xf32>
    %85 = vector.extract_strided_slice %84 {offsets = [0, 0, 0], sizes = [8, 8, 128], strides = [1, 1, 1]} : vector<8x16x128xf32> to vector<8x8x128xf32>
    %86 = vector.extract_strided_slice %84 {offsets = [0, 8, 0], sizes = [8, 8, 128], strides = [1, 1, 1]} : vector<8x16x128xf32> to vector<8x8x128xf32>
    %87 = arith.maximumf %85, %86 : vector<8x8x128xf32>
    %88 = vector.shape_cast %87 : vector<8x8x128xf32> to vector<32x2x128xf32>
    %89 = vector.extract_strided_slice %88 {offsets = [0, 0, 0], sizes = [32, 1, 128], strides = [1, 1, 1]} : vector<32x2x128xf32> to vector<32x1x128xf32>
    %90 = vector.shape_cast %89 : vector<32x1x128xf32> to vector<32x128xf32>
    %91 = vector.extract_strided_slice %88 {offsets = [0, 1, 0], sizes = [32, 1, 128], strides = [1, 1, 1]} : vector<32x2x128xf32> to vector<32x1x128xf32>
    %92 = vector.shape_cast %91 : vector<32x1x128xf32> to vector<32x128xf32>
    %93 = arith.maximumf %90, %92 : vector<32x128xf32>
    %94 = vector.shape_cast %93 : vector<32x128xf32> to vector<2x4x4x128xf32>
    %95 = arith.truncf %94 : vector<2x4x4x128xf32> to vector<2x4x4x128xbf16>
    %cst_85 = arith.constant 0.000000e+00 : bf16
    %96 = vector.broadcast %cst_85 : bf16 to vector<2x6x6x128xbf16>
    %c0_86 = arith.constant 0 : index
    %c0_87 = arith.constant 0 : index
    %c0_88 = arith.constant 0 : index
    %c0_89 = arith.constant 0 : index
    %97 = vector.load %arg19[%c0_86, %c0_87, %c0_88, %c0_89] : memref<2x6x6x128xbf16, #tpu.memory_space<vmem>>, vector<2x6x6x128xbf16>
    tpu.vector_store %arg19[%c0_86, %c0_87, %c0_88, %c0_89], %96 {strides = array<i32>} : memref<2x6x6x128xbf16, #tpu.memory_space<vmem>>, vector<2x6x6x128xbf16>,
    %c0_90 = arith.constant 0 : index
    %c1_91 = arith.constant 1 : index
    %c1_92 = arith.constant 1 : index
    %c0_93 = arith.constant 0 : index
    %98 = vector.load %arg19[%c0_90, %c1_91, %c1_92, %c0_93] : memref<2x6x6x128xbf16, #tpu.memory_space<vmem>>, vector<2x4x4x128xbf16>
    tpu.vector_store %arg19[%c0_90, %c1_91, %c1_92, %c0_93], %95 {strides = array<i32>} : memref<2x6x6x128xbf16, #tpu.memory_space<vmem>>, vector<2x4x4x128xbf16>,
    %cst_94 = arith.constant 0.000000e+00 : f32
    %99 = vector.broadcast %cst_94 : f32 to vector<32x256xf32>
    %c0_95 = arith.constant 0 : index
    %c0_96 = arith.constant 0 : index
    %c0_97 = arith.constant 0 : index
    %c0_98 = arith.constant 0 : index
    %100 = vector.load %arg19[%c0_95, %c0_96, %c0_97, %c0_98] : memref<2x6x6x128xbf16, #tpu.memory_space<vmem>>, vector<2x4x4x128xbf16>
    %101 = vector.shape_cast %100 : vector<2x4x4x128xbf16> to vector<32x128xbf16>
    %c0_99 = arith.constant 0 : index
    %c0_100 = arith.constant 0 : index
    %c0_101 = arith.constant 0 : index
    %102 = vector.load %arg6[%c0_99, %c0_100, %c0_101] : memref<9x128x256xbf16, #tpu.memory_space<vmem>>, vector<1x128x256xbf16>
    %103 = vector.shape_cast %102 : vector<1x128x256xbf16> to vector<128x256xbf16>
    %cst_102 = arith.constant dense<0.000000e+00> : vector<32x256xf32>
    %104 = tpu.matmul %101, %103, %cst_102 {dimension_numbers = #tpu.dot_dimension_numbers<[1], [0], [0], [1], [0, 0, 1, 1], [], []>} : vector<32x128xbf16>, vector<128x256xbf16>, vector<32x256xf32> -> vector<32x256xf32>
    %105 = arith.addf %99, %104 : vector<32x256xf32>
    %c0_103 = arith.constant 0 : index
    %c0_104 = arith.constant 0 : index
    %c1_105 = arith.constant 1 : index
    %c0_106 = arith.constant 0 : index
    %106 = vector.load %arg19[%c0_103, %c0_104, %c1_105, %c0_106] : memref<2x6x6x128xbf16, #tpu.memory_space<vmem>>, vector<2x4x4x128xbf16>
    %107 = vector.shape_cast %106 : vector<2x4x4x128xbf16> to vector<32x128xbf16>
    %c1_107 = arith.constant 1 : index
    %c0_108 = arith.constant 0 : index
    %c0_109 = arith.constant 0 : index
    %108 = vector.load %arg6[%c1_107, %c0_108, %c0_109] : memref<9x128x256xbf16, #tpu.memory_space<vmem>>, vector<1x128x256xbf16>
    %109 = vector.shape_cast %108 : vector<1x128x256xbf16> to vector<128x256xbf16>
    %cst_110 = arith.constant dense<0.000000e+00> : vector<32x256xf32>
    %110 = tpu.matmul %107, %109, %cst_110 {dimension_numbers = #tpu.dot_dimension_numbers<[1], [0], [0], [1], [0, 0, 1, 1], [], []>} : vector<32x128xbf16>, vector<128x256xbf16>, vector<32x256xf32> -> vector<32x256xf32>
    %111 = arith.addf %105, %110 : vector<32x256xf32>
    %c0_111 = arith.constant 0 : index
    %c0_112 = arith.constant 0 : index
    %c2_113 = arith.constant 2 : index
    %c0_114 = arith.constant 0 : index
    %112 = vector.load %arg19[%c0_111, %c0_112, %c2_113, %c0_114] : memref<2x6x6x128xbf16, #tpu.memory_space<vmem>>, vector<2x4x4x128xbf16>
    %113 = vector.shape_cast %112 : vector<2x4x4x128xbf16> to vector<32x128xbf16>
    %c2_115 = arith.constant 2 : index
    %c0_116 = arith.constant 0 : index
    %c0_117 = arith.constant 0 : index
    %114 = vector.load %arg6[%c2_115, %c0_116, %c0_117] : memref<9x128x256xbf16, #tpu.memory_space<vmem>>, vector<1x128x256xbf16>
    %115 = vector.shape_cast %114 : vector<1x128x256xbf16> to vector<128x256xbf16>
    %cst_118 = arith.constant dense<0.000000e+00> : vector<32x256xf32>
    %116 = tpu.matmul %113, %115, %cst_118 {dimension_numbers = #tpu.dot_dimension_numbers<[1], [0], [0], [1], [0, 0, 1, 1], [], []>} : vector<32x128xbf16>, vector<128x256xbf16>, vector<32x256xf32> -> vector<32x256xf32>
    %117 = arith.addf %111, %116 : vector<32x256xf32>
    %c0_119 = arith.constant 0 : index
    %c1_120 = arith.constant 1 : index
    %c0_121 = arith.constant 0 : index
    %c0_122 = arith.constant 0 : index
    %118 = vector.load %arg19[%c0_119, %c1_120, %c0_121, %c0_122] : memref<2x6x6x128xbf16, #tpu.memory_space<vmem>>, vector<2x4x4x128xbf16>
    %119 = vector.shape_cast %118 : vector<2x4x4x128xbf16> to vector<32x128xbf16>
    %c3_123 = arith.constant 3 : index
    %c0_124 = arith.constant 0 : index
    %c0_125 = arith.constant 0 : index
    %120 = vector.load %arg6[%c3_123, %c0_124, %c0_125] : memref<9x128x256xbf16, #tpu.memory_space<vmem>>, vector<1x128x256xbf16>
    %121 = vector.shape_cast %120 : vector<1x128x256xbf16> to vector<128x256xbf16>
    %cst_126 = arith.constant dense<0.000000e+00> : vector<32x256xf32>
    %122 = tpu.matmul %119, %121, %cst_126 {dimension_numbers = #tpu.dot_dimension_numbers<[1], [0], [0], [1], [0, 0, 1, 1], [], []>} : vector<32x128xbf16>, vector<128x256xbf16>, vector<32x256xf32> -> vector<32x256xf32>
    %123 = arith.addf %117, %122 : vector<32x256xf32>
    %c0_127 = arith.constant 0 : index
    %c1_128 = arith.constant 1 : index
    %c1_129 = arith.constant 1 : index
    %c0_130 = arith.constant 0 : index
    %124 = vector.load %arg19[%c0_127, %c1_128, %c1_129, %c0_130] : memref<2x6x6x128xbf16, #tpu.memory_space<vmem>>, vector<2x4x4x128xbf16>
    %125 = vector.shape_cast %124 : vector<2x4x4x128xbf16> to vector<32x128xbf16>
    %c4_131 = arith.constant 4 : index
    %c0_132 = arith.constant 0 : index
    %c0_133 = arith.constant 0 : index
    %126 = vector.load %arg6[%c4_131, %c0_132, %c0_133] : memref<9x128x256xbf16, #tpu.memory_space<vmem>>, vector<1x128x256xbf16>
    %127 = vector.shape_cast %126 : vector<1x128x256xbf16> to vector<128x256xbf16>
    %cst_134 = arith.constant dense<0.000000e+00> : vector<32x256xf32>
    %128 = tpu.matmul %125, %127, %cst_134 {dimension_numbers = #tpu.dot_dimension_numbers<[1], [0], [0], [1], [0, 0, 1, 1], [], []>} : vector<32x128xbf16>, vector<128x256xbf16>, vector<32x256xf32> -> vector<32x256xf32>
    %129 = arith.addf %123, %128 : vector<32x256xf32>
    %c0_135 = arith.constant 0 : index
    %c1_136 = arith.constant 1 : index
    %c2_137 = arith.constant 2 : index
    %c0_138 = arith.constant 0 : index
    %130 = vector.load %arg19[%c0_135, %c1_136, %c2_137, %c0_138] : memref<2x6x6x128xbf16, #tpu.memory_space<vmem>>, vector<2x4x4x128xbf16>
    %131 = vector.shape_cast %130 : vector<2x4x4x128xbf16> to vector<32x128xbf16>
    %c5_139 = arith.constant 5 : index
    %c0_140 = arith.constant 0 : index
    %c0_141 = arith.constant 0 : index
    %132 = vector.load %arg6[%c5_139, %c0_140, %c0_141] : memref<9x128x256xbf16, #tpu.memory_space<vmem>>, vector<1x128x256xbf16>
    %133 = vector.shape_cast %132 : vector<1x128x256xbf16> to vector<128x256xbf16>
    %cst_142 = arith.constant dense<0.000000e+00> : vector<32x256xf32>
    %134 = tpu.matmul %131, %133, %cst_142 {dimension_numbers = #tpu.dot_dimension_numbers<[1], [0], [0], [1], [0, 0, 1, 1], [], []>} : vector<32x128xbf16>, vector<128x256xbf16>, vector<32x256xf32> -> vector<32x256xf32>
    %135 = arith.addf %129, %134 : vector<32x256xf32>
    %c0_143 = arith.constant 0 : index
    %c2_144 = arith.constant 2 : index
    %c0_145 = arith.constant 0 : index
    %c0_146 = arith.constant 0 : index
    %136 = vector.load %arg19[%c0_143, %c2_144, %c0_145, %c0_146] : memref<2x6x6x128xbf16, #tpu.memory_space<vmem>>, vector<2x4x4x128xbf16>
    %137 = vector.shape_cast %136 : vector<2x4x4x128xbf16> to vector<32x128xbf16>
    %c6_147 = arith.constant 6 : index
    %c0_148 = arith.constant 0 : index
    %c0_149 = arith.constant 0 : index
    %138 = vector.load %arg6[%c6_147, %c0_148, %c0_149] : memref<9x128x256xbf16, #tpu.memory_space<vmem>>, vector<1x128x256xbf16>
    %139 = vector.shape_cast %138 : vector<1x128x256xbf16> to vector<128x256xbf16>
    %cst_150 = arith.constant dense<0.000000e+00> : vector<32x256xf32>
    %140 = tpu.matmul %137, %139, %cst_150 {dimension_numbers = #tpu.dot_dimension_numbers<[1], [0], [0], [1], [0, 0, 1, 1], [], []>} : vector<32x128xbf16>, vector<128x256xbf16>, vector<32x256xf32> -> vector<32x256xf32>
    %141 = arith.addf %135, %140 : vector<32x256xf32>
    %c0_151 = arith.constant 0 : index
    %c2_152 = arith.constant 2 : index
    %c1_153 = arith.constant 1 : index
    %c0_154 = arith.constant 0 : index
    %142 = vector.load %arg19[%c0_151, %c2_152, %c1_153, %c0_154] : memref<2x6x6x128xbf16, #tpu.memory_space<vmem>>, vector<2x4x4x128xbf16>
    %143 = vector.shape_cast %142 : vector<2x4x4x128xbf16> to vector<32x128xbf16>
    %c7_155 = arith.constant 7 : index
    %c0_156 = arith.constant 0 : index
    %c0_157 = arith.constant 0 : index
    %144 = vector.load %arg6[%c7_155, %c0_156, %c0_157] : memref<9x128x256xbf16, #tpu.memory_space<vmem>>, vector<1x128x256xbf16>
    %145 = vector.shape_cast %144 : vector<1x128x256xbf16> to vector<128x256xbf16>
    %cst_158 = arith.constant dense<0.000000e+00> : vector<32x256xf32>
    %146 = tpu.matmul %143, %145, %cst_158 {dimension_numbers = #tpu.dot_dimension_numbers<[1], [0], [0], [1], [0, 0, 1, 1], [], []>} : vector<32x128xbf16>, vector<128x256xbf16>, vector<32x256xf32> -> vector<32x256xf32>
    %147 = arith.addf %141, %146 : vector<32x256xf32>
    %c0_159 = arith.constant 0 : index
    %c2_160 = arith.constant 2 : index
    %c2_161 = arith.constant 2 : index
    %c0_162 = arith.constant 0 : index
    %148 = vector.load %arg19[%c0_159, %c2_160, %c2_161, %c0_162] : memref<2x6x6x128xbf16, #tpu.memory_space<vmem>>, vector<2x4x4x128xbf16>
    %149 = vector.shape_cast %148 : vector<2x4x4x128xbf16> to vector<32x128xbf16>
    %c8_163 = arith.constant 8 : index
    %c0_164 = arith.constant 0 : index
    %c0_165 = arith.constant 0 : index
    %150 = vector.load %arg6[%c8_163, %c0_164, %c0_165] : memref<9x128x256xbf16, #tpu.memory_space<vmem>>, vector<1x128x256xbf16>
    %151 = vector.shape_cast %150 : vector<1x128x256xbf16> to vector<128x256xbf16>
    %cst_166 = arith.constant dense<0.000000e+00> : vector<32x256xf32>
    %152 = tpu.matmul %149, %151, %cst_166 {dimension_numbers = #tpu.dot_dimension_numbers<[1], [0], [0], [1], [0, 0, 1, 1], [], []>} : vector<32x128xbf16>, vector<128x256xbf16>, vector<32x256xf32> -> vector<32x256xf32>
    %153 = arith.addf %147, %152 : vector<32x256xf32>
    %c0_167 = arith.constant 0 : index
    %c0_168 = arith.constant 0 : index
    %154 = vector.load %arg7[%c0_167, %c0_168] : memref<1x256xf32, #tpu.memory_space<vmem>>, vector<1x256xf32>
    %155 = vector.broadcast %154 : vector<1x256xf32> to vector<32x256xf32>
    %156 = arith.addf %153, %155 : vector<32x256xf32>
    %cst_169 = arith.constant 0.000000e+00 : f32
    %157 = vector.broadcast %cst_169 : f32 to vector<32x256xf32>
    %158 = arith.maximumf %156, %157 : vector<32x256xf32>
    %159 = vector.shape_cast %158 : vector<32x256xf32> to vector<4x8x256xf32>
    %160 = vector.extract_strided_slice %159 {offsets = [0, 0, 0], sizes = [4, 4, 256], strides = [1, 1, 1]} : vector<4x8x256xf32> to vector<4x4x256xf32>
    %161 = vector.extract_strided_slice %159 {offsets = [0, 4, 0], sizes = [4, 4, 256], strides = [1, 1, 1]} : vector<4x8x256xf32> to vector<4x4x256xf32>
    %162 = arith.maximumf %160, %161 : vector<4x4x256xf32>
    %163 = vector.shape_cast %162 : vector<4x4x256xf32> to vector<8x2x256xf32>
    %164 = vector.extract_strided_slice %163 {offsets = [0, 0, 0], sizes = [8, 1, 256], strides = [1, 1, 1]} : vector<8x2x256xf32> to vector<8x1x256xf32>
    %165 = vector.shape_cast %164 : vector<8x1x256xf32> to vector<8x256xf32>
    %166 = vector.extract_strided_slice %163 {offsets = [0, 1, 0], sizes = [8, 1, 256], strides = [1, 1, 1]} : vector<8x2x256xf32> to vector<8x1x256xf32>
    %167 = vector.shape_cast %166 : vector<8x1x256xf32> to vector<8x256xf32>
    %168 = arith.maximumf %165, %167 : vector<8x256xf32>
    %169 = vector.shape_cast %168 : vector<8x256xf32> to vector<2x2x2x256xf32>
    %170 = arith.truncf %169 : vector<2x2x2x256xf32> to vector<2x2x2x256xbf16>
    %cst_170 = arith.constant 0.000000e+00 : bf16
    %171 = vector.broadcast %cst_170 : bf16 to vector<2x4x4x256xbf16>
    %c0_171 = arith.constant 0 : index
    %c0_172 = arith.constant 0 : index
    %c0_173 = arith.constant 0 : index
    %c0_174 = arith.constant 0 : index
    %172 = vector.load %arg20[%c0_171, %c0_172, %c0_173, %c0_174] : memref<2x4x4x256xbf16, #tpu.memory_space<vmem>>, vector<2x4x4x256xbf16>
    tpu.vector_store %arg20[%c0_171, %c0_172, %c0_173, %c0_174], %171 {strides = array<i32>} : memref<2x4x4x256xbf16, #tpu.memory_space<vmem>>, vector<2x4x4x256xbf16>,
    %c0_175 = arith.constant 0 : index
    %c1_176 = arith.constant 1 : index
    %c1_177 = arith.constant 1 : index
    %c0_178 = arith.constant 0 : index
    %173 = vector.load %arg20[%c0_175, %c1_176, %c1_177, %c0_178] : memref<2x4x4x256xbf16, #tpu.memory_space<vmem>>, vector<2x2x2x256xbf16>
    tpu.vector_store %arg20[%c0_175, %c1_176, %c1_177, %c0_178], %170 {strides = array<i32>} : memref<2x4x4x256xbf16, #tpu.memory_space<vmem>>, vector<2x2x2x256xbf16>,
    %cst_179 = arith.constant 0.000000e+00 : f32
    %174 = vector.broadcast %cst_179 : f32 to vector<8x512xf32>
    %c0_180 = arith.constant 0 : index
    %c0_181 = arith.constant 0 : index
    %c0_182 = arith.constant 0 : index
    %c0_183 = arith.constant 0 : index
    %175 = vector.load %arg20[%c0_180, %c0_181, %c0_182, %c0_183] : memref<2x4x4x256xbf16, #tpu.memory_space<vmem>>, vector<2x2x2x256xbf16>
    %176 = vector.shape_cast %175 : vector<2x2x2x256xbf16> to vector<8x256xbf16>
    %c0_184 = arith.constant 0 : index
    %c0_185 = arith.constant 0 : index
    %c0_186 = arith.constant 0 : index
    %177 = vector.load %arg8[%c0_184, %c0_185, %c0_186] : memref<9x256x512xbf16, #tpu.memory_space<vmem>>, vector<1x256x512xbf16>
    %178 = vector.shape_cast %177 : vector<1x256x512xbf16> to vector<256x512xbf16>
    %cst_187 = arith.constant dense<0.000000e+00> : vector<8x512xf32>
    %179 = tpu.matmul %176, %178, %cst_187 {dimension_numbers = #tpu.dot_dimension_numbers<[1], [0], [0], [1], [0, 0, 1, 1], [], []>} : vector<8x256xbf16>, vector<256x512xbf16>, vector<8x512xf32> -> vector<8x512xf32>
    %180 = arith.addf %174, %179 : vector<8x512xf32>
    %c0_188 = arith.constant 0 : index
    %c0_189 = arith.constant 0 : index
    %c1_190 = arith.constant 1 : index
    %c0_191 = arith.constant 0 : index
    %181 = vector.load %arg20[%c0_188, %c0_189, %c1_190, %c0_191] : memref<2x4x4x256xbf16, #tpu.memory_space<vmem>>, vector<2x2x2x256xbf16>
    %182 = vector.shape_cast %181 : vector<2x2x2x256xbf16> to vector<8x256xbf16>
    %c1_192 = arith.constant 1 : index
    %c0_193 = arith.constant 0 : index
    %c0_194 = arith.constant 0 : index
    %183 = vector.load %arg8[%c1_192, %c0_193, %c0_194] : memref<9x256x512xbf16, #tpu.memory_space<vmem>>, vector<1x256x512xbf16>
    %184 = vector.shape_cast %183 : vector<1x256x512xbf16> to vector<256x512xbf16>
    %cst_195 = arith.constant dense<0.000000e+00> : vector<8x512xf32>
    %185 = tpu.matmul %182, %184, %cst_195 {dimension_numbers = #tpu.dot_dimension_numbers<[1], [0], [0], [1], [0, 0, 1, 1], [], []>} : vector<8x256xbf16>, vector<256x512xbf16>, vector<8x512xf32> -> vector<8x512xf32>
    %186 = arith.addf %180, %185 : vector<8x512xf32>
    %c0_196 = arith.constant 0 : index
    %c0_197 = arith.constant 0 : index
    %c2_198 = arith.constant 2 : index
    %c0_199 = arith.constant 0 : index
    %187 = vector.load %arg20[%c0_196, %c0_197, %c2_198, %c0_199] : memref<2x4x4x256xbf16, #tpu.memory_space<vmem>>, vector<2x2x2x256xbf16>
    %188 = vector.shape_cast %187 : vector<2x2x2x256xbf16> to vector<8x256xbf16>
    %c2_200 = arith.constant 2 : index
    %c0_201 = arith.constant 0 : index
    %c0_202 = arith.constant 0 : index
    %189 = vector.load %arg8[%c2_200, %c0_201, %c0_202] : memref<9x256x512xbf16, #tpu.memory_space<vmem>>, vector<1x256x512xbf16>
    %190 = vector.shape_cast %189 : vector<1x256x512xbf16> to vector<256x512xbf16>
    %cst_203 = arith.constant dense<0.000000e+00> : vector<8x512xf32>
    %191 = tpu.matmul %188, %190, %cst_203 {dimension_numbers = #tpu.dot_dimension_numbers<[1], [0], [0], [1], [0, 0, 1, 1], [], []>} : vector<8x256xbf16>, vector<256x512xbf16>, vector<8x512xf32> -> vector<8x512xf32>
    %192 = arith.addf %186, %191 : vector<8x512xf32>
    %c0_204 = arith.constant 0 : index
    %c1_205 = arith.constant 1 : index
    %c0_206 = arith.constant 0 : index
    %c0_207 = arith.constant 0 : index
    %193 = vector.load %arg20[%c0_204, %c1_205, %c0_206, %c0_207] : memref<2x4x4x256xbf16, #tpu.memory_space<vmem>>, vector<2x2x2x256xbf16>
    %194 = vector.shape_cast %193 : vector<2x2x2x256xbf16> to vector<8x256xbf16>
    %c3_208 = arith.constant 3 : index
    %c0_209 = arith.constant 0 : index
    %c0_210 = arith.constant 0 : index
    %195 = vector.load %arg8[%c3_208, %c0_209, %c0_210] : memref<9x256x512xbf16, #tpu.memory_space<vmem>>, vector<1x256x512xbf16>
    %196 = vector.shape_cast %195 : vector<1x256x512xbf16> to vector<256x512xbf16>
    %cst_211 = arith.constant dense<0.000000e+00> : vector<8x512xf32>
    %197 = tpu.matmul %194, %196, %cst_211 {dimension_numbers = #tpu.dot_dimension_numbers<[1], [0], [0], [1], [0, 0, 1, 1], [], []>} : vector<8x256xbf16>, vector<256x512xbf16>, vector<8x512xf32> -> vector<8x512xf32>
    %198 = arith.addf %192, %197 : vector<8x512xf32>
    %c0_212 = arith.constant 0 : index
    %c1_213 = arith.constant 1 : index
    %c1_214 = arith.constant 1 : index
    %c0_215 = arith.constant 0 : index
    %199 = vector.load %arg20[%c0_212, %c1_213, %c1_214, %c0_215] : memref<2x4x4x256xbf16, #tpu.memory_space<vmem>>, vector<2x2x2x256xbf16>
    %200 = vector.shape_cast %199 : vector<2x2x2x256xbf16> to vector<8x256xbf16>
    %c4_216 = arith.constant 4 : index
    %c0_217 = arith.constant 0 : index
    %c0_218 = arith.constant 0 : index
    %201 = vector.load %arg8[%c4_216, %c0_217, %c0_218] : memref<9x256x512xbf16, #tpu.memory_space<vmem>>, vector<1x256x512xbf16>
    %202 = vector.shape_cast %201 : vector<1x256x512xbf16> to vector<256x512xbf16>
    %cst_219 = arith.constant dense<0.000000e+00> : vector<8x512xf32>
    %203 = tpu.matmul %200, %202, %cst_219 {dimension_numbers = #tpu.dot_dimension_numbers<[1], [0], [0], [1], [0, 0, 1, 1], [], []>} : vector<8x256xbf16>, vector<256x512xbf16>, vector<8x512xf32> -> vector<8x512xf32>
    %204 = arith.addf %198, %203 : vector<8x512xf32>
    %c0_220 = arith.constant 0 : index
    %c1_221 = arith.constant 1 : index
    %c2_222 = arith.constant 2 : index
    %c0_223 = arith.constant 0 : index
    %205 = vector.load %arg20[%c0_220, %c1_221, %c2_222, %c0_223] : memref<2x4x4x256xbf16, #tpu.memory_space<vmem>>, vector<2x2x2x256xbf16>
    %206 = vector.shape_cast %205 : vector<2x2x2x256xbf16> to vector<8x256xbf16>
    %c5_224 = arith.constant 5 : index
    %c0_225 = arith.constant 0 : index
    %c0_226 = arith.constant 0 : index
    %207 = vector.load %arg8[%c5_224, %c0_225, %c0_226] : memref<9x256x512xbf16, #tpu.memory_space<vmem>>, vector<1x256x512xbf16>
    %208 = vector.shape_cast %207 : vector<1x256x512xbf16> to vector<256x512xbf16>
    %cst_227 = arith.constant dense<0.000000e+00> : vector<8x512xf32>
    %209 = tpu.matmul %206, %208, %cst_227 {dimension_numbers = #tpu.dot_dimension_numbers<[1], [0], [0], [1], [0, 0, 1, 1], [], []>} : vector<8x256xbf16>, vector<256x512xbf16>, vector<8x512xf32> -> vector<8x512xf32>
    %210 = arith.addf %204, %209 : vector<8x512xf32>
    %c0_228 = arith.constant 0 : index
    %c2_229 = arith.constant 2 : index
    %c0_230 = arith.constant 0 : index
    %c0_231 = arith.constant 0 : index
    %211 = vector.load %arg20[%c0_228, %c2_229, %c0_230, %c0_231] : memref<2x4x4x256xbf16, #tpu.memory_space<vmem>>, vector<2x2x2x256xbf16>
    %212 = vector.shape_cast %211 : vector<2x2x2x256xbf16> to vector<8x256xbf16>
    %c6_232 = arith.constant 6 : index
    %c0_233 = arith.constant 0 : index
    %c0_234 = arith.constant 0 : index
    %213 = vector.load %arg8[%c6_232, %c0_233, %c0_234] : memref<9x256x512xbf16, #tpu.memory_space<vmem>>, vector<1x256x512xbf16>
    %214 = vector.shape_cast %213 : vector<1x256x512xbf16> to vector<256x512xbf16>
    %cst_235 = arith.constant dense<0.000000e+00> : vector<8x512xf32>
    %215 = tpu.matmul %212, %214, %cst_235 {dimension_numbers = #tpu.dot_dimension_numbers<[1], [0], [0], [1], [0, 0, 1, 1], [], []>} : vector<8x256xbf16>, vector<256x512xbf16>, vector<8x512xf32> -> vector<8x512xf32>
    %216 = arith.addf %210, %215 : vector<8x512xf32>
    %c0_236 = arith.constant 0 : index
    %c2_237 = arith.constant 2 : index
    %c1_238 = arith.constant 1 : index
    %c0_239 = arith.constant 0 : index
    %217 = vector.load %arg20[%c0_236, %c2_237, %c1_238, %c0_239] : memref<2x4x4x256xbf16, #tpu.memory_space<vmem>>, vector<2x2x2x256xbf16>
    %218 = vector.shape_cast %217 : vector<2x2x2x256xbf16> to vector<8x256xbf16>
    %c7_240 = arith.constant 7 : index
    %c0_241 = arith.constant 0 : index
    %c0_242 = arith.constant 0 : index
    %219 = vector.load %arg8[%c7_240, %c0_241, %c0_242] : memref<9x256x512xbf16, #tpu.memory_space<vmem>>, vector<1x256x512xbf16>
    %220 = vector.shape_cast %219 : vector<1x256x512xbf16> to vector<256x512xbf16>
    %cst_243 = arith.constant dense<0.000000e+00> : vector<8x512xf32>
    %221 = tpu.matmul %218, %220, %cst_243 {dimension_numbers = #tpu.dot_dimension_numbers<[1], [0], [0], [1], [0, 0, 1, 1], [], []>} : vector<8x256xbf16>, vector<256x512xbf16>, vector<8x512xf32> -> vector<8x512xf32>
    %222 = arith.addf %216, %221 : vector<8x512xf32>
    %c0_244 = arith.constant 0 : index
    %c2_245 = arith.constant 2 : index
    %c2_246 = arith.constant 2 : index
    %c0_247 = arith.constant 0 : index
    %223 = vector.load %arg20[%c0_244, %c2_245, %c2_246, %c0_247] : memref<2x4x4x256xbf16, #tpu.memory_space<vmem>>, vector<2x2x2x256xbf16>
    %224 = vector.shape_cast %223 : vector<2x2x2x256xbf16> to vector<8x256xbf16>
    %c8_248 = arith.constant 8 : index
    %c0_249 = arith.constant 0 : index
    %c0_250 = arith.constant 0 : index
    %225 = vector.load %arg8[%c8_248, %c0_249, %c0_250] : memref<9x256x512xbf16, #tpu.memory_space<vmem>>, vector<1x256x512xbf16>
    %226 = vector.shape_cast %225 : vector<1x256x512xbf16> to vector<256x512xbf16>
    %cst_251 = arith.constant dense<0.000000e+00> : vector<8x512xf32>
    %227 = tpu.matmul %224, %226, %cst_251 {dimension_numbers = #tpu.dot_dimension_numbers<[1], [0], [0], [1], [0, 0, 1, 1], [], []>} : vector<8x256xbf16>, vector<256x512xbf16>, vector<8x512xf32> -> vector<8x512xf32>
    %228 = arith.addf %222, %227 : vector<8x512xf32>
    %c0_252 = arith.constant 0 : index
    %c0_253 = arith.constant 0 : index
    %229 = vector.load %arg9[%c0_252, %c0_253] : memref<1x512xf32, #tpu.memory_space<vmem>>, vector<1x512xf32>
    %230 = vector.broadcast %229 : vector<1x512xf32> to vector<8x512xf32>
    %231 = arith.addf %228, %230 : vector<8x512xf32>
    %cst_254 = arith.constant 0.000000e+00 : f32
    %232 = vector.broadcast %cst_254 : f32 to vector<8x512xf32>
    %233 = arith.maximumf %231, %232 : vector<8x512xf32>
    %234 = vector.shape_cast %233 : vector<8x512xf32> to vector<2x4x512xf32>
    %235 = vector.extract_strided_slice %234 {offsets = [0, 0, 0], sizes = [2, 2, 512], strides = [1, 1, 1]} : vector<2x4x512xf32> to vector<2x2x512xf32>
    %236 = vector.extract_strided_slice %234 {offsets = [0, 2, 0], sizes = [2, 2, 512], strides = [1, 1, 1]} : vector<2x4x512xf32> to vector<2x2x512xf32>
    %237 = arith.maximumf %235, %236 : vector<2x2x512xf32>
    %238 = vector.extract_strided_slice %237 {offsets = [0, 0, 0], sizes = [2, 1, 512], strides = [1, 1, 1]} : vector<2x2x512xf32> to vector<2x1x512xf32>
    %239 = vector.shape_cast %238 : vector<2x1x512xf32> to vector<2x512xf32>
    %240 = vector.extract_strided_slice %237 {offsets = [0, 1, 0], sizes = [2, 1, 512], strides = [1, 1, 1]} : vector<2x2x512xf32> to vector<2x1x512xf32>
    %241 = vector.shape_cast %240 : vector<2x1x512xf32> to vector<2x512xf32>
    %242 = arith.maximumf %239, %241 : vector<2x512xf32>
    %243 = vector.shape_cast %242 : vector<2x512xf32> to vector<2x1x1x512xf32>
    %244 = arith.truncf %243 : vector<2x1x1x512xf32> to vector<2x1x1x512xbf16>
    %245 = vector.shape_cast %244 : vector<2x1x1x512xbf16> to vector<2x1x512xbf16>
    %246 = arith.extf %245 : vector<2x1x512xbf16> to vector<2x1x512xf32>
    %cst_255 = arith.constant dense<0.000000e+00> : vector<2x512xf32>
    %247 = vector.multi_reduction <add>, %246, %cst_255 [1] : vector<2x1x512xf32> to vector<2x512xf32>
    %cst_256 = arith.constant 1.000000e+00 : f32
    %248 = vector.broadcast %cst_256 : f32 to vector<2x512xf32>
    %249 = arith.divf %247, %248 : vector<2x512xf32>
    %250 = arith.truncf %249 : vector<2x512xf32> to vector<2x512xbf16>
    %c0_257 = arith.constant 0 : index
    %c0_258 = arith.constant 0 : index
    %251 = vector.load %arg10[%c0_257, %c0_258] : memref<512x512xbf16, #tpu.memory_space<vmem>>, vector<512x512xbf16>
    %cst_259 = arith.constant dense<0.000000e+00> : vector<2x512xf32>
    %252 = tpu.matmul %250, %251, %cst_259 {dimension_numbers = #tpu.dot_dimension_numbers<[1], [0], [0], [1], [0, 0, 1, 1], [], []>} : vector<2x512xbf16>, vector<512x512xbf16>, vector<2x512xf32> -> vector<2x512xf32>
    %c0_260 = arith.constant 0 : index
    %c0_261 = arith.constant 0 : index
    %253 = vector.load %arg11[%c0_260, %c0_261] : memref<1x512xf32, #tpu.memory_space<vmem>>, vector<1x512xf32>
    %254 = vector.broadcast %253 : vector<1x512xf32> to vector<2x512xf32>
    %255 = arith.addf %252, %254 : vector<2x512xf32>
    %cst_262 = arith.constant 0.000000e+00 : f32
    %256 = vector.broadcast %cst_262 : f32 to vector<2x512xf32>
    %257 = arith.maximumf %255, %256 : vector<2x512xf32>
    %258 = arith.truncf %257 : vector<2x512xf32> to vector<2x512xbf16>
    %c0_263 = arith.constant 0 : index
    %c0_264 = arith.constant 0 : index
    %259 = vector.load %arg12[%c0_263, %c0_264] : memref<512x256xbf16, #tpu.memory_space<vmem>>, vector<512x256xbf16>
    %cst_265 = arith.constant dense<0.000000e+00> : vector<2x256xf32>
    %260 = tpu.matmul %258, %259, %cst_265 {dimension_numbers = #tpu.dot_dimension_numbers<[1], [0], [0], [1], [0, 0, 1, 1], [], []>} : vector<2x512xbf16>, vector<512x256xbf16>, vector<2x256xf32> -> vector<2x256xf32>
    %c0_266 = arith.constant 0 : index
    %c0_267 = arith.constant 0 : index
    %261 = vector.load %arg13[%c0_266, %c0_267] : memref<1x256xf32, #tpu.memory_space<vmem>>, vector<1x256xf32>
    %262 = vector.broadcast %261 : vector<1x256xf32> to vector<2x256xf32>
    %263 = arith.addf %260, %262 : vector<2x256xf32>
    %264 = arith.truncf %263 : vector<2x256xf32> to vector<2x256xbf16>
    %c0_268 = arith.constant 0 : index
    %c0_269 = arith.constant 0 : index
    %265 = vector.load %arg14[%c0_268, %c0_269] : memref<256x128xbf16, #tpu.memory_space<vmem>>, vector<256x128xbf16>
    %cst_270 = arith.constant dense<0.000000e+00> : vector<2x128xf32>
    %266 = tpu.matmul %264, %265, %cst_270 {dimension_numbers = #tpu.dot_dimension_numbers<[1], [0], [0], [1], [0, 0, 1, 1], [], []>} : vector<2x256xbf16>, vector<256x128xbf16>, vector<2x128xf32> -> vector<2x128xf32>
    %c0_271 = arith.constant 0 : index
    %c0_272 = arith.constant 0 : index
    %267 = vector.load %arg15[%c0_271, %c0_272] : memref<1x128xf32, #tpu.memory_space<vmem>>, vector<1x128xf32>
    %268 = vector.broadcast %267 : vector<1x128xf32> to vector<2x128xf32>
    %269 = arith.addf %266, %268 : vector<2x128xf32>
    %c0_273 = arith.constant 0 : index
    %c0_274 = arith.constant 0 : index
    %270 = vector.load %arg16[%c0_273, %c0_274] : memref<2x256xf32, #tpu.memory_space<vmem>>, vector<2x256xf32>
    tpu.vector_store %arg16[%c0_273, %c0_274], %263 {strides = array<i32>} : memref<2x256xf32, #tpu.memory_space<vmem>>, vector<2x256xf32>,
    %c0_275 = arith.constant 0 : index
    %c0_276 = arith.constant 0 : index
    %271 = vector.load %arg17[%c0_275, %c0_276] : memref<2x128xf32, #tpu.memory_space<vmem>>, vector<2x128xf32>
    tpu.vector_store %arg17[%c0_275, %c0_276], %269 {strides = array<i32>} : memref<2x128xf32, #tpu.memory_space<vmem>>, vector<2x128xf32>,
    return
  }
  func.func @transform_0(%arg0: i32) -> (i32, i32, i32, i32) {
    %c0_i32 = arith.constant 0 : i32
    %c0_i32_0 = arith.constant 0 : i32
    %c0_i32_1 = arith.constant 0 : i32
    %c0_i32_2 = arith.constant 0 : i32
    return %arg0, %c0_i32, %c0_i32_0, %c0_i32_1 : i32, i32, i32, i32
  }
  func.func @transform_1(%arg0: i32) -> (i32, i32) {
    %c0_i32 = arith.constant 0 : i32
    %c0_i32_0 = arith.constant 0 : i32
    %c0_i32_1 = arith.constant 0 : i32
    return %c0_i32, %c0_i32_0 : i32, i32
  }
  func.func @transform_2(%arg0: i32) -> (i32, i32) {
    %c0_i32 = arith.constant 0 : i32
    %c0_i32_0 = arith.constant 0 : i32
    %c0_i32_1 = arith.constant 0 : i32
    return %c0_i32, %c0_i32_0 : i32, i32
  }
  func.func @transform_3(%arg0: i32) -> (i32, i32, i32) {
    %c0_i32 = arith.constant 0 : i32
    %c0_i32_0 = arith.constant 0 : i32
    %c0_i32_1 = arith.constant 0 : i32
    %c0_i32_2 = arith.constant 0 : i32
    return %c0_i32, %c0_i32_0, %c0_i32_1 : i32, i32, i32
  }
  func.func @transform_4(%arg0: i32) -> (i32, i32) {
    %c0_i32 = arith.constant 0 : i32
    %c0_i32_0 = arith.constant 0 : i32
    %c0_i32_1 = arith.constant 0 : i32
    return %c0_i32, %c0_i32_0 : i32, i32
  }
  func.func @transform_5(%arg0: i32) -> (i32, i32, i32) {
    %c0_i32 = arith.constant 0 : i32
    %c0_i32_0 = arith.constant 0 : i32
    %c0_i32_1 = arith.constant 0 : i32
    %c0_i32_2 = arith.constant 0 : i32
    return %c0_i32, %c0_i32_0, %c0_i32_1 : i32, i32, i32
  }
  func.func @transform_6(%arg0: i32) -> (i32, i32) {
    %c0_i32 = arith.constant 0 : i32
    %c0_i32_0 = arith.constant 0 : i32
    %c0_i32_1 = arith.constant 0 : i32
    return %c0_i32, %c0_i32_0 : i32, i32
  }
  func.func @transform_7(%arg0: i32) -> (i32, i32, i32) {
    %c0_i32 = arith.constant 0 : i32
    %c0_i32_0 = arith.constant 0 : i32
    %c0_i32_1 = arith.constant 0 : i32
    %c0_i32_2 = arith.constant 0 : i32
    return %c0_i32, %c0_i32_0, %c0_i32_1 : i32, i32, i32
  }
  func.func @transform_8(%arg0: i32) -> (i32, i32) {
    %c0_i32 = arith.constant 0 : i32
    %c0_i32_0 = arith.constant 0 : i32
    %c0_i32_1 = arith.constant 0 : i32
    return %c0_i32, %c0_i32_0 : i32, i32
  }
  func.func @transform_9(%arg0: i32) -> (i32, i32) {
    %c0_i32 = arith.constant 0 : i32
    %c0_i32_0 = arith.constant 0 : i32
    %c0_i32_1 = arith.constant 0 : i32
    return %c0_i32, %c0_i32_0 : i32, i32
  }
  func.func @transform_10(%arg0: i32) -> (i32, i32) {
    %c0_i32 = arith.constant 0 : i32
    %c0_i32_0 = arith.constant 0 : i32
    %c0_i32_1 = arith.constant 0 : i32
    return %c0_i32, %c0_i32_0 : i32, i32
  }
  func.func @transform_11(%arg0: i32) -> (i32, i32) {
    %c0_i32 = arith.constant 0 : i32
    %c0_i32_0 = arith.constant 0 : i32
    %c0_i32_1 = arith.constant 0 : i32
    return %c0_i32, %c0_i32_0 : i32, i32
  }
  func.func @transform_12(%arg0: i32) -> (i32, i32) {
    %c0_i32 = arith.constant 0 : i32
    %c0_i32_0 = arith.constant 0 : i32
    %c0_i32_1 = arith.constant 0 : i32
    return %c0_i32, %c0_i32_0 : i32, i32
  }
  func.func @transform_13(%arg0: i32) -> (i32, i32) {
    %c0_i32 = arith.constant 0 : i32
    %c0_i32_0 = arith.constant 0 : i32
    %c0_i32_1 = arith.constant 0 : i32
    return %c0_i32, %c0_i32_0 : i32, i32
  }
  func.func @transform_14(%arg0: i32) -> (i32, i32) {
    %c0_i32 = arith.constant 0 : i32
    %c0_i32_0 = arith.constant 0 : i32
    %c0_i32_1 = arith.constant 0 : i32
    return %c0_i32, %c0_i32_0 : i32, i32
  }
  func.func @transform_15(%arg0: i32) -> (i32, i32) {
    %c0_i32 = arith.constant 0 : i32
    %c0_i32_0 = arith.constant 0 : i32
    return %arg0, %c0_i32 : i32, i32
  }
  func.func @transform_16(%arg0: i32) -> (i32, i32) {
    %c0_i32 = arith.constant 0 : i32
    %c0_i32_0 = arith.constant 0 : i32
    return %arg0, %c0_i32 : i32, i32
  }
}

</mosaic_0001>

<bundles_post_ra>
// kernel: simple_cifar_net_moon_forward.1
= control target key start
LH: loop header
LB: loop body
LE: loop exit
PB: predicated region body
PF: predicated region fallthrough
CT: control target
= control target key end

     0   :  { %s23789_s0 = inlined_call_operand.hbm [shape: bf16[2,16,16,27], index: 0, kind: input, shape index: {}]   ;;  %s23790_s1 = inlined_call_operand.hbm [shape: bf16[27,64], index: 1, kind: input, shape index: {}]   ;;  %s23791_s2 = inlined_call_operand.hbm [shape: f32[1,64], index: 2, kind: input, shape index: {}]   ;;  %s23792_s3 = inlined_call_operand.hbm [shape: bf16[9,64,128], index: 3, kind: input, shape index: {}]   ;;  %s23793_s4 = inlined_call_operand.hbm [shape: f32[1,128], index: 4, kind: input, shape index: {}]   ;;  %s23794_s5 = inlined_call_operand.hbm [shape: bf16[9,128,256], index: 5, kind: input, shape index: {}]   ;;  %s23795_s6 = inlined_call_operand.hbm [shape: f32[1,256], index: 6, kind: input, shape index: {}]   ;;  %s23796_s7 = inlined_call_operand.hbm [shape: bf16[9,256,512], index: 7, kind: input, shape index: {}]   ;;  %s23797_s8 = inlined_call_operand.hbm [shape: f32[1,512], index: 8, kind: input, shape index: {}]   ;;  %s23798_s9 = inlined_call_operand.hbm [shape: bf16[512,512], index: 9, kind: input, shape index: {}]   ;;  %s23799_s10 = inlined_call_operand.hbm [shape: f32[1,512], index: 10, kind: input, shape index: {}]   ;;  %s23800_s11 = inlined_call_operand.hbm [shape: bf16[512,256], index: 11, kind: input, shape index: {}]   ;;  %s23801_s12 = inlined_call_operand.hbm [shape: f32[1,256], index: 12, kind: input, shape index: {}]   ;;  %s23802_s13 = inlined_call_operand.hbm [shape: bf16[256,128], index: 13, kind: input, shape index: {}]   ;;  %s23803_s14 = inlined_call_operand.hbm [shape: f32[1,128], index: 14, kind: input, shape index: {}]   ;;  %s23804_s15 = inlined_call_operand.hbm [shape: f32[2,256], index: 15, kind: output, shape index: {0}]   ;;  %s23805_s16 = inlined_call_operand.hbm [shape: f32[2,128], index: 16, kind: output, shape index: {1}]  }
   0x1   :  { %23815 = sst [smem:[#allocation44_spill]] %s23789_s0 }
   0x2   :  { %22 = vsyncpa [#allocation6], 0 }
   0x3   :  { %23 = vsyncpa [#allocation9], 0 }
   0x4   :  { %24 = vsyncpa [#allocation12], 0 }
   0x5   :  { %25 = vsyncpa [#allocation15], 0 }
   0x6   :  { %26 = vsyncpa [#allocation18], 0 }
   0x7   :  { %27 = vsyncpa [#allocation21], 0 }
   0x8   :  { %28 = vsyncpa [#allocation24], 0 }
   0x9   :  { %29 = vsyncpa [#allocation27], 0 }
   0xa   :  { %30 = vsyncpa [#allocation7], 0 }
   0xb   :  { %31 = vsyncpa [#allocation31], 0  ;;  %s21316_s21 = smov [#allocation8]   ;;  %s21317_s23 = smov [#allocation11]  }
   0xc   :  { %s49_s22 = sshll.u32 %s21316_s21, 4  ;;  %s71_s24 = sshll.u32 %s21317_s23, 4  ;;  %s50_s22 = int_to_ptr.vmem [resolvable:$true] %s49_s22  ;;  %s21428_s24 = int_to_ptr.vmem [resolvable:$true] %s71_s24 }
   0xd   :  { %s20922_s27 = scalar_lea.hbm %s23790_s1, 256 }
   0xe   :  { %p20923_p0 = scmp.ne.s32.totalorder %s23790_s1, %s20922_s27  ;;  %p20926_p1 = scmp.lt.u32.totalorder %s20922_s27, %s23790_s1 }
  0x10   :  { %p20928_p2 = pnand %p20926_p1, %p20923_p0 }
  0x12   :  { %20931 = shalt.err (!%p20928_p2)
}
  0x13   :  { %s20932_s17 = scalar_lea.vmem %s50_s22, 256  ;;  %p20937_p4 = scmp.lt.s32.totalorder %s50_s22, %s50_s22 }
  0x14   :  { %p20933_p3 = scmp.ne.s32.totalorder %s50_s22, %s20932_s17  ;;  %p20938_p5 = scmp.lt.s32.totalorder %s20932_s17, %s20932_s17 }
  0x16   :  { %p20939_p6 = por %p20938_p5, %p20937_p4 }
  0x18   :  { %p20940_p7 = pnand %p20939_p6, %p20933_p3 }
  0x1a   :  { %20943 = shalt.err (!%p20940_p7)
}
  0x1b   :  { %s23807_s18 = smov 64   ;;  %s23809_s19 = smov 4  }
  0x1c   :  { %55 = dma.hbm_to_vmem [thread:$0]  %s23790_s1, 256, %s50_s22, [#allocation9], %s23807_s18, %s23807_s18, %s23809_s19  }
  0x1d   :  { %s20944_s26 = scalar_lea.hbm %s23792_s3, 4608 }
  0x1e   :  { %p20945_p8 = scmp.ne.s32.totalorder %s23792_s3, %s20944_s26  ;;  %p20948_p9 = scmp.lt.u32.totalorder %s20944_s26, %s23792_s3 }
  0x20   :  { %p20950_p10 = pnand %p20948_p9, %p20945_p8 }
  0x22   :  { %20953 = shalt.err (!%p20950_p10)
}
  0x23   :  { %s20954_s0 = scalar_lea.vmem %s21428_s24, 4608  ;;  %p20959_p12 = scmp.lt.s32.totalorder %s21428_s24, %s21428_s24 }
  0x24   :  { %p20955_p11 = scmp.ne.s32.totalorder %s21428_s24, %s20954_s0  ;;  %p20960_p13 = scmp.lt.s32.totalorder %s20954_s0, %s20954_s0 }
  0x26   :  { %p20961_p0 = por %p20960_p13, %p20959_p12 }
  0x28   :  { %p20962_p1 = pnand %p20961_p0, %p20955_p11 }
  0x2a   :  { %20965 = shalt.err (!%p20962_p1)
}
  0x2b   :  { %77 = dma.hbm_to_vmem [thread:$0]  %s23792_s3, 4608, %s21428_s24, [#allocation12], %s23807_s18, %s23807_s18, %s23809_s19  }
  0x2c   :  { %s21320_s17 = smov [#allocation14]   ;;  %s20966_s25 = scalar_lea.hbm %s23794_s5, 18432 }
  0x2d   :  { %s93_s20 = sshll.u32 %s21320_s17, 4  ;;  %p20967_p2 = scmp.ne.s32.totalorder %s23794_s5, %s20966_s25  ;;  %s94_s20 = int_to_ptr.vmem [resolvable:$true] %s93_s20 }
  0x2e   :  { %p20970_p3 = scmp.lt.u32.totalorder %s20966_s25, %s23794_s5 }
  0x30   :  { %p20972_p4 = pnand %p20970_p3, %p20967_p2 }
  0x32   :  { %20975 = shalt.err (!%p20972_p4)
}
  0x33   :  { %s20976_s30 = scalar_lea.vmem %s94_s20, 18432  ;;  %p20981_p6 = scmp.lt.s32.totalorder %s94_s20, %s94_s20 }
  0x34   :  { %p20977_p5 = scmp.ne.s32.totalorder %s94_s20, %s20976_s30  ;;  %p20982_p7 = scmp.lt.s32.totalorder %s20976_s30, %s20976_s30 }
  0x36   :  { %p20983_p8 = por %p20982_p7, %p20981_p6 }
  0x38   :  { %p20984_p9 = pnand %p20983_p8, %p20977_p5 }
  0x3a   :  { %20987 = shalt.err (!%p20984_p9)
}
  0x3b   :  { %s21321_s3 = smov 128   ;;  %s21322_s24 = smov 8  }
  0x3c   :  { %99 = dma.hbm_to_vmem [thread:$0]  %s23794_s5, 18432, %s94_s20, [#allocation15], %s21321_s3, %s21321_s3, %s21322_s24  }
  0x3d   :  { %s21323_s22 = smov [#allocation17]   ;;  %s20988_s25 = scalar_lea.hbm %s23796_s7, 73728 }
  0x3e   :  { %s115_s17 = sshll.u32 %s21323_s22, 4  ;;  %p20989_p10 = scmp.ne.s32.totalorder %s23796_s7, %s20988_s25  ;;  %s116_s17 = int_to_ptr.vmem [resolvable:$true] %s115_s17 }
  0x3f   :  { %p20992_p11 = scmp.lt.u32.totalorder %s20988_s25, %s23796_s7 }
  0x41   :  { %p20994_p12 = pnand %p20992_p11, %p20989_p10 }
  0x43   :  { %20997 = shalt.err (!%p20994_p12)
}
  0x44   :  { %s20998_s30 = scalar_lea.vmem %s116_s17, 73728  ;;  %p21003_p0 = scmp.lt.s32.totalorder %s116_s17, %s116_s17 }
  0x45   :  { %p20999_p13 = scmp.ne.s32.totalorder %s116_s17, %s20998_s30  ;;  %p21004_p1 = scmp.lt.s32.totalorder %s20998_s30, %s20998_s30 }
  0x47   :  { %p21005_p2 = por %p21004_p1, %p21003_p0 }
  0x49   :  { %p21006_p3 = pnand %p21005_p2, %p20999_p13 }
  0x4b   :  { %21009 = shalt.err (!%p21006_p3)
}
  0x4c   :  { %s21324_s5 = smov 256   ;;  %s21325_s20 = smov 16  }
  0x4d   :  { %121 = dma.hbm_to_vmem [thread:$0]  %s23796_s7, 73728, %s116_s17, [#allocation18], %s21324_s5, %s21324_s5, %s21325_s20  }
  0x4e   :  { %s21326_s22 = smov [#allocation20]   ;;  %s21327_s23 = smov [#allocation23]  }
  0x4f   :  { %s137_s21 = sshll.u32 %s21326_s22, 4  ;;  %s159_s26 = sshll.u32 %s21327_s23, 4  ;;  %s138_s21 = int_to_ptr.vmem [resolvable:$true] %s137_s21  ;;  %s21492_s26 = int_to_ptr.vmem [resolvable:$true] %s159_s26 }
  0x50   :  { %s21010_s28 = scalar_lea.hbm %s23798_s9, 16384 }
  0x51   :  { %p21011_p4 = scmp.ne.s32.totalorder %s23798_s9, %s21010_s28  ;;  %p21014_p5 = scmp.lt.u32.totalorder %s21010_s28, %s23798_s9 }
  0x53   :  { %p21016_p6 = pnand %p21014_p5, %p21011_p4 }
  0x55   :  { %21019 = shalt.err (!%p21016_p6)
}
  0x56   :  { %s21020_s7 = scalar_lea.vmem %s138_s21, 16384  ;;  %p21025_p8 = scmp.lt.s32.totalorder %s138_s21, %s138_s21 }
  0x57   :  { %p21021_p7 = scmp.ne.s32.totalorder %s138_s21, %s21020_s7  ;;  %p21026_p9 = scmp.lt.s32.totalorder %s21020_s7, %s21020_s7 }
  0x59   :  { %p21027_p10 = por %p21026_p9, %p21025_p8 }
  0x5b   :  { %p21028_p11 = pnand %p21027_p10, %p21021_p7 }
  0x5d   :  { %21031 = shalt.err (!%p21028_p11)
}
  0x5e   :  { %143 = dma.hbm_to_vmem [thread:$0]  %s23798_s9, 16384, %s138_s21, [#allocation21], %s21324_s5, %s21324_s5, %s21325_s20  }
  0x5f   :  { %s21032_s23 = scalar_lea.hbm %s23800_s11, 8192 }
  0x60   :  { %p21033_p12 = scmp.ne.s32.totalorder %s23800_s11, %s21032_s23  ;;  %p21036_p13 = scmp.lt.u32.totalorder %s21032_s23, %s23800_s11 }
  0x62   :  { %p21038_p0 = pnand %p21036_p13, %p21033_p12 }
  0x64   :  { %21041 = shalt.err (!%p21038_p0)
}
  0x65   :  { %s21042_s28 = scalar_lea.vmem %s21492_s26, 8192  ;;  %p21047_p2 = scmp.lt.s32.totalorder %s21492_s26, %s21492_s26 }
  0x66   :  { %p21043_p1 = scmp.ne.s32.totalorder %s21492_s26, %s21042_s28  ;;  %p21048_p3 = scmp.lt.s32.totalorder %s21042_s28, %s21042_s28 }
  0x68   :  { %p21049_p4 = por %p21048_p3, %p21047_p2 }
  0x6a   :  { %p21050_p5 = pnand %p21049_p4, %p21043_p1 }
  0x6c   :  { %21053 = shalt.err (!%p21050_p5)
}
  0x6d   :  { %165 = dma.hbm_to_vmem [thread:$0]  %s23800_s11, 8192, %s21492_s26, [#allocation24], %s21321_s3, %s21321_s3, %s21322_s24  }
  0x6e   :  { %s21328_s20 = smov [#allocation26]   ;;  %s21329_s29 = smov [#allocation5]  }
  0x6f   :  { %s181_s21 = sshll.u32 %s21328_s20, 4  ;;  %s37_s30 = sshll.u32 %s21329_s29, 4  ;;  %s182_s21 = int_to_ptr.vmem [resolvable:$true] %s181_s21  ;;  %s21526_s30 = int_to_ptr.vmem [resolvable:$true] %s37_s30 }
  0x70   :  { %s21054_s0 = scalar_lea.hbm %s23802_s13, 2048 }
  0x71   :  { %p21055_p6 = scmp.ne.s32.totalorder %s23802_s13, %s21054_s0  ;;  %p21058_p7 = scmp.lt.u32.totalorder %s21054_s0, %s23802_s13 }
  0x73   :  { %p21060_p8 = pnand %p21058_p7, %p21055_p6 }
  0x75   :  { %21063 = shalt.err (!%p21060_p8)
}
  0x76   :  { %s21064_s11 = scalar_lea.vmem %s182_s21, 2048  ;;  %p21069_p10 = scmp.lt.s32.totalorder %s182_s21, %s182_s21 }
  0x77   :  { %p21065_p9 = scmp.ne.s32.totalorder %s182_s21, %s21064_s11  ;;  %p21070_p11 = scmp.lt.s32.totalorder %s21064_s11, %s21064_s11 }
  0x79   :  { %p21071_p12 = por %p21070_p11, %p21069_p10 }
  0x7b   :  { %p21072_p13 = pnand %p21071_p12, %p21065_p9 }
  0x7d   :  { %21075 = shalt.err (!%p21072_p13)
}
  0x7e   :  { %s23816_s3 = smov 4   ;;  %s23817_s24 = smov 64  }
  0x7f   :  { %187 = dma.hbm_to_vmem [thread:$0]  %s23802_s13, 2048, %s182_s21, [#allocation27], %s23817_s24, %s23817_s24, %s23816_s3  }
  0x80   :  { %s23818_s28 = sld [smem:[#allocation44_spill]] }
  0x86   :  { %s21076_s9 = scalar_lea.hbm %s23818_s28, 4096 }
  0x87   :  { %p21077_p0 = scmp.ne.s32.totalorder %s23818_s28, %s21076_s9  ;;  %p21080_p1 = scmp.lt.u32.totalorder %s21076_s9, %s23818_s28 }
  0x89   :  { %p21082_p2 = pnand %p21080_p1, %p21077_p0 }
  0x8b   :  { %21085 = shalt.err (!%p21082_p2)
}
  0x8c   :  { %s21086_s17 = scalar_lea.vmem %s21526_s30, 4096  ;;  %p21091_p4 = scmp.lt.s32.totalorder %s21526_s30, %s21526_s30 }
  0x8d   :  { %p21087_p3 = scmp.ne.s32.totalorder %s21526_s30, %s21086_s17  ;;  %p21092_p5 = scmp.lt.s32.totalorder %s21086_s17, %s21086_s17 }
  0x8f   :  { %p21093_p6 = por %p21092_p5, %p21091_p4 }
  0x91   :  { %p21094_p7 = pnand %p21093_p6, %p21087_p3 }
  0x93   :  { %21097 = shalt.err (!%p21094_p7)
}
  0x94   :  { %43 = dma.hbm_to_vmem [thread:$0]  %s23818_s28, 4096, %s21526_s30, [#allocation6], %s23817_s24, %s23817_s24, %s23816_s3  }
  0x95   :  { %s21330_s0 = smov [#allocation10]   ;;  %s21331_s22 = smov [#allocation13]  }
  0x96   :  { %s62_s1 = sshll.u32 %s21330_s0, 4  ;;  %s84_s23 = sshll.u32 %s21331_s22, 4  ;;  %s63_s1 = int_to_ptr.vmem [resolvable:$true] %s62_s1  ;;  %s85_s23 = int_to_ptr.vmem [resolvable:$true] %s84_s23 }
  0x97   :  { %s21098_s26 = scalar_lea.hbm %s23791_s2, 16 }
  0x98   :  { %p21099_p8 = scmp.ne.s32.totalorder %s23791_s2, %s21098_s26  ;;  %p21102_p9 = scmp.lt.u32.totalorder %s21098_s26, %s23791_s2 }
  0x9a   :  { %p21104_p10 = pnand %p21102_p9, %p21099_p8 }
  0x9c   :  { %21107 = shalt.err (!%p21104_p10)
}
  0x9d   :  { %s21108_s30 = scalar_lea.vmem %s63_s1, 16  ;;  %s21112_s3 = scalar_lea.vmem %s63_s1, 32 }
  0x9e   :  { %p21109_p11 = scmp.ne.s32.totalorder %s63_s1, %s21108_s30  ;;  %p21113_p12 = scmp.lt.s32.totalorder %s63_s1, %s63_s1 }
  0x9f   :  { %p21114_p13 = scmp.lt.s32.totalorder %s21112_s3, %s21108_s30 }
  0xa1   :  { %p21115_p0 = por %p21114_p13, %p21113_p12 }
  0xa3   :  { %p21116_p1 = pnand %p21115_p0, %p21109_p11 }
  0xa5   :  { %21119 = shalt.err (!%p21116_p1)
}
  0xa6   :  { %65 = dma.hbm_to_vmem [thread:$0]  %s23791_s2, 16, %s63_s1, [#allocation9]  }
  0xa7   :  { %s21120_s29 = scalar_lea.hbm %s23793_s4, 16 }
  0xa8   :  { %p21121_p2 = scmp.ne.s32.totalorder %s23793_s4, %s21120_s29  ;;  %p21124_p3 = scmp.lt.u32.totalorder %s21120_s29, %s23793_s4 }
  0xaa   :  { %p21126_p4 = pnand %p21124_p3, %p21121_p2 }
  0xac   :  { %21129 = shalt.err (!%p21126_p4)
}
  0xad   :  { %s21130_s0 = scalar_lea.vmem %s85_s23, 16  ;;  %s21134_s22 = scalar_lea.vmem %s85_s23, 32 }
  0xae   :  { %p21131_p5 = scmp.ne.s32.totalorder %s85_s23, %s21130_s0  ;;  %p21135_p6 = scmp.lt.s32.totalorder %s85_s23, %s85_s23 }
  0xaf   :  { %p21136_p7 = scmp.lt.s32.totalorder %s21134_s22, %s21130_s0 }
  0xb1   :  { %p21137_p8 = por %p21136_p7, %p21135_p6 }
  0xb3   :  { %p21138_p9 = pnand %p21137_p8, %p21131_p5 }
  0xb5   :  { %21141 = shalt.err (!%p21138_p9)
}
  0xb6   :  { %87 = dma.hbm_to_vmem [thread:$0]  %s23793_s4, 16, %s85_s23, [#allocation12]  }
  0xb7   :  { %s21332_s25 = smov [#allocation16]   ;;  %s21333_s26 = smov [#allocation19]  }
  0xb8   :  { %s106_s11 = sshll.u32 %s21332_s25, 4  ;;  %s128_s18 = sshll.u32 %s21333_s26, 4  ;;  %s107_s11 = int_to_ptr.vmem [resolvable:$true] %s106_s11  ;;  %s129_s18 = int_to_ptr.vmem [resolvable:$true] %s128_s18 }
  0xb9   :  { %s21142_s9 = scalar_lea.hbm %s23795_s6, 32 }
  0xba   :  { %p21143_p10 = scmp.ne.s32.totalorder %s23795_s6, %s21142_s9  ;;  %p21146_p11 = scmp.lt.u32.totalorder %s21142_s9, %s23795_s6 }
  0xbc   :  { %p21148_p12 = pnand %p21146_p11, %p21143_p10 }
  0xbe   :  { %21151 = shalt.err (!%p21148_p12)
}
  0xbf   :  { %s21152_s4 = scalar_lea.vmem %s107_s11, 32  ;;  %p21157_p0 = scmp.lt.s32.totalorder %s107_s11, %s107_s11 }
  0xc0   :  { %p21153_p13 = scmp.ne.s32.totalorder %s107_s11, %s21152_s4  ;;  %p21158_p1 = scmp.lt.s32.totalorder %s21152_s4, %s21152_s4 }
  0xc2   :  { %p21159_p2 = por %p21158_p1, %p21157_p0 }
  0xc4   :  { %p21160_p3 = pnand %p21159_p2, %p21153_p13 }
  0xc6   :  { %21163 = shalt.err (!%p21160_p3)
}
  0xc7   :  { %109 = dma.hbm_to_vmem [thread:$0]  %s23795_s6, 32, %s107_s11, [#allocation15]  }
  0xc8   :  { %s21164_s7 = scalar_lea.hbm %s23797_s8, 64 }
  0xc9   :  { %p21165_p4 = scmp.ne.s32.totalorder %s23797_s8, %s21164_s7  ;;  %p21168_p5 = scmp.lt.u32.totalorder %s21164_s7, %s23797_s8 }
  0xcb   :  { %p21170_p6 = pnand %p21168_p5, %p21165_p4 }
  0xcd   :  { %21173 = shalt.err (!%p21170_p6)
}
  0xce   :  { %s21174_s22 = scalar_lea.vmem %s129_s18, 64  ;;  %p21179_p8 = scmp.lt.s32.totalorder %s129_s18, %s129_s18 }
  0xcf   :  { %p21175_p7 = scmp.ne.s32.totalorder %s129_s18, %s21174_s22  ;;  %p21180_p9 = scmp.lt.s32.totalorder %s21174_s22, %s21174_s22 }
  0xd1   :  { %p21181_p10 = por %p21180_p9, %p21179_p8 }
  0xd3   :  { %p21182_p11 = pnand %p21181_p10, %p21175_p7 }
  0xd5   :  { %21185 = shalt.err (!%p21182_p11)
}
  0xd6   :  { %131 = dma.hbm_to_vmem [thread:$0]  %s23797_s8, 64, %s129_s18, [#allocation18]  }
  0xd7   :  { %s21334_s1 = smov [#allocation22]   ;;  %s21335_s11 = smov [#allocation25]  }
  0xd8   :  { %s150_s25 = sshll.u32 %s21334_s1, 4  ;;  %s172_s26 = sshll.u32 %s21335_s11, 4  ;;  %s151_s25 = int_to_ptr.vmem [resolvable:$true] %s150_s25  ;;  %s173_s26 = int_to_ptr.vmem [resolvable:$true] %s172_s26 }
  0xd9   :  { %s21186_s9 = scalar_lea.hbm %s23799_s10, 64 }
  0xda   :  { %p21187_p12 = scmp.ne.s32.totalorder %s23799_s10, %s21186_s9  ;;  %p21190_p13 = scmp.lt.u32.totalorder %s21186_s9, %s23799_s10 }
  0xdc   :  { %p21192_p0 = pnand %p21190_p13, %p21187_p12 }
  0xde   :  { %21195 = shalt.err (!%p21192_p0)
}
  0xdf   :  { %s21196_s8 = scalar_lea.vmem %s151_s25, 64  ;;  %p21201_p2 = scmp.lt.s32.totalorder %s151_s25, %s151_s25 }
  0xe0   :  { %p21197_p1 = scmp.ne.s32.totalorder %s151_s25, %s21196_s8  ;;  %p21202_p3 = scmp.lt.s32.totalorder %s21196_s8, %s21196_s8 }
  0xe2   :  { %p21203_p4 = por %p21202_p3, %p21201_p2 }
  0xe4   :  { %p21204_p5 = pnand %p21203_p4, %p21197_p1 }
  0xe6   :  { %21207 = shalt.err (!%p21204_p5)
}
  0xe7   :  { %153 = dma.hbm_to_vmem [thread:$0]  %s23799_s10, 64, %s151_s25, [#allocation21]  }
  0xe8   :  { %s21208_s20 = scalar_lea.hbm %s23801_s12, 32 }
  0xe9   :  { %p21209_p6 = scmp.ne.s32.totalorder %s23801_s12, %s21208_s20  ;;  %p21212_p7 = scmp.lt.u32.totalorder %s21208_s20, %s23801_s12 }
  0xeb   :  { %p21214_p8 = pnand %p21212_p7, %p21209_p6 }
  0xed   :  { %21217 = shalt.err (!%p21214_p8)
}
  0xee   :  { %s21218_s21 = scalar_lea.vmem %s173_s26, 32  ;;  %p21223_p10 = scmp.lt.s32.totalorder %s173_s26, %s173_s26 }
  0xef   :  { %p21219_p9 = scmp.ne.s32.totalorder %s173_s26, %s21218_s21  ;;  %p21224_p11 = scmp.lt.s32.totalorder %s21218_s21, %s21218_s21 }
  0xf1   :  { %p21225_p12 = por %p21224_p11, %p21223_p10 }
  0xf3   :  { %p21226_p13 = pnand %p21225_p12, %p21219_p9 }
  0xf5   :  { %21229 = shalt.err (!%p21226_p13)
}
  0xf6   :  { %175 = dma.hbm_to_vmem [thread:$0]  %s23801_s12, 32, %s173_s26, [#allocation24]  }
  0xf7   :  { %s21336_s22 = smov [#allocation28]   ;;  %s21230_s25 = scalar_lea.hbm %s23803_s14, 16 }
  0xf8   :  { %s194_s6 = sshll.u32 %s21336_s22, 4  ;;  %p21231_p0 = scmp.ne.s32.totalorder %s23803_s14, %s21230_s25  ;;  %s195_s6 = int_to_ptr.vmem [resolvable:$true] %s194_s6 }
  0xf9   :  { %p21234_p1 = scmp.lt.u32.totalorder %s21230_s25, %s23803_s14 }
  0xfb   :  { %p21236_p2 = pnand %p21234_p1, %p21231_p0 }
  0xfd   :  { %21239 = shalt.err (!%p21236_p2)
}
  0xfe   :  { %s21240_s30 = scalar_lea.vmem %s195_s6, 16  ;;  %s21244_s12 = scalar_lea.vmem %s195_s6, 32 }
  0xff   :  { %p21241_p3 = scmp.ne.s32.totalorder %s195_s6, %s21240_s30  ;;  %p21245_p4 = scmp.lt.s32.totalorder %s195_s6, %s195_s6 }
 0x100   :  { %p21246_p5 = scmp.lt.s32.totalorder %s21244_s12, %s21240_s30 }
 0x102   :  { %p21247_p6 = por %p21246_p5, %p21245_p4 }
 0x104   :  { %p21248_p7 = pnand %p21247_p6, %p21241_p3 }
 0x106   :  { %21251 = shalt.err (!%p21248_p7)
}
 0x107   :  { %197 = dma.hbm_to_vmem [thread:$0]  %s23803_s14, 16, %s195_s6, [#allocation27]  }
 0x108   :  { %21296 = dma.done.wait [#allocation6], 4096  }
 0x109   :  { %21297 = vsyncadd [#allocation6], 4294963200 }
 0x10a   :  { %21298 = dma.done.wait [#allocation9], 272  }
 0x10b   :  { %21299 = vsyncadd [#allocation9], 4294967024 }
 0x10c   :  { %21300 = dma.done.wait [#allocation12], 4624  }
 0x10d   :  { %21301 = vsyncadd [#allocation12], 4294962672 }
 0x10e   :  { %21302 = dma.done.wait [#allocation15], 18464  }
 0x10f   :  { %21303 = vsyncadd [#allocation15], 4294948832 }
 0x110   :  { %21304 = dma.done.wait [#allocation18], 73792  }
 0x111   :  { %21305 = vsyncadd [#allocation18], 4294893504 }
 0x112   :  { %21306 = dma.done.wait [#allocation21], 16448  }
 0x113   :  { %21307 = vsyncadd [#allocation21], 4294950848 }
 0x114   :  { %21308 = dma.done.wait [#allocation24], 8224  }
 0x115   :  { %21309 = vsyncadd [#allocation24], 4294959072 }
 0x116   :  { %21310 = dma.done.wait [#allocation27], 2064  }
 0x117   :  { %21311 = vsyncadd [#allocation27], 4294965232  ;;  %vm587_vm0 = vcmask 1044480   ;;  %vm588_vm1 = vcmask 1045504   ;;  %v21337_v0 = vmov 65535   ;;  %vm490_vm2 = vcmask 220160  }
 0x118   :  { %v589_v1 = vsel %vm587_vm0, 4294967295, %v21337_v0  ;;  %v19414_v2 = vld [vmem:[#allocation8] sm:$0xff]   ;;  %v19415_v4 = vld [vmem:[#allocation8 + $0x8] sm:$0x3f]   ;;  %v19418_v8 = vld [vmem:[#allocation5 + $0x10] sm:$0xff]   ;;  %vm2325_vm3 = vcmask 516096   ;;  %v1015_v42 = vlaneseq }
 0x119   :  { %v590_v3 = vsel %vm588_vm1, %v589_v1, 0  ;;  %18889 = vmatprep.subr.bf16.mxu0 %v19414_v2  ;;  %v19416_v5 = vld [vmem:[#allocation5] sm:$0xff]   ;;  %19173 = vmatprep.subr.bf16.mxu1 %v19414_v2  ;;  %v19417_v7 = vld [vmem:[#allocation5 + $0x8] sm:$0xff]   ;;  %v19426_v11 = vld [vmem:[#allocation5 + $0xb0] sm:$0xff]   ;;  %v23811_v38 = vmov 0   ;;  %vm2323_vm4 = vcmask 519168  }
 0x11a   :  { %18890 = vmatpush3.bf16.msra.mxu0 %v19414_v2  ;;  %v592_v6 = vand.u32 %v19415_v4, %v590_v3  ;;  %19175 = vmatpush3.bf16.msra.mxu1 %v19414_v2  ;;  %v19422_v9 = vld [vmem:[#allocation5 + $0xa0] sm:$0xff]   ;;  %v19424_v10 = vld [vmem:[#allocation5 + $0xa8] sm:$0xff]   ;;  %v19419_v12 = vld [vmem:[#allocation5 + $0x18] sm:$0xff]   ;;  %2328 = vst.msk [vmem:[#allocation2 + $0xc] sm:$0x1] %vm2325_vm3, %v23811_v38  ;;  %v21782_v45 = vshrl.u32 %v1015_v42, 7 }
 0x11b   :  { %18893 = vmatprep.mubr.msk.bf16.mxu0 %vm490_vm2, %v19416_v5  ;;  %18933 = vmatprep.mubr.msk.bf16.mxu1 %vm490_vm2, %v19422_v9  ;;  %v19420_v13 = vld [vmem:[#allocation5 + $0x20] sm:$0xff]   ;;  %v19428_v14 = vld [vmem:[#allocation5 + $0xb8] sm:$0xff]   ;;  %v19421_v16 = vld [vmem:[#allocation5 + $0x28] sm:$0xff]   ;;  %2326 = vst.msk [vmem:[#allocation2 + $0x4] sm:$0x1] %vm2325_vm3, %v23811_v38  ;;  %vm2879_vm6 = vcmask 1042434  }
 0x11c   :  { %18891 = vmatprep.subr.bf16.mxu0 %v592_v6  ;;  %19174 = vmatprep.subr.bf16.mxu1 %v592_v6  ;;  %v19430_v15 = vld [vmem:[#allocation5 + $0xc0] sm:$0xff]   ;;  %v19423_v17 = vld [vmem:[#allocation5 + $0x30] sm:$0xff]   ;;  %v19432_v18 = vld [vmem:[#allocation5 + $0xc8] sm:$0xff]   ;;  %2330 = vst.msk [vmem:[#allocation2 + $0x14] sm:$0x1] %vm2325_vm3, %v23811_v38  ;;  %vm2882_vm7 = vcmask 1043459  }
 0x11d   :  { %v19434_v19 = vld [vmem:[#allocation5 + $0xd0] sm:$0xff]   ;;  %v19425_v20 = vld [vmem:[#allocation5 + $0x38] sm:$0xff]   ;;  %v19427_v21 = vld [vmem:[#allocation5 + $0x40] sm:$0xff]   ;;  %2332 = vst.msk [vmem:[#allocation2 + $0x1c] sm:$0x1] %vm2325_vm3, %v23811_v38  ;;  %vm2885_vm8 = vcmask 1044484  }
 0x11e   :  { %18892 = vmatpush3.bf16.msra.mxu0 %v592_v6  ;;  %19176 = vmatpush3.bf16.msra.mxu1 %v592_v6  ;;  %v19436_v22 = vld [vmem:[#allocation5 + $0xd8] sm:$0xff]   ;;  %v19438_v23 = vld [vmem:[#allocation5 + $0xe0] sm:$0xff]   ;;  %v19429_v24 = vld [vmem:[#allocation5 + $0x48] sm:$0xff]   ;;  %2334 = vst.msk [vmem:[#allocation2 + $0x24] sm:$0x1] %vm2325_vm3, %v23811_v38  ;;  %vm2888_vm9 = vcmask 1045509  }
 0x11f   :  { %v19431_v25 = vld [vmem:[#allocation5 + $0x50] sm:$0xff]   ;;  %v19440_v26 = vld [vmem:[#allocation5 + $0xe8] sm:$0xff]   ;;  %v19433_v28 = vld [vmem:[#allocation5 + $0x58] sm:$0xff]   ;;  %2336 = vst.msk [vmem:[#allocation2 + $0x2c] sm:$0x1] %vm2325_vm3, %v23811_v38  ;;  %vm2891_vm10 = vcmask 1046534  }
 0x120   :  { %v19442_v27 = vld [vmem:[#allocation5 + $0xf0] sm:$0xff]   ;;  %v19435_v29 = vld [vmem:[#allocation5 + $0x60] sm:$0xff]   ;;  %v19444_v30 = vld [vmem:[#allocation5 + $0xf8] sm:$0xff]   ;;  %2338 = vst.msk [vmem:[#allocation2 + $0x34] sm:$0x1] %vm2325_vm3, %v23811_v38  ;;  %vm2894_vm11 = vcmask 1047559  }
 0x121   :  { %18894 = vmatmul.mubr.msk.bf16.vlgmr.msra.gmra.mrb[0].mxu0 %vm490_vm2, %v19417_v7  ;;  %18934 = vmatmul.mubr.msk.bf16.vlgmr.msra.gmra.mrb[0].mxu1 %vm490_vm2, %v19424_v10  ;;  %v19437_v31 = vld [vmem:[#allocation5 + $0x68] sm:$0xff]   ;;  %v19439_v32 = vld [vmem:[#allocation5 + $0x70] sm:$0xff]   ;;  %v19441_v33 = vld [vmem:[#allocation5 + $0x78] sm:$0xff]   ;;  %2340 = vst.msk [vmem:[#allocation2 + $0x3c] sm:$0x1] %vm2325_vm3, %v23811_v38  ;;  %s21341_s14 = smov [#allocation29]  }
 0x122   :  { %18897 = vmatprep.mubr.msk.bf16.mxu0 %vm490_vm2, %v19418_v8  ;;  %18937 = vmatprep.mubr.msk.bf16.mxu1 %vm490_vm2, %v19426_v11  ;;  %v19443_v34 = vld [vmem:[#allocation5 + $0x80] sm:$0xff]   ;;  %v19445_v35 = vld [vmem:[#allocation5 + $0x88] sm:$0xff]   ;;  %v19446_v36 = vld [vmem:[#allocation5 + $0x90] sm:$0xff]   ;;  %2342 = vst.msk [vmem:[#allocation2 + $0x44] sm:$0x1] %vm2325_vm3, %v23811_v38  ;;  %s16807_s24 = sshll.u32 %s21341_s14, 4  ;;  %s16808_s24 = int_to_ptr.vmem [resolvable:$true] %s16807_s24 }
 0x123   :  { %v19447_v37 = vld [vmem:[#allocation5 + $0x98] sm:$0xff]   ;;  %2344 = vst.msk [vmem:[#allocation2 + $0x4c] sm:$0x1] %vm2325_vm3, %v23811_v38  ;;  %2346 = vst.msk [vmem:[#allocation2 + $0x54] sm:$0x1] %vm2325_vm3, %v23811_v38  ;;  %s21252_s28 = scalar_lea.vmem %s16808_s24, 64  ;;  %p21257_p9 = scmp.lt.s32.totalorder %s16808_s24, %s16808_s24 }
 0x124   :  { %2348 = vst.msk [vmem:[#allocation2 + $0x5c] sm:$0x1] %vm2325_vm3, %v23811_v38  ;;  %2350 = vst.msk [vmem:[#allocation2 + $0x64] sm:$0x1] %vm2325_vm3, %v23811_v38  ;;  %v21780_v39 = vld [vmem:[#allocation10] ss:$0 sm:$0xff]  ;;  %p21253_p8 = scmp.ne.s32.totalorder %s16808_s24, %s21252_s28  ;;  %p21258_p10 = scmp.lt.s32.totalorder %s21252_s28, %s21252_s28 }
 0x125   :  { %2352 = vst.msk [vmem:[#allocation2 + $0x6c] sm:$0x1] %vm2325_vm3, %v23811_v38  ;;  %2354 = vst.msk [vmem:[#allocation2 + $0x74] sm:$0x1] %vm2325_vm3, %v23811_v38  ;;  %v21339_v40 = vmov 1983009808  }
 0x126   :  { %2356 = vst.msk [vmem:[#allocation2 + $0x7c] sm:$0x1] %vm2325_vm3, %v23811_v38  ;;  %2358 = vst.msk [vmem:[#allocation2 + $0x84] sm:$0x1] %vm2325_vm3, %v23811_v38  ;;  %v1013_v41 = vunpack.c.l.s4 %v21339_v40  ;;  %vm3163_vm5 = vsmask.f32 256  ;;  %p21259_p11 = por %p21258_p10, %p21257_p9 }
 0x127   :  { %2360 = vst.msk [vmem:[#allocation2 + $0x8c] sm:$0x1] %vm2325_vm3, %v23811_v38  ;;  %2362 = vst.msk [vmem:[#allocation2 + $0x94] sm:$0x1] %vm2325_vm3, %v23811_v38  ;;  %vm3157_vm12 = vsmask.f32 7938 }
 0x128   :  { %2364 = vst.msk [vmem:[#allocation2 + $0x9c] sm:$0x1] %vm2325_vm3, %v23811_v38  ;;  %6546 = vst [vmem:[#allocation3] sm:$0x7] %v23811_v38  ;;  %v1014_v44 = vunpack.c.0.s8 %v1013_v41  ;;  %vm3298_vm15 = vsmask.f32 3328  ;;  %p21260_p12 = pnand %p21259_p11, %p21253_p8 }
 0x129   :  { %18898 = vmatmul.mubr.msk.bf16.gmra.mrb[4].mxu0 %vm490_vm2, %v19419_v12  ;;  %18938 = vmatmul.mubr.msk.bf16.gmra.mrb[4].mxu1 %vm490_vm2, %v19428_v14  ;;  %6547 = vst [vmem:[#allocation3 + $0x4] sm:$0x7] %v23811_v38  ;;  %6548 = vst [vmem:[#allocation3 + $0x8] sm:$0x7] %v23811_v38  ;;  %vm3299_vm0 = vsmask.f32 7440 }
 0x12a   :  { %18901 = vmatprep.mubr.msk.bf16.mxu0 %vm490_vm2, %v19420_v13  ;;  %18941 = vmatprep.mubr.msk.bf16.mxu1 %vm490_vm2, %v19430_v15  ;;  %6549 = vst [vmem:[#allocation3 + $0xc] sm:$0x7] %v23811_v38  ;;  %6550 = vst [vmem:[#allocation3 + $0x10] sm:$0x7] %v23811_v38  ;;  %v21789_v57 = vsub.s32 %v1014_v44, %v21782_v45 }
 0x12b   :  { %6551 = vst [vmem:[#allocation3 + $0x14] sm:$0x7] %v23811_v38  ;;  %6552 = vst [vmem:[#allocation3 + $0x18] sm:$0x7] %v23811_v38 }
 0x12c   :  { %6553 = vst [vmem:[#allocation3 + $0x1c] sm:$0x7] %v23811_v38  ;;  %6554 = vst [vmem:[#allocation3 + $0x20] sm:$0x7] %v23811_v38 }
 0x12d   :  { %6555 = vst [vmem:[#allocation3 + $0x24] sm:$0x7] %v23811_v38  ;;  %6556 = vst [vmem:[#allocation3 + $0x28] sm:$0x7] %v23811_v38 }
 0x12e   :  { %6557 = vst [vmem:[#allocation3 + $0x2c] sm:$0x7] %v23811_v38  ;;  %9737 = vst [vmem:[#allocation4] sm:$0xf] %v23811_v38 }
 0x12f   :  { %9738 = vst [vmem:[#allocation4 + $0x4] sm:$0xf] %v23811_v38  ;;  %9739 = vst [vmem:[#allocation4 + $0x8] sm:$0xf] %v23811_v38 }
 0x130   :  { %9740 = vst [vmem:[#allocation4 + $0xc] sm:$0xf] %v23811_v38  ;;  %9741 = vst [vmem:[#allocation4 + $0x10] sm:$0xf] %v23811_v38 }
 0x131   :  { %18902 = vmatmul.mubr.msk.bf16.gmra.mrb[8].mxu0 %vm490_vm2, %v19421_v16  ;;  %18942 = vmatmul.mubr.msk.bf16.gmra.mrb[8].mxu1 %vm490_vm2, %v19432_v18  ;;  %9742 = vst [vmem:[#allocation4 + $0x14] sm:$0xf] %v23811_v38  ;;  %9743 = vst [vmem:[#allocation4 + $0x18] sm:$0xf] %v23811_v38 }
 0x132   :  { %18905 = vmatprep.mubr.msk.bf16.mxu0 %vm490_vm2, %v19423_v17  ;;  %18945 = vmatprep.mubr.msk.bf16.mxu1 %vm490_vm2, %v19434_v19  ;;  %9744 = vst [vmem:[#allocation4 + $0x1c] sm:$0xf] %v23811_v38  ;;  %2327 = vst.msk [vmem:[#allocation2 + $0x8] sm:$0xf] %vm2323_vm4, %v23811_v38 }
 0x133   :  { %2324 = vst.msk [vmem:[#allocation2] sm:$0xf] %vm2323_vm4, %v23811_v38  ;;  %2329 = vst.msk [vmem:[#allocation2 + $0x10] sm:$0xf] %vm2323_vm4, %v23811_v38 }
 0x134   :  { %2331 = vst.msk [vmem:[#allocation2 + $0x18] sm:$0xf] %vm2323_vm4, %v23811_v38  ;;  %2333 = vst.msk [vmem:[#allocation2 + $0x20] sm:$0xf] %vm2323_vm4, %v23811_v38 }
 0x135   :  { %2335 = vst.msk [vmem:[#allocation2 + $0x28] sm:$0xf] %vm2323_vm4, %v23811_v38  ;;  %2337 = vst.msk [vmem:[#allocation2 + $0x30] sm:$0xf] %vm2323_vm4, %v23811_v38 }
 0x136   :  { %2339 = vst.msk [vmem:[#allocation2 + $0x38] sm:$0xf] %vm2323_vm4, %v23811_v38  ;;  %2341 = vst.msk [vmem:[#allocation2 + $0x40] sm:$0xf] %vm2323_vm4, %v23811_v38 }
 0x137   :  { %2343 = vst.msk [vmem:[#allocation2 + $0x48] sm:$0xf] %vm2323_vm4, %v23811_v38  ;;  %2345 = vst.msk [vmem:[#allocation2 + $0x50] sm:$0xf] %vm2323_vm4, %v23811_v38 }
 0x138   :  { %2347 = vst.msk [vmem:[#allocation2 + $0x58] sm:$0xf] %vm2323_vm4, %v23811_v38  ;;  %2349 = vst.msk [vmem:[#allocation2 + $0x60] sm:$0xf] %vm2323_vm4, %v23811_v38 }
 0x139   :  { %18906 = vmatmul.mubr.msk.bf16.gmra.mrb[12].mxu0 %vm490_vm2, %v19425_v20  ;;  %18946 = vmatmul.mubr.msk.bf16.gmra.mrb[12].mxu1 %vm490_vm2, %v19436_v22  ;;  %2351 = vst.msk [vmem:[#allocation2 + $0x68] sm:$0xf] %vm2323_vm4, %v23811_v38  ;;  %2353 = vst.msk [vmem:[#allocation2 + $0x70] sm:$0xf] %vm2323_vm4, %v23811_v38 }
 0x13a   :  { %18909 = vmatprep.mubr.msk.bf16.mxu0 %vm490_vm2, %v19427_v21  ;;  %18949 = vmatprep.mubr.msk.bf16.mxu1 %vm490_vm2, %v19438_v23  ;;  %2355 = vst.msk [vmem:[#allocation2 + $0x78] sm:$0xf] %vm2323_vm4, %v23811_v38  ;;  %2357 = vst.msk [vmem:[#allocation2 + $0x80] sm:$0xf] %vm2323_vm4, %v23811_v38 }
 0x13b   :  { %2359 = vst.msk [vmem:[#allocation2 + $0x88] sm:$0xf] %vm2323_vm4, %v23811_v38  ;;  %2361 = vst.msk [vmem:[#allocation2 + $0x90] sm:$0xf] %vm2323_vm4, %v23811_v38 }
 0x13c   :  { %2363 = vst.msk [vmem:[#allocation2 + $0x98] sm:$0xf] %vm2323_vm4, %v23811_v38  ;;  %23819 = vst [vmem:[#allocation42_spill] sm:$0xff] %v21782_v45 }
 0x13d   :  { %vm21827_vm13 = vmand %vm2325_vm3, %vm3163_vm5  ;;  %vm3937_vm3 = vcmask 1042432  }
 0x13e   :  { %vm21867_vm14 = vmand %vm2323_vm4, %vm3157_vm12  ;;  %vm3938_vm4 = vcmask 1046532  }
 0x13f   :  { %vm22175_vm1 = vmor %vm3298_vm15, %vm3299_vm0  ;;  %vm6892_vm15 = vsmask.f32 5392  ;;  %vm6894_vm0 = vsmask.f32 7448 }
 0x141   :  { %18910 = vmatmul.mubr.msk.bf16.gmra.mrb[16].mxu0 %vm490_vm2, %v19429_v24  ;;  %18950 = vmatmul.mubr.msk.bf16.gmra.mrb[16].mxu1 %vm490_vm2, %v19440_v26 }
 0x142   :  { %18913 = vmatprep.mubr.msk.bf16.mxu0 %vm490_vm2, %v19431_v25  ;;  %18953 = vmatprep.mubr.msk.bf16.mxu1 %vm490_vm2, %v19442_v27 }
 0x149   :  { %18914 = vmatmul.mubr.msk.bf16.gmra.mrb[20].mxu0 %vm490_vm2, %v19433_v28  ;;  %18954 = vmatmul.mubr.msk.bf16.gmra.mrb[20].mxu1 %vm490_vm2, %v19444_v30 }
 0x14a   :  { %18917 = vmatprep.mubr.msk.bf16.mxu0 %vm490_vm2, %v19435_v29 }
 0x151   :  { %18918 = vmatmul.mubr.msk.bf16.gmra.mrb[24].mxu0 %vm490_vm2, %v19437_v31 }
 0x152   :  { %18921 = vmatprep.mubr.msk.bf16.mxu0 %vm490_vm2, %v19439_v32 }
 0x159   :  { %18922 = vmatmul.mubr.msk.bf16.gmra.mrb[28].mxu0 %vm490_vm2, %v19441_v33 }
 0x15a   :  { %18925 = vmatprep.mubr.msk.bf16.mxu0 %vm490_vm2, %v19443_v34 }
 0x161   :  { %18926 = vmatmul.mubr.msk.bf16.gmra.mrb[32].mxu0 %vm490_vm2, %v19445_v35 }
 0x162   :  { %18929 = vmatprep.mubr.msk.bf16.mxu0 %vm490_vm2, %v19446_v36 }
 0x169   :  { %18930 = vmatmul.mubr.msk.bf16.gmra.mrb[36].mxu0 %vm490_vm2, %v19447_v37  ;;  %vm3582_vm2 = vcmask 523264  }
 0x16a   :  { %7173 = vmatprep.mubr.bf16.mxu0 %v23811_v38 }
 0x1f4   :  { %v18895_v43 = vpop.f32.mrb[0].mxu0  ;;  %v18935_v50 = vpop.f32.mrb[0].mxu1 }
 0x1f5   :  { %v637_v46 = vadd.f32 %v18895_v43, %v21780_v39  ;;  %v628_v47 = vpop.f32.mrb[1].mxu0  ;;  %v797_v54 = vadd.f32 %v18935_v50, %v21780_v39  ;;  %v788_v55 = vpop.f32.mrb[1].mxu1 }
 0x1f6   :  { %v629_v48 = vadd.f32 %v21780_v39, %v628_v47  ;;  %v18896_v49 = vpop.f32.mrb[2].mxu0  ;;  %v789_v59 = vadd.f32 %v21780_v39, %v788_v55  ;;  %v18936_v60 = vpop.f32.mrb[2].mxu1 }
 0x1f7   :  { %v885_v51 = vmax.f32 %v637_v46, 0.0  ;;  %v640_v52 = vadd.f32 %v18896_v49, %v21780_v39  ;;  %v631_v53 = vpop.f32.mrb[3].mxu0  ;;  %v925_v62 = vmax.f32 %v797_v54, 0.0  ;;  %v21794_v63 = vadd.f32 %v18936_v60, %v21780_v39  ;;  %v791_v0 = vpop.f32.mrb[3].mxu1 }
 0x1f8   :  { %v883_v56 = vmax.f32 %v629_v48, 0.0  ;;  %v632_v58 = vadd.f32 %v21780_v39, %v631_v53  ;;  %v923_v3 = vmax.f32 %v789_v59, 0.0  ;;  %v21797_v4 = vadd.f32 %v21780_v39, %v791_v0  ;;  %v3165_v0 = vld [vmem:[#allocation2 + $0xc] sm:$0x1] }
 0x1f9   :  { %v886_v61 = vmax.f32 %v640_v52, 0.0 }
 0x1fa   :  { %v947_v1 = vmax.f32 %v883_v56, %v885_v51  ;;  %v884_v2 = vmax.f32 %v632_v58, 0.0  ;;  %v21800_v9 = vmax.f32 %v923_v3, %v925_v62 }
 0x1fc   :  { %v1011_v5 = vcombine.high %v947_v1, %v947_v1  ;;  %v1018_v6 = vrot.slane %v947_v1, %v21789_v57  ;;  %v948_v7 = vmax.f32 %v884_v2, %v886_v61  ;;  %v18899_v8 = vpop.f32.mrb[4].mxu0  ;;  %v21808_v19 = vpop.f32.mrb[4].mxu1 }
 0x1fd   :  { %v21803_v10 = vadd.f32 %v18899_v8, %v21780_v39  ;;  %v644_v11 = vpop.f32.mrb[5].mxu0  ;;  %v21818_v25 = vpop.f32.mrb[5].mxu1 }
 0x1fe   :  { %v1025_v14 = vrot.slane %v1011_v5, %v21789_v57  ;;  %v1026_v15 = vcombine.high %v1018_v6, %v1018_v6  ;;  %v16904_v16 = vrot.slane %v1018_v6, 9  ;;  %v1028_v17 = vcombine.high %v948_v7, %v948_v7  ;;  %v18900_v18 = vpop.f32.mrb[6].mxu0  ;;  %v21820_v30 = vpop.f32.mrb[6].mxu1 }
 0x1ff   :  { %v1035_v20 = vrot.slane %v948_v7, %v21789_v57  ;;  %v889_v21 = vmax.f32 %v21803_v10, 0.0  ;;  %v645_v22 = vadd.f32 %v21780_v39, %v644_v11  ;;  %v21814_v23 = vadd.f32 %v18900_v18, %v21780_v39  ;;  %v21816_v24 = vpop.f32.mrb[7].mxu0  ;;  %v21823_v35 = vpop.f32.mrb[7].mxu1 }
 0x200   :  { %v1027_v26 = vcombine.high %v1025_v14, %v1025_v14  ;;  %v16905_v27 = vrot.slane %v1026_v15, 9  ;;  %v16906_v28 = vrot.slane %v1025_v14, 9  ;;  %v2067_v29 = vmax.f32 %v1018_v6, %v16904_v16 }
 0x201   :  { %v1042_v31 = vrot.slane %v1028_v17, %v21789_v57  ;;  %v1043_v32 = vcombine.high %v1035_v20, %v1035_v20  ;;  %v16908_v33 = vrot.slane %v1035_v20, 9  ;;  %v887_v34 = vmax.f32 %v645_v22, 0.0 }
 0x202   :  { %v16907_v36 = vrot.slane %v1027_v26, 9  ;;  %v2068_v37 = vmax.f32 %v1026_v15, %v16905_v27  ;;  %v2069_v40 = vmax.f32 %v1025_v14, %v16906_v28  ;;  %v18549_v41 = vpack.c.bf16 %v2067_v29, %v2067_v29 }
 0x203   :  { %v1044_v42 = vcombine.high %v1042_v31, %v1042_v31  ;;  %v16909_v43 = vrot.slane %v1043_v32, 9  ;;  %v16910_v44 = vrot.slane %v1042_v31, 9  ;;  %v2071_v46 = vmax.f32 %v1035_v20, %v16908_v33 }
 0x204   :  { %v2070_v47 = vmax.f32 %v1027_v26, %v16907_v36  ;;  %v18550_v48 = vpack.c.bf16 %v2068_v37, %v2068_v37  ;;  %v18551_v49 = vpack.c.bf16 %v2069_v40, %v2069_v40  ;;  %v2749_v50 = vunpack.c.l.b16 %v18549_v41  ;;  %v18903_v51 = vpop.f32.mrb[8].mxu0  ;;  %v21833_v2 = vpop.f32.mrb[8].mxu1 }
 0x205   :  { %v16911_v52 = vrot.slane %v1044_v42, 9  ;;  %v2072_v53 = vmax.f32 %v1043_v32, %v16909_v43  ;;  %v2073_v54 = vmax.f32 %v1042_v31, %v16910_v44  ;;  %v18553_v55 = vpack.c.bf16 %v2071_v46, %v2071_v46  ;;  %v21831_v58 = vpop.f32.mrb[9].mxu0  ;;  %v21837_v10 = vpop.f32.mrb[9].mxu1 }
 0x206   :  { %v18552_v59 = vpack.c.bf16 %v2070_v47, %v2070_v47  ;;  %v2750_v60 = vunpack.c.l.b16 %v18550_v48  ;;  %v2751_v61 = vunpack.c.l.b16 %v18551_v49  ;;  %v2877_v62 = vrot.slane %v2749_v50, 7  ;;  %v18904_v1 = vpop.f32.mrb[10].mxu0  ;;  %v21839_v17 = vpop.f32.mrb[10].mxu1 }
 0x207   :  { %v2074_v3 = vmax.f32 %v1044_v42, %v16911_v52  ;;  %v18554_v5 = vpack.c.bf16 %v2072_v53, %v2072_v53  ;;  %v18555_v6 = vpack.c.bf16 %v2073_v54, %v2073_v54  ;;  %v2753_v7 = vunpack.c.l.b16 %v18553_v55  ;;  %v21835_v8 = vpop.f32.mrb[11].mxu0  ;;  %v21841_v27 = vpop.f32.mrb[11].mxu1 }
 0x208   :  { %v2752_v11 = vunpack.c.l.b16 %v18552_v59  ;;  %v2878_v14 = vrot.slane %v2750_v60, 6  ;;  %v2881_v15 = vrot.slane %v2751_v61, 5  ;;  %v949_v16 = vmax.f32 %v887_v34, %v889_v21 }
 0x209   :  { %v2754_v18 = vunpack.c.l.b16 %v18554_v5  ;;  %v2755_v20 = vunpack.c.l.b16 %v18555_v6  ;;  %v2887_v22 = vrot.slane %v2753_v7, 3  ;;  %v18677_v26 = vpack.c.bf16 %v2074_v3, %v2074_v3 }
 0x20a   :  { %v2880_v28 = vsel %vm2879_vm6, %v2878_v14, %v2877_v62  ;;  %v2884_v29 = vrot.slane %v2752_v11, 4  ;;  %v1045_v31 = vcombine.high %v949_v16, %v949_v16  ;;  %v1052_v32 = vrot.slane %v949_v16, %v21789_v57  ;;  %v19448_v14 = vld [vmem:[#allocation11 + $0x20] sm:$0xff]  }
 0x20b   :  { %v2883_v33 = vsel %vm2882_vm7, %v2881_v15, %v2880_v28  ;;  %v2890_v36 = vrot.slane %v2754_v18, 2  ;;  %v2893_v37 = vrot.slane %v2755_v20, 1  ;;  %v3166_v21 = vsel %vm21827_vm13, %v18677_v26, %v3165_v0  ;;  %18957 = vmatprep.subr.bf16.mxu1 %v19448_v14 }
 0x20c   :  { %v2886_v34 = vsel %vm2885_vm8, %v2884_v29, %v2883_v33  ;;  %3167 = vst [vmem:[#allocation2 + $0xc] sm:$0x1] %v3166_v21  ;;  %v1059_v40 = vrot.slane %v1045_v31, %v21789_v57  ;;  %v1060_v41 = vcombine.high %v1052_v32, %v1052_v32  ;;  %v16912_v42 = vrot.slane %v1052_v32, 9  ;;  %v21850_v43 = vpop.f32.mrb[12].mxu0  ;;  %v21862_v59 = vpop.f32.mrb[12].mxu1  ;;  %18958 = vmatpush3.bf16.msra.mxu1 %v19448_v14 }
 0x20d   :  { %v2889_v44 = vsel %vm2888_vm9, %v2887_v22, %v2886_v34  ;;  %v890_v46 = vmax.f32 %v21814_v23, 0.0  ;;  %v648_v47 = vadd.f32 %v21780_v39, %v21816_v24  ;;  %v669_v48 = vadd.f32 %v18903_v51, %v21780_v39  ;;  %v21857_v49 = vpop.f32.mrb[13].mxu0  ;;  %v3159_v24 = vld [vmem:[#allocation2 + $0x8] sm:$0xf]  ;;  %v21873_v3 = vpop.f32.mrb[13].mxu1 }
 0x20e   :  { %v2892_v50 = vsel %vm2891_vm10, %v2890_v36, %v2889_v44  ;;  %v1061_v52 = vcombine.high %v1059_v40, %v1059_v40  ;;  %v16913_v53 = vrot.slane %v1060_v41, 9  ;;  %v16914_v54 = vrot.slane %v1059_v40, 9  ;;  %v21860_v55 = vpop.f32.mrb[14].mxu0 }
 0x20f   :  { %v2895_v60 = vsel %vm2894_vm11, %v2893_v37, %v2892_v50  ;;  %v2075_v51 = vmax.f32 %v1052_v32, %v16912_v42  ;;  %v888_v61 = vmax.f32 %v648_v47, 0.0  ;;  %v893_v62 = vmax.f32 %v669_v48, 0.0  ;;  %v21871_v0 = vpop.f32.mrb[15].mxu0 }
 0x210   :  { %v3091_v5 = vpack.c.b16 %v2895_v60, %v2895_v60  ;;  %v16915_v6 = vrot.slane %v1061_v52, 9  ;;  %v2076_v7 = vmax.f32 %v1060_v41, %v16913_v53  ;;  %v2077_v11 = vmax.f32 %v1059_v40, %v16914_v54 }
 0x211   :  { %v18557_v15 = vpack.c.bf16 %v2075_v51, %v2075_v51  ;;  %v950_v16 = vmax.f32 %v888_v61, %v890_v46  ;;  %v661_v18 = vadd.f32 %v21780_v39, %v21831_v58  ;;  %v21878_v20 = vadd.f32 %v18904_v1, %v21780_v39 }
 0x212   :  { %v3160_v22 = vsel %vm21867_vm14, %v3091_v5, %v3159_v24  ;;  %v2078_v26 = vmax.f32 %v1061_v52, %v16915_v6  ;;  %v18558_v28 = vpack.c.bf16 %v2076_v7, %v2076_v7  ;;  %v18559_v29 = vpack.c.bf16 %v2077_v11, %v2077_v11 }
 0x213   :  { %3161 = vst [vmem:[#allocation2 + $0x8] sm:$0xf] %v3160_v22  ;;  %v2757_v31 = vunpack.c.l.b16 %v18557_v15  ;;  %v1062_v32 = vcombine.high %v950_v16, %v950_v16  ;;  %v1069_v33 = vrot.slane %v950_v16, %v21789_v57  ;;  %v891_v36 = vmax.f32 %v661_v18, 0.0 }
 0x214   :  { %v18560_v37 = vpack.c.bf16 %v2078_v26, %v2078_v26  ;;  %v2758_v21 = vunpack.c.l.b16 %v18558_v28  ;;  %v2759_v58 = vunpack.c.l.b16 %v18559_v29  ;;  %v894_v1 = vmax.f32 %v21878_v20, 0.0  ;;  %v21884_v34 = vpop.f32.mrb[16].mxu0  ;;  %v3171_v26 = vld [vmem:[#allocation2 + $0x14] sm:$0x1] }
 0x215   :  { %v2896_v40 = vrot.slane %v2757_v31, 7  ;;  %v1076_v41 = vrot.slane %v1062_v32, %v21789_v57  ;;  %v1077_v42 = vcombine.high %v1069_v33, %v1069_v33  ;;  %v16916_v44 = vrot.slane %v1069_v33, 9  ;;  %v21887_v46 = vpop.f32.mrb[17].mxu0 }
 0x216   :  { %v2760_v47 = vunpack.c.l.b16 %v18560_v37  ;;  %v2897_v48 = vrot.slane %v2758_v21, 6  ;;  %v2899_v50 = vrot.slane %v2759_v58, 5  ;;  %v951_v52 = vmax.f32 %v891_v36, %v893_v62  ;;  %v21889_v53 = vpop.f32.mrb[18].mxu0 }
 0x217   :  { %v1078_v54 = vcombine.high %v1076_v41, %v1076_v41  ;;  %v16917_v60 = vrot.slane %v1077_v42, 9  ;;  %v16918_v24 = vrot.slane %v1076_v41, 9  ;;  %v2079_v51 = vmax.f32 %v1069_v33, %v16916_v44  ;;  %v21891_v61 = vpop.f32.mrb[19].mxu0 }
 0x218   :  { %v2898_v5 = vsel %vm2879_vm6, %v2897_v48, %v2896_v40  ;;  %v2901_v6 = vrot.slane %v2760_v47, 4  ;;  %v1079_v7 = vcombine.high %v951_v52, %v951_v52  ;;  %v1086_v11 = vrot.slane %v951_v52, %v21789_v57 }
 0x219   :  { %v2900_v14 = vsel %vm2882_vm7, %v2899_v50, %v2898_v5  ;;  %v16919_v15 = vrot.slane %v1078_v54, 9  ;;  %v2080_v16 = vmax.f32 %v1077_v42, %v16917_v60  ;;  %v2081_v18 = vmax.f32 %v1076_v41, %v16918_v24 }
 0x21a   :  { %v18561_v62 = vpack.c.bf16 %v2079_v51, %v2079_v51  ;;  %v2902_v22 = vsel %vm2885_vm8, %v2901_v6, %v2900_v14  ;;  %v1093_v28 = vrot.slane %v1079_v7, %v21789_v57  ;;  %v1094_v29 = vcombine.high %v1086_v11, %v1086_v11 }
 0x21b   :  { %v2082_v31 = vmax.f32 %v1078_v54, %v16919_v15  ;;  %v18562_v32 = vpack.c.bf16 %v2080_v16, %v2080_v16  ;;  %v18563_v33 = vpack.c.bf16 %v2081_v18, %v2081_v18  ;;  %v16920_v36 = vrot.slane %v1086_v11, 9  ;;  %v3168_v18 = vld [vmem:[#allocation2 + $0x10] sm:$0xf] }
 0x21c   :  { %v2761_v37 = vunpack.c.l.b16 %v18561_v62  ;;  %v1095_v21 = vcombine.high %v1093_v28, %v1093_v28  ;;  %v16921_v58 = vrot.slane %v1094_v29, 9  ;;  %v16922_v40 = vrot.slane %v1093_v28, 9  ;;  %v21898_v44 = vpop.f32.mrb[20].mxu0 }
 0x21d   :  { %v2762_v47 = vunpack.c.l.b16 %v18562_v32  ;;  %v2763_v42 = vunpack.c.l.b16 %v18563_v33  ;;  %v18678_v41 = vpack.c.bf16 %v2082_v31, %v2082_v31  ;;  %v2083_v48 = vmax.f32 %v1086_v11, %v16920_v36  ;;  %v21900_v50 = vpop.f32.mrb[21].mxu0 }
 0x21e   :  { %v2903_v52 = vrot.slane %v2761_v37, 3  ;;  %v16923_v60 = vrot.slane %v1095_v21, 9  ;;  %v2084_v24 = vmax.f32 %v1094_v29, %v16921_v58  ;;  %v2085_v51 = vmax.f32 %v1093_v28, %v16922_v40  ;;  %v21902_v54 = vpop.f32.mrb[22].mxu0 }
 0x21f   :  { %v2905_v5 = vrot.slane %v2762_v47, 2  ;;  %v2907_v6 = vrot.slane %v2763_v42, 1  ;;  %v3172_v7 = vsel %vm21827_vm13, %v18678_v41, %v3171_v26  ;;  %v18565_v14 = vpack.c.bf16 %v2083_v48, %v2083_v48  ;;  %v21906_v15 = vpop.f32.mrb[23].mxu0 }
 0x220   :  { %v2904_v16 = vsel %vm2888_vm9, %v2903_v52, %v2902_v22  ;;  %3173 = vst [vmem:[#allocation2 + $0x14] sm:$0x1] %v3172_v7  ;;  %v2086_v11 = vmax.f32 %v1095_v21, %v16923_v60  ;;  %v18566_v62 = vpack.c.bf16 %v2084_v24, %v2084_v24  ;;  %v18567_v31 = vpack.c.bf16 %v2085_v51, %v2085_v51 }
 0x221   :  { %v2906_v29 = vsel %vm2891_vm10, %v2905_v5, %v2904_v16  ;;  %v2765_v28 = vunpack.c.l.b16 %v18565_v14  ;;  %v664_v32 = vadd.f32 %v21780_v39, %v21835_v8  ;;  %v685_v33 = vadd.f32 %v21850_v43, %v21780_v39 }
 0x222   :  { %v2908_v26 = vsel %vm2894_vm11, %v2907_v6, %v2906_v29  ;;  %v18568_v36 = vpack.c.bf16 %v2086_v11, %v2086_v11  ;;  %v2766_v37 = vunpack.c.l.b16 %v18566_v62  ;;  %v2767_v58 = vunpack.c.l.b16 %v18567_v31 }
 0x223   :  { %v3093_v22 = vpack.c.b16 %v2908_v26, %v2908_v26  ;;  %v2909_v40 = vrot.slane %v2765_v28, 7  ;;  %v892_v47 = vmax.f32 %v664_v32, 0.0  ;;  %v897_v21 = vmax.f32 %v685_v33, 0.0 }
 0x224   :  { %v2768_v42 = vunpack.c.l.b16 %v18568_v36  ;;  %v2910_v41 = vrot.slane %v2766_v37, 6  ;;  %v2912_v48 = vrot.slane %v2767_v58, 5  ;;  %v677_v52 = vadd.f32 %v21780_v39, %v21857_v49  ;;  %v21917_v60 = vpop.f32.mrb[24].mxu0 }
 0x225   :  { %v3169_v8 = vsel %vm21867_vm14, %v3093_v22, %v3168_v18  ;;  %v952_v43 = vmax.f32 %v892_v47, %v894_v1  ;;  %v688_v24 = vadd.f32 %v21860_v55, %v21780_v39  ;;  %v680_v51 = vadd.f32 %v21780_v39, %v21871_v0  ;;  %v21927_v5 = vpop.f32.mrb[25].mxu0 }
 0x226   :  { %3170 = vst [vmem:[#allocation2 + $0x10] sm:$0xf] %v3169_v8  ;;  %v2911_v6 = vsel %vm2879_vm6, %v2910_v41, %v2909_v40  ;;  %v2914_v49 = vrot.slane %v2768_v42, 4  ;;  %v895_v7 = vmax.f32 %v677_v52, 0.0  ;;  %v1351_v14 = vcombine.high %v21800_v9, %v21800_v9  ;;  %v21932_v16 = vpop.f32.mrb[26].mxu0 }
 0x227   :  { %v2913_v20 = vsel %vm2882_vm7, %v2912_v48, %v2911_v6  ;;  %v1096_v1 = vcombine.high %v952_v43, %v952_v43  ;;  %v1103_v55 = vrot.slane %v952_v43, %v21789_v57  ;;  %v898_v18 = vmax.f32 %v688_v24, 0.0  ;;  %v21951_v48 = vpop.f32.mrb[27].mxu0 }
 0x228   :  { %v2915_v39 = vsel %vm2885_vm8, %v2914_v49, %v2913_v20  ;;  %v953_v0 = vmax.f32 %v895_v7, %v897_v21  ;;  %v896_v11 = vmax.f32 %v680_v51, 0.0  ;;  %v21939_v62 = vrot.slane %v21800_v9, %v21789_v57  ;;  %23824 = vst [vmem:[#allocation43_spill] sm:$0xff] %v21951_v48  ;;  %v3177_v51 = vld [vmem:[#allocation2 + $0x1c] sm:$0x1] }
 0x229   :  { %v1110_v31 = vrot.slane %v1096_v1, %v21789_v57  ;;  %v1111_v29 = vcombine.high %v1103_v55, %v1103_v55  ;;  %v16924_v28 = vrot.slane %v1103_v55, 9  ;;  %v21943_v32 = vrot.slane %v1351_v14, %v21789_v57 }
 0x22a   :  { %v1113_v33 = vcombine.high %v953_v0, %v953_v0  ;;  %v1120_v26 = vrot.slane %v953_v0, %v21789_v57  ;;  %v954_v36 = vmax.f32 %v896_v11, %v898_v18  ;;  %v21948_v37 = vcombine.high %v21939_v62, %v21939_v62 }
 0x22b   :  { %v1112_v58 = vcombine.high %v1110_v31, %v1110_v31  ;;  %v16925_v22 = vrot.slane %v1111_v29, 9  ;;  %v16926_v40 = vrot.slane %v1110_v31, 9  ;;  %v2087_v9 = vmax.f32 %v1103_v55, %v16924_v28 }
 0x22c   :  { %v1127_v47 = vrot.slane %v1113_v33, %v21789_v57  ;;  %v1128_v21 = vcombine.high %v1120_v26, %v1120_v26  ;;  %v16928_v42 = vrot.slane %v1120_v26, 9  ;;  %v1130_v41 = vcombine.high %v954_v36, %v954_v36 }
 0x22d   :  { %v16927_v52 = vrot.slane %v1112_v58, 9  ;;  %v2088_v8 = vmax.f32 %v1111_v29, %v16925_v22  ;;  %v2089_v43 = vmax.f32 %v1110_v31, %v16926_v40  ;;  %v18569_v24 = vpack.c.bf16 %v2087_v9, %v2087_v9 }
 0x22e   :  { %v1129_v6 = vcombine.high %v1127_v47, %v1127_v47  ;;  %v16929_v49 = vrot.slane %v1128_v21, 9  ;;  %v16930_v7 = vrot.slane %v1127_v47, 9  ;;  %v2091_v14 = vmax.f32 %v1120_v26, %v16928_v42  ;;  %v3174_v42 = vld [vmem:[#allocation2 + $0x18] sm:$0xf] }
 0x22f   :  { %v2090_v20 = vmax.f32 %v1112_v58, %v16927_v52  ;;  %v18570_v1 = vpack.c.bf16 %v2088_v8, %v2088_v8  ;;  %v18571_v18 = vpack.c.bf16 %v2089_v43, %v2089_v43  ;;  %v2769_v55 = vunpack.c.l.b16 %v18569_v24 }
 0x230   :  { %v16931_v0 = vrot.slane %v1129_v6, 9  ;;  %v2092_v11 = vmax.f32 %v1128_v21, %v16929_v49  ;;  %v2093_v28 = vmax.f32 %v1127_v47, %v16930_v7  ;;  %v18573_v33 = vpack.c.bf16 %v2091_v14, %v2091_v14  ;;  %v19449_v7 = vld [vmem:[#allocation11 + $0x28] sm:$0xff]  }
 0x231   :  { %v2770_v38 = vunpack.c.l.b16 %v18570_v1  ;;  %v2771_v13 = vunpack.c.l.b16 %v18571_v18  ;;  %v2916_v12 = vrot.slane %v2769_v55, 3  ;;  %v18679_v45 = vpack.c.bf16 %v2090_v20, %v2090_v20  ;;  %18959 = vmatprep.subr.bf16.mxu1 %v19449_v7 }
 0x232   :  { %v2094_v29 = vmax.f32 %v1129_v6, %v16931_v0  ;;  %v18574_v31 = vpack.c.bf16 %v2092_v11, %v2092_v11  ;;  %v18575_v22 = vpack.c.bf16 %v2093_v28, %v2093_v28  ;;  %v2773_v40 = vunpack.c.l.b16 %v18573_v33  ;;  %18960 = vmatpush3.bf16.msra.mxu1 %v19449_v7 }
 0x233   :  { %v2917_v9 = vsel %vm2888_vm9, %v2916_v12, %v2915_v39  ;;  %v2918_v48 = vrot.slane %v2770_v38, 2  ;;  %v2920_v26 = vrot.slane %v2771_v13, 1  ;;  %v3178_v58 = vsel %vm21827_vm13, %v18679_v45, %v3177_v51  ;;  %v21961_v38 = vpop.f32.mrb[14].mxu1 }
 0x234   :  { %3179 = vst [vmem:[#allocation2 + $0x1c] sm:$0x1] %v3178_v58  ;;  %v18576_v21 = vpack.c.bf16 %v2094_v29, %v2094_v29  ;;  %v2774_v47 = vunpack.c.l.b16 %v18574_v31  ;;  %v2775_v52 = vunpack.c.l.b16 %v18575_v22  ;;  %v2922_v8 = vrot.slane %v2773_v40, 7  ;;  %v21964_v49 = vpop.f32.mrb[15].mxu1 }
 0x235   :  { %v2919_v43 = vsel %vm2891_vm10, %v2918_v48, %v2917_v9  ;;  %v1137_v24 = vrot.slane %v954_v36, %v21789_v57  ;;  %v1144_v6 = vrot.slane %v1130_v41, %v21789_v57  ;;  %v1367_v12 = vcombine.high %v21943_v32, %v21943_v32  ;;  %v21971_v29 = vpop.f32.mrb[16].mxu1 }
 0x236   :  { %v2921_v13 = vsel %vm2894_vm11, %v2920_v26, %v2919_v43  ;;  %v2776_v45 = vunpack.c.l.b16 %v18576_v21  ;;  %v2923_v39 = vrot.slane %v2774_v47, 6  ;;  %v2925_v51 = vrot.slane %v2775_v52, 5  ;;  %v21975_v26 = vpop.f32.mrb[28].mxu0  ;;  %v21977_v58 = vpop.f32.mrb[17].mxu1  ;;  %v19450_v21 = vld [vmem:[#allocation11 + $0x30] sm:$0xff]  }
 0x237   :  { %v3095_v14 = vpack.c.b16 %v2921_v13, %v2921_v13  ;;  %v1145_v20 = vcombine.high %v1137_v24, %v1137_v24  ;;  %v1146_v48 = vcombine.high %v1144_v6, %v1144_v6  ;;  %v16932_v1 = vrot.slane %v1137_v24, 9  ;;  %v21980_v43 = vpop.f32.mrb[29].mxu0  ;;  %18961 = vmatprep.subr.bf16.mxu1 %v19450_v21 }
 0x238   :  { %v2924_v36 = vsel %vm2879_vm6, %v2923_v39, %v2922_v8  ;;  %v2927_v41 = vrot.slane %v2776_v45, 4  ;;  %v16934_v18 = vrot.slane %v1144_v6, 9  ;;  %v16984_v55 = vrot.slane %v21939_v62, 9  ;;  %18962 = vmatpush3.bf16.msra.mxu1 %v19450_v21 }
 0x239   :  { %v3175_v0 = vsel %vm21867_vm14, %v3095_v14, %v3174_v42  ;;  %v2926_v11 = vsel %vm2882_vm7, %v2925_v51, %v2924_v36  ;;  %v16933_v28 = vrot.slane %v1145_v20, 9  ;;  %v16935_v33 = vrot.slane %v1146_v48, 9  ;;  %v21984_v51 = vpop.f32.mrb[30].mxu0 }
 0x23a   :  { %3176 = vst [vmem:[#allocation2 + $0x18] sm:$0xf] %v3175_v0  ;;  %v2095_v31 = vmax.f32 %v1137_v24, %v16932_v1  ;;  %v2097_v22 = vmax.f32 %v1144_v6, %v16934_v18  ;;  %v2928_v40 = vsel %vm2885_vm8, %v2927_v41, %v2926_v11  ;;  %v16985_v9 = vrot.slane %v21948_v37, 9  ;;  %v3183_v24 = vld [vmem:[#allocation2 + $0x24] sm:$0x1]  ;;  %v21987_v1 = vpop.f32.mrb[31].mxu0 }
 0x23b   :  { %v2096_v42 = vmax.f32 %v1145_v20, %v16933_v28  ;;  %v2098_v47 = vmax.f32 %v1146_v48, %v16935_v33  ;;  %v16986_v52 = vrot.slane %v21943_v32, 9  ;;  %v16987_v8 = vrot.slane %v1367_v12, 9 }
 0x23c   :  { %v18577_v13 = vpack.c.bf16 %v2095_v31, %v2095_v31  ;;  %v18579_v45 = vpack.c.bf16 %v2097_v22, %v2097_v22  ;;  %v2147_v6 = vmax.f32 %v21939_v62, %v16984_v55  ;;  %v2148_v39 = vmax.f32 %v21948_v37, %v16985_v9 }
 0x23d   :  { %v18578_v7 = vpack.c.bf16 %v2096_v42, %v2096_v42  ;;  %v18680_v14 = vpack.c.bf16 %v2098_v47, %v2098_v47  ;;  %v2149_v20 = vmax.f32 %v21943_v32, %v16986_v52  ;;  %v2150_v48 = vmax.f32 %v1367_v12, %v16987_v8  ;;  %v3180_v8 = vld [vmem:[#allocation2 + $0x20] sm:$0xf] }
 0x23e   :  { %v2777_v36 = vunpack.c.l.b16 %v18577_v13  ;;  %v2779_v41 = vunpack.c.l.b16 %v18579_v45  ;;  %v18629_v18 = vpack.c.bf16 %v2147_v6, %v2147_v6  ;;  %v18630_v0 = vpack.c.bf16 %v2148_v39, %v2148_v39 }
 0x23f   :  { %v2778_v11 = vunpack.c.l.b16 %v18578_v7  ;;  %v3184_v62 = vsel %vm21827_vm13, %v18680_v14, %v3183_v24  ;;  %v18631_v37 = vpack.c.bf16 %v2149_v20, %v2149_v20  ;;  %v18632_v55 = vpack.c.bf16 %v2150_v48, %v2150_v48  ;;  %v21996_v24 = vld [vmem:[#allocation10] ss:$0 sm:$0xff]  ;;  %v22001_v48 = vpop.f32.mrb[18].mxu1 }
 0x240   :  { %v2929_v28 = vrot.slane %v2777_v36, 3  ;;  %v2933_v33 = vrot.slane %v2779_v41, 1  ;;  %3185 = vst [vmem:[#allocation2 + $0x24] sm:$0x1] %v3184_v62  ;;  %v2829_v31 = vunpack.c.l.b16 %v18629_v18  ;;  %v2830_v22 = vunpack.c.l.b16 %v18630_v0  ;;  %v22006_v41 = vpop.f32.mrb[19].mxu1 }
 0x241   :  { %v2931_v32 = vrot.slane %v2778_v11, 2  ;;  %v2831_v12 = vunpack.c.l.b16 %v18631_v37  ;;  %v2832_v9 = vunpack.c.l.b16 %v18632_v55  ;;  %v23825_v21 = vmax.f32 %v21794_v63, 0.0 }
 0x242   :  { %v23826_v42 = vmax.f32 %v21797_v4, 0.0  ;;  %v2930_v52 = vsel %vm2888_vm9, %v2929_v28, %v2928_v40  ;;  %v3013_v13 = vrot.slane %v2829_v31, 7  ;;  %v3014_v45 = vrot.slane %v2830_v22, 6 }
 0x243   :  { %v813_v6 = vadd.f32 %v21996_v24, %v21808_v19  ;;  %v2932_v39 = vsel %vm2891_vm10, %v2931_v32, %v2930_v52  ;;  %v3016_v7 = vrot.slane %v2831_v12, 5  ;;  %v3018_v14 = vrot.slane %v2832_v9, 4 }
 0x244   :  { %v968_v47 = vmax.f32 %v23826_v42, %v23825_v21  ;;  %v2934_v63 = vsel %vm2894_vm11, %v2933_v33, %v2932_v39  ;;  %v3015_v4 = vsel %vm2879_vm6, %v3014_v45, %v3013_v13  ;;  %v701_v11 = vadd.f32 %v21996_v24, %v21884_v34  ;;  %v19451_v33 = vld [vmem:[#allocation11 + $0x38] sm:$0xff]   ;;  %v3225_v39 = vld [vmem:[#allocation2 + $0x6c] sm:$0x1] }
 0x245   :  { %v929_v36 = vmax.f32 %v813_v6, 0.0  ;;  %v3097_v18 = vpack.c.b16 %v2934_v63, %v2934_v63  ;;  %v3017_v0 = vsel %vm2882_vm7, %v3016_v7, %v3015_v4  ;;  %v805_v28 = vadd.f32 %v21996_v24, %v21818_v25  ;;  %18963 = vmatprep.subr.bf16.mxu1 %v19451_v33 }
 0x246   :  { %v1368_v20 = vcombine.high %v968_v47, %v968_v47  ;;  %v1375_v40 = vrot.slane %v968_v47, %v21789_v57  ;;  %v3019_v55 = vsel %vm2885_vm8, %v3018_v14, %v3017_v0  ;;  %v901_v12 = vmax.f32 %v701_v11, 0.0  ;;  %18964 = vmatpush3.bf16.msra.mxu1 %v19451_v33 }
 0x247   :  { %v3181_v31 = vsel %vm21867_vm14, %v3097_v18, %v3180_v8  ;;  %v927_v42 = vmax.f32 %v805_v28, 0.0  ;;  %v693_v34 = vadd.f32 %v21996_v24, %v21887_v46  ;;  %v704_v25 = vadd.f32 %v21996_v24, %v21889_v53  ;;  %v22023_v8 = vpop.f32.mrb[20].mxu1 }
 0x248   :  { %v1382_v19 = vrot.slane %v1368_v20, %v21789_v57  ;;  %v1383_v62 = vcombine.high %v1375_v40, %v1375_v40  ;;  %v16988_v37 = vrot.slane %v1375_v40, 9  ;;  %3182 = vst [vmem:[#allocation2 + $0x20] sm:$0xf] %v3181_v31  ;;  %v696_v13 = vadd.f32 %v21996_v24, %v21891_v61  ;;  %v22025_v20 = vpop.f32.mrb[32].mxu0  ;;  %v22027_v46 = vpop.f32.mrb[21].mxu1 }
 0x249   :  { %v969_v7 = vmax.f32 %v927_v42, %v929_v36  ;;  %v899_v14 = vmax.f32 %v693_v34, 0.0 }
 0x24a   :  { %v1384_v22 = vcombine.high %v1382_v19, %v1382_v19  ;;  %v16990_v32 = vrot.slane %v1382_v19, 9  ;;  %v16989_v9 = vrot.slane %v1383_v62, 9  ;;  %v2151_v21 = vmax.f32 %v1375_v40, %v16988_v37 }
 0x24b   :  { %v902_v40 = vmax.f32 %v704_v25, 0.0  ;;  %v900_v18 = vmax.f32 %v696_v13, 0.0  ;;  %v1392_v61 = vrot.slane %v969_v7, %v21789_v57  ;;  %v3222_v13 = vld [vmem:[#allocation2 + $0x68] sm:$0xf] }
 0x24c   :  { %v16991_v47 = vrot.slane %v1384_v22, 9  ;;  %v2153_v52 = vmax.f32 %v1382_v19, %v16990_v32  ;;  %v2152_v45 = vmax.f32 %v1383_v62, %v16989_v9  ;;  %v18633_v6 = vpack.c.bf16 %v2151_v21, %v2151_v21 }
 0x24d   :  { %v1385_v19 = vcombine.high %v969_v7, %v969_v7  ;;  %v955_v62 = vmax.f32 %v899_v14, %v901_v12  ;;  %v956_v28 = vmax.f32 %v900_v18, %v902_v40  ;;  %v1400_v32 = vcombine.high %v1392_v61, %v1392_v61  ;;  %v22037_v40 = vpop.f32.mrb[33].mxu0 }
 0x24e   :  { %v2154_v63 = vmax.f32 %v1384_v22, %v16991_v47  ;;  %v18635_v4 = vpack.c.bf16 %v2153_v52, %v2153_v52  ;;  %v18634_v53 = vpack.c.bf16 %v2152_v45, %v2152_v45  ;;  %v2833_v0 = vunpack.c.l.b16 %v18633_v6 }
 0x24f   :  { %v1399_v31 = vrot.slane %v1385_v19, %v21789_v57  ;;  %v16992_v21 = vrot.slane %v1392_v61, 9  ;;  %v1147_v42 = vcombine.high %v955_v62, %v955_v62  ;;  %v16993_v25 = vrot.slane %v1400_v32, 9 }
 0x250   :  { %v2835_v11 = vunpack.c.l.b16 %v18635_v4  ;;  %v18687_v37 = vpack.c.bf16 %v2154_v63, %v2154_v63  ;;  %v2834_v33 = vunpack.c.l.b16 %v18634_v53  ;;  %v3020_v36 = vrot.slane %v2833_v0, 3 }
 0x251   :  { %v1401_v52 = vcombine.high %v1399_v31, %v1399_v31  ;;  %v16994_v12 = vrot.slane %v1399_v31, 9  ;;  %v2155_v45 = vmax.f32 %v1392_v61, %v16992_v21  ;;  %v1154_v6 = vrot.slane %v955_v62, %v21789_v57 }
 0x252   :  { %v3024_v9 = vrot.slane %v2835_v11, 1  ;;  %v3226_v22 = vsel %vm21827_vm13, %v18687_v37, %v3225_v39  ;;  %v3021_v34 = vsel %vm2888_vm9, %v3020_v36, %v3019_v55  ;;  %v3022_v47 = vrot.slane %v2834_v33, 2 }
 0x253   :  { %3227 = vst [vmem:[#allocation2 + $0x6c] sm:$0x1] %v3226_v22  ;;  %v1161_v7 = vrot.slane %v1147_v42, %v21789_v57  ;;  %v16995_v63 = vrot.slane %v1401_v52, 9  ;;  %v2156_v4 = vmax.f32 %v1400_v32, %v16993_v25  ;;  %v1164_v39 = vcombine.high %v956_v28, %v956_v28 }
 0x254   :  { %v3023_v14 = vsel %vm2891_vm10, %v3022_v47, %v3021_v34  ;;  %v2157_v18 = vmax.f32 %v1399_v31, %v16994_v12  ;;  %v18637_v53 = vpack.c.bf16 %v2155_v45, %v2155_v45  ;;  %v1162_v0 = vcombine.high %v1154_v6, %v1154_v6  ;;  %v22042_v12 = vpop.f32.mrb[34].mxu0 }
 0x255   :  { %v3025_v55 = vsel %vm2894_vm11, %v3024_v9, %v3023_v14  ;;  %v2158_v11 = vmax.f32 %v1401_v52, %v16995_v63  ;;  %v18638_v37 = vpack.c.bf16 %v2156_v4, %v2156_v4  ;;  %v1163_v61 = vcombine.high %v1161_v7, %v1161_v7 }
 0x256   :  { %v3111_v19 = vpack.c.b16 %v3025_v55, %v3025_v55  ;;  %v18639_v33 = vpack.c.bf16 %v2157_v18, %v2157_v18  ;;  %v2837_v62 = vunpack.c.l.b16 %v18637_v53  ;;  %v16936_v36 = vrot.slane %v1154_v6, 9 }
 0x257   :  { %v16937_v22 = vrot.slane %v1162_v0, 9  ;;  %v18640_v32 = vpack.c.bf16 %v2158_v11, %v2158_v11  ;;  %v2838_v42 = vunpack.c.l.b16 %v18638_v37  ;;  %v16938_v34 = vrot.slane %v1161_v7, 9 }
 0x258   :  { %v3223_v21 = vsel %vm21867_vm14, %v3111_v19, %v3222_v13  ;;  %v2839_v47 = vunpack.c.l.b16 %v18639_v33  ;;  %v3026_v9 = vrot.slane %v2837_v62, 7  ;;  %v16939_v31 = vrot.slane %v1163_v61, 9 }
 0x259   :  { %3224 = vst [vmem:[#allocation2 + $0x68] sm:$0xf] %v3223_v21  ;;  %v2099_v25 = vmax.f32 %v1154_v6, %v16936_v36  ;;  %v2840_v52 = vunpack.c.l.b16 %v18640_v32  ;;  %v3027_v45 = vrot.slane %v2838_v42, 6  ;;  %v2100_v14 = vmax.f32 %v1162_v0, %v16937_v22 }
 0x25a   :  { %v2101_v63 = vmax.f32 %v1161_v7, %v16938_v34  ;;  %v3029_v4 = vrot.slane %v2839_v47, 5  ;;  %v2102_v55 = vmax.f32 %v1163_v61, %v16939_v31  ;;  %v1171_v53 = vrot.slane %v956_v28, %v21789_v57 }
 0x25b   :  { %v18581_v18 = vpack.c.bf16 %v2099_v25, %v2099_v25  ;;  %v3028_v13 = vsel %vm2879_vm6, %v3027_v45, %v3026_v9  ;;  %v3031_v19 = vrot.slane %v2840_v52, 4  ;;  %v18582_v11 = vpack.c.bf16 %v2100_v14, %v2100_v14 }
 0x25c   :  { %v18583_v37 = vpack.c.bf16 %v2101_v63, %v2101_v63  ;;  %v3030_v33 = vsel %vm2882_vm7, %v3029_v4, %v3028_v13  ;;  %v18584_v62 = vpack.c.bf16 %v2102_v55, %v2102_v55  ;;  %v1178_v36 = vrot.slane %v1164_v39, %v21789_v57  ;;  %v3189_v55 = vld [vmem:[#allocation2 + $0x2c] sm:$0x1] }
 0x25d   :  { %v2781_v6 = vunpack.c.l.b16 %v18581_v18  ;;  %v2782_v21 = vunpack.c.l.b16 %v18582_v11  ;;  %v1179_v0 = vcombine.high %v1171_v53, %v1171_v53  ;;  %v16940_v7 = vrot.slane %v1171_v53, 9 }
 0x25e   :  { %v2783_v32 = vunpack.c.l.b16 %v18583_v37  ;;  %v2784_v22 = vunpack.c.l.b16 %v18584_v62  ;;  %v1180_v42 = vcombine.high %v1178_v36, %v1178_v36  ;;  %v16942_v34 = vrot.slane %v1178_v36, 9 }
 0x25f   :  { %v2935_v61 = vrot.slane %v2781_v6, 7  ;;  %v2936_v28 = vrot.slane %v2782_v21, 6  ;;  %v16941_v9 = vrot.slane %v1179_v0, 9  ;;  %v2103_v31 = vmax.f32 %v1171_v53, %v16940_v7 }
 0x260   :  { %v2938_v47 = vrot.slane %v2783_v32, 5  ;;  %v2940_v25 = vrot.slane %v2784_v22, 4  ;;  %v16943_v52 = vrot.slane %v1180_v42, 9  ;;  %v2105_v45 = vmax.f32 %v1178_v36, %v16942_v34 }
 0x261   :  { %v816_v14 = vadd.f32 %v21996_v24, %v21820_v30  ;;  %v2937_v39 = vsel %vm2879_vm6, %v2936_v28, %v2935_v61  ;;  %v2104_v63 = vmax.f32 %v1179_v0, %v16941_v9  ;;  %v18585_v4 = vpack.c.bf16 %v2103_v31, %v2103_v31 }
 0x262   :  { %v808_v18 = vadd.f32 %v21996_v24, %v21823_v35  ;;  %v2939_v13 = vsel %vm2882_vm7, %v2938_v47, %v2937_v39  ;;  %v2106_v11 = vmax.f32 %v1180_v42, %v16943_v52  ;;  %v18587_v37 = vpack.c.bf16 %v2105_v45, %v2105_v45 }
 0x263   :  { %v930_v62 = vmax.f32 %v816_v14, 0.0  ;;  %v18586_v53 = vpack.c.bf16 %v2104_v63, %v2104_v63  ;;  %v2785_v6 = vunpack.c.l.b16 %v18585_v4  ;;  %v2941_v36 = vsel %vm2885_vm8, %v2940_v25, %v2939_v13  ;;  %v3186_v25 = vld [vmem:[#allocation2 + $0x28] sm:$0xf] }
 0x264   :  { %v928_v21 = vmax.f32 %v808_v18, 0.0  ;;  %v2787_v32 = vunpack.c.l.b16 %v18587_v37  ;;  %v18681_v30 = vpack.c.bf16 %v2106_v11, %v2106_v11  ;;  %v22056_v7 = vsel %vm2885_vm8, %v3031_v19, %v3030_v33 }
 0x265   :  { %v829_v0 = vadd.f32 %v21996_v24, %v21833_v2  ;;  %v2786_v22 = vunpack.c.l.b16 %v18586_v53  ;;  %v2942_v35 = vrot.slane %v2785_v6, 3  ;;  %v717_v42 = vadd.f32 %v21996_v24, %v21898_v44 }
 0x266   :  { %v970_v61 = vmax.f32 %v928_v21, %v930_v62  ;;  %v2946_v34 = vrot.slane %v2787_v32, 1  ;;  %v3190_v28 = vsel %vm21827_vm13, %v18681_v30, %v3189_v55  ;;  %v821_v9 = vadd.f32 %v21996_v24, %v21837_v10 }
 0x267   :  { %v933_v47 = vmax.f32 %v829_v0, 0.0  ;;  %v2943_v19 = vsel %vm2888_vm9, %v2942_v35, %v2941_v36  ;;  %v2944_v33 = vrot.slane %v2786_v22, 2  ;;  %3191 = vst [vmem:[#allocation2 + $0x2c] sm:$0x1] %v3190_v28  ;;  %v905_v52 = vmax.f32 %v717_v42, 0.0 }
 0x268   :  { %v1402_v31 = vcombine.high %v970_v61, %v970_v61  ;;  %v1409_v2 = vrot.slane %v970_v61, %v21789_v57  ;;  %v931_v45 = vmax.f32 %v821_v9, 0.0  ;;  %v709_v44 = vadd.f32 %v21996_v24, %v21900_v50  ;;  %v3231_v61 = vld [vmem:[#allocation2 + $0x74] sm:$0x1] }
 0x269   :  { %v22072_v14 = vadd.f32 %v21996_v24, %v21902_v54  ;;  %v2945_v39 = vsel %vm2891_vm10, %v2944_v33, %v2943_v19 }
 0x26a   :  { %v1416_v10 = vrot.slane %v1402_v31, %v21789_v57  ;;  %v1417_v63 = vcombine.high %v1409_v2, %v1409_v2  ;;  %v16996_v4 = vrot.slane %v1409_v2, 9  ;;  %v2947_v55 = vsel %vm2894_vm11, %v2946_v34, %v2945_v39 }
 0x26b   :  { %v971_v18 = vmax.f32 %v931_v45, %v933_v47  ;;  %v903_v13 = vmax.f32 %v709_v44, 0.0  ;;  %v906_v11 = vmax.f32 %v22072_v14, 0.0  ;;  %v3099_v37 = vpack.c.b16 %v2947_v55, %v2947_v55 }
 0x26c   :  { %v1418_v62 = vcombine.high %v1416_v10, %v1416_v10  ;;  %v16997_v53 = vrot.slane %v1417_v63, 9  ;;  %v16998_v50 = vrot.slane %v1416_v10, 9  ;;  %v2159_v6 = vmax.f32 %v1409_v2, %v16996_v4 }
 0x26d   :  { %v1419_v36 = vcombine.high %v971_v18, %v971_v18  ;;  %v1426_v54 = vrot.slane %v971_v18, %v21789_v57  ;;  %v957_v21 = vmax.f32 %v903_v13, %v905_v52  ;;  %v3187_v32 = vsel %vm21867_vm14, %v3099_v37, %v3186_v25 }
 0x26e   :  { %v16999_v30 = vrot.slane %v1418_v62, 9  ;;  %v2160_v0 = vmax.f32 %v1417_v63, %v16997_v53  ;;  %v2161_v22 = vmax.f32 %v1416_v10, %v16998_v50  ;;  %3188 = vst [vmem:[#allocation2 + $0x28] sm:$0xf] %v3187_v32  ;;  %v18641_v35 = vpack.c.bf16 %v2159_v6, %v2159_v6  ;;  %v3228_v6 = vld [vmem:[#allocation2 + $0x70] sm:$0xf] }
 0x26f   :  { %v1433_v42 = vrot.slane %v1419_v36, %v21789_v57  ;;  %v1434_v34 = vcombine.high %v1426_v54, %v1426_v54  ;;  %v17000_v28 = vrot.slane %v1426_v54, 9  ;;  %v1181_v33 = vcombine.high %v957_v21, %v957_v21 }
 0x270   :  { %v2162_v47 = vmax.f32 %v1418_v62, %v16999_v30  ;;  %v18642_v9 = vpack.c.bf16 %v2160_v0, %v2160_v0  ;;  %v18643_v19 = vpack.c.bf16 %v2161_v22, %v2161_v22  ;;  %v2841_v31 = vunpack.c.l.b16 %v18641_v35 }
 0x271   :  { %v1435_v2 = vcombine.high %v1433_v42, %v1433_v42  ;;  %v17001_v52 = vrot.slane %v1434_v34, 9  ;;  %v17002_v45 = vrot.slane %v1433_v42, 9  ;;  %v2163_v63 = vmax.f32 %v1426_v54, %v17000_v28 }
 0x272   :  { %v2842_v44 = vunpack.c.l.b16 %v18642_v9  ;;  %v2843_v25 = vunpack.c.l.b16 %v18643_v19  ;;  %v18688_v39 = vpack.c.bf16 %v2162_v47, %v2162_v47  ;;  %v3033_v10 = vrot.slane %v2841_v31, 3 }
 0x273   :  { %v17003_v4 = vrot.slane %v1435_v2, 9  ;;  %v2164_v55 = vmax.f32 %v1434_v34, %v17001_v52  ;;  %v2165_v18 = vmax.f32 %v1433_v42, %v17002_v45  ;;  %v18645_v53 = vpack.c.bf16 %v2163_v63, %v2163_v63  ;;  %v22089_v42 = vpop.f32.mrb[35].mxu0 }
 0x274   :  { %v3035_v13 = vrot.slane %v2842_v44, 2  ;;  %v3037_v37 = vrot.slane %v2843_v25, 1  ;;  %v3232_v62 = vsel %vm21827_vm13, %v18688_v39, %v3231_v61  ;;  %v3034_v50 = vsel %vm2888_vm9, %v3033_v10, %v22056_v7 }
 0x275   :  { %3233 = vst [vmem:[#allocation2 + $0x74] sm:$0x1] %v3232_v62  ;;  %v2166_v36 = vmax.f32 %v1435_v2, %v17003_v4  ;;  %v18646_v32 = vpack.c.bf16 %v2164_v55, %v2164_v55  ;;  %v18647_v30 = vpack.c.bf16 %v2165_v18, %v2165_v18  ;;  %v2845_v0 = vunpack.c.l.b16 %v18645_v53 }
 0x276   :  { %v3036_v54 = vsel %vm2891_vm10, %v3035_v13, %v3034_v50  ;;  %v1188_v22 = vrot.slane %v957_v21, %v21789_v57  ;;  %v1195_v35 = vrot.slane %v1181_v33, %v21789_v57  ;;  %v712_v55 = vadd.f32 %v21996_v24, %v21906_v15 }
 0x277   :  { %v3038_v61 = vsel %vm2894_vm11, %v3037_v37, %v3036_v54  ;;  %v18648_v34 = vpack.c.bf16 %v2166_v36, %v2166_v36  ;;  %v2846_v28 = vunpack.c.l.b16 %v18646_v32  ;;  %v2847_v47 = vunpack.c.l.b16 %v18647_v30 }
 0x278   :  { %v3113_v7 = vpack.c.b16 %v3038_v61, %v3038_v61  ;;  %v3039_v9 = vrot.slane %v2845_v0, 7  ;;  %v1196_v19 = vcombine.high %v1188_v22, %v1188_v22  ;;  %v1197_v31 = vcombine.high %v1195_v35, %v1195_v35 }
 0x279   :  { %v2848_v2 = vunpack.c.l.b16 %v18648_v34  ;;  %v3040_v52 = vrot.slane %v2846_v28, 6  ;;  %v3042_v45 = vrot.slane %v2847_v47, 5  ;;  %v16944_v44 = vrot.slane %v1188_v22, 9 }
 0x27a   :  { %v3229_v21 = vsel %vm21867_vm14, %v3113_v7, %v3228_v6  ;;  %v16945_v25 = vrot.slane %v1196_v19, 9  ;;  %v16946_v33 = vrot.slane %v1195_v35, 9  ;;  %v16947_v39 = vrot.slane %v1197_v31, 9 }
 0x27b   :  { %3230 = vst [vmem:[#allocation2 + $0x70] sm:$0xf] %v3229_v21  ;;  %v3041_v63 = vsel %vm2879_vm6, %v3040_v52, %v3039_v9  ;;  %v3044_v10 = vrot.slane %v2848_v2, 4  ;;  %v2107_v4 = vmax.f32 %v1188_v22, %v16944_v44  ;;  %v904_v50 = vmax.f32 %v712_v55, 0.0 }
 0x27c   :  { %v3043_v18 = vsel %vm2882_vm7, %v3042_v45, %v3041_v63  ;;  %v2108_v13 = vmax.f32 %v1196_v19, %v16945_v25  ;;  %v2109_v37 = vmax.f32 %v1195_v35, %v16946_v33  ;;  %v2110_v62 = vmax.f32 %v1197_v31, %v16947_v39 }
 0x27d   :  { %v18589_v53 = vpack.c.bf16 %v2107_v4, %v2107_v4  ;;  %v832_v6 = vadd.f32 %v21996_v24, %v21839_v17  ;;  %v824_v36 = vadd.f32 %v21996_v24, %v21841_v27  ;;  %v22103_v0 = vsel %vm2885_vm8, %v3044_v10, %v3043_v18  ;;  %v22125_v18 = vpop.f32.mrb[22].mxu1 }
 0x27e   :  { %v18590_v32 = vpack.c.bf16 %v2108_v13, %v2108_v13  ;;  %v18591_v30 = vpack.c.bf16 %v2109_v37, %v2109_v37  ;;  %v18592_v54 = vpack.c.bf16 %v2110_v62, %v2110_v62  ;;  %v958_v22 = vmax.f32 %v904_v50, %v906_v11  ;;  %v22129_v50 = vpop.f32.mrb[23].mxu1 }
 0x27f   :  { %v2789_v15 = vunpack.c.l.b16 %v18589_v53  ;;  %v934_v35 = vmax.f32 %v832_v6, 0.0  ;;  %v932_v61 = vmax.f32 %v824_v36, 0.0  ;;  %v22109_v17 = vadd.f32 %v21996_v24, %v21862_v59 }
 0x280   :  { %v2790_v34 = vunpack.c.l.b16 %v18590_v32  ;;  %v2791_v28 = vunpack.c.l.b16 %v18591_v30  ;;  %v2792_v47 = vunpack.c.l.b16 %v18592_v54  ;;  %v1198_v7 = vcombine.high %v958_v22, %v958_v22 }
 0x281   :  { %v2948_v27 = vrot.slane %v2789_v15, 7  ;;  %v1205_v9 = vrot.slane %v958_v22, %v21789_v57  ;;  %v972_v19 = vmax.f32 %v932_v61, %v934_v35  ;;  %v937_v14 = vmax.f32 %v22109_v17, 0.0  ;;  %v22131_v15 = vpop.f32.mrb[36].mxu0  ;;  %v3234_v17 = vld [vmem:[#allocation2 + $0x78] sm:$0xf] }
 0x282   :  { %v2949_v31 = vrot.slane %v2790_v34, 6  ;;  %v2951_v2 = vrot.slane %v2791_v28, 5  ;;  %v2953_v52 = vrot.slane %v2792_v47, 4  ;;  %v1212_v11 = vrot.slane %v1198_v7, %v21789_v57  ;;  %v3195_v34 = vld [vmem:[#allocation2 + $0x34] sm:$0x1]  ;;  %v22133_v47 = vpop.f32.mrb[37].mxu0 }
 0x283   :  { %v1213_v45 = vcombine.high %v1205_v9, %v1205_v9  ;;  %v16948_v44 = vrot.slane %v1205_v9, 9  ;;  %v1436_v21 = vcombine.high %v972_v19, %v972_v19  ;;  %v1443_v59 = vrot.slane %v972_v19, %v21789_v57 }
 0x284   :  { %v2950_v25 = vsel %vm2879_vm6, %v2949_v31, %v2948_v27  ;;  %v22118_v33 = vadd.f32 %v21996_v24, %v21917_v60  ;;  %v22122_v39 = vadd.f32 %v21996_v24, %v21873_v3  ;;  %v1214_v10 = vcombine.high %v1212_v11, %v1212_v11 }
 0x285   :  { %v2952_v63 = vsel %vm2882_vm7, %v2951_v2, %v2950_v25  ;;  %v16949_v4 = vrot.slane %v1213_v45, 9  ;;  %v16950_v55 = vrot.slane %v1212_v11, 9  ;;  %v2111_v13 = vmax.f32 %v1205_v9, %v16948_v44 }
 0x286   :  { %v2954_v37 = vsel %vm2885_vm8, %v2953_v52, %v2952_v63  ;;  %v1450_v62 = vrot.slane %v1436_v21, %v21789_v57  ;;  %v1451_v53 = vcombine.high %v1443_v59, %v1443_v59  ;;  %v16951_v60 = vrot.slane %v1214_v10, 9 }
 0x287   :  { %v2112_v6 = vmax.f32 %v1213_v45, %v16949_v4  ;;  %v2113_v36 = vmax.f32 %v1212_v11, %v16950_v55  ;;  %v17004_v3 = vrot.slane %v1443_v59, 9  ;;  %v18593_v24 = vpack.c.bf16 %v2111_v13, %v2111_v13  ;;  %v3237_v45 = vld [vmem:[#allocation2 + $0x7c] sm:$0x1] }
 0x288   :  { %v1452_v32 = vcombine.high %v1450_v62, %v1450_v62  ;;  %v17005_v30 = vrot.slane %v1451_v53, 9  ;;  %v17006_v54 = vrot.slane %v1450_v62, 9  ;;  %v2114_v22 = vmax.f32 %v1214_v10, %v16951_v60  ;;  %v22135_v10 = vpop.f32.mrb[38].mxu0 }
 0x289   :  { %v18594_v35 = vpack.c.bf16 %v2112_v6, %v2112_v6  ;;  %v18595_v61 = vpack.c.bf16 %v2113_v36, %v2113_v36  ;;  %v2167_v28 = vmax.f32 %v1443_v59, %v17004_v3  ;;  %v2793_v27 = vunpack.c.l.b16 %v18593_v24  ;;  %v22139_v60 = vpop.f32.mrb[39].mxu0 }
 0x28a   :  { %v17007_v7 = vrot.slane %v1452_v32, 9  ;;  %v2168_v9 = vmax.f32 %v1451_v53, %v17005_v30  ;;  %v2169_v19 = vmax.f32 %v1450_v62, %v17006_v54  ;;  %v18682_v52 = vpack.c.bf16 %v2114_v22, %v2114_v22  ;;  %v3192_v53 = vld [vmem:[#allocation2 + $0x30] sm:$0xf]  ;;  %v3258_v22 = vld [vmem:[#allocation2] sm:$0xf] }
 0x28b   :  { %v2794_v31 = vunpack.c.l.b16 %v18594_v35  ;;  %v2795_v2 = vunpack.c.l.b16 %v18595_v61  ;;  %v18649_v11 = vpack.c.bf16 %v2167_v28, %v2167_v28  ;;  %v2955_v44 = vrot.slane %v2793_v27, 3 }
 0x28c   :  { %v2170_v21 = vmax.f32 %v1452_v32, %v17007_v7  ;;  %v18650_v25 = vpack.c.bf16 %v2168_v9, %v2168_v9  ;;  %v18651_v63 = vpack.c.bf16 %v2169_v19, %v2169_v19  ;;  %v3196_v59 = vsel %vm21827_vm13, %v18682_v52, %v3195_v34  ;;  %v22152_v9 = vld [vmem:[#allocation10] ss:$0 sm:$0xff] }
 0x28d   :  { %v2957_v4 = vrot.slane %v2794_v31, 2  ;;  %v2959_v55 = vrot.slane %v2795_v2, 1  ;;  %v2849_v13 = vunpack.c.l.b16 %v18649_v11  ;;  %v2956_v62 = vsel %vm2888_vm9, %v2955_v44, %v2954_v37  ;;  %3197 = vst [vmem:[#allocation2 + $0x34] sm:$0x1] %v3196_v59 }
 0x28e   :  { %v2850_v6 = vunpack.c.l.b16 %v18650_v25  ;;  %v2851_v36 = vunpack.c.l.b16 %v18651_v63  ;;  %v18689_v3 = vpack.c.bf16 %v2170_v21, %v2170_v21  ;;  %v909_v30 = vmax.f32 %v22118_v33, 0.0 }
 0x28f   :  { %v2958_v24 = vsel %vm2891_vm10, %v2957_v4, %v2956_v62  ;;  %v3046_v32 = vrot.slane %v2849_v13, 3  ;;  %v935_v54 = vmax.f32 %v22122_v39, 0.0  ;;  %v725_v33 = vadd.f32 %v22152_v9, %v21927_v5 }
 0x290   :  { %v2960_v35 = vsel %vm2894_vm11, %v2959_v55, %v2958_v24  ;;  %v3048_v61 = vrot.slane %v2850_v6, 2  ;;  %v3050_v34 = vrot.slane %v2851_v36, 1  ;;  %v3238_v37 = vsel %vm21827_vm13, %v18689_v3, %v3237_v45  ;;  %v3282_v45 = vld [vmem:[#allocation2 + $0x4] sm:$0x1] }
 0x291   :  { %v3101_v28 = vpack.c.b16 %v2960_v35, %v2960_v35  ;;  %v3047_v27 = vsel %vm2888_vm9, %v3046_v32, %v22103_v0  ;;  %3239 = vst [vmem:[#allocation2 + $0x7c] sm:$0x1] %v3238_v37  ;;  %v973_v7 = vmax.f32 %v935_v54, %v937_v14  ;;  %v22159_v19 = vadd.f32 %v22152_v9, %v21932_v16 }
 0x292   :  { %v3049_v39 = vsel %vm2891_vm10, %v3048_v61, %v3047_v27  ;;  %v907_v5 = vmax.f32 %v725_v33, 0.0  ;;  %v3302_v44 = vshrl.u32 %v3258_v22, 16  ;;  %v3305_v63 = vshll.u32 %v3258_v22, 16 }
 0x293   :  { %v3193_v0 = vsel %vm21867_vm14, %v3101_v28, %v3192_v53  ;;  %v3051_v31 = vsel %vm2894_vm11, %v3050_v34, %v3049_v39  ;;  %v1453_v14 = vcombine.high %v973_v7, %v973_v7  ;;  %v1460_v2 = vrot.slane %v973_v7, %v21789_v57 }
 0x294   :  { %3194 = vst [vmem:[#allocation2 + $0x30] sm:$0xf] %v3193_v0  ;;  %v3115_v52 = vpack.c.b16 %v3051_v31, %v3051_v31  ;;  %v910_v11 = vmax.f32 %v22159_v19, 0.0  ;;  %v959_v55 = vmax.f32 %v907_v5, %v909_v30  ;;  %v3304_v59 = vrot.slane %v3302_v44, 4 }
 0x295   :  { %v1467_v16 = vrot.slane %v1453_v14, %v21789_v57  ;;  %v1468_v21 = vcombine.high %v1460_v2, %v1460_v2  ;;  %v17008_v25 = vrot.slane %v1460_v2, 9  ;;  %v3311_v13 = vshll.u32 %v3282_v45, 16 }
 0x296   :  { %v3235_v4 = vsel %vm21867_vm14, %v3115_v52, %v3234_v17  ;;  %v1215_v3 = vcombine.high %v959_v55, %v959_v55  ;;  %v1222_v24 = vrot.slane %v959_v55, %v21789_v57  ;;  %v3307_v32 = vrot.slane %v3305_v63, 5  ;;  %v3259_v52 = vld [vmem:[#allocation2 + $0x8] sm:$0xf] }
 0x297   :  { %3236 = vst [vmem:[#allocation2 + $0x78] sm:$0xf] %v3235_v4  ;;  %v1469_v62 = vcombine.high %v1467_v16, %v1467_v16  ;;  %v17009_v53 = vrot.slane %v1468_v21, 9  ;;  %v17010_v6 = vrot.slane %v1467_v16, 9  ;;  %v2171_v36 = vmax.f32 %v1460_v2, %v17008_v25 }
 0x298   :  { %v22170_v54 = vrot.slane %v3311_v13, 5  ;;  %v1229_v37 = vrot.slane %v1215_v3, %v21789_v57  ;;  %v1230_v30 = vcombine.high %v1222_v24, %v1222_v24  ;;  %v16952_v28 = vrot.slane %v1222_v24, 9 }
 0x299   :  { %v17011_v35 = vrot.slane %v1469_v62, 9  ;;  %v2172_v61 = vmax.f32 %v1468_v21, %v17009_v53  ;;  %v2173_v22 = vmax.f32 %v1467_v16, %v17010_v6  ;;  %v18653_v34 = vpack.c.bf16 %v2171_v36, %v2171_v36 }
 0x29a   :  { %v3308_v27 = vor.u32 %v3307_v32, %v3304_v59  ;;  %v1231_v31 = vcombine.high %v1229_v37, %v1229_v37  ;;  %v16953_v17 = vrot.slane %v1230_v30, 9  ;;  %v16954_v14 = vrot.slane %v1229_v37, 9  ;;  %v3283_v32 = vld [vmem:[#allocation2 + $0xc] sm:$0x1] }
 0x29b   :  { %v2174_v7 = vmax.f32 %v1469_v62, %v17011_v35  ;;  %v18654_v33 = vpack.c.bf16 %v2172_v61, %v2172_v61  ;;  %v18655_v39 = vpack.c.bf16 %v2173_v22, %v2173_v22  ;;  %v2853_v0 = vunpack.c.l.b16 %v18653_v34 }
 0x29c   :  { %v2115_v2 = vmax.f32 %v1222_v24, %v16952_v28  ;;  %v16955_v25 = vrot.slane %v1231_v31, 9  ;;  %v2116_v63 = vmax.f32 %v1230_v30, %v16953_v17  ;;  %v2117_v4 = vmax.f32 %v1229_v37, %v16954_v14  ;;  %v22183_v30 = vld [vmem:[#allocation11] sm:$0xff]  }
 0x29d   :  { %v18656_v5 = vpack.c.bf16 %v2174_v7, %v2174_v7  ;;  %v2854_v45 = vunpack.c.l.b16 %v18654_v33  ;;  %v2855_v44 = vunpack.c.l.b16 %v18655_v39  ;;  %v3052_v21 = vrot.slane %v2853_v0, 7  ;;  %18981 = vmatprep.subr.bf16.mxu1 %v22183_v30 }
 0x29e   :  { %v18597_v55 = vpack.c.bf16 %v2115_v2, %v2115_v2  ;;  %v3309_v53 = vrot.slane %v3308_v27, 4  ;;  %v2118_v6 = vmax.f32 %v1231_v31, %v16955_v25  ;;  %v18598_v36 = vpack.c.bf16 %v2116_v63, %v2116_v63 }
 0x29f   :  { %v2856_v59 = vunpack.c.l.b16 %v18656_v5  ;;  %v3053_v13 = vrot.slane %v2854_v45, 6  ;;  %v3055_v62 = vrot.slane %v2855_v44, 5  ;;  %v18599_v3 = vpack.c.bf16 %v2117_v4, %v2117_v4  ;;  %v23829_v45 = vld [vmem:[#allocation43_spill] sm:$0xff] }
 0x2a0   :  { %v2797_v24 = vunpack.c.l.b16 %v18597_v55  ;;  %v3314_v22 = vsel %vm22175_vm1, %v3309_v53, %v22170_v54  ;;  %v3316_v34 = vshrl.u32 %v3259_v52, 16  ;;  %v18600_v28 = vpack.c.bf16 %v2118_v6, %v2118_v6 }
 0x2a1   :  { %v3054_v35 = vsel %vm2879_vm6, %v3053_v13, %v3052_v21  ;;  %v3057_v61 = vrot.slane %v2856_v59, 4  ;;  %v2798_v7 = vunpack.c.l.b16 %v18598_v36  ;;  %v2799_v27 = vunpack.c.l.b16 %v18599_v3 }
 0x2a2   :  { %v3056_v37 = vsel %vm2882_vm7, %v3055_v62, %v3054_v35  ;;  %v2961_v33 = vrot.slane %v2797_v24, 7  ;;  %v3318_v39 = vrot.slane %v3316_v34, 4  ;;  %v3319_v0 = vshll.u32 %v3259_v52, 16 }
 0x2a3   :  { %v3325_v31 = vshll.u32 %v3283_v32, 16  ;;  %v2800_v17 = vunpack.c.l.b16 %v18600_v28  ;;  %v2962_v14 = vrot.slane %v2798_v7, 6  ;;  %v2964_v2 = vrot.slane %v2799_v27, 5 }
 0x2a4   :  { %v3321_v5 = vrot.slane %v3319_v0, 5  ;;  %v728_v44 = vadd.f32 %v22152_v9, %v23829_v45  ;;  %v848_v21 = vadd.f32 %v22152_v9, %v21961_v38  ;;  %v840_v52 = vadd.f32 %v22152_v9, %v21964_v49 }
 0x2a5   :  { %v3327_v54 = vrot.slane %v3325_v31, 5  ;;  %v2963_v25 = vsel %vm2879_vm6, %v2962_v14, %v2961_v33  ;;  %v2966_v63 = vrot.slane %v2800_v17, 4  ;;  %v22195_v4 = vsel %vm2885_vm8, %v3057_v61, %v3056_v37 }
 0x2a6   :  { %v2965_v55 = vsel %vm2882_vm7, %v2964_v2, %v2963_v25  ;;  %v3322_v59 = vor.u32 %v3321_v5, %v3318_v39  ;;  %v908_v13 = vmax.f32 %v728_v44, 0.0  ;;  %v938_v62 = vmax.f32 %v848_v21, 0.0 }
 0x2a7   :  { %v22199_v53 = vsel %vm2885_vm8, %v2966_v63, %v2965_v55  ;;  %v936_v6 = vmax.f32 %v840_v52, 0.0  ;;  %v861_v38 = vadd.f32 %v22152_v9, %v21971_v29  ;;  %v749_v36 = vadd.f32 %v22152_v9, %v21975_v26 }
 0x2a8   :  { %v3323_v3 = vrot.slane %v3322_v59, 4  ;;  %v960_v49 = vmax.f32 %v908_v13, %v910_v11  ;;  %v853_v24 = vadd.f32 %v22152_v9, %v21977_v58  ;;  %v741_v32 = vadd.f32 %v22152_v9, %v21980_v43  ;;  %v3201_v13 = vld [vmem:[#allocation2 + $0x3c] sm:$0x1] }
 0x2a9   :  { %v974_v35 = vmax.f32 %v936_v6, %v938_v62  ;;  %v941_v61 = vmax.f32 %v861_v38, 0.0  ;;  %v913_v34 = vmax.f32 %v749_v36, 0.0  ;;  %v22213_v37 = vadd.f32 %v22152_v9, %v21984_v51 }
 0x2aa   :  { %v3328_v29 = vsel %vm22175_vm1, %v3323_v3, %v3327_v54  ;;  %v1232_v26 = vcombine.high %v960_v49, %v960_v49  ;;  %v1239_v19 = vrot.slane %v960_v49, %v21789_v57  ;;  %v939_v11 = vmax.f32 %v853_v24, 0.0 }
 0x2ab   :  { %v17176_v28 = vcombine.low %v3314_v22, %v3328_v29  ;;  %v1470_v7 = vcombine.high %v974_v35, %v974_v35  ;;  %v1477_v58 = vrot.slane %v974_v35, %v21789_v57  ;;  %v911_v27 = vmax.f32 %v741_v32, 0.0  ;;  %v3243_v35 = vld [vmem:[#allocation2 + $0x84] sm:$0x1] }
 0x2ac   :  { %v1246_v43 = vrot.slane %v1232_v26, %v21789_v57  ;;  %v1247_v33 = vcombine.high %v1239_v19, %v1239_v19  ;;  %v16956_v39 = vrot.slane %v1239_v19, 9  ;;  %v22220_v0 = vmax.f32 %v939_v11, %v941_v61 }
 0x2ad   :  { %18965 = vmatprep.mubr.msk.bf16.mxu1 %vm3582_vm2, %v17176_v28  ;;  %v1484_v51 = vrot.slane %v1470_v7, %v21789_v57  ;;  %v1485_v31 = vcombine.high %v1477_v58, %v1477_v58  ;;  %v17012_v17 = vrot.slane %v1477_v58, 9  ;;  %v961_v14 = vmax.f32 %v911_v27, %v913_v34 }
 0x2ae   :  { %v1248_v2 = vcombine.high %v1246_v43, %v1246_v43  ;;  %v16957_v5 = vrot.slane %v1247_v33, 9  ;;  %v16958_v22 = vrot.slane %v1246_v43, 9  ;;  %v2119_v54 = vmax.f32 %v1239_v19, %v16956_v39 }
 0x2af   :  { %v1486_v45 = vcombine.high %v1484_v51, %v1484_v51  ;;  %v17013_v44 = vrot.slane %v1485_v31, 9  ;;  %v17014_v21 = vrot.slane %v1484_v51, 9  ;;  %v2175_v25 = vmax.f32 %v1477_v58, %v17012_v17 }
 0x2b0   :  { %v16959_v63 = vrot.slane %v1248_v2, 9  ;;  %v2120_v52 = vmax.f32 %v1247_v33, %v16957_v5  ;;  %v2121_v55 = vmax.f32 %v1246_v43, %v16958_v22  ;;  %v18601_v59 = vpack.c.bf16 %v2119_v54, %v2119_v54 }
 0x2b1   :  { %v17015_v62 = vrot.slane %v1486_v45, 9  ;;  %v2176_v6 = vmax.f32 %v1485_v31, %v17013_v44  ;;  %v2177_v38 = vmax.f32 %v1484_v51, %v17014_v21  ;;  %v18657_v36 = vpack.c.bf16 %v2175_v25, %v2175_v25 }
 0x2b2   :  { %v2122_v3 = vmax.f32 %v1248_v2, %v16959_v63  ;;  %v18602_v49 = vpack.c.bf16 %v2120_v52, %v2120_v52  ;;  %v18603_v24 = vpack.c.bf16 %v2121_v55, %v2121_v55  ;;  %v2801_v32 = vunpack.c.l.b16 %v18601_v59  ;;  %v3198_v63 = vld [vmem:[#allocation2 + $0x38] sm:$0xf] }
 0x2b3   :  { %v2178_v61 = vmax.f32 %v1486_v45, %v17015_v62  ;;  %v18658_v34 = vpack.c.bf16 %v2176_v6, %v2176_v6  ;;  %v18659_v29 = vpack.c.bf16 %v2177_v38, %v2177_v38  ;;  %v2857_v26 = vunpack.c.l.b16 %v18657_v36  ;;  %v3240_v62 = vld [vmem:[#allocation2 + $0x80] sm:$0xf] }
 0x2b4   :  { %v2802_v19 = vunpack.c.l.b16 %v18602_v49  ;;  %v2803_v11 = vunpack.c.l.b16 %v18603_v24  ;;  %v2968_v28 = vrot.slane %v2801_v32, 3  ;;  %v18683_v7 = vpack.c.bf16 %v2122_v3, %v2122_v3 }
 0x2b5   :  { %v2858_v58 = vunpack.c.l.b16 %v18658_v34  ;;  %v2859_v27 = vunpack.c.l.b16 %v18659_v29  ;;  %v3059_v43 = vrot.slane %v2857_v26, 3  ;;  %v18690_v33 = vpack.c.bf16 %v2178_v61, %v2178_v61 }
 0x2b6   :  { %v2969_v39 = vsel %vm2888_vm9, %v2968_v28, %v22199_v53  ;;  %v2970_v51 = vrot.slane %v2802_v19, 2  ;;  %v2972_v31 = vrot.slane %v2803_v11, 1  ;;  %v3202_v17 = vsel %vm21827_vm13, %v18683_v7, %v3201_v13 }
 0x2b7   :  { %3203 = vst [vmem:[#allocation2 + $0x3c] sm:$0x1] %v3202_v17  ;;  %v3060_v2 = vsel %vm2888_vm9, %v3059_v43, %v22195_v4  ;;  %v3061_v5 = vrot.slane %v2858_v58, 2  ;;  %v3063_v22 = vrot.slane %v2859_v27, 1  ;;  %v3244_v54 = vsel %vm21827_vm13, %v18690_v33, %v3243_v35 }
 0x2b8   :  { %v2971_v45 = vsel %vm2891_vm10, %v2970_v51, %v2969_v39  ;;  %3245 = vst [vmem:[#allocation2 + $0x84] sm:$0x1] %v3244_v54  ;;  %v1487_v53 = vcombine.high %v22220_v0, %v22220_v0  ;;  %v1494_v44 = vrot.slane %v22220_v0, %v21789_v57  ;;  %v1249_v21 = vcombine.high %v961_v14, %v961_v14 }
 0x2b9   :  { %v2973_v25 = vsel %vm2894_vm11, %v2972_v31, %v2971_v45  ;;  %v3062_v4 = vsel %vm2891_vm10, %v3061_v5, %v3060_v2  ;;  %v1256_v52 = vrot.slane %v961_v14, %v21789_v57  ;;  %v914_v55 = vmax.f32 %v22213_v37, 0.0 }
 0x2ba   :  { %v3103_v59 = vpack.c.b16 %v2973_v25, %v2973_v25  ;;  %v3064_v13 = vsel %vm2894_vm11, %v3063_v22, %v3062_v4  ;;  %v1501_v6 = vrot.slane %v1487_v53, %v21789_v57  ;;  %v1502_v38 = vcombine.high %v1494_v44, %v1494_v44 }
 0x2bb   :  { %v3117_v36 = vpack.c.b16 %v3064_v13, %v3064_v13  ;;  %v17016_v3 = vrot.slane %v1494_v44, 9  ;;  %v1263_v0 = vrot.slane %v1249_v21, %v21789_v57  ;;  %v1264_v49 = vcombine.high %v1256_v52, %v1256_v52 }
 0x2bc   :  { %v3199_v24 = vsel %vm21867_vm14, %v3103_v59, %v3198_v63  ;;  %v1503_v32 = vcombine.high %v1501_v6, %v1501_v6  ;;  %v17017_v35 = vrot.slane %v1502_v38, 9  ;;  %v17018_v14 = vrot.slane %v1501_v6, 9 }
 0x2bd   :  { %3200 = vst [vmem:[#allocation2 + $0x38] sm:$0xf] %v3199_v24  ;;  %v3241_v61 = vsel %vm21867_vm14, %v3117_v36, %v3240_v62  ;;  %v2179_v34 = vmax.f32 %v1494_v44, %v17016_v3  ;;  %v1265_v29 = vcombine.high %v1263_v0, %v1263_v0  ;;  %v16960_v26 = vrot.slane %v1256_v52, 9 }
 0x2be   :  { %3242 = vst [vmem:[#allocation2 + $0x80] sm:$0xf] %v3241_v61  ;;  %v17019_v19 = vrot.slane %v1503_v32, 9  ;;  %v2180_v11 = vmax.f32 %v1502_v38, %v17017_v35  ;;  %v2181_v28 = vmax.f32 %v1501_v6, %v17018_v14  ;;  %v16961_v7 = vrot.slane %v1264_v49, 9 }
 0x2bf   :  { %v18661_v58 = vpack.c.bf16 %v2179_v34, %v2179_v34  ;;  %v16962_v27 = vrot.slane %v1263_v0, 9  ;;  %v16963_v43 = vrot.slane %v1265_v29, 9  ;;  %v2123_v33 = vmax.f32 %v1256_v52, %v16960_v26 }
 0x2c0   :  { %v2182_v39 = vmax.f32 %v1503_v32, %v17019_v19  ;;  %v18662_v51 = vpack.c.bf16 %v2180_v11, %v2180_v11  ;;  %v18663_v31 = vpack.c.bf16 %v2181_v28, %v2181_v28  ;;  %v2124_v17 = vmax.f32 %v1264_v49, %v16961_v7 }
 0x2c1   :  { %v2861_v2 = vunpack.c.l.b16 %v18661_v58  ;;  %v2125_v5 = vmax.f32 %v1263_v0, %v16962_v27  ;;  %v2126_v22 = vmax.f32 %v1265_v29, %v16963_v43  ;;  %v18605_v54 = vpack.c.bf16 %v2123_v33, %v2123_v33 }
 0x2c2   :  { %v18664_v45 = vpack.c.bf16 %v2182_v39, %v2182_v39  ;;  %v2862_v53 = vunpack.c.l.b16 %v18662_v51  ;;  %v2863_v44 = vunpack.c.l.b16 %v18663_v31  ;;  %v18606_v21 = vpack.c.bf16 %v2124_v17, %v2124_v17  ;;  %v22272_v39 = vld [vmem:[#allocation2 + $0x10] sm:$0xf] }
 0x2c3   :  { %v3065_v25 = vrot.slane %v2861_v2, 7  ;;  %v18607_v63 = vpack.c.bf16 %v2125_v5, %v2125_v5  ;;  %v18608_v4 = vpack.c.bf16 %v2126_v22, %v2126_v22  ;;  %v2805_v59 = vunpack.c.l.b16 %v18605_v54 }
 0x2c4   :  { %v2864_v13 = vunpack.c.l.b16 %v18664_v45  ;;  %v3066_v62 = vrot.slane %v2862_v53, 6  ;;  %v3068_v6 = vrot.slane %v2863_v44, 5  ;;  %v2806_v52 = vunpack.c.l.b16 %v18606_v21 }
 0x2c5   :  { %v2807_v38 = vunpack.c.l.b16 %v18607_v63  ;;  %v2808_v36 = vunpack.c.l.b16 %v18608_v4  ;;  %v2974_v3 = vrot.slane %v2805_v59, 7  ;;  %v744_v0 = vadd.f32 %v22152_v9, %v21987_v1 }
 0x2c6   :  { %v3067_v49 = vsel %vm2879_vm6, %v3066_v62, %v3065_v25  ;;  %v3070_v24 = vrot.slane %v2864_v13, 4  ;;  %v2975_v32 = vrot.slane %v2806_v52, 6  ;;  %v864_v35 = vadd.f32 %v22152_v9, %v22001_v48 }
 0x2c7   :  { %v3069_v14 = vsel %vm2882_vm7, %v3068_v6, %v3067_v49  ;;  %v2977_v61 = vrot.slane %v2807_v38, 5  ;;  %v2979_v34 = vrot.slane %v2808_v36, 4  ;;  %v912_v29 = vmax.f32 %v744_v0, 0.0 }
 0x2c8   :  { %v2976_v26 = vsel %vm2879_vm6, %v2975_v32, %v2974_v3  ;;  %v942_v19 = vmax.f32 %v864_v35, 0.0  ;;  %v856_v11 = vadd.f32 %v22152_v9, %v22006_v41  ;;  %v22258_v1 = vsel %vm2885_vm8, %v3070_v24, %v3069_v14 }
 0x2c9   :  { %v2978_v28 = vsel %vm2882_vm7, %v2977_v61, %v2976_v26  ;;  %v962_v7 = vmax.f32 %v912_v29, %v914_v55  ;;  %v877_v48 = vadd.f32 %v22152_v9, %v22023_v8  ;;  %v765_v58 = vadd.f32 %v22152_v9, %v22025_v20 }
 0x2ca   :  { %v2980_v27 = vsel %vm2885_vm8, %v2979_v34, %v2978_v28  ;;  %v940_v43 = vmax.f32 %v856_v11, 0.0  ;;  %v869_v41 = vadd.f32 %v22152_v9, %v22027_v46  ;;  %v757_v33 = vadd.f32 %v22152_v9, %v22037_v40  ;;  %v3207_v34 = vld [vmem:[#allocation2 + $0x44] sm:$0x1] }
 0x2cb   :  { %v1266_v51 = vcombine.high %v962_v7, %v962_v7  ;;  %v1273_v37 = vrot.slane %v962_v7, %v21789_v57  ;;  %v945_v55 = vmax.f32 %v877_v48, 0.0  ;;  %v917_v31 = vmax.f32 %v765_v58, 0.0 }
 0x2cc   :  { %v976_v8 = vmax.f32 %v940_v43, %v942_v19  ;;  %v943_v17 = vmax.f32 %v869_v41, 0.0  ;;  %v915_v2 = vmax.f32 %v757_v33, 0.0  ;;  %v22277_v20 = vadd.f32 %v22152_v9, %v22042_v12 }
 0x2cd   :  { %v1280_v5 = vrot.slane %v1266_v51, %v21789_v57  ;;  %v1281_v46 = vcombine.high %v1273_v37, %v1273_v37  ;;  %v16964_v22 = vrot.slane %v1273_v37, 9  ;;  %v3330_v40 = vshrl.u32 %v22272_v39, 16 }
 0x2ce   :  { %v1504_v54 = vcombine.high %v976_v8, %v976_v8  ;;  %v1511_v45 = vrot.slane %v976_v8, %v21789_v57  ;;  %v977_v53 = vmax.f32 %v943_v17, %v945_v55  ;;  %v22282_v44 = vmax.f32 %v915_v2, %v917_v31 }
 0x2cf   :  { %v1282_v21 = vcombine.high %v1280_v5, %v1280_v5  ;;  %v16965_v25 = vrot.slane %v1281_v46, 9  ;;  %v16966_v63 = vrot.slane %v1280_v5, 9  ;;  %v2127_v4 = vmax.f32 %v1273_v37, %v16964_v22  ;;  %v3249_v22 = vld [vmem:[#allocation2 + $0x8c] sm:$0x1] }
 0x2d0   :  { %v1518_v59 = vrot.slane %v1504_v54, %v21789_v57  ;;  %v1519_v12 = vcombine.high %v1511_v45, %v1511_v45  ;;  %v17020_v13 = vrot.slane %v1511_v45, 9  ;;  %v1521_v62 = vcombine.high %v977_v53, %v977_v53 }
 0x2d1   :  { %v16967_v6 = vrot.slane %v1282_v21, 9  ;;  %v2128_v52 = vmax.f32 %v1281_v46, %v16965_v25  ;;  %v2129_v38 = vmax.f32 %v1280_v5, %v16966_v63  ;;  %v18609_v36 = vpack.c.bf16 %v2127_v4, %v2127_v4  ;;  %v3204_v63 = vld [vmem:[#allocation2 + $0x40] sm:$0xf] }
 0x2d2   :  { %v1520_v3 = vcombine.high %v1518_v59, %v1518_v59  ;;  %v17021_v0 = vrot.slane %v1519_v12, 9  ;;  %v17022_v49 = vrot.slane %v1518_v59, 9  ;;  %v2183_v24 = vmax.f32 %v1511_v45, %v17020_v13 }
 0x2d3   :  { %v2130_v32 = vmax.f32 %v1282_v21, %v16967_v6  ;;  %v18610_v35 = vpack.c.bf16 %v2128_v52, %v2128_v52  ;;  %v18611_v14 = vpack.c.bf16 %v2129_v38, %v2129_v38  ;;  %v2809_v61 = vunpack.c.l.b16 %v18609_v36 }
 0x2d4   :  { %v17023_v29 = vrot.slane %v1520_v3, 9  ;;  %v2184_v26 = vmax.f32 %v1519_v12, %v17021_v0  ;;  %v2185_v19 = vmax.f32 %v1518_v59, %v17022_v49  ;;  %v18665_v11 = vpack.c.bf16 %v2183_v24, %v2183_v24  ;;  %v3246_v49 = vld [vmem:[#allocation2 + $0x88] sm:$0xf] }
 0x2d5   :  { %v2810_v28 = vunpack.c.l.b16 %v18610_v35  ;;  %v2811_v7 = vunpack.c.l.b16 %v18611_v14  ;;  %v2981_v48 = vrot.slane %v2809_v61, 3  ;;  %v18684_v58 = vpack.c.bf16 %v2130_v32, %v2130_v32 }
 0x2d6   :  { %v2186_v43 = vmax.f32 %v1520_v3, %v17023_v29  ;;  %v18666_v41 = vpack.c.bf16 %v2184_v26, %v2184_v26  ;;  %v18667_v33 = vpack.c.bf16 %v2185_v19, %v2185_v19  ;;  %v2865_v51 = vunpack.c.l.b16 %v18665_v11 }
 0x2d7   :  { %v2982_v37 = vsel %vm2888_vm9, %v2981_v48, %v2980_v27  ;;  %v2983_v55 = vrot.slane %v2810_v28, 2  ;;  %v2985_v31 = vrot.slane %v2811_v7, 1  ;;  %v3208_v8 = vsel %vm21827_vm13, %v18684_v58, %v3207_v34 }
 0x2d8   :  { %3209 = vst [vmem:[#allocation2 + $0x44] sm:$0x1] %v3208_v8  ;;  %v2866_v17 = vunpack.c.l.b16 %v18666_v41  ;;  %v2867_v2 = vunpack.c.l.b16 %v18667_v33  ;;  %v3072_v5 = vrot.slane %v2865_v51, 3  ;;  %v18691_v46 = vpack.c.bf16 %v2186_v43, %v2186_v43 }
 0x2d9   :  { %v2984_v54 = vsel %vm2891_vm10, %v2983_v55, %v2982_v37  ;;  %v1528_v45 = vrot.slane %v977_v53, %v21789_v57  ;;  %v1535_v21 = vrot.slane %v1521_v62, %v21789_v57  ;;  %v1283_v27 = vcombine.high %v22282_v44, %v22282_v44 }
 0x2da   :  { %v2986_v25 = vsel %vm2894_vm11, %v2985_v31, %v2984_v54  ;;  %v3073_v4 = vsel %vm2888_vm9, %v3072_v5, %v22258_v1  ;;  %v3074_v59 = vrot.slane %v2866_v17, 2  ;;  %v3076_v12 = vrot.slane %v2867_v2, 1 }
 0x2db   :  { %v3105_v13 = vpack.c.b16 %v2986_v25, %v2986_v25  ;;  %v3250_v6 = vsel %vm21827_vm13, %v18691_v46, %v3249_v22  ;;  %v1536_v52 = vcombine.high %v1528_v45, %v1528_v45  ;;  %v1537_v38 = vcombine.high %v1535_v21, %v1535_v21 }
 0x2dc   :  { %v3075_v53 = vsel %vm2891_vm10, %v3074_v59, %v3073_v4  ;;  %3251 = vst [vmem:[#allocation2 + $0x8c] sm:$0x1] %v3250_v6  ;;  %v17024_v62 = vrot.slane %v1528_v45, 9  ;;  %v17026_v36 = vrot.slane %v1535_v21, 9  ;;  %v1290_v3 = vrot.slane %v22282_v44, %v21789_v57  ;;  %v22310_v6 = vld [vmem:[#allocation2 + $0x18] sm:$0xf] }
 0x2dd   :  { %v3205_v0 = vsel %vm21867_vm14, %v3105_v13, %v3204_v63  ;;  %v3077_v1 = vsel %vm2894_vm11, %v3076_v12, %v3075_v53  ;;  %v17025_v24 = vrot.slane %v1536_v52, 9  ;;  %v17027_v32 = vrot.slane %v1537_v38, 9 }
 0x2de   :  { %3206 = vst [vmem:[#allocation2 + $0x40] sm:$0xf] %v3205_v0  ;;  %v3119_v35 = vpack.c.b16 %v3077_v1, %v3077_v1  ;;  %v2187_v14 = vmax.f32 %v1528_v45, %v17024_v62  ;;  %v2189_v61 = vmax.f32 %v1535_v21, %v17026_v36  ;;  %v1297_v34 = vrot.slane %v1283_v27, %v21789_v57  ;;  %v22307_v21 = vld [vmem:[#allocation2 + $0x14] sm:$0x1]  ;;  %v22315_v36 = vld [vmem:[#allocation2 + $0x1c] sm:$0x1] }
 0x2df   :  { %v2188_v29 = vmax.f32 %v1536_v52, %v17025_v24  ;;  %v2190_v26 = vmax.f32 %v1537_v38, %v17027_v32  ;;  %v1298_v19 = vcombine.high %v1290_v3, %v1290_v3  ;;  %v16968_v11 = vrot.slane %v1290_v3, 9 }
 0x2e0   :  { %v3247_v44 = vsel %vm21867_vm14, %v3119_v35, %v3246_v49  ;;  %v18669_v28 = vpack.c.bf16 %v2187_v14, %v2187_v14  ;;  %v18671_v7 = vpack.c.bf16 %v2189_v61, %v2189_v61  ;;  %v1299_v48 = vcombine.high %v1297_v34, %v1297_v34 }
 0x2e1   :  { %3248 = vst [vmem:[#allocation2 + $0x88] sm:$0xf] %v3247_v44  ;;  %v18670_v58 = vpack.c.bf16 %v2188_v29, %v2188_v29  ;;  %v18672_v43 = vpack.c.bf16 %v2190_v26, %v2190_v26  ;;  %v16969_v41 = vrot.slane %v1298_v19, 9  ;;  %v16970_v33 = vrot.slane %v1297_v34, 9 }
 0x2e2   :  { %v2869_v51 = vunpack.c.l.b16 %v18669_v28  ;;  %v2871_v37 = vunpack.c.l.b16 %v18671_v7  ;;  %v16971_v55 = vrot.slane %v1299_v48, 9  ;;  %v2131_v31 = vmax.f32 %v1290_v3, %v16968_v11 }
 0x2e3   :  { %v2870_v8 = vunpack.c.l.b16 %v18670_v58  ;;  %v2872_v17 = vunpack.c.l.b16 %v18672_v43  ;;  %v2132_v2 = vmax.f32 %v1298_v19, %v16969_v41  ;;  %v2133_v5 = vmax.f32 %v1297_v34, %v16970_v33 }
 0x2e4   :  { %v3078_v46 = vrot.slane %v2869_v51, 7  ;;  %v3081_v22 = vrot.slane %v2871_v37, 5  ;;  %v2134_v54 = vmax.f32 %v1299_v48, %v16971_v55  ;;  %v18613_v45 = vpack.c.bf16 %v2131_v31, %v2131_v31 }
 0x2e5   :  { %v3079_v27 = vrot.slane %v2870_v8, 6  ;;  %v3083_v25 = vrot.slane %v2872_v17, 4  ;;  %v18614_v63 = vpack.c.bf16 %v2132_v2, %v2132_v2  ;;  %v18615_v4 = vpack.c.bf16 %v2133_v5, %v2133_v5  ;;  %v22343_v5 = vld [vmem:[#allocation2 + $0x20] sm:$0xf] }
 0x2e6   :  { %v18616_v59 = vpack.c.bf16 %v2134_v54, %v2134_v54  ;;  %v2813_v12 = vunpack.c.l.b16 %v18613_v45  ;;  %v918_v13 = vmax.f32 %v22277_v20, 0.0  ;;  %v3332_v52 = vrot.slane %v3330_v40, 4 }
 0x2e7   :  { %v3080_v38 = vsel %vm2879_vm6, %v3079_v27, %v3078_v46  ;;  %v2814_v53 = vunpack.c.l.b16 %v18614_v63  ;;  %v2815_v62 = vunpack.c.l.b16 %v18615_v4  ;;  %v3333_v3 = vshll.u32 %v22272_v39, 16 }
 0x2e8   :  { %v3082_v0 = vsel %vm2882_vm7, %v3081_v22, %v3080_v38  ;;  %v2816_v1 = vunpack.c.l.b16 %v18616_v59  ;;  %v2987_v49 = vrot.slane %v2813_v12, 7  ;;  %v3339_v24 = vshll.u32 %v22307_v21, 16  ;;  %v19453_v38 = vld [vmem:[#allocation11 + $0x8] sm:$0xff]  }
 0x2e9   :  { %v2988_v20 = vrot.slane %v2814_v53, 6  ;;  %v2990_v32 = vrot.slane %v2815_v62, 5  ;;  %v3335_v35 = vrot.slane %v3333_v3, 5  ;;  %v3344_v14 = vshrl.u32 %v22310_v6, 16 }
 0x2ea   :  { %v2992_v40 = vrot.slane %v2816_v1, 4  ;;  %v3341_v61 = vrot.slane %v3339_v24, 5  ;;  %v3347_v34 = vshll.u32 %v22310_v6, 16  ;;  %v3353_v29 = vshll.u32 %v22315_v36, 16 }
 0x2eb   :  { %v2989_v26 = vsel %vm2879_vm6, %v2988_v20, %v2987_v49  ;;  %v3336_v19 = vor.u32 %v3335_v35, %v3332_v52  ;;  %v3346_v11 = vrot.slane %v3344_v14, 4  ;;  %v760_v44 = vadd.f32 %v22152_v9, %v22089_v42 }
 0x2ec   :  { %v2991_v28 = vsel %vm2882_vm7, %v2990_v32, %v2989_v26  ;;  %v3349_v7 = vrot.slane %v3347_v34, 5  ;;  %v3355_v48 = vrot.slane %v3353_v29, 5  ;;  %v880_v58 = vadd.f32 %v22152_v9, %v22125_v18  ;;  %v19454_v29 = vld [vmem:[#allocation11 + $0x10] sm:$0xff]  }
 0x2ed   :  { %v3337_v43 = vrot.slane %v3336_v19, 4  ;;  %v916_v41 = vmax.f32 %v760_v44, 0.0  ;;  %v22330_v33 = vsel %vm2885_vm8, %v2992_v40, %v2991_v28  ;;  %v872_v51 = vadd.f32 %v22152_v9, %v22129_v50 }
 0x2ee   :  { %v3350_v37 = vor.u32 %v3349_v7, %v3346_v11  ;;  %v946_v55 = vmax.f32 %v880_v58, 0.0  ;;  %v22335_v31 = vsel %vm2885_vm8, %v3083_v25, %v3082_v0  ;;  %v781_v42 = vadd.f32 %v22152_v9, %v22131_v15 }
 0x2ef   :  { %v3342_v8 = vsel %vm22175_vm1, %v3337_v43, %v3341_v61  ;;  %v964_v18 = vmax.f32 %v916_v41, %v918_v13  ;;  %v944_v17 = vmax.f32 %v872_v51, 0.0  ;;  %v773_v2 = vadd.f32 %v22152_v9, %v22133_v47  ;;  %v3213_v43 = vld [vmem:[#allocation2 + $0x5c] sm:$0x1] }
 0x2f0   :  { %v3351_v46 = vrot.slane %v3350_v37, 4  ;;  %v921_v50 = vmax.f32 %v781_v42, 0.0  ;;  %v784_v22 = vadd.f32 %v22152_v9, %v22135_v10  ;;  %v776_v54 = vadd.f32 %v22152_v9, %v22139_v60 }
 0x2f1   :  { %v1300_v45 = vcombine.high %v964_v18, %v964_v18  ;;  %v1307_v15 = vrot.slane %v964_v18, %v21789_v57  ;;  %v978_v27 = vmax.f32 %v944_v17, %v946_v55  ;;  %v919_v25 = vmax.f32 %v773_v2, 0.0  ;;  %v19455_v17 = vld [vmem:[#allocation11 + $0x18] sm:$0xff]  }
 0x2f2   :  { %v3356_v63 = vsel %vm22175_vm1, %v3351_v46, %v3355_v48  ;;  %v922_v4 = vmax.f32 %v784_v22, 0.0  ;;  %v920_v47 = vmax.f32 %v776_v54, 0.0  ;;  %v3358_v59 = vshrl.u32 %v22343_v5, 16 }
 0x2f3   :  { %v17177_v12 = vcombine.low %v3342_v8, %v3356_v63  ;;  %v1314_v13 = vrot.slane %v1300_v45, %v21789_v57  ;;  %v1315_v52 = vcombine.high %v1307_v15, %v1307_v15  ;;  %v16972_v10 = vrot.slane %v1307_v15, 9 }
 0x2f4   :  { %v1538_v53 = vcombine.high %v978_v27, %v978_v27  ;;  %v1545_v60 = vrot.slane %v978_v27, %v21789_v57  ;;  %v965_v9 = vmax.f32 %v919_v25, %v921_v50  ;;  %v22355_v62 = vmax.f32 %v920_v47, %v922_v4 }
 0x2f5   :  { %18966 = vmatmul.mubr.msk.bf16.vlgmr.msra.gmra.mrb[24].mxu1 %vm3582_vm2, %v17177_v12  ;;  %v1316_v3 = vcombine.high %v1314_v13, %v1314_v13  ;;  %v16973_v0 = vrot.slane %v1315_v52, 9  ;;  %v16974_v1 = vrot.slane %v1314_v13, 9  ;;  %v2135_v49 = vmax.f32 %v1307_v15, %v16972_v10  ;;  %v3255_v12 = vld [vmem:[#allocation2 + $0x94] sm:$0x1] }
 0x2f6   :  { %v1552_v24 = vrot.slane %v1538_v53, %v21789_v57  ;;  %v1553_v20 = vcombine.high %v1545_v60, %v1545_v60  ;;  %v17028_v32 = vrot.slane %v1545_v60, 9  ;;  %v1317_v35 = vcombine.high %v965_v9, %v965_v9  ;;  %18982 = vmatpush3.bf16.msra.mxu1 %v22183_v30 }
 0x2f7   :  { %v16975_v14 = vrot.slane %v1316_v3, 9  ;;  %v2136_v40 = vmax.f32 %v1315_v52, %v16973_v0  ;;  %v2137_v61 = vmax.f32 %v1314_v13, %v16974_v1  ;;  %v18617_v34 = vpack.c.bf16 %v2135_v49, %v2135_v49  ;;  %18983 = vmatprep.subr.bf16.mxu1 %v19453_v38 }
 0x2f8   :  { %v1554_v26 = vcombine.high %v1552_v24, %v1552_v24  ;;  %v17029_v19 = vrot.slane %v1553_v20, 9  ;;  %v17030_v11 = vrot.slane %v1552_v24, 9  ;;  %v2191_v44 = vmax.f32 %v1545_v60, %v17028_v32  ;;  %v3210_v60 = vld [vmem:[#allocation2 + $0x58] sm:$0xf] }
 0x2f9   :  { %v2138_v28 = vmax.f32 %v1316_v3, %v16975_v14  ;;  %v18618_v7 = vpack.c.bf16 %v2136_v40, %v2136_v40  ;;  %v18619_v48 = vpack.c.bf16 %v2137_v61, %v2137_v61  ;;  %v2817_v58 = vunpack.c.l.b16 %v18617_v34  ;;  %v3252_v34 = vld [vmem:[#allocation2 + $0x90] sm:$0xf] }
 0x2fa   :  { %v17031_v41 = vrot.slane %v1554_v26, 9  ;;  %v2192_v51 = vmax.f32 %v1553_v20, %v17029_v19  ;;  %v2193_v37 = vmax.f32 %v1552_v24, %v17030_v11  ;;  %v18673_v55 = vpack.c.bf16 %v2191_v44, %v2191_v44  ;;  %18984 = vmatpush3.bf16.msra.mxu1 %v19453_v38  ;;  %v22369_v38 = vld [vmem:[#allocation11 + $0x40] sm:$0xff]  }
 0x2fb   :  { %v2818_v30 = vunpack.c.l.b16 %v18618_v7  ;;  %v2819_v42 = vunpack.c.l.b16 %v18619_v48  ;;  %v2994_v8 = vrot.slane %v2817_v58, 3  ;;  %v18685_v18 = vpack.c.bf16 %v2138_v28, %v2138_v28  ;;  %18985 = vmatprep.subr.bf16.mxu1 %v19454_v29 }
 0x2fc   :  { %v2194_v2 = vmax.f32 %v1554_v26, %v17031_v41  ;;  %v18674_v46 = vpack.c.bf16 %v2192_v51, %v2192_v51  ;;  %v18675_v50 = vpack.c.bf16 %v2193_v37, %v2193_v37  ;;  %v2873_v22 = vunpack.c.l.b16 %v18673_v55 }
 0x2fd   :  { %v2995_v54 = vsel %vm2888_vm9, %v2994_v8, %v22330_v33  ;;  %v2996_v45 = vrot.slane %v2818_v30, 2  ;;  %v2998_v15 = vrot.slane %v2819_v42, 1  ;;  %v3214_v27 = vsel %vm21827_vm13, %v18685_v18, %v3213_v43 }
 0x2fe   :  { %3215 = vst [vmem:[#allocation2 + $0x5c] sm:$0x1] %v3214_v27  ;;  %v2874_v25 = vunpack.c.l.b16 %v18674_v46  ;;  %v2875_v63 = vunpack.c.l.b16 %v18675_v50  ;;  %v3085_v4 = vrot.slane %v2873_v22, 3  ;;  %v18692_v47 = vpack.c.bf16 %v2194_v2, %v2194_v2  ;;  %18986 = vmatpush3.bf16.msra.mxu1 %v19454_v29 }
 0x2ff   :  { %v2997_v13 = vsel %vm2891_vm10, %v2996_v45, %v2995_v54  ;;  %v1324_v52 = vrot.slane %v965_v9, %v21789_v57  ;;  %v1331_v10 = vrot.slane %v1317_v35, %v21789_v57  ;;  %v1334_v33 = vcombine.high %v22355_v62, %v22355_v62  ;;  %18987 = vmatprep.subr.bf16.mxu1 %v19455_v17 }
 0x300   :  { %v2999_v53 = vsel %vm2894_vm11, %v2998_v15, %v2997_v13  ;;  %v3086_v3 = vsel %vm2888_vm9, %v3085_v4, %v22335_v31  ;;  %v3087_v0 = vrot.slane %v2874_v25, 2  ;;  %v3089_v1 = vrot.slane %v2875_v63, 1  ;;  %v22386_v4 = vld [vmem:[#allocation2 + $0x24] sm:$0x1] }
 0x301   :  { %v3107_v49 = vpack.c.b16 %v2999_v53, %v2999_v53  ;;  %v3256_v9 = vsel %vm21827_vm13, %v18692_v47, %v3255_v12  ;;  %v1332_v24 = vcombine.high %v1324_v52, %v1324_v52  ;;  %v1333_v20 = vcombine.high %v1331_v10, %v1331_v10 }
 0x302   :  { %v3088_v32 = vsel %vm2891_vm10, %v3087_v0, %v3086_v3  ;;  %3257 = vst [vmem:[#allocation2 + $0x94] sm:$0x1] %v3256_v9  ;;  %v16976_v35 = vrot.slane %v1324_v52, 9  ;;  %v16978_v14 = vrot.slane %v1331_v10, 9  ;;  %v1341_v40 = vrot.slane %v22355_v62, %v21789_v57  ;;  %18988 = vmatpush3.bf16.msra.mxu1 %v19455_v17  ;;  %v22392_v9 = vld [vmem:[#allocation2 + $0x28] sm:$0xf] }
 0x303   :  { %v3211_v31 = vsel %vm21867_vm14, %v3107_v49, %v3210_v60  ;;  %v3090_v61 = vsel %vm2894_vm11, %v3089_v1, %v3088_v32  ;;  %v16977_v29 = vrot.slane %v1332_v24, 9  ;;  %v16979_v26 = vrot.slane %v1333_v20, 9  ;;  %19005 = vmatprep.subr.bf16.mxu1 %v22369_v38 }
 0x304   :  { %3212 = vst [vmem:[#allocation2 + $0x58] sm:$0xf] %v3211_v31  ;;  %v3121_v19 = vpack.c.b16 %v3090_v61, %v3090_v61  ;;  %v2139_v11 = vmax.f32 %v1324_v52, %v16976_v35  ;;  %v2141_v44 = vmax.f32 %v1331_v10, %v16978_v14  ;;  %v1348_v28 = vrot.slane %v1334_v33, %v21789_v57  ;;  %v3219_v10 = vld [vmem:[#allocation2 + $0x64] sm:$0x1] }
 0x305   :  { %v2140_v7 = vmax.f32 %v1332_v24, %v16977_v29  ;;  %v2142_v48 = vmax.f32 %v1333_v20, %v16979_v26  ;;  %v1349_v62 = vcombine.high %v1341_v40, %v1341_v40  ;;  %v16980_v58 = vrot.slane %v1341_v40, 9  ;;  %v22394_v24 = vld [vmem:[#allocation2 + $0x2c] sm:$0x1] }
 0x306   :  { %v3253_v43 = vsel %vm21867_vm14, %v3121_v19, %v3252_v34  ;;  %v18621_v41 = vpack.c.bf16 %v2139_v11, %v2139_v11  ;;  %v18623_v51 = vpack.c.bf16 %v2141_v44, %v2141_v44  ;;  %v1350_v37 = vcombine.high %v1348_v28, %v1348_v28  ;;  %v3216_v19 = vld [vmem:[#allocation2 + $0x60] sm:$0xf] }
 0x307   :  { %3254 = vst [vmem:[#allocation2 + $0x90] sm:$0xf] %v3253_v43  ;;  %v18622_v55 = vpack.c.bf16 %v2140_v7, %v2140_v7  ;;  %v18624_v30 = vpack.c.bf16 %v2142_v48, %v2142_v48  ;;  %v16981_v42 = vrot.slane %v1349_v62, 9  ;;  %v16982_v8 = vrot.slane %v1348_v28, 9  ;;  %v22406_v7 = vld [vmem:[#allocation2 + $0x34] sm:$0x1] }
 0x308   :  { %v2821_v18 = vunpack.c.l.b16 %v18621_v41  ;;  %v2823_v17 = vunpack.c.l.b16 %v18623_v51  ;;  %v16983_v2 = vrot.slane %v1350_v37, 9  ;;  %v2143_v46 = vmax.f32 %v1341_v40, %v16980_v58 }
 0x309   :  { %v2822_v50 = vunpack.c.l.b16 %v18622_v55  ;;  %v2824_v22 = vunpack.c.l.b16 %v18624_v30  ;;  %v2144_v54 = vmax.f32 %v1349_v62, %v16981_v42  ;;  %v2145_v45 = vmax.f32 %v1348_v28, %v16982_v8  ;;  %v22410_v62 = vld [vmem:[#allocation2 + $0x38] sm:$0xf]  ;;  %v22415_v30 = vld [vmem:[#allocation2 + $0x3c] sm:$0x1] }
 0x30a   :  { %v3000_v15 = vrot.slane %v2821_v18, 7  ;;  %v3003_v27 = vrot.slane %v2823_v17, 5  ;;  %v2146_v25 = vmax.f32 %v1350_v37, %v16983_v2  ;;  %v18625_v63 = vpack.c.bf16 %v2143_v46, %v2143_v46  ;;  %v22417_v2 = vld [vmem:[#allocation2 + $0x50] sm:$0xf] }
 0x30b   :  { %v3001_v47 = vrot.slane %v2822_v50, 6  ;;  %v3005_v12 = vrot.slane %v2824_v22, 4  ;;  %v18626_v13 = vpack.c.bf16 %v2144_v54, %v2144_v54  ;;  %v18627_v52 = vpack.c.bf16 %v2145_v45, %v2145_v45 }
 0x30c   :  { %v2825_v33 = vunpack.c.l.b16 %v18625_v63  ;;  %v18686_v53 = vpack.c.bf16 %v2146_v25, %v2146_v25  ;;  %v3360_v60 = vrot.slane %v3358_v59, 4  ;;  %v3361_v3 = vshll.u32 %v22343_v5, 16  ;;  %v22400_v59 = vld [vmem:[#allocation2 + $0x30] sm:$0xf]  ;;  %v22427_v63 = vld [vmem:[#allocation2 + $0x58] sm:$0xf] }
 0x30d   :  { %v3002_v0 = vsel %vm2879_vm6, %v3001_v47, %v3000_v15  ;;  %v2826_v1 = vunpack.c.l.b16 %v18626_v13  ;;  %v2827_v49 = vunpack.c.l.b16 %v18627_v52  ;;  %v3367_v20 = vshll.u32 %v22386_v4, 16  ;;  %v22429_v52 = vld [vmem:[#allocation2 + $0x54] sm:$0x1] }
 0x30e   :  { %v3004_v32 = vsel %vm2882_vm7, %v3003_v27, %v3002_v0  ;;  %v3007_v35 = vrot.slane %v2825_v33, 3  ;;  %v3220_v14 = vsel %vm21827_vm13, %v18686_v53, %v3219_v10  ;;  %v3363_v40 = vrot.slane %v3361_v3, 5  ;;  %v22432_v33 = vld [vmem:[#allocation2 + $0x68] sm:$0xf]  ;;  %v22434_v3 = vld [vmem:[#allocation2 + $0x5c] sm:$0x1] }
 0x30f   :  { %v3006_v31 = vsel %vm2885_vm8, %v3005_v12, %v3004_v32  ;;  %v3009_v61 = vrot.slane %v2826_v1, 2  ;;  %v3011_v34 = vrot.slane %v2827_v49, 1  ;;  %3221 = vst [vmem:[#allocation2 + $0x64] sm:$0x1] %v3220_v14  ;;  %v3369_v29 = vrot.slane %v3367_v20, 5 }
 0x310   :  { %v3008_v26 = vsel %vm2888_vm9, %v3007_v35, %v3006_v31  ;;  %v3364_v11 = vor.u32 %v3363_v40, %v3360_v60  ;;  %v3372_v44 = vshrl.u32 %v22392_v9, 16  ;;  %v3375_v28 = vshll.u32 %v22392_v9, 16  ;;  %vm22512_vm9 = vmor %vm3937_vm3, %vm3938_vm4 }
 0x311   :  { %v3010_v56 = vsel %vm2891_vm10, %v3009_v61, %v3008_v26  ;;  %v3381_v48 = vshll.u32 %v22394_v24, 16  ;;  %v3386_v58 = vshrl.u32 %v22400_v59, 16  ;;  %v3389_v43 = vshll.u32 %v22400_v59, 16 }
 0x312   :  { %v3012_v41 = vsel %vm2894_vm11, %v3011_v34, %v3010_v56  ;;  %v3365_v51 = vrot.slane %v3364_v11, 4  ;;  %v3374_v37 = vrot.slane %v3372_v44, 4  ;;  %v3377_v55 = vrot.slane %v3375_v28, 5  ;;  %v22445_v34 = vld [vmem:[#allocation2 + $0x6c] sm:$0x1] }
 0x313   :  { %v3109_v42 = vpack.c.b16 %v3012_v41, %v3012_v41  ;;  %v3383_v8 = vrot.slane %v3381_v48, 5  ;;  %v3388_v18 = vrot.slane %v3386_v58, 4  ;;  %v3391_v17 = vrot.slane %v3389_v43, 5  ;;  %v22452_v58 = vld [vmem:[#allocation2 + $0x70] sm:$0xf] }
 0x314   :  { %v3370_v46 = vsel %vm22175_vm1, %v3365_v51, %v3369_v29  ;;  %v3378_v50 = vor.u32 %v3377_v55, %v3374_v37  ;;  %v3395_v22 = vshll.u32 %v22406_v7, 16  ;;  %v3400_v54 = vshrl.u32 %v22410_v62, 16  ;;  %v22456_v55 = vld [vmem:[#allocation2 + $0x78] sm:$0xf] }
 0x315   :  { %v3217_v45 = vsel %vm21867_vm14, %v3109_v42, %v3216_v19  ;;  %v3392_v15 = vor.u32 %v3391_v17, %v3388_v18  ;;  %v3403_v27 = vshll.u32 %v22410_v62, 16  ;;  %v3409_v25 = vshll.u32 %v22415_v30, 16 }
 0x316   :  { %3218 = vst [vmem:[#allocation2 + $0x60] sm:$0xf] %v3217_v45  ;;  %v3379_v47 = vrot.slane %v3378_v50, 4  ;;  %v3397_v12 = vrot.slane %v3395_v22, 5  ;;  %v3402_v13 = vrot.slane %v3400_v54, 4  ;;  %v3414_v10 = vshrl.u32 %v22417_v2, 16 }
 0x317   :  { %v3393_v53 = vrot.slane %v3392_v15, 4  ;;  %v3405_v23 = vrot.slane %v3403_v27, 5  ;;  %v3411_v60 = vrot.slane %v3409_v25, 5  ;;  %v3417_v0 = vshll.u32 %v22417_v2, 16  ;;  %v22441_v35 = vld [vmem:[#allocation2 + $0x64] sm:$0x1] }
 0x318   :  { %v3384_v1 = vsel %vm22175_vm1, %v3379_v47, %v3383_v8  ;;  %v3416_v49 = vrot.slane %v3414_v10, 4  ;;  %v3423_v20 = vshll.u32 %v22429_v52, 16  ;;  %v3428_v32 = vshrl.u32 %v22427_v63, 16  ;;  %v22464_v15 = vld [vmem:[#allocation2 + $0x74] sm:$0x1] }
 0x319   :  { %v17178_v14 = vcombine.low %v3370_v46, %v3384_v1  ;;  %v3398_v40 = vsel %vm22175_vm1, %v3393_v53, %v3397_v12  ;;  %v3406_v31 = vor.u32 %v3405_v23, %v3402_v13  ;;  %v3419_v61 = vrot.slane %v3417_v0, 5  ;;  %v22470_v23 = vld [vmem:[#allocation2 + $0x7c] sm:$0x1] }
 0x31a   :  { %v3425_v29 = vrot.slane %v3423_v20, 5  ;;  %v3430_v26 = vrot.slane %v3428_v32, 4  ;;  %v3431_v19 = vshll.u32 %v22427_v63, 16  ;;  %v3437_v11 = vshll.u32 %v22434_v3, 16  ;;  %v22475_v32 = vld [vmem:[#allocation2 + $0x84] sm:$0x1] }
 0x31b   :  { %18969 = vmatprep.mubr.msk.bf16.mxu1 %vm3582_vm2, %v17178_v14  ;;  %v3407_v44 = vrot.slane %v3406_v31, 4  ;;  %v3420_v28 = vor.u32 %v3419_v61, %v3416_v49  ;;  %v3451_v56 = vshll.u32 %v22441_v35, 16  ;;  %v3456_v48 = vshrl.u32 %v22432_v33, 16 }
 0x31c   :  { %v3433_v43 = vrot.slane %v3431_v19, 5  ;;  %v3439_v41 = vrot.slane %v3437_v11, 5  ;;  %v3459_v51 = vshll.u32 %v22432_v33, 16  ;;  %v3465_v37 = vshll.u32 %v22445_v34, 16 }
 0x31d   :  { %v3412_v42 = vsel %vm22175_vm1, %v3407_v44, %v3411_v60  ;;  %v3421_v8 = vrot.slane %v3420_v28, 4  ;;  %v22460_v18 = vld [vmem:[#allocation2 + $0x60] sm:$0xf]  ;;  %v3453_v17 = vrot.slane %v3451_v56, 5  ;;  %v3458_v46 = vrot.slane %v3456_v48, 4 }
 0x31e   :  { %v17179_v50 = vcombine.low %v3398_v40, %v3412_v42  ;;  %v3434_v22 = vor.u32 %v3433_v43, %v3430_v26  ;;  %v3442_v54 = vshrl.u32 %v22460_v18, 16  ;;  %v3445_v45 = vshll.u32 %v22460_v18, 16 }
 0x31f   :  { %v3426_v27 = vsel %vm22175_vm1, %v3421_v8, %v3425_v29  ;;  %v3461_v25 = vrot.slane %v3459_v51, 5  ;;  %v3467_v47 = vrot.slane %v3465_v37, 5  ;;  %v3470_v12 = vshrl.u32 %v22452_v58, 16  ;;  %v22480_v29 = vld [vmem:[#allocation2 + $0x80] sm:$0xf] }
 0x320   :  { %18970 = vmatmul.mubr.msk.bf16.gmra.mrb[28].mxu1 %vm3582_vm2, %v17179_v50  ;;  %v3435_v13 = vrot.slane %v3434_v22, 4  ;;  %v3444_v10 = vrot.slane %v3442_v54, 4  ;;  %v3447_v53 = vrot.slane %v3445_v45, 5  ;;  %v3473_v60 = vshll.u32 %v22452_v58, 16  ;;  %v22486_v51 = vld [vmem:[#allocation2 + $0x88] sm:$0xf] }
 0x321   :  { %v3462_v0 = vor.u32 %v3461_v25, %v3458_v46  ;;  %v3472_v1 = vrot.slane %v3470_v12, 4  ;;  %v3479_v49 = vshll.u32 %v22464_v15, 16  ;;  %v3484_v20 = vshrl.u32 %v22456_v55, 16  ;;  %v22493_v45 = vld [vmem:[#allocation2 + $0x8c] sm:$0x1] }
 0x322   :  { %v3440_v14 = vsel %vm22175_vm1, %v3435_v13, %v3439_v41  ;;  %v3448_v40 = vor.u32 %v3447_v53, %v3444_v10  ;;  %v3475_v31 = vrot.slane %v3473_v60, 5  ;;  %v3487_v61 = vshll.u32 %v22456_v55, 16 }
 0x323   :  { %v17180_v26 = vcombine.low %v3426_v27, %v3440_v14  ;;  %v3463_v19 = vrot.slane %v3462_v0, 4  ;;  %v3481_v11 = vrot.slane %v3479_v49, 5  ;;  %v3486_v44 = vrot.slane %v3484_v20, 4 }
 0x324   :  { %v3449_v28 = vrot.slane %v3448_v40, 4  ;;  %v3476_v56 = vor.u32 %v3475_v31, %v3472_v1  ;;  %v3489_v48 = vrot.slane %v3487_v61, 5  ;;  %v3493_v43 = vshll.u32 %v22470_v23, 16 }
 0x325   :  { %18973 = vmatprep.mubr.msk.bf16.mxu1 %vm3582_vm2, %v17180_v26  ;;  %v3468_v41 = vsel %vm22175_vm1, %v3463_v19, %v3467_v47  ;;  %v3498_v37 = vshrl.u32 %v22480_v29, 16  ;;  %v3501_v42 = vshll.u32 %v22480_v29, 16  ;;  %v3507_v8 = vshll.u32 %v22475_v32, 16  ;;  %v3893_v26 = vld [vmem:[#allocation2 + $0x20] sm:$0xe] }
 0x326   :  { %v3454_v46 = vsel %vm22175_vm1, %v3449_v28, %v3453_v17  ;;  %v3477_v50 = vrot.slane %v3476_v56, 4  ;;  %v3490_v22 = vor.u32 %v3489_v48, %v3486_v44  ;;  %v3495_v54 = vrot.slane %v3493_v43, 5  ;;  %v3894_v44 = vld [vmem:[#allocation2 + $0x28] sm:$0xe]  ;;  %v3895_v48 = vld [vmem:[#allocation2 + $0x30] sm:$0xe] }
 0x327   :  { %v17181_v27 = vcombine.low %v3454_v46, %v3468_v41  ;;  %v3500_v25 = vrot.slane %v3498_v37, 4  ;;  %v3503_v12 = vrot.slane %v3501_v42, 5  ;;  %v3512_v10 = vshrl.u32 %v22486_v51, 16  ;;  %v3896_v37 = vld [vmem:[#allocation2 + $0x38] sm:$0xe] }
 0x328   :  { %v3482_v47 = vsel %vm22175_vm1, %v3477_v50, %v3481_v11  ;;  %v3491_v13 = vrot.slane %v3490_v22, 4  ;;  %v3515_v53 = vshll.u32 %v22486_v51, 16  ;;  %v3521_v17 = vshll.u32 %v22493_v45, 16  ;;  %v3897_v42 = vld [vmem:[#allocation2 + $0x50] sm:$0xe] }
 0x329   :  { %18974 = vmatmul.mubr.msk.bf16.gmra.mrb[32].mxu1 %vm3582_vm2, %v17181_v27  ;;  %v3504_v60 = vor.u32 %v3503_v12, %v3500_v25  ;;  %v3509_v1 = vrot.slane %v3507_v8, 5  ;;  %v3514_v49 = vrot.slane %v3512_v10, 4  ;;  %v17220_v56 = vrot.slane %v3893_v26, 9  ;;  %v20906_v8 = vld [vmem:[#allocation2] sm:$0xf] }
 0x32a   :  { %v3496_v0 = vsel %vm22175_vm1, %v3491_v13, %v3495_v54  ;;  %v3517_v20 = vrot.slane %v3515_v53, 5  ;;  %v3523_v61 = vrot.slane %v3521_v17, 5  ;;  %v3958_v41 = vrot.slane %v22386_v4, 5  ;;  %v20907_v46 = vld [vmem:[#allocation2 + $0x8] sm:$0xf] }
 0x32b   :  { %v17182_v14 = vcombine.low %v3482_v47, %v3496_v0  ;;  %v3505_v40 = vrot.slane %v3504_v60, 4  ;;  %v17196_v50 = vcombine.low %v20906_v8, %v20907_v46  ;;  %v17197_v22 = vcombine.low %v22272_v39, %v22310_v6  ;;  %v3898_v12 = vld [vmem:[#allocation2 + $0x58] sm:$0xe]  ;;  %v3899_v6 = vld [vmem:[#allocation2 + $0x60] sm:$0xe] }
 0x32c   :  { %v3518_v31 = vor.u32 %v3517_v20, %v3514_v49  ;;  %v17221_v27 = vrot.slane %v3894_v44, 9  ;;  %v3962_v25 = vrot.slane %v22394_v24, 5  ;;  %v17198_v4 = vcombine.low %v22343_v5, %v22392_v9  ;;  %v3900_v17 = vld [vmem:[#allocation2 + $0x68] sm:$0xe]  ;;  %v19526_v54 = vld [vmem:[#allocation14 + $0xe0] ss:$8 sps:$4 sm:$0xff]  }
 0x32d   :  { %18977 = vmatprep.mubr.msk.bf16.mxu1 %vm3582_vm2, %v17182_v14  ;;  %v3510_v19 = vsel %vm22175_vm1, %v3505_v40, %v3509_v1  ;;  %v22522_v47 = vsel %vm22512_vm9, %v17220_v56, %v3958_v41  ;;  %v17222_v13 = vrot.slane %v3895_v48, 9  ;;  %v3966_v39 = vrot.slane %v22406_v7, 5  ;;  %v3901_v1 = vld [vmem:[#allocation2 + $0x70] sm:$0xe]  ;;  %v3902_v40 = vld [vmem:[#allocation2 + $0x78] sm:$0xe] }
 0x32e   :  { %v3519_v11 = vrot.slane %v3518_v31, 4  ;;  %v22528_v10 = vsel %vm22512_vm9, %v17221_v27, %v3962_v25  ;;  %v17223_v24 = vrot.slane %v3896_v37, 9  ;;  %v3970_v53 = vrot.slane %v22415_v30, 5  ;;  %v19460_v56 = vld [vmem:[#allocation11 + $0x48] sm:$0xff]  }
 0x32f   :  { %v17224_v60 = vrot.slane %v3897_v42, 9  ;;  %v17234_v5 = vcombine.low %v22522_v47, %v22528_v10  ;;  %v22535_v9 = vsel %vm22512_vm9, %v17222_v13, %v3966_v39  ;;  %v3974_v7 = vrot.slane %v22429_v52, 5  ;;  %v19468_v13 = vld [vmem:[#allocation11 + $0x60] sm:$0xff]  }
 0x330   :  { %v3524_v28 = vsel %vm22175_vm1, %v3519_v11, %v3523_v61  ;;  %v17225_v0 = vrot.slane %v3898_v12, 9  ;;  %v22540_v49 = vsel %vm22512_vm9, %v17223_v24, %v3970_v53  ;;  %v3978_v20 = vrot.slane %v22434_v3, 5  ;;  %v3889_v39 = vld [vmem:[#allocation2] sm:$0xe]  ;;  %v19472_v47 = vld [vmem:[#allocation2 + $0x8] ss:$8 sps:$4 sm:$0xff]  }
 0x331   :  { %v17183_v43 = vcombine.low %v3510_v19, %v3524_v28  ;;  %v17226_v30 = vrot.slane %v3899_v6, 9  ;;  %v3982_v14 = vrot.slane %v22441_v35, 5  ;;  %v17235_v31 = vcombine.low %v22535_v9, %v22540_v49  ;;  %v3903_v19 = vld [vmem:[#allocation2 + $0x80] sm:$0xe]  ;;  %v3904_v28 = vld [vmem:[#allocation2 + $0x88] sm:$0xe] }
 0x332   :  { %v22548_v61 = vsel %vm22512_vm9, %v17224_v60, %v3974_v7  ;;  %v17227_v52 = vrot.slane %v3900_v17, 9  ;;  %v3986_v26 = vrot.slane %v22445_v34, 5  ;;  %v22553_v11 = vsel %vm22512_vm9, %v17225_v0, %v3978_v20  ;;  %v3890_v6 = vld [vmem:[#allocation2 + $0x8] sm:$0xe]  ;;  %v20909_v60 = vld [vmem:[#allocation2 + $0xc] sm:$0x1] }
 0x333   :  { %18978 = vmatmul.mubr.msk.bf16.gmra.mrb[36].mxu1 %vm3582_vm2, %v17183_v43  ;;  %v22557_v3 = vsel %vm22512_vm9, %v17226_v30, %v3982_v14  ;;  %v17228_v35 = vrot.slane %v3901_v1, 9  ;;  %v3990_v44 = vrot.slane %v22464_v15, 5  ;;  %v17236_v48 = vcombine.low %v22548_v61, %v22553_v11  ;;  %v19474_v10 = vld [vmem:[#allocation2 + $0x18] ss:$8 sps:$4 sm:$0xff]   ;;  %v19475_v9 = vld [vmem:[#allocation2 + $0x28] ss:$8 sps:$4 sm:$0xff]  }
 0x334   :  { %18989 = vmatprep.mubr.msk.bf16.mxu1 %vm3582_vm2, %v17196_v50  ;;  %v22564_v34 = vsel %vm22512_vm9, %v17227_v52, %v3986_v26  ;;  %v17229_v43 = vrot.slane %v3902_v40, 9  ;;  %v3994_v41 = vrot.slane %v22470_v23, 5  ;;  %v17230_v15 = vrot.slane %v3903_v19, 9  ;;  %v4426_v49 = vld [vmem:[#allocation2 + $0x10] sm:$0xf] }
 0x335   :  { %v17237_v37 = vcombine.low %v22557_v3, %v22564_v34  ;;  %v22571_v42 = vsel %vm22512_vm9, %v17228_v35, %v3990_v44  ;;  %v3998_v8 = vrot.slane %v22475_v32, 5  ;;  %v17231_v50 = vrot.slane %v3904_v28, 9  ;;  %v19463_v32 = vld [vmem:[#allocation11 + $0x50] sm:$0xff]   ;;  %v4430_v61 = vld [vmem:[#allocation2 + $0x20] sm:$0xf] }
 0x336   :  { %v22577_v46 = vsel %vm22512_vm9, %v17229_v43, %v3994_v41  ;;  %v4002_v27 = vrot.slane %v22493_v45, 5  ;;  %v19466_v45 = vld [vmem:[#allocation11 + $0x58] sm:$0xff]   ;;  %v17201_v24 = vcombine.low %v22460_v18, %v22432_v33  ;;  %v17217_v53 = vrot.slane %v3890_v6, 9  ;;  %v19479_v19 = vld [vmem:[#allocation11 + $0x90] sm:$0xff]   ;;  %v22639_v43 = vld [vmem:[#allocation2 + $0xc] sm:$0x1] }
 0x337   :  { %v17238_v23 = vcombine.low %v22571_v42, %v22577_v46  ;;  %v22586_v25 = vsel %vm22512_vm9, %v17230_v15, %v3998_v8  ;;  %v3946_v17 = vrot.slane %v20909_v60, 5  ;;  %v3892_v18 = vld [vmem:[#allocation2 + $0x18] sm:$0xe]  ;;  %v3954_v30 = vrot.slane %v22315_v36, 5  ;;  %v4432_v41 = vld [vmem:[#allocation2 + $0x28] sm:$0xf] }
 0x338   :  { %v17219_v1 = vrot.slane %v3892_v18, 9  ;;  %v3950_v14 = vrot.slane %v22307_v21, 5  ;;  %v19470_v36 = vld [vmem:[#allocation11 + $0x70] sm:$0xff]   ;;  %v19471_v21 = vld [vmem:[#allocation11 + $0x78] sm:$0xff]   ;;  %v4471_v11 = vshrl.u32 %v4426_v49, 16  ;;  %v4474_v3 = vshll.u32 %v4426_v49, 16 }
 0x339   :  { %v3947_v33 = vsel %vm22512_vm9, %v17217_v53, %v3946_v17  ;;  %v4428_v28 = vld [vmem:[#allocation2 + $0x18] sm:$0xf]  ;;  %v22648_v6 = vld [vmem:[#allocation11 + $0xa0] sm:$0xff]   ;;  %vm6759_vm11 = vsmask.f32 2306 }
 0x33a   :  { %v3955_v40 = vsel %vm22512_vm9, %v17219_v1, %v3954_v30  ;;  %v19477_v34 = vld [vmem:[#allocation2 + $0x38] ss:$8 sps:$4 sm:$0xff]   ;;  %v4473_v42 = vrot.slane %v4471_v11, 4  ;;  %v4476_v15 = vrot.slane %v4474_v3, 5  ;;  %v4485_v8 = vshrl.u32 %v4428_v28, 16  ;;  %vm23000_vm12 = vmand %vm3937_vm3, %vm6759_vm11 }
 0x33b   :  { %18990 = vmatmul.mubr.msk.bf16.vlgmr.msra.gmra.mrb[24].mxu1 %vm3582_vm2, %v17197_v22  ;;  %v4003_v22 = vsel %vm22512_vm9, %v17231_v50, %v4002_v27  ;;  %v4488_v46 = vshll.u32 %v4428_v28, 16  ;;  %v19478_v50 = vld [vmem:[#allocation2 + $0x58] ss:$8 sps:$4 sm:$0xff]   ;;  %v22641_v27 = vld [vmem:[#allocation2 + $0x14] sm:$0x1] }
 0x33c   :  { %19006 = vmatpush3.bf16.msra.mxu1 %v22369_v38  ;;  %18993 = vmatprep.mubr.msk.bf16.mxu1 %vm3582_vm2, %v17198_v4  ;;  %v17239_v12 = vcombine.low %v22586_v25, %v4003_v22  ;;  %v17199_v38 = vcombine.low %v22400_v59, %v22410_v62  ;;  %v17200_v4 = vcombine.low %v22417_v2, %v22427_v63  ;;  %v17216_v62 = vrot.slane %v3889_v39, 9  ;;  %v20908_v2 = vld [vmem:[#allocation2 + $0x4] sm:$0x1]  ;;  %v4436_v18 = vld [vmem:[#allocation2 + $0x38] sm:$0xf] }
 0x33d   :  { %19007 = vmatprep.subr.bf16.mxu1 %v19460_v56  ;;  %v17202_v59 = vcombine.low %v22452_v58, %v22456_v55  ;;  %v3942_v63 = vrot.slane %v20908_v2, 5  ;;  %v17203_v58 = vcombine.low %v22480_v29, %v22486_v51  ;;  %v3891_v55 = vld [vmem:[#allocation2 + $0x10] sm:$0xe]  ;;  %v19473_v51 = vld [vmem:[#allocation11 + $0x80] sm:$0xff]   ;;  %v4477_v39 = vor.u32 %v4476_v15, %v4473_v42  ;;  %v22655_v1 = vld [vmem:[#allocation2 + $0x2c] sm:$0x1] }
 0x33e   :  { %v17218_v20 = vrot.slane %v3891_v55, 9  ;;  %v19469_v29 = vld [vmem:[#allocation11 + $0x68] sm:$0xff]   ;;  %v4480_v2 = vshll.u32 %v22641_v27, 16  ;;  %v4440_v28 = vld [vmem:[#allocation2 + $0x58] sm:$0xf] }
 0x33f   :  { %v3943_v7 = vsel %vm22512_vm9, %v17216_v62, %v3942_v63  ;;  %v4490_v62 = vrot.slane %v4488_v46, 5  ;;  %vm6889_vm13 = vsmask.f32 1280  ;;  %vm6890_vm14 = vsmask.f32 3336 }
 0x340   :  { %19008 = vmatpush3.bf16.msra.mxu1 %v19460_v56  ;;  %v17232_v0 = vcombine.low %v3943_v7, %v3947_v33  ;;  %v3951_v52 = vsel %vm22512_vm9, %v17218_v20, %v3950_v14  ;;  %v4499_v56 = vshrl.u32 %v4430_v61, 16  ;;  %v19481_v20 = vld [vmem:[#allocation2 + $0x78] ss:$8 sps:$4 sm:$0xff]   ;;  %v4478_v14 = vrot.slane %v4477_v39, 4 }
 0x341   :  { %19009 = vmatprep.subr.bf16.mxu1 %v19463_v32  ;;  %v17233_v26 = vcombine.low %v3951_v52, %v3955_v40  ;;  %v4438_v52 = vld [vmem:[#allocation2 + $0x40] sm:$0xf] }
 0x342   :  { %v4555_v11 = vshrl.u32 %v4438_v52, 16  ;;  %v4558_v3 = vshll.u32 %v4438_v52, 16  ;;  %v4450_v52 = vld [vmem:[#allocation2 + $0x80] sm:$0xf] }
 0x343   :  { %18994 = vmatmul.mubr.msk.bf16.gmra.mrb[28].mxu1 %vm3582_vm2, %v17199_v38  ;;  %v4513_v38 = vshrl.u32 %v4432_v41, 16 }
 0x344   :  { %18997 = vmatprep.mubr.msk.bf16.mxu1 %vm3582_vm2, %v17200_v4  ;;  %19010 = vmatpush3.bf16.msra.mxu1 %v19463_v32  ;;  %v4501_v32 = vrot.slane %v4499_v56, 4  ;;  %v22645_v4 = vld [vmem:[#allocation2 + $0x1c] sm:$0x1] }
 0x345   :  { %19011 = vmatprep.subr.bf16.mxu1 %v19466_v45  ;;  %v4515_v7 = vrot.slane %v4513_v38, 4  ;;  %v4494_v55 = vshll.u32 %v22645_v4, 16  ;;  %v19483_v38 = vld [vmem:[#allocation2 + $0x88] ss:$8 sps:$4 sm:$0xff]  }
 0x348   :  { %19012 = vmatpush3.bf16.msra.mxu1 %v19466_v45  ;;  %v4516_v45 = vshll.u32 %v4432_v41, 16 }
 0x349   :  { %19029 = vmatprep.subr.bf16.mxu1 %v19468_v13 }
 0x34a   :  { %v4518_v33 = vrot.slane %v4516_v45, 5 }
 0x34b   :  { %18998 = vmatmul.mubr.msk.bf16.gmra.mrb[32].mxu1 %vm3582_vm2, %v17201_v24  ;;  %v22650_v24 = vld [vmem:[#allocation2 + $0x24] sm:$0x1] }
 0x34c   :  { %19001 = vmatprep.mubr.msk.bf16.mxu1 %vm3582_vm2, %v17202_v59  ;;  %v4487_v59 = vrot.slane %v4485_v8, 4  ;;  %v4519_v49 = vor.u32 %v4518_v33, %v4515_v7 }
 0x34e   :  { %v4491_v40 = vor.u32 %v4490_v62, %v4487_v59  ;;  %v4520_v8 = vrot.slane %v4519_v49, 4 }
 0x353   :  { %19002 = vmatmul.mubr.msk.bf16.gmra.mrb[36].mxu1 %vm3582_vm2, %v17203_v58  ;;  %v19480_v58 = vld [vmem:[#allocation2 + $0x68] ss:$8 sps:$4 sm:$0xff]  }
 0x354   :  { %19013 = vmatprep.mubr.msk.bf16.mxu1 %vm3582_vm2, %v17232_v0  ;;  %v4508_v0 = vshll.u32 %v22650_v24, 16 }
 0x35b   :  { %19014 = vmatmul.mubr.msk.bf16.vlgmr.msra.gmra.mrb[24].mxu1 %vm3582_vm2, %v17233_v26 }
 0x35c   :  { %19030 = vmatpush3.bf16.msra.mxu1 %v19468_v13  ;;  %19017 = vmatprep.mubr.msk.bf16.mxu1 %vm3582_vm2, %v17234_v5  ;;  %v19476_v5 = vld [vmem:[#allocation11 + $0x88] sm:$0xff]   ;;  %v4466_v13 = vshll.u32 %v22639_v43, 16 }
 0x35d   :  { %19031 = vmatprep.subr.bf16.mxu1 %v19469_v29 }
 0x35e   :  { %v4468_v30 = vrot.slane %v4466_v13, 5 }
 0x360   :  { %19032 = vmatpush3.bf16.msra.mxu1 %v19469_v29 }
 0x361   :  { %19033 = vmatprep.subr.bf16.mxu1 %v19470_v36 }
 0x363   :  { %19018 = vmatmul.mubr.msk.bf16.gmra.mrb[28].mxu1 %vm3582_vm2, %v17235_v31  ;;  %v4424_v31 = vld [vmem:[#allocation2 + $0x8] sm:$0xf] }
 0x364   :  { %19021 = vmatprep.mubr.msk.bf16.mxu1 %vm3582_vm2, %v17236_v48  ;;  %19034 = vmatpush3.bf16.msra.mxu1 %v19470_v36  ;;  %v4457_v35 = vshrl.u32 %v4424_v31, 16  ;;  %v4460_v44 = vshll.u32 %v4424_v31, 16  ;;  %v4502_v48 = vshll.u32 %v4430_v61, 16  ;;  %v4541_v36 = vshrl.u32 %v4436_v18, 16 }
 0x365   :  { %19035 = vmatprep.subr.bf16.mxu1 %v19471_v21  ;;  %v4496_v31 = vrot.slane %v4494_v55, 5  ;;  %v4510_v61 = vrot.slane %v4508_v0, 5  ;;  %v22682_v0 = vld [vmem:[#allocation2 + $0x64] sm:$0x1] }
 0x366   :  { %v4462_v25 = vrot.slane %v4460_v44, 5  ;;  %v4504_v22 = vrot.slane %v4502_v48, 5  ;;  %v4522_v44 = vshll.u32 %v22655_v1, 16  ;;  %v4592_v49 = vshll.u32 %v22682_v0, 16 }
 0x368   :  { %19036 = vmatpush3.bf16.msra.mxu1 %v19471_v21  ;;  %v4505_v17 = vor.u32 %v4504_v22, %v4501_v32  ;;  %v4544_v21 = vshll.u32 %v4436_v18, 16  ;;  %v4569_v32 = vshrl.u32 %v4440_v28, 16  ;;  %v4572_v22 = vshll.u32 %v4440_v28, 16 }
 0x369   :  { %19053 = vmatprep.subr.bf16.mxu1 %v19473_v51  ;;  %v4524_v13 = vrot.slane %v4522_v44, 5 }
 0x36a   :  { %v4546_v42 = vrot.slane %v4544_v21, 5 }
 0x36b   :  { %19022 = vmatmul.mubr.msk.bf16.gmra.mrb[32].mxu1 %vm3582_vm2, %v17237_v37  ;;  %v19482_v37 = vld [vmem:[#allocation11 + $0x98] sm:$0xff]   ;;  %v4525_v33 = vsel %vm22175_vm1, %v4520_v8, %v4524_v13 }
 0x36c   :  { %19025 = vmatprep.mubr.msk.bf16.mxu1 %vm3582_vm2, %v17238_v23  ;;  %v4459_v23 = vrot.slane %v4457_v35, 4 }
 0x36e   :  { %v4463_v60 = vor.u32 %v4462_v25, %v4459_v23  ;;  %v4557_v23 = vrot.slane %v4555_v11, 4  ;;  %v4560_v25 = vrot.slane %v4558_v3, 5  ;;  %v4639_v3 = vshrl.u32 %v4450_v52, 16 }
 0x373   :  { %19026 = vmatmul.mubr.msk.bf16.gmra.mrb[36].mxu1 %vm3582_vm2, %v17239_v12  ;;  %v4434_v12 = vld [vmem:[#allocation2 + $0x30] sm:$0xf] }
 0x374   :  { %19037 = vmatprep.mubr.msk.bf16.mxu1 %vm3582_vm2, %v19472_v47  ;;  %v4527_v63 = vshrl.u32 %v4434_v12, 16  ;;  %v4530_v53 = vshll.u32 %v4434_v12, 16  ;;  %v4464_v47 = vrot.slane %v4463_v60, 4  ;;  %v4444_v12 = vld [vmem:[#allocation2 + $0x68] sm:$0xf] }
 0x375   :  { %v4446_v60 = vld [vmem:[#allocation2 + $0x70] sm:$0xf] }
 0x376   :  { %v4529_v26 = vrot.slane %v4527_v63, 4  ;;  %v4532_v29 = vrot.slane %v4530_v53, 5  ;;  %v4469_v45 = vsel %vm22175_vm1, %v4464_v47, %v4468_v30  ;;  %v4571_v30 = vrot.slane %v4569_v32, 4  ;;  %v22699_v32 = vld [vmem:[#allocation2 + $0x7c] sm:$0x1] }
 0x377   :  { %v4611_v21 = vshrl.u32 %v4446_v60, 16 }
 0x378   :  { %v4533_v41 = vor.u32 %v4532_v29, %v4529_v26  ;;  %v22685_v26 = vld [vmem:[#allocation2 + $0x5c] sm:$0x1] }
 0x37a   :  { %v4534_v63 = vrot.slane %v4533_v41, 4  ;;  %v19485_v41 = vld [vmem:[#allocation11 + $0xa8] sm:$0xff]  }
 0x37b   :  { %19038 = vmatmul.mubr.msk.bf16.vlgmr.msra.gmra.mrb[24].mxu1 %vm3582_vm2, %v19474_v10  ;;  %v4482_v10 = vrot.slane %v4480_v2, 5 }
 0x37c   :  { %19054 = vmatpush3.bf16.msra.mxu1 %v19473_v51  ;;  %19041 = vmatprep.mubr.msk.bf16.mxu1 %vm3582_vm2, %v19475_v9  ;;  %v4442_v51 = vld [vmem:[#allocation2 + $0x60] sm:$0xf]  ;;  %v22659_v9 = vld [vmem:[#allocation2 + $0x34] sm:$0x1] }
 0x37d   :  { %19055 = vmatprep.subr.bf16.mxu1 %v19476_v5  ;;  %v4483_v35 = vsel %vm22175_vm1, %v4478_v14, %v4482_v10  ;;  %v4583_v56 = vshrl.u32 %v4442_v51, 16  ;;  %v4586_v48 = vshll.u32 %v4442_v51, 16  ;;  %v4536_v46 = vshll.u32 %v22659_v9, 16 }
 0x37e   :  { %v17272_v62 = vcombine.low %v4469_v45, %v4483_v35  ;;  %v4574_v14 = vrot.slane %v4572_v22, 5  ;;  %v4614_v51 = vshll.u32 %v4446_v60, 16  ;;  %v4642_v35 = vshll.u32 %v4450_v52, 16  ;;  %v4452_v22 = vld [vmem:[#allocation2 + $0x88] sm:$0xf] }
 0x37f   :  { %v4585_v39 = vrot.slane %v4583_v56, 4  ;;  %v4588_v59 = vrot.slane %v4586_v48, 5  ;;  %v4538_v18 = vrot.slane %v4536_v46, 5  ;;  %v4578_v56 = vshll.u32 %v22685_v26, 16  ;;  %v22694_v48 = vld [vmem:[#allocation2 + $0x74] sm:$0x1] }
 0x380   :  { %19056 = vmatpush3.bf16.msra.mxu1 %v19476_v5  ;;  %v4506_v5 = vrot.slane %v4505_v17, 4  ;;  %v4448_v17 = vld [vmem:[#allocation2 + $0x78] sm:$0xf]  ;;  %v4575_v28 = vor.u32 %v4574_v14, %v4571_v30  ;;  %v4616_v8 = vrot.slane %v4614_v51, 5  ;;  %v4641_v45 = vrot.slane %v4639_v3, 4 }
 0x381   :  { %19057 = vmatprep.subr.bf16.mxu1 %v19479_v19  ;;  %v4589_v29 = vor.u32 %v4588_v59, %v4585_v39  ;;  %v4539_v47 = vsel %vm22175_vm1, %v4534_v63, %v4538_v18  ;;  %v4628_v11 = vshll.u32 %v4448_v17, 16  ;;  %v4644_v13 = vrot.slane %v4642_v35, 5  ;;  %v4454_v39 = vld [vmem:[#allocation2 + $0x90] sm:$0xf] }
 0x382   :  { %v4511_v15 = vsel %vm22175_vm1, %v4506_v5, %v4510_v61  ;;  %v4625_v61 = vshrl.u32 %v4448_v17, 16  ;;  %v17274_v46 = vcombine.low %v4525_v33, %v4539_v47  ;;  %v19486_v17 = vld [vmem:[#allocation11 + $0xb0] sm:$0xff]   ;;  %v4653_v18 = vshrl.u32 %v4452_v22, 16 }
 0x383   :  { %19042 = vmatmul.mubr.msk.bf16.gmra.mrb[28].mxu1 %vm3582_vm2, %v19477_v34  ;;  %v4492_v34 = vrot.slane %v4491_v40, 4  ;;  %v4597_v40 = vshrl.u32 %v4444_v12, 16  ;;  %v4670_v30 = vshll.u32 %v4454_v39, 16  ;;  %v4645_v52 = vor.u32 %v4644_v13, %v4641_v45  ;;  %v4875_v45 = vld [vmem:[#allocation2 + $0x10] sm:$0xe] }
 0x384   :  { %19045 = vmatprep.mubr.msk.bf16.mxu1 %vm3582_vm2, %v19478_v50  ;;  %19058 = vmatpush3.bf16.msra.mxu1 %v19479_v19  ;;  %v22662_v19 = vld [vmem:[#allocation2 + $0x3c] sm:$0x1]  ;;  %v4655_v3 = vrot.slane %v4653_v18, 4 }
 0x385   :  { %19059 = vmatprep.subr.bf16.mxu1 %v19482_v37  ;;  %v4550_v50 = vshll.u32 %v22662_v19, 16  ;;  %v4497_v2 = vsel %vm22175_vm1, %v4492_v34, %v4496_v31  ;;  %v22691_v31 = vld [vmem:[#allocation2 + $0x6c] sm:$0x1]  ;;  %v4599_v34 = vrot.slane %v4597_v40, 4  ;;  %v4634_v40 = vshll.u32 %v22699_v32, 16 }
 0x386   :  { %v17273_v7 = vcombine.low %v4497_v2, %v4511_v15  ;;  %v4613_v15 = vrot.slane %v4611_v21, 4  ;;  %v4580_v2 = vrot.slane %v4578_v56, 5  ;;  %v4606_v63 = vshll.u32 %v22691_v31, 16 }
 0x387   :  { %v22680_v55 = vrot.slane %v4550_v50, 5 }
 0x388   :  { %19060 = vmatpush3.bf16.msra.mxu1 %v19482_v37  ;;  %v4543_v37 = vrot.slane %v4541_v36, 4  ;;  %v4600_v36 = vshll.u32 %v4444_v12, 16  ;;  %v4627_v12 = vrot.slane %v4625_v61, 4  ;;  %v4617_v33 = vor.u32 %v4616_v8, %v4613_v15  ;;  %v19487_v61 = vld [vmem:[#allocation11 + $0xb8] sm:$0xff]  }
 0x389   :  { %19077 = vmatprep.subr.bf16.mxu1 %v22648_v6  ;;  %v4608_v51 = vrot.slane %v4606_v63, 5 }
 0x38a   :  { %v4547_v53 = vor.u32 %v4546_v42, %v4543_v37  ;;  %v4590_v37 = vrot.slane %v4589_v29, 4  ;;  %v4602_v42 = vrot.slane %v4600_v36, 5 }
 0x38b   :  { %19046 = vmatmul.mubr.msk.bf16.gmra.mrb[32].mxu1 %vm3582_vm2, %v19480_v58  ;;  %v22678_v58 = vld [vmem:[#allocation2 + $0x44] sm:$0x1] }
 0x38c   :  { %19049 = vmatprep.mubr.msk.bf16.mxu1 %vm3582_vm2, %v19481_v20  ;;  %v4561_v20 = vor.u32 %v4560_v25, %v4557_v23  ;;  %v4548_v10 = vrot.slane %v4547_v53, 4  ;;  %v4564_v5 = vshll.u32 %v22678_v58, 16  ;;  %v4594_v25 = vrot.slane %v4592_v49, 5  ;;  %v22707_v53 = vld [vmem:[#allocation2 + $0x84] sm:$0x1] }
 0x38d   :  { %v4648_v29 = vshll.u32 %v22707_v53, 16 }
 0x38e   :  { %v4562_v44 = vrot.slane %v4561_v20, 4  ;;  %v4553_v50 = vsel %vm22175_vm1, %v4548_v10, %v22680_v55  ;;  %v4566_v23 = vrot.slane %v4564_v5, 5  ;;  %v4595_v60 = vsel %vm22175_vm1, %v4590_v37, %v4594_v25 }
 0x38f   :  { %v4656_v55 = vshll.u32 %v4452_v22, 16  ;;  %v4667_v20 = vshrl.u32 %v4454_v39, 16  ;;  %v4618_v5 = vrot.slane %v4617_v33, 4  ;;  %v4650_v37 = vrot.slane %v4648_v29, 5  ;;  %v4876_v29 = vld [vmem:[#allocation2 + $0x18] sm:$0xe] }
 0x390   :  { %v4567_v59 = vsel %vm22175_vm1, %v4562_v44, %v4566_v23  ;;  %v4928_v33 = vrot.slane %v22641_v27, 5 }
 0x391   :  { %v17275_v36 = vcombine.low %v4553_v50, %v4567_v59  ;;  %v4658_v35 = vrot.slane %v4656_v55, 5  ;;  %v4669_v44 = vrot.slane %v4667_v20, 4  ;;  %v4924_v55 = vrot.slane %v22639_v43, 5 }
 0x392   :  { %v17294_v43 = vrot.slane %v4876_v29, 9 }
 0x393   :  { %19050 = vmatmul.mubr.msk.bf16.gmra.mrb[36].mxu1 %vm3582_vm2, %v19483_v38  ;;  %v4630_v38 = vrot.slane %v4628_v11, 5  ;;  %v22716_v11 = vld [vmem:[#allocation2 + $0x8c] sm:$0x1]  ;;  %v4659_v23 = vor.u32 %v4658_v35, %v4655_v3  ;;  %v4944_v3 = vrot.slane %v22659_v9, 5  ;;  %v4932_v35 = vrot.slane %v22645_v4, 5 }
 0x394   :  { %19061 = vmatprep.mubr.msk.bf16.mxu1 %vm3582_vm2, %v17272_v62  ;;  %v4576_v62 = vrot.slane %v4575_v28, 4  ;;  %v4672_v28 = vrot.slane %v4670_v30, 5  ;;  %v4662_v8 = vshll.u32 %v22716_v11, 16  ;;  %v4877_v30 = vld [vmem:[#allocation2 + $0x20] sm:$0xe] }
 0x395   :  { %v4631_v14 = vor.u32 %v4630_v38, %v4627_v12  ;;  %v17295_v27 = vrot.slane %v4877_v30, 9  ;;  %v4972_v30 = vrot.slane %v22699_v32, 5 }
 0x396   :  { %v4581_v21 = vsel %vm22175_vm1, %v4576_v62, %v4580_v2  ;;  %v4673_v25 = vor.u32 %v4672_v28, %v4669_v44  ;;  %v4664_v39 = vrot.slane %v4662_v8, 5  ;;  %v4660_v62 = vrot.slane %v4659_v23, 4  ;;  %v19511_v28 = vld [vmem:[#allocation14 + $0x90] ss:$8 sps:$4 sm:$0xff]   ;;  %v4880_v8 = vld [vmem:[#allocation2 + $0x38] sm:$0xe] }
 0x397   :  { %v17276_v47 = vcombine.low %v4581_v21, %v4595_v60  ;;  %v4632_v56 = vrot.slane %v4631_v14, 4  ;;  %v4874_v60 = vld [vmem:[#allocation2 + $0x8] sm:$0xe]  ;;  %v4879_v14 = vld [vmem:[#allocation2 + $0x30] sm:$0xe] }
 0x398   :  { %v4674_v2 = vrot.slane %v4673_v25, 4  ;;  %v4878_v21 = vld [vmem:[#allocation2 + $0x28] sm:$0xe]  ;;  %v4882_v25 = vld [vmem:[#allocation2 + $0x58] sm:$0xe] }
 0x39b   :  { %19062 = vmatmul.mubr.msk.bf16.vlgmr.msra.gmra.mrb[24].mxu1 %vm3582_vm2, %v17273_v7  ;;  %v4603_v7 = vor.u32 %v4602_v42, %v4599_v34  ;;  %v4636_v34 = vrot.slane %v4634_v40, 5  ;;  %v22719_v42 = vld [vmem:[#allocation2 + $0x94] sm:$0x1] }
 0x39c   :  { %19078 = vmatpush3.bf16.msra.mxu1 %v22648_v6  ;;  %19065 = vmatprep.mubr.msk.bf16.mxu1 %vm3582_vm2, %v17274_v46  ;;  %v4620_v6 = vshll.u32 %v22694_v48, 16  ;;  %v22725_v46 = vld [vmem:[#allocation11 + $0xc0] sm:$0xff]   ;;  %v4676_v22 = vshll.u32 %v22719_v42, 16 }
 0x39d   :  { %19079 = vmatprep.subr.bf16.mxu1 %v19485_v41  ;;  %v4604_v10 = vrot.slane %v4603_v7, 4  ;;  %v4637_v12 = vsel %vm22175_vm1, %v4632_v56, %v4636_v34  ;;  %v17292_v7 = vrot.slane %v4874_v60, 9  ;;  %v4940_v56 = vrot.slane %v22655_v1, 5  ;;  %v4886_v60 = vld [vmem:[#allocation2 + $0x78] sm:$0xe] }
 0x39e   :  { %v4622_v49 = vrot.slane %v4620_v6, 5  ;;  %v4678_v63 = vrot.slane %v4676_v22, 5  ;;  %v4665_v6 = vsel %vm22175_vm1, %v4660_v62, %v4664_v39  ;;  %v17298_v22 = vrot.slane %v4880_v8, 9  ;;  %v4884_v62 = vld [vmem:[#allocation2 + $0x68] sm:$0xe] }
 0x39f   :  { %v4609_v15 = vsel %vm22175_vm1, %v4604_v10, %v4608_v51  ;;  %v17297_v51 = vrot.slane %v4879_v14, 9  ;;  %v19510_v10 = vld [vmem:[#allocation14 + $0x84] ss:$8 sps:$4 sm:$0xff]   ;;  %v4948_v39 = vrot.slane %v22662_v19, 5  ;;  %v5411_v8 = vld [vmem:[#allocation2 + $0x20] sm:$0xf] }
 0x3a0   :  { %19080 = vmatpush3.bf16.msra.mxu1 %v19485_v41  ;;  %v4646_v41 = vrot.slane %v4645_v52, 4  ;;  %v4623_v50 = vsel %vm22175_vm1, %v4618_v5, %v4622_v49  ;;  %v4679_v18 = vsel %vm22175_vm1, %v4674_v2, %v4678_v63  ;;  %v4925_v52 = vsel %vm22512_vm9, %v17292_v7, %v4924_v55  ;;  %v19513_v49 = vld [vmem:[#allocation14 + $0x94] ss:$8 sps:$4 sm:$0xff]   ;;  %7141 = vmatprep.subr.bf16.mxu0 %v19510_v10  ;;  %v4885_v63 = vld [vmem:[#allocation2 + $0x70] sm:$0xe] }
 0x3a1   :  { %19081 = vmatprep.subr.bf16.mxu1 %v19486_v17  ;;  %v17277_v13 = vcombine.low %v4609_v15, %v4623_v50  ;;  %v17279_v40 = vcombine.low %v4665_v6, %v4679_v18  ;;  %v4936_v5 = vrot.slane %v22650_v24, 5  ;;  %v4945_v34 = vsel %vm22512_vm9, %v17297_v51, %v4944_v3  ;;  %v19489_v15 = vld [vmem:[#allocation11 + $0xc8] sm:$0xff]  }
 0x3a2   :  { %v4651_v38 = vsel %vm22175_vm1, %v4646_v41, %v4650_v37  ;;  %v4881_v41 = vld [vmem:[#allocation2 + $0x40] sm:$0xe]  ;;  %v4933_v24 = vsel %vm22512_vm9, %v17294_v43, %v4932_v35  ;;  %v4956_v2 = vrot.slane %v22685_v26, 5  ;;  %v17302_v7 = vrot.slane %v4884_v62, 9  ;;  %v19492_v3 = vld [vmem:[#allocation2 + $0x10] ss:$8 sps:$4 sm:$0xff]  }
 0x3a3   :  { %19066 = vmatmul.mubr.msk.bf16.gmra.mrb[28].mxu1 %vm3582_vm2, %v17275_v36  ;;  %v17278_v59 = vcombine.low %v4637_v12, %v4651_v38  ;;  %v4937_v44 = vsel %vm22512_vm9, %v17295_v27, %v4936_v5  ;;  %v4883_v37 = vld [vmem:[#allocation2 + $0x60] sm:$0xe]  ;;  %v17299_v23 = vrot.slane %v4881_v41, 9  ;;  %v4952_v12 = vrot.slane %v22678_v58, 5  ;;  %v4889_v27 = vld [vmem:[#allocation2 + $0x90] sm:$0xe] }
 0x3a4   :  { %19069 = vmatprep.mubr.msk.bf16.mxu1 %vm3582_vm2, %v17276_v47  ;;  %19082 = vmatpush3.bf16.msra.mxu1 %v19486_v17  ;;  %v17293_v17 = vrot.slane %v4875_v45, 9  ;;  %v19508_v47 = vld [vmem:[#allocation14 + $0x80] ss:$8 sps:$4 sm:$0xff]   ;;  %v17309_v9 = vcombine.low %v4933_v24, %v4937_v44  ;;  %v17301_v1 = vrot.slane %v4883_v37, 9  ;;  %v17300_v38 = vrot.slane %v4882_v25, 9 }
 0x3a5   :  { %19083 = vmatprep.subr.bf16.mxu1 %v19487_v61  ;;  %7142 = vmatpush1.bf16.msra.mxu0 %v19508_v47  ;;  %v4960_v45 = vrot.slane %v22682_v0, 5  ;;  %v4949_v58 = vsel %vm22512_vm9, %v17298_v22, %v4948_v39  ;;  %v4964_v26 = vrot.slane %v22691_v31, 5  ;;  %v17303_v18 = vrot.slane %v4885_v63, 9  ;;  %v19494_v35 = vld [vmem:[#allocation2 + $0x20] ss:$8 sps:$4 sm:$0xff]  }
 0x3a6   :  { %v4929_v20 = vsel %vm22512_vm9, %v17293_v17, %v4928_v33  ;;  %7143 = vmatprep.subr.bf16.mxu0 %v19513_v49  ;;  %v4887_v17 = vld [vmem:[#allocation2 + $0x80] sm:$0xe]  ;;  %v4957_v19 = vsel %vm22512_vm9, %v17300_v38, %v4956_v2  ;;  %v4968_v55 = vrot.slane %v22694_v48, 5  ;;  %v4888_v48 = vld [vmem:[#allocation2 + $0x88] sm:$0xe]  ;;  %v4980_v47 = vrot.slane %v22716_v11, 5 }
 0x3a7   :  { %v17308_v36 = vcombine.low %v4925_v52, %v4929_v20  ;;  %v19491_v33 = vld [vmem:[#allocation11 + $0xd8] sm:$0xff]   ;;  %v17304_v20 = vrot.slane %v4886_v60, 9  ;;  %v17305_v14 = vrot.slane %v4887_v17, 9  ;;  %v19493_v52 = vld [vmem:[#allocation11 + $0xe0] sm:$0xff]   ;;  %v4965_v29 = vsel %vm22512_vm9, %v17302_v7, %v4964_v26  ;;  %v5407_v11 = vld [vmem:[#allocation2 + $0x10] sm:$0xf] }
 0x3a8   :  { %19084 = vmatpush3.bf16.msra.mxu1 %v19487_v61  ;;  %v17296_v61 = vrot.slane %v4878_v21, 9  ;;  %v4969_v31 = vsel %vm22512_vm9, %v17303_v18, %v4968_v55  ;;  %v17306_v21 = vrot.slane %v4888_v48, 9  ;;  %v17307_v10 = vrot.slane %v4889_v27, 9  ;;  %v19496_v44 = vld [vmem:[#allocation11 + $0xe8] sm:$0xff]   ;;  %v22804_v25 = vld [vmem:[#allocation2 + $0x1c] sm:$0x1] }
 0x3a9   :  { %19101 = vmatprep.subr.bf16.mxu1 %v22725_v46  ;;  %7144 = vmatpush1.bf16.msra.mxu0 %v19511_v28  ;;  %v4984_v43 = vrot.slane %v22719_v42, 5  ;;  %v5409_v42 = vld [vmem:[#allocation2 + $0x18] sm:$0xf]  ;;  %v5443_v41 = vshll.u32 %v5407_v11, 16  ;;  %v5468_v39 = vshrl.u32 %v5411_v8, 16 }
 0x3aa   :  { %v4941_v4 = vsel %vm22512_vm9, %v17296_v61, %v4940_v56  ;;  %v4981_v5 = vsel %vm22512_vm9, %v17306_v21, %v4980_v47  ;;  %v19495_v28 = vld [vmem:[#allocation2 + $0x30] ss:$8 sps:$4 sm:$0xff]   ;;  %v5413_v56 = vld [vmem:[#allocation2 + $0x28] sm:$0xf]  ;;  %v5454_v24 = vshrl.u32 %v5409_v42, 16  ;;  %v5457_v37 = vshll.u32 %v5409_v42, 16 }
 0x3ab   :  { %19070 = vmatmul.mubr.msk.bf16.gmra.mrb[32].mxu1 %vm3582_vm2, %v17277_v13  ;;  %v17310_v50 = vcombine.low %v4941_v4, %v4945_v34  ;;  %v19490_v13 = vld [vmem:[#allocation11 + $0xd0] sm:$0xff]   ;;  %v4985_v49 = vsel %vm22512_vm9, %v17307_v10, %v4984_v43  ;;  %v5440_v34 = vshrl.u32 %v5407_v11, 16  ;;  %v5482_v4 = vshrl.u32 %v5413_v56, 16  ;;  %v22810_v7 = vld [vmem:[#allocation2 + $0x24] sm:$0x1] }
 0x3ac   :  { %19073 = vmatprep.mubr.msk.bf16.mxu1 %vm3582_vm2, %v17278_v59  ;;  %v4953_v59 = vsel %vm22512_vm9, %v17299_v23, %v4952_v12  ;;  %v17315_v61 = vcombine.low %v4981_v5, %v4985_v49  ;;  %v22802_v23 = vld [vmem:[#allocation2 + $0x14] sm:$0x1]  ;;  %v5445_v22 = vrot.slane %v5443_v41, 5  ;;  %v5456_v12 = vrot.slane %v5454_v24, 4  ;;  %v5417_v63 = vld [vmem:[#allocation2 + $0x38] sm:$0xf] }
 0x3ad   :  { %v17311_v0 = vcombine.low %v4949_v58, %v4953_v59  ;;  %v5459_v38 = vrot.slane %v5457_v37, 5  ;;  %v5471_v59 = vshll.u32 %v5411_v8, 16  ;;  %v5484_v62 = vrot.slane %v5482_v4, 4  ;;  %v22814_v26 = vld [vmem:[#allocation2 + $0x2c] sm:$0x1] }
 0x3ae   :  { %v5470_v18 = vrot.slane %v5468_v39, 4  ;;  %v5419_v48 = vld [vmem:[#allocation2 + $0x40] sm:$0xf]  ;;  %v5491_v27 = vshll.u32 %v22814_v26, 16  ;;  %v22820_v21 = vld [vmem:[#allocation2 + $0x3c] sm:$0x1] }
 0x3af   :  { %v5473_v55 = vrot.slane %v5471_v59, 5  ;;  %v5423_v49 = vld [vmem:[#allocation2 + $0x60] sm:$0xf]  ;;  %v22827_v37 = vld [vmem:[#allocation2 + $0x44] sm:$0x1] }
 0x3b0   :  { %v5493_v24 = vrot.slane %v5491_v27, 5  ;;  %v5555_v4 = vshll.u32 %v5423_v49, 16  ;;  %v5533_v59 = vshll.u32 %v22827_v37, 16 }
 0x3b1   :  { %v5474_v43 = vor.u32 %v5473_v55, %v5470_v18 }
 0x3b3   :  { %19074 = vmatmul.mubr.msk.bf16.gmra.mrb[36].mxu1 %vm3582_vm2, %v17279_v40  ;;  %v4976_v40 = vrot.slane %v22707_v53, 5  ;;  %v17313_v53 = vcombine.low %v4965_v29, %v4969_v31  ;;  %v5475_v8 = vrot.slane %v5474_v43, 4  ;;  %v5433_v43 = vld [vmem:[#allocation2 + $0x88] sm:$0xf] }
 0x3b4   :  { %19085 = vmatprep.mubr.msk.bf16.mxu1 %vm3582_vm2, %v17308_v36  ;;  %v4973_v36 = vsel %vm22512_vm9, %v17304_v20, %v4972_v30  ;;  %v5510_v30 = vshrl.u32 %v5417_v63, 16 }
 0x3b5   :  { %v4977_v32 = vsel %vm22512_vm9, %v17305_v14, %v4976_v40  ;;  %v5513_v14 = vshll.u32 %v5417_v63, 16  ;;  %v19500_v40 = vld [vmem:[#allocation2 + $0x70] ss:$8 sps:$4 sm:$0xff]   ;;  %v5557_v63 = vrot.slane %v5555_v4, 5 }
 0x3b6   :  { %v17314_v51 = vcombine.low %v4973_v36, %v4977_v32 }
 0x3b7   :  { %v5515_v11 = vrot.slane %v5513_v14, 5  ;;  %v5427_v14 = vld [vmem:[#allocation2 + $0x70] sm:$0xf] }
 0x3bb   :  { %19086 = vmatmul.mubr.msk.bf16.vlgmr.msra.gmra.mrb[24].mxu1 %vm3582_vm2, %v17309_v9  ;;  %v19499_v9 = vld [vmem:[#allocation11 + $0xf0] sm:$0xff]  }
 0x3bc   :  { %19102 = vmatpush3.bf16.msra.mxu1 %v22725_v46  ;;  %19089 = vmatprep.mubr.msk.bf16.mxu1 %vm3582_vm2, %v17310_v50  ;;  %v4961_v46 = vsel %vm22512_vm9, %v17301_v1, %v4960_v45  ;;  %v19497_v50 = vld [vmem:[#allocation2 + $0x40] ss:$8 sps:$4 sm:$0xff]   ;;  %v5442_v1 = vrot.slane %v5440_v34, 4  ;;  %v5415_v45 = vld [vmem:[#allocation2 + $0x30] sm:$0xf] }
 0x3bd   :  { %19103 = vmatprep.subr.bf16.mxu1 %v19489_v15  ;;  %v17312_v6 = vcombine.low %v4957_v19, %v4961_v46  ;;  %v19498_v46 = vld [vmem:[#allocation2 + $0x60] ss:$8 sps:$4 sm:$0xff]   ;;  %v5496_v58 = vshrl.u32 %v5415_v45, 16  ;;  %v5499_v60 = vshll.u32 %v5415_v45, 16  ;;  %v5463_v19 = vshll.u32 %v22804_v25, 16 }
 0x3be   :  { %v5446_v17 = vor.u32 %v5445_v22, %v5442_v1  ;;  %v5519_v1 = vshll.u32 %v22820_v21, 16  ;;  %v5425_v22 = vld [vmem:[#allocation2 + $0x68] sm:$0xf] }
 0x3bf   :  { %v5498_v29 = vrot.slane %v5496_v58, 4  ;;  %v5501_v31 = vrot.slane %v5499_v60, 5  ;;  %v5465_v10 = vrot.slane %v5463_v19, 5  ;;  %v5566_v58 = vshrl.u32 %v5425_v22, 16 }
 0x3c0   :  { %19104 = vmatpush3.bf16.msra.mxu1 %v19489_v15  ;;  %v5485_v15 = vshll.u32 %v5413_v56, 16  ;;  %v5447_v36 = vrot.slane %v5446_v17, 4  ;;  %v5569_v60 = vshll.u32 %v5425_v22, 16  ;;  %v19503_v17 = vld [vmem:[#allocation2 + $0x90] ss:$8 sps:$4 sm:$0xff]  }
 0x3c1   :  { %19105 = vmatprep.subr.bf16.mxu1 %v19490_v13  ;;  %v19505_v22 = vld [vmem:[#allocation11 + $0x108] sm:$0xff]  }
 0x3c2   :  { %v5487_v2 = vrot.slane %v5485_v15, 5 }
 0x3c3   :  { %19090 = vmatmul.mubr.msk.bf16.gmra.mrb[28].mxu1 %vm3582_vm2, %v17311_v0  ;;  %v5449_v0 = vshll.u32 %v22802_v23, 16 }
 0x3c4   :  { %19093 = vmatprep.mubr.msk.bf16.mxu1 %vm3582_vm2, %v17312_v6  ;;  %19106 = vmatpush3.bf16.msra.mxu1 %v19490_v13  ;;  %v19502_v13 = vld [vmem:[#allocation11 + $0xf8] sm:$0xff]   ;;  %v22812_v6 = vld [vmem:[#allocation11 + $0x100] sm:$0xff]   ;;  %v5488_v20 = vor.u32 %v5487_v2, %v5484_v62 }
 0x3c5   :  { %19107 = vmatprep.subr.bf16.mxu1 %v19491_v33  ;;  %v5451_v32 = vrot.slane %v5449_v0, 5 }
 0x3c6   :  { %v5489_v5 = vrot.slane %v5488_v20, 4 }
 0x3c7   :  { %v5452_v41 = vsel %vm22175_vm1, %v5447_v36, %v5451_v32  ;;  %v22846_v36 = vld [vmem:[#allocation2 + $0x64] sm:$0x1] }
 0x3c8   :  { %19108 = vmatpush3.bf16.msra.mxu1 %v19491_v33  ;;  %v5460_v33 = vor.u32 %v5459_v38, %v5456_v12  ;;  %v5494_v12 = vsel %vm22175_vm1, %v5489_v5, %v5493_v24  ;;  %v22849_v5 = vld [vmem:[#allocation2 + $0x6c] sm:$0x1]  ;;  %v5622_v24 = vshrl.u32 %v5433_v43, 16 }
 0x3c9   :  { %19125 = vmatprep.subr.bf16.mxu1 %v19493_v52 }
 0x3ca   :  { %v5461_v47 = vrot.slane %v5460_v33, 4  ;;  %v22836_v33 = vld [vmem:[#allocation2 + $0x4c] sm:$0x1] }
 0x3cb   :  { %19094 = vmatmul.mubr.msk.bf16.gmra.mrb[32].mxu1 %vm3582_vm2, %v17313_v53  ;;  %v22818_v53 = vld [vmem:[#allocation2 + $0x34] sm:$0x1] }
 0x3cc   :  { %19097 = vmatprep.mubr.msk.bf16.mxu1 %vm3582_vm2, %v17314_v51  ;;  %v5421_v51 = vld [vmem:[#allocation2 + $0x48] sm:$0xf]  ;;  %v5466_v15 = vsel %vm22175_vm1, %v5461_v47, %v5465_v10  ;;  %v5571_v47 = vrot.slane %v5569_v60, 5  ;;  %v5431_v10 = vld [vmem:[#allocation2 + $0x80] sm:$0xf]  ;;  %v5624_v60 = vrot.slane %v5622_v24, 4 }
 0x3cd   :  { %v5538_v56 = vshrl.u32 %v5421_v51, 16  ;;  %v5541_v34 = vshll.u32 %v5421_v51, 16  ;;  %v17348_v0 = vcombine.low %v5452_v41, %v5466_v15  ;;  %v5568_v51 = vrot.slane %v5566_v58, 4 }
 0x3ce   :  { %v5611_v41 = vshll.u32 %v5431_v10, 16 }
 0x3cf   :  { %v5540_v62 = vrot.slane %v5538_v56, 4  ;;  %v5543_v2 = vrot.slane %v5541_v34, 5  ;;  %v22854_v56 = vld [vmem:[#allocation2 + $0x74] sm:$0x1]  ;;  %v5608_v34 = vshrl.u32 %v5431_v10, 16 }
 0x3d0   :  { %v5613_v58 = vrot.slane %v5611_v41, 5 }
 0x3d1   :  { %v5544_v32 = vor.u32 %v5543_v2, %v5540_v62  ;;  %v22862_v2 = vld [vmem:[#allocation2 + $0x84] sm:$0x1] }
 0x3d3   :  { %19098 = vmatmul.mubr.msk.bf16.gmra.mrb[36].mxu1 %vm3582_vm2, %v17315_v61  ;;  %v19501_v61 = vld [vmem:[#allocation2 + $0x80] ss:$8 sps:$4 sm:$0xff]   ;;  %v5545_v4 = vrot.slane %v5544_v32, 4 }
 0x3d4   :  { %19109 = vmatprep.mubr.msk.bf16.mxu1 %vm3582_vm2, %v19492_v3  ;;  %v5512_v3 = vrot.slane %v5510_v30, 4  ;;  %v5547_v30 = vshll.u32 %v22836_v33, 16 }
 0x3d6   :  { %v5516_v38 = vor.u32 %v5515_v11, %v5512_v3 }
 0x3d8   :  { %v5517_v55 = vrot.slane %v5516_v38, 4 }
 0x3db   :  { %19110 = vmatmul.mubr.msk.bf16.vlgmr.msra.gmra.mrb[24].mxu1 %vm3582_vm2, %v19494_v35  ;;  %v5524_v35 = vshrl.u32 %v5419_v48, 16 }
 0x3dc   :  { %19126 = vmatpush3.bf16.msra.mxu1 %v19493_v52  ;;  %19113 = vmatprep.mubr.msk.bf16.mxu1 %vm3582_vm2, %v19495_v28  ;;  %v5477_v52 = vshll.u32 %v22810_v7, 16  ;;  %v5502_v28 = vor.u32 %v5501_v31, %v5498_v29  ;;  %v5521_v31 = vrot.slane %v5519_v1, 5  ;;  %v22857_v1 = vld [vmem:[#allocation2 + $0x7c] sm:$0x1] }
 0x3dd   :  { %19127 = vmatprep.subr.bf16.mxu1 %v19496_v44  ;;  %v5526_v45 = vrot.slane %v5524_v35, 4 }
 0x3de   :  { %v5479_v42 = vrot.slane %v5477_v52, 5  ;;  %v5503_v39 = vrot.slane %v5502_v28, 4  ;;  %v5522_v35 = vsel %vm22175_vm1, %v5517_v55, %v5521_v31  ;;  %v5561_v28 = vshll.u32 %v22846_v36, 16 }
 0x3e0   :  { %19128 = vmatpush3.bf16.msra.mxu1 %v19496_v44  ;;  %v5527_v44 = vshll.u32 %v5419_v48, 16  ;;  %v5480_v18 = vsel %vm22175_vm1, %v5475_v8, %v5479_v42  ;;  %v22844_v48 = vrot.slane %v5533_v59, 5  ;;  %v5549_v42 = vrot.slane %v5547_v30, 5  ;;  %v22870_v30 = vld [vmem:[#allocation2 + $0x8c] sm:$0x1] }
 0x3e1   :  { %19129 = vmatprep.subr.bf16.mxu1 %v19499_v9  ;;  %v17349_v52 = vcombine.low %v5480_v18, %v5494_v12  ;;  %v5572_v8 = vor.u32 %v5571_v47, %v5568_v51  ;;  %v5563_v62 = vrot.slane %v5561_v28, 5  ;;  %v5617_v47 = vshll.u32 %v22862_v2, 16  ;;  %v19507_v28 = vld [vmem:[#allocation11 + $0x118] sm:$0xff]  }
 0x3e3   :  { %19114 = vmatmul.mubr.msk.bf16.gmra.mrb[28].mxu1 %vm3582_vm2, %v19497_v50  ;;  %v5505_v50 = vshll.u32 %v22818_v53, 16  ;;  %v5573_v18 = vrot.slane %v5572_v8, 4  ;;  %v5619_v8 = vrot.slane %v5617_v47, 5 }
 0x3e4   :  { %19117 = vmatprep.mubr.msk.bf16.mxu1 %vm3582_vm2, %v19498_v46  ;;  %19130 = vmatpush3.bf16.msra.mxu1 %v19499_v9  ;;  %v5552_v9 = vshrl.u32 %v5423_v49, 16  ;;  %v5580_v49 = vshrl.u32 %v5427_v14, 16 }
 0x3e5   :  { %19131 = vmatprep.subr.bf16.mxu1 %v19502_v13  ;;  %v5507_v19 = vrot.slane %v5505_v50, 5  ;;  %v5575_v50 = vshll.u32 %v22849_v5, 16 }
 0x3e6   :  { %v5554_v46 = vrot.slane %v5552_v9, 4  ;;  %v5625_v9 = vshll.u32 %v5433_v43, 16  ;;  %v5582_v12 = vrot.slane %v5580_v49, 4  ;;  %v5631_v43 = vshll.u32 %v22870_v30, 16 }
 0x3e7   :  { %v5508_v29 = vsel %vm22175_vm1, %v5503_v39, %v5507_v19  ;;  %v5550_v19 = vsel %vm22175_vm1, %v5545_v4, %v5549_v42  ;;  %v5577_v55 = vrot.slane %v5575_v50, 5 }
 0x3e8   :  { %19132 = vmatpush3.bf16.msra.mxu1 %v19502_v13  ;;  %v5529_v13 = vrot.slane %v5527_v44, 5  ;;  %v5558_v27 = vor.u32 %v5557_v63, %v5554_v46  ;;  %v17350_v39 = vcombine.low %v5508_v29, %v5522_v35  ;;  %v5435_v46 = vld [vmem:[#allocation2 + $0x90] sm:$0xf]  ;;  %v5610_v63 = vrot.slane %v5608_v34, 4  ;;  %v22879_v34 = vld [vmem:[#allocation2 + $0x94] sm:$0x1] }
 0x3e9   :  { %19149 = vmatprep.subr.bf16.mxu1 %v22812_v6  ;;  %v5636_v31 = vshrl.u32 %v5435_v46, 16 }
 0x3ea   :  { %v5530_v20 = vor.u32 %v5529_v13, %v5526_v45  ;;  %v5559_v15 = vrot.slane %v5558_v27, 4  ;;  %v5614_v51 = vor.u32 %v5613_v58, %v5610_v63  ;;  %v5858_v58 = vld [vmem:[#allocation2 + $0x18] sm:$0xe] }
 0x3eb   :  { %19118 = vmatmul.mubr.msk.bf16.gmra.mrb[32].mxu1 %vm3582_vm2, %v19500_v40  ;;  %v5429_v40 = vld [vmem:[#allocation2 + $0x78] sm:$0xf]  ;;  %v5638_v41 = vrot.slane %v5636_v31, 4  ;;  %v5907_v31 = vrot.slane %v22802_v23, 5  ;;  %v5919_v23 = vrot.slane %v22814_v26, 5 }
 0x3ec   :  { %19121 = vmatprep.mubr.msk.bf16.mxu1 %vm3582_vm2, %v19501_v61  ;;  %v5583_v61 = vshll.u32 %v5427_v14, 16  ;;  %v5594_v3 = vshrl.u32 %v5429_v40, 16  ;;  %v5597_v11 = vshll.u32 %v5429_v40, 16  ;;  %v5531_v44 = vrot.slane %v5530_v20, 4  ;;  %v19506_v40 = vld [vmem:[#allocation11 + $0x110] sm:$0xff]  }
 0x3ed   :  { %v5589_v20 = vshll.u32 %v22854_v56, 16  ;;  %v5564_v14 = vsel %vm22175_vm1, %v5559_v15, %v5563_v62  ;;  %v5615_v15 = vrot.slane %v5614_v51, 4  ;;  %v5865_v26 = vld [vmem:[#allocation2 + $0x60] sm:$0xe] }
 0x3ee   :  { %v5585_v38 = vrot.slane %v5583_v61, 5  ;;  %v5596_v45 = vrot.slane %v5594_v3, 4  ;;  %v5599_v13 = vrot.slane %v5597_v11, 5  ;;  %v5536_v59 = vsel %vm22175_vm1, %v5531_v44, %v22844_v48 }
 0x3ef   :  { %v5639_v48 = vshll.u32 %v5435_v46, 16  ;;  %v17351_v49 = vcombine.low %v5536_v59, %v5550_v19  ;;  %v5578_v61 = vsel %vm22175_vm1, %v5573_v18, %v5577_v55  ;;  %v5591_v3 = vrot.slane %v5589_v20, 5  ;;  %v5857_v20 = vld [vmem:[#allocation2 + $0x10] sm:$0xe] }
 0x3f0   :  { %v5600_v29 = vor.u32 %v5599_v13, %v5596_v45  ;;  %v17352_v11 = vcombine.low %v5564_v14, %v5578_v61  ;;  %v5645_v45 = vshll.u32 %v22879_v34, 16  ;;  %v5620_v46 = vsel %vm22175_vm1, %v5615_v15, %v5619_v8 }
 0x3f1   :  { %v5641_v24 = vrot.slane %v5639_v48, 5  ;;  %v17369_v14 = vrot.slane %v5858_v58, 9  ;;  %v5870_v58 = vld [vmem:[#allocation2 + $0x88] sm:$0xe] }
 0x3f2   :  { %v5601_v44 = vrot.slane %v5600_v29, 4 }
 0x3f3   :  { %19122 = vmatmul.mubr.msk.bf16.gmra.mrb[36].mxu1 %vm3582_vm2, %v19503_v17  ;;  %v5627_v17 = vrot.slane %v5625_v9, 5 }
 0x3f4   :  { %19133 = vmatprep.mubr.msk.bf16.mxu1 %vm3582_vm2, %v17348_v0  ;;  %v5437_v0 = vld [vmem:[#allocation2 + $0x98] sm:$0xf] }
 0x3f5   :  { %v5650_v32 = vshrl.u32 %v5437_v0, 16  ;;  %v5653_v27 = vshll.u32 %v5437_v0, 16  ;;  %v5628_v10 = vor.u32 %v5627_v17, %v5624_v60  ;;  %v5647_v17 = vrot.slane %v5645_v45, 5 }
 0x3f7   :  { %v5652_v9 = vrot.slane %v5650_v32, 4  ;;  %v5655_v4 = vrot.slane %v5653_v27, 5  ;;  %v5629_v50 = vrot.slane %v5628_v10, 4  ;;  %v5860_v32 = vld [vmem:[#allocation2 + $0x28] sm:$0xe] }
 0x3f8   :  { %v5862_v27 = vld [vmem:[#allocation2 + $0x38] sm:$0xe]  ;;  %v5859_v10 = vld [vmem:[#allocation2 + $0x20] sm:$0xe] }
 0x3f9   :  { %v5656_v59 = vor.u32 %v5655_v4, %v5652_v9  ;;  %v17373_v61 = vrot.slane %v5862_v27, 9  ;;  %v17370_v16 = vrot.slane %v5859_v10, 9 }
 0x3fb   :  { %19134 = vmatmul.mubr.msk.bf16.vlgmr.msra.gmra.mrb[24].mxu1 %vm3582_vm2, %v17349_v52  ;;  %v5586_v52 = vor.u32 %v5585_v38, %v5582_v12  ;;  %v22882_v12 = vld [vmem:[#allocation2 + $0x9c] sm:$0x1]  ;;  %v5657_v18 = vrot.slane %v5656_v59, 4 }
 0x3fc   :  { %19150 = vmatpush3.bf16.msra.mxu1 %v22812_v6  ;;  %19137 = vmatprep.mubr.msk.bf16.mxu1 %vm3582_vm2, %v17350_v39  ;;  %v5603_v6 = vshll.u32 %v22857_v1, 16  ;;  %v5642_v39 = vor.u32 %v5641_v24, %v5638_v41  ;;  %v5659_v62 = vshll.u32 %v22882_v12, 16  ;;  %v5923_v41 = vrot.slane %v22818_v53, 5 }
 0x3fd   :  { %19151 = vmatprep.subr.bf16.mxu1 %v19505_v22  ;;  %v5587_v35 = vrot.slane %v5586_v52, 4  ;;  %v5911_v52 = vrot.slane %v22804_v25, 5  ;;  %v17371_v25 = vrot.slane %v5860_v32, 9  ;;  %v17376_v53 = vrot.slane %v5865_v26, 9 }
 0x3fe   :  { %v5605_v42 = vrot.slane %v5603_v6, 5  ;;  %v5643_v19 = vrot.slane %v5642_v39, 4  ;;  %v5661_v55 = vrot.slane %v5659_v62, 5  ;;  %v5939_v39 = vrot.slane %v22846_v36, 5  ;;  %v5867_v62 = vld [vmem:[#allocation2 + $0x70] sm:$0xe] }
 0x3ff   :  { %v5592_v38 = vsel %vm22175_vm1, %v5587_v35, %v5591_v3  ;;  %v5912_v48 = vsel %vm22512_vm9, %v17369_v14, %v5911_v52  ;;  %v5863_v35 = vld [vmem:[#allocation2 + $0x40] sm:$0xe]  ;;  %v5951_v36 = vrot.slane %v22857_v1, 5  ;;  %v17381_v14 = vrot.slane %v5870_v58, 9 }
 0x400   :  { %19152 = vmatpush3.bf16.msra.mxu1 %v19505_v22  ;;  %v5633_v22 = vrot.slane %v5631_v43, 5  ;;  %v5606_v13 = vsel %vm22175_vm1, %v5601_v44, %v5605_v42  ;;  %v5648_v29 = vsel %vm22175_vm1, %v5643_v19, %v5647_v17  ;;  %v5662_v6 = vsel %vm22175_vm1, %v5657_v18, %v5661_v55 }
 0x401   :  { %19153 = vmatprep.subr.bf16.mxu1 %v19506_v40  ;;  %v17353_v60 = vcombine.low %v5592_v38, %v5606_v13  ;;  %v17355_v51 = vcombine.low %v5648_v29, %v5662_v6  ;;  %v5915_v44 = vrot.slane %v22810_v7, 5  ;;  %v5920_v42 = vsel %vm22512_vm9, %v17371_v25, %v5919_v23  ;;  %v5866_v38 = vld [vmem:[#allocation2 + $0x68] sm:$0xe]  ;;  %v5872_v6 = vld [vmem:[#allocation2 + $0x98] sm:$0xe] }
 0x402   :  { %v5634_v63 = vsel %vm22175_vm1, %v5629_v50, %v5633_v22  ;;  %v17374_v4 = vrot.slane %v5863_v35, 9  ;;  %v5935_v7 = vrot.slane %v22836_v33, 5  ;;  %v5931_v22 = vrot.slane %v22827_v37, 5  ;;  %v5869_v37 = vld [vmem:[#allocation2 + $0x80] sm:$0xe]  ;;  %vm6891_vm1 = vmor %vm6889_vm13, %vm6890_vm14 }
 0x403   :  { %19138 = vmatmul.mubr.msk.bf16.gmra.mrb[28].mxu1 %vm3582_vm2, %v17351_v49  ;;  %v17354_v0 = vcombine.low %v5620_v46, %v5634_v63  ;;  %v5861_v49 = vld [vmem:[#allocation2 + $0x30] sm:$0xe]  ;;  %v5916_v9 = vsel %vm22512_vm9, %v17370_v16, %v5915_v44  ;;  %v17377_v59 = vrot.slane %v5866_v38, 9  ;;  %v5943_v33 = vrot.slane %v22849_v5, 5  ;;  %v5868_v46 = vld [vmem:[#allocation2 + $0x78] sm:$0xe] }
 0x404   :  { %19141 = vmatprep.mubr.msk.bf16.mxu1 %vm3582_vm2, %v17352_v11  ;;  %19154 = vmatpush3.bf16.msra.mxu1 %v19506_v40  ;;  %v17368_v40 = vrot.slane %v5857_v20, 9  ;;  %v17372_v3 = vrot.slane %v5861_v49, 9  ;;  %v5927_v11 = vrot.slane %v22820_v21, 5  ;;  %v17385_v15 = vcombine.low %v5916_v9, %v5920_v42  ;;  %v19514_v25 = vld [vmem:[#allocation14 + $0xa0] ss:$8 sps:$4 sm:$0xff]  }
 0x405   :  { %19155 = vmatprep.subr.bf16.mxu1 %v19507_v28  ;;  %v5932_v45 = vsel %vm22512_vm9, %v17374_v4, %v5931_v22  ;;  %v5940_v63 = vsel %vm22512_vm9, %v17376_v53, %v5939_v39  ;;  %v17378_v17 = vrot.slane %v5867_v62, 9  ;;  %v5944_v19 = vsel %vm22512_vm9, %v17377_v59, %v5943_v33  ;;  %v19516_v49 = vld [vmem:[#allocation14 + $0xa4] ss:$8 sps:$4 sm:$0xff]   ;;  %v19523_v23 = vld [vmem:[#allocation14 + $0xd0] ss:$8 sps:$4 sm:$0xff]  }
 0x406   :  { %v5908_v47 = vsel %vm22512_vm9, %v17368_v40, %v5907_v31  ;;  %v5928_v24 = vsel %vm22512_vm9, %v17373_v61, %v5927_v11  ;;  %v5924_v21 = vsel %vm22512_vm9, %v17372_v3, %v5923_v41  ;;  %v17379_v18 = vrot.slane %v5868_v46, 9  ;;  %7145 = vmatprep.subr.bf16.mxu0 %v19516_v49  ;;  %v19519_v61 = vld [vmem:[#allocation14 + $0xb4] ss:$8 sps:$4 sm:$0xff]   ;;  %v19522_v16 = vld [vmem:[#allocation14 + $0xc4] ss:$8 sps:$4 sm:$0xff]  }
 0x407   :  { %v17384_v43 = vcombine.low %v5908_v47, %v5912_v48  ;;  %v17386_v50 = vcombine.low %v5924_v21, %v5928_v24  ;;  %v17380_v55 = vrot.slane %v5869_v37, 9  ;;  %v17388_v20 = vcombine.low %v5940_v63, %v5944_v19  ;;  %7146 = vmatpush1.bf16.msra.mxu0 %v19514_v25  ;;  %v19525_v3 = vld [vmem:[#allocation14 + $0xd4] ss:$8 sps:$4 sm:$0xff]   ;;  %v19528_v11 = vld [vmem:[#allocation14 + $0xe4] ss:$8 sps:$4 sm:$0xff]  }
 0x408   :  { %19156 = vmatpush3.bf16.msra.mxu1 %v19507_v28  ;;  %v5864_v28 = vld [vmem:[#allocation2 + $0x48] sm:$0xe]  ;;  %v5955_v5 = vrot.slane %v22862_v2, 5  ;;  %v5959_v40 = vrot.slane %v22870_v30, 5  ;;  %v5952_v52 = vsel %vm22512_vm9, %v17379_v18, %v5951_v36  ;;  %v5871_v2 = vld [vmem:[#allocation2 + $0x90] sm:$0xe]  ;;  %7147 = vmatprep.subr.bf16.mxu0 %v19519_v61 }
 0x409   :  { %v17375_v8 = vrot.slane %v5864_v28, 9  ;;  %v17382_v48 = vrot.slane %v5871_v2, 9  ;;  %v5963_v32 = vrot.slane %v22879_v34, 5  ;;  %v17383_v27 = vrot.slane %v5872_v6, 9  ;;  %v19517_v34 = vld [vmem:[#allocation14 + $0xb0] ss:$8 sps:$4 sm:$0xff]  }
 0x40a   :  { %v5956_v1 = vsel %vm22512_vm9, %v17380_v55, %v5955_v5  ;;  %v5960_v29 = vsel %vm22512_vm9, %v17381_v14, %v5959_v40  ;;  %v19531_v35 = vld [vmem:[#allocation14 + $0xf4] ss:$8 sps:$4 sm:$0xff]   ;;  %v19529_v44 = vld [vmem:[#allocation14 + $0xf0] ss:$8 sps:$4 sm:$0xff]   ;;  %v19534_v42 = vld [vmem:[#allocation14 + $0x4] ss:$8 sps:$4 sm:$0xff]  }
 0x40b   :  { %19142 = vmatmul.mubr.msk.bf16.gmra.mrb[32].mxu1 %vm3582_vm2, %v17353_v60  ;;  %v5936_v13 = vsel %vm22512_vm9, %v17375_v8, %v5935_v7  ;;  %v17390_v30 = vcombine.low %v5956_v1, %v5960_v29  ;;  %v5964_v47 = vsel %vm22512_vm9, %v17382_v48, %v5963_v32  ;;  %7148 = vmatpush1.bf16.msra.mxu0 %v19517_v34  ;;  %v22958_v28 = vld [vmem:[#allocation13] ss:$0 sm:$0xff]  ;;  %vm9962_vm13 = vsmask.f32 3338 }
 0x40c   :  { %19145 = vmatprep.mubr.msk.bf16.mxu1 %vm3582_vm2, %v17354_v0  ;;  %v17387_v60 = vcombine.low %v5932_v45, %v5936_v13  ;;  %v5947_v0 = vrot.slane %v22854_v56, 5  ;;  %7149 = vmatprep.subr.bf16.mxu0 %v19522_v16  ;;  %v17469_v41 = vld.sshfl [vmem:[#allocation3] sm:$0x13 pattern:$0x76325410] }
 0x40d   :  { %v6832_v26 = vcombine.high %v17469_v41, %v17469_v41  ;;  %v6897_v8 = vshrl.u32 %v17469_v41, 16  ;;  %v6900_v7 = vshll.u32 %v17469_v41, 16  ;;  %vm10117_vm14 = vsmask.f32 1284 }
 0x40e   :  { %v5948_v56 = vsel %vm22512_vm9, %v17378_v17, %v5947_v0 }
 0x40f   :  { %v17389_v31 = vcombine.low %v5948_v56, %v5952_v52  ;;  %v22964_v13 = vshll.u32 %v6832_v26, 16  ;;  %v22966_v33 = vrot.slane %v6897_v8, 6  ;;  %v22968_v62 = vrot.slane %v6900_v7, 7 }
 0x411   :  { %v6908_v19 = vrot.slane %v22964_v13, 7  ;;  %v6903_v5 = vor.u32 %v22968_v62, %v22966_v33 }
 0x413   :  { %19146 = vmatmul.mubr.msk.bf16.gmra.mrb[36].mxu1 %vm3582_vm2, %v17355_v51  ;;  %v5967_v51 = vrot.slane %v22882_v12, 5  ;;  %v19520_v12 = vld [vmem:[#allocation14 + $0xc0] ss:$8 sps:$4 sm:$0xff]  }
 0x414   :  { %19157 = vmatprep.mubr.msk.bf16.mxu1 %vm3582_vm2, %v17384_v43  ;;  %7150 = vmatpush1.bf16.msra.mxu0 %v19520_v12 }
 0x415   :  { %v5968_v10 = vsel %vm22512_vm9, %v17383_v27, %v5967_v51  ;;  %7151 = vmatprep.subr.bf16.mxu0 %v19525_v3 }
 0x416   :  { %v17391_v43 = vcombine.low %v5964_v47, %v5968_v10 }
 0x418   :  { %7152 = vmatpush1.bf16.msra.mxu0 %v19523_v23 }
 0x419   :  { %7153 = vmatprep.subr.bf16.mxu0 %v19528_v11 }
 0x41b   :  { %19158 = vmatmul.mubr.msk.bf16.vlgmr.msra.gmra.mrb[24].mxu1 %vm3582_vm2, %v17385_v15 }
 0x41c   :  { %19161 = vmatprep.mubr.msk.bf16.mxu1 %vm3582_vm2, %v17386_v50  ;;  %7154 = vmatpush1.bf16.msra.mxu0 %v19526_v54 }
 0x41d   :  { %7155 = vmatprep.subr.bf16.mxu0 %v19531_v35 }
 0x420   :  { %7156 = vmatpush1.bf16.msra.mxu0 %v19529_v44 }
 0x421   :  { %7318 = vmatprep.subr.bf16.mxu0 %v19534_v42 }
 0x423   :  { %19162 = vmatmul.mubr.msk.bf16.gmra.mrb[28].mxu1 %vm3582_vm2, %v17387_v60 }
 0x424   :  { %19165 = vmatprep.mubr.msk.bf16.mxu1 %vm3582_vm2, %v17388_v20 }
 0x42b   :  { %19166 = vmatmul.mubr.msk.bf16.gmra.mrb[32].mxu1 %vm3582_vm2, %v17389_v31 }
 0x42c   :  { %19169 = vmatprep.mubr.msk.bf16.mxu1 %vm3582_vm2, %v17390_v30 }
 0x433   :  { %19170 = vmatmul.mubr.msk.bf16.gmra.mrb[36].mxu1 %vm3582_vm2, %v17391_v43  ;;  %vm6893_vm2 = vmor %vm6891_vm1, %vm6892_vm15 }
 0x434   :  { %vm23106_vm3 = vmor %vm6893_vm2, %vm6894_vm0  ;;  %vm10119_vm2 = vsmask.f32 2312 }
 0x4ee   :  { %v19159_v24 = vpop.f32.mrb[24].mxu1 }
 0x4ef   :  { %v6172_v9 = vadd.f32 %v19159_v24, %v22958_v28  ;;  %v6084_v4 = vpop.f32.mrb[25].mxu1 }
 0x4f0   :  { %v6170_v15 = vadd.f32 %v22958_v28, %v6084_v4  ;;  %v19160_v21 = vpop.f32.mrb[26].mxu1 }
 0x4f1   :  { %v6173_v50 = vadd.f32 %v19160_v21, %v22958_v28  ;;  %v6087_v22 = vpop.f32.mrb[27].mxu1  ;;  %v6188_v53 = vmax.f32 %v6172_v9, 0.0 }
 0x4f2   :  { %v6171_v38 = vadd.f32 %v22958_v28, %v6087_v22  ;;  %v6186_v39 = vmax.f32 %v6170_v15, 0.0 }
 0x4f3   :  { %v6189_v45 = vmax.f32 %v6173_v50, 0.0 }
 0x4f4   :  { %v6187_v59 = vmax.f32 %v6171_v38, 0.0 }
 0x4f5   :  { %v6203_v46 = vmax.f32 %v6188_v53, %v6189_v45 }
 0x4f6   :  { %v6202_v37 = vmax.f32 %v6186_v39, %v6187_v59  ;;  %v19163_v63 = vpop.f32.mrb[28].mxu1 }
 0x4f7   :  { %v6235_v58 = vcombine.high %v6203_v46, %v6203_v46  ;;  %v6242_v60 = vrot.slane %v6203_v46, %v21789_v57  ;;  %v22972_v17 = vadd.f32 %v19163_v63, %v22958_v28  ;;  %v6100_v0 = vpop.f32.mrb[29].mxu1 }
 0x4f8   :  { %v6218_v18 = vcombine.high %v6202_v37, %v6202_v37  ;;  %v6225_v36 = vrot.slane %v6202_v37, %v21789_v57  ;;  %v22977_v55 = vadd.f32 %v22958_v28, %v6100_v0  ;;  %v19164_v20 = vpop.f32.mrb[30].mxu1 }
 0x4f9   :  { %v6249_v14 = vrot.slane %v6235_v58, %v21789_v57  ;;  %v6250_v40 = vcombine.high %v6242_v60, %v6242_v60  ;;  %v17409_v56 = vrot.slane %v6242_v60, 9  ;;  %v6192_v52 = vmax.f32 %v22972_v17, 0.0  ;;  %v6103_v1 = vpop.f32.mrb[31].mxu1 }
 0x4fa   :  { %v6232_v29 = vrot.slane %v6218_v18, %v21789_v57  ;;  %v6233_v2 = vcombine.high %v6225_v36, %v6225_v36  ;;  %v17405_v6 = vrot.slane %v6225_v36, 9  ;;  %v6190_v31 = vmax.f32 %v22977_v55, 0.0 }
 0x4fb   :  { %v6251_v30 = vcombine.high %v6249_v14, %v6249_v14  ;;  %v17410_v48 = vrot.slane %v6250_v40, 9  ;;  %v17411_v32 = vrot.slane %v6249_v14, 9  ;;  %v6486_v27 = vmax.f32 %v6242_v60, %v17409_v56 }
 0x4fc   :  { %v6234_v51 = vcombine.high %v6232_v29, %v6232_v29  ;;  %v17406_v47 = vrot.slane %v6233_v2, 9  ;;  %v17407_v10 = vrot.slane %v6232_v29, 9  ;;  %v6482_v43 = vmax.f32 %v6225_v36, %v17405_v6 }
 0x4fd   :  { %v17412_v25 = vrot.slane %v6251_v30, 9  ;;  %v6487_v49 = vmax.f32 %v6250_v40, %v17410_v48  ;;  %v6488_v34 = vmax.f32 %v6249_v14, %v17411_v32  ;;  %v18697_v61 = vpack.c.bf16 %v6486_v27, %v6486_v27  ;;  %v6764_v32 = vld [vmem:[#allocation3 + $0x8] sm:$0x7] }
 0x4fe   :  { %v17408_v12 = vrot.slane %v6234_v51, 9  ;;  %v6483_v16 = vmax.f32 %v6233_v2, %v17406_v47  ;;  %v6484_v23 = vmax.f32 %v6232_v29, %v17407_v10  ;;  %v18693_v3 = vpack.c.bf16 %v6482_v43, %v6482_v43  ;;  %v19167_v11 = vpop.f32.mrb[32].mxu1 }
 0x4ff   :  { %v6489_v54 = vmax.f32 %v6251_v30, %v17412_v25  ;;  %v18698_v35 = vpack.c.bf16 %v6487_v49, %v6487_v49  ;;  %v18699_v44 = vpack.c.bf16 %v6488_v34, %v6488_v34  ;;  %v6658_v42 = vunpack.c.l.b16 %v18697_v61  ;;  %v6116_v41 = vpop.f32.mrb[33].mxu1  ;;  %v6761_v49 = vld [vmem:[#allocation3 + $0x4] sm:$0x7] }
 0x500   :  { %v6485_v24 = vmax.f32 %v6234_v51, %v17408_v12  ;;  %v18694_v9 = vpack.c.bf16 %v6483_v16, %v6483_v16  ;;  %v18695_v4 = vpack.c.bf16 %v6484_v23, %v6484_v23  ;;  %v6654_v26 = vunpack.c.l.b16 %v18693_v3  ;;  %v19168_v15 = vpop.f32.mrb[34].mxu1 }
 0x501   :  { %v18700_v21 = vpack.c.bf16 %v6489_v54, %v6489_v54  ;;  %v6659_v8 = vunpack.c.l.b16 %v18698_v35  ;;  %v6660_v7 = vunpack.c.l.b16 %v18699_v44  ;;  %v6693_v50 = vrot.slane %v6658_v42, 7  ;;  %v22985_v22 = vpop.f32.mrb[35].mxu1 }
 0x502   :  { %v18696_v38 = vpack.c.bf16 %v6485_v24, %v6485_v24  ;;  %v6655_v53 = vunpack.c.l.b16 %v18694_v9  ;;  %v6656_v45 = vunpack.c.l.b16 %v18695_v4  ;;  %v6686_v39 = vrot.slane %v6654_v26, 7 }
 0x503   :  { %v6661_v59 = vunpack.c.l.b16 %v18700_v21  ;;  %v6694_v46 = vrot.slane %v6659_v8, 6  ;;  %v6696_v37 = vrot.slane %v6660_v7, 5  ;;  %v6177_v63 = vadd.f32 %v19164_v20, %v22958_v28 }
 0x504   :  { %v6657_v58 = vunpack.c.l.b16 %v18696_v38  ;;  %v6687_v60 = vrot.slane %v6655_v53, 6  ;;  %v6689_v0 = vrot.slane %v6656_v45, 5  ;;  %v6175_v18 = vadd.f32 %v22958_v28, %v6103_v1 }
 0x505   :  { %v6695_v36 = vsel %vm2879_vm6, %v6694_v46, %v6693_v50  ;;  %v6698_v14 = vrot.slane %v6661_v59, 4  ;;  %v6193_v40 = vmax.f32 %v6177_v63, 0.0  ;;  %v22991_v56 = vadd.f32 %v19167_v11, %v22958_v28 }
 0x506   :  { %v6697_v29 = vsel %vm2882_vm7, %v6696_v37, %v6695_v36  ;;  %v6688_v2 = vsel %vm2879_vm6, %v6687_v60, %v6686_v39  ;;  %v6691_v6 = vrot.slane %v6657_v58, 4  ;;  %v6191_v30 = vmax.f32 %v6175_v18, 0.0  ;;  %v22995_v48 = vpop.f32.mrb[36].mxu1 }
 0x507   :  { %v6699_v20 = vsel %vm2885_vm8, %v6698_v14, %v6697_v29  ;;  %v6690_v27 = vsel %vm2882_vm7, %v6689_v0, %v6688_v2  ;;  %v6205_v51 = vmax.f32 %v6192_v52, %v6193_v40  ;;  %v6196_v47 = vmax.f32 %v22991_v56, 0.0  ;;  %v23008_v10 = vpop.f32.mrb[37].mxu1 }
 0x508   :  { %v6743_v43 = vpack.c.b16 %v6699_v20, %v6699_v20  ;;  %v6692_v25 = vsel %vm2885_vm8, %v6691_v6, %v6690_v27  ;;  %v6204_v34 = vmax.f32 %v6190_v31, %v6191_v30  ;;  %v23014_v61 = vadd.f32 %v22958_v28, %v6116_v41  ;;  %v23016_v12 = vpop.f32.mrb[38].mxu1 }
 0x509   :  { %v6742_v16 = vpack.c.b16 %v6692_v25, %v6692_v25  ;;  %v6269_v23 = vcombine.high %v6205_v51, %v6205_v51  ;;  %v6276_v17 = vrot.slane %v6205_v51, %v21789_v57  ;;  %v6181_v52 = vadd.f32 %v19168_v15, %v22958_v28  ;;  %v23020_v3 = vpop.f32.mrb[39].mxu1 }
 0x50a   :  { %v6765_v11 = vsel %vm23000_vm12, %v6743_v43, %v6764_v32  ;;  %v6252_v54 = vcombine.high %v6204_v34, %v6204_v34  ;;  %v6259_v55 = vrot.slane %v6204_v34, %v21789_v57  ;;  %v6194_v31 = vmax.f32 %v23014_v61, 0.0 }
 0x50b   :  { %6766 = vst [vmem:[#allocation3 + $0x8] sm:$0x7] %v6765_v11  ;;  %v6762_v35 = vsel %vm23000_vm12, %v6742_v16, %v6761_v49  ;;  %v6283_v44 = vrot.slane %v6269_v23, %v21789_v57  ;;  %v6284_v42 = vcombine.high %v6276_v17, %v6276_v17  ;;  %v17417_v41 = vrot.slane %v6276_v17, 9 }
 0x50c   :  { %6763 = vst [vmem:[#allocation3 + $0x4] sm:$0x7] %v6762_v35  ;;  %v6266_v24 = vrot.slane %v6252_v54, %v21789_v57  ;;  %v6267_v9 = vcombine.high %v6259_v55, %v6259_v55  ;;  %v17413_v4 = vrot.slane %v6259_v55, 9  ;;  %v6197_v26 = vmax.f32 %v6181_v52, 0.0 }
 0x50d   :  { %v6285_v15 = vcombine.high %v6283_v44, %v6283_v44  ;;  %v17418_v21 = vrot.slane %v6284_v42, 9  ;;  %v17419_v8 = vrot.slane %v6283_v44, 9  ;;  %v6494_v7 = vmax.f32 %v6276_v17, %v17417_v41 }
 0x50e   :  { %v6268_v50 = vcombine.high %v6266_v24, %v6266_v24  ;;  %v17414_v38 = vrot.slane %v6267_v9, 9  ;;  %v17415_v53 = vrot.slane %v6266_v24, 9  ;;  %v6490_v45 = vmax.f32 %v6259_v55, %v17413_v4 }
 0x50f   :  { %v17420_v39 = vrot.slane %v6285_v15, 9  ;;  %v6495_v59 = vmax.f32 %v6284_v42, %v17418_v21  ;;  %v6496_v46 = vmax.f32 %v6283_v44, %v17419_v8  ;;  %v18705_v37 = vpack.c.bf16 %v6494_v7, %v6494_v7 }
 0x510   :  { %v17416_v63 = vrot.slane %v6268_v50, 9  ;;  %v6491_v58 = vmax.f32 %v6267_v9, %v17414_v38  ;;  %v6492_v60 = vmax.f32 %v6266_v24, %v17415_v53  ;;  %v18701_v0 = vpack.c.bf16 %v6490_v45, %v6490_v45  ;;  %v6767_v38 = vld [vmem:[#allocation3 + $0xc] sm:$0x7] }
 0x511   :  { %v6497_v18 = vmax.f32 %v6285_v15, %v17420_v39  ;;  %v18706_v36 = vpack.c.bf16 %v6495_v59, %v6495_v59  ;;  %v18707_v14 = vpack.c.bf16 %v6496_v46, %v6496_v46  ;;  %v6666_v40 = vunpack.c.l.b16 %v18705_v37 }
 0x512   :  { %v6493_v56 = vmax.f32 %v6268_v50, %v17416_v63  ;;  %v18702_v29 = vpack.c.bf16 %v6491_v58, %v6491_v58  ;;  %v18703_v2 = vpack.c.bf16 %v6492_v60, %v6492_v60  ;;  %v6662_v6 = vunpack.c.l.b16 %v18701_v0 }
 0x513   :  { %v18708_v30 = vpack.c.bf16 %v6497_v18, %v6497_v18  ;;  %v6667_v20 = vunpack.c.l.b16 %v18706_v36  ;;  %v6668_v32 = vunpack.c.l.b16 %v18707_v14  ;;  %v6707_v27 = vrot.slane %v6666_v40, 7 }
 0x514   :  { %v18704_v51 = vpack.c.bf16 %v6493_v56, %v6493_v56  ;;  %v6663_v43 = vunpack.c.l.b16 %v18702_v29  ;;  %v6664_v25 = vunpack.c.l.b16 %v18703_v2  ;;  %v6700_v49 = vrot.slane %v6662_v6, 7 }
 0x515   :  { %v6669_v34 = vunpack.c.l.b16 %v18708_v30  ;;  %v6708_v16 = vrot.slane %v6667_v20, 6  ;;  %v6710_v23 = vrot.slane %v6668_v32, 5  ;;  %v6207_v17 = vmax.f32 %v6196_v47, %v6197_v26  ;;  %v6770_v26 = vld [vmem:[#allocation3 + $0x10] sm:$0x7] }
 0x516   :  { %v6665_v52 = vunpack.c.l.b16 %v18704_v51  ;;  %v6701_v11 = vrot.slane %v6663_v43, 6  ;;  %v6703_v54 = vrot.slane %v6664_v25, 5  ;;  %v6179_v55 = vadd.f32 %v22958_v28, %v22985_v22 }
 0x517   :  { %v6709_v35 = vsel %vm2879_vm6, %v6708_v16, %v6707_v27  ;;  %v6712_v44 = vrot.slane %v6669_v34, 4  ;;  %v6303_v42 = vcombine.high %v6207_v17, %v6207_v17  ;;  %v6310_v41 = vrot.slane %v6207_v17, %v21789_v57 }
 0x518   :  { %v6711_v24 = vsel %vm2882_vm7, %v6710_v23, %v6709_v35  ;;  %v6702_v9 = vsel %vm2879_vm6, %v6701_v11, %v6700_v49  ;;  %v6705_v4 = vrot.slane %v6665_v52, 4  ;;  %v6195_v15 = vmax.f32 %v6179_v55, 0.0 }
 0x519   :  { %v6713_v47 = vsel %vm2885_vm8, %v6712_v44, %v6711_v24  ;;  %v6704_v21 = vsel %vm2882_vm7, %v6703_v54, %v6702_v9  ;;  %v6317_v8 = vrot.slane %v6303_v42, %v21789_v57  ;;  %v6318_v22 = vcombine.high %v6310_v41, %v6310_v41  ;;  %v23053_v42 = vld.sshfl [vmem:[#allocation3 + $0x18] sm:$0x13 pattern:$0x76325410] }
 0x51a   :  { %v6745_v7 = vpack.c.b16 %v6713_v47, %v6713_v47  ;;  %v6706_v50 = vsel %vm2885_vm8, %v6705_v4, %v6704_v21  ;;  %v17425_v53 = vrot.slane %v6310_v41, 9  ;;  %v6206_v45 = vmax.f32 %v6194_v31, %v6195_v15 }
 0x51b   :  { %v6744_v39 = vpack.c.b16 %v6706_v50, %v6706_v50  ;;  %v6319_v59 = vcombine.high %v6317_v8, %v6317_v8  ;;  %v17426_v46 = vrot.slane %v6318_v22, 9  ;;  %v17427_v37 = vrot.slane %v6317_v8, 9 }
 0x51c   :  { %v6771_v63 = vsel %vm23000_vm12, %v6745_v7, %v6770_v26  ;;  %v6502_v58 = vmax.f32 %v6310_v41, %v17425_v53  ;;  %v6286_v60 = vcombine.high %v6206_v45, %v6206_v45  ;;  %v6293_v0 = vrot.slane %v6206_v45, %v21789_v57  ;;  %v6776_v26 = vld [vmem:[#allocation3 + $0x20] sm:$0x7]  ;;  %v23064_v53 = vld.sshfl [vmem:[#allocation3 + $0x8] sm:$0x13 pattern:$0x76325410] }
 0x51d   :  { %6772 = vst [vmem:[#allocation3 + $0x10] sm:$0x7] %v6771_v63  ;;  %v6768_v18 = vsel %vm23000_vm12, %v6744_v39, %v6767_v38  ;;  %v17428_v36 = vrot.slane %v6319_v59, 9  ;;  %v6503_v14 = vmax.f32 %v6318_v22, %v17426_v46  ;;  %v6504_v40 = vmax.f32 %v6317_v8, %v17427_v37 }
 0x51e   :  { %6769 = vst [vmem:[#allocation3 + $0xc] sm:$0x7] %v6768_v18  ;;  %v18713_v61 = vpack.c.bf16 %v6502_v58, %v6502_v58  ;;  %v6300_v31 = vrot.slane %v6286_v60, %v21789_v57  ;;  %v6301_v56 = vcombine.high %v6293_v0, %v6293_v0  ;;  %v17421_v29 = vrot.slane %v6293_v0, 9 }
 0x51f   :  { %v6505_v2 = vmax.f32 %v6319_v59, %v17428_v36  ;;  %v18714_v6 = vpack.c.bf16 %v6503_v14, %v6503_v14  ;;  %v18715_v30 = vpack.c.bf16 %v6504_v40, %v6504_v40  ;;  %v23051_v20 = vrot.slane %v6903_v5, 2 }
 0x520   :  { %v6674_v32 = vunpack.c.l.b16 %v18713_v61  ;;  %v6302_v27 = vcombine.high %v6300_v31, %v6300_v31  ;;  %v17422_v51 = vrot.slane %v6301_v56, 9  ;;  %v17423_v43 = vrot.slane %v6300_v31, 9 }
 0x521   :  { %v18716_v25 = vpack.c.bf16 %v6505_v2, %v6505_v2  ;;  %v6675_v49 = vunpack.c.l.b16 %v18714_v6  ;;  %v6676_v34 = vunpack.c.l.b16 %v18715_v30  ;;  %v6498_v16 = vmax.f32 %v6293_v0, %v17421_v29 }
 0x522   :  { %v6721_v23 = vrot.slane %v6674_v32, 7  ;;  %v17424_v17 = vrot.slane %v6302_v27, 9  ;;  %v6499_v52 = vmax.f32 %v6301_v56, %v17422_v51  ;;  %v6500_v11 = vmax.f32 %v6300_v31, %v17423_v43 }
 0x523   :  { %v6677_v54 = vunpack.c.l.b16 %v18716_v25  ;;  %v6722_v55 = vrot.slane %v6675_v49, 6  ;;  %v6724_v35 = vrot.slane %v6676_v34, 5  ;;  %v18709_v44 = vpack.c.bf16 %v6498_v16, %v6498_v16 }
 0x524   :  { %v6501_v33 = vmax.f32 %v6302_v27, %v17424_v17  ;;  %v18710_v62 = vpack.c.bf16 %v6499_v52, %v6499_v52  ;;  %v18711_v5 = vpack.c.bf16 %v6500_v11, %v6500_v11  ;;  %v6184_v41 = vadd.f32 %v22995_v48, %v22958_v28  ;;  %v17470_v48 = vld.sshfl [vmem:[#allocation3 + $0x4] sm:$0x13 pattern:$0x76325410] }
 0x525   :  { %v6723_v24 = vsel %vm2879_vm6, %v6722_v55, %v6721_v23  ;;  %v6726_v9 = vrot.slane %v6677_v54, 4  ;;  %v6670_v4 = vunpack.c.l.b16 %v18709_v44  ;;  %v6182_v15 = vadd.f32 %v22958_v28, %v23008_v10  ;;  %v23074_v31 = vld.sshfl [vmem:[#allocation3 + $0xc] sm:$0x13 pattern:$0x76325410] }
 0x526   :  { %v6725_v47 = vsel %vm2882_vm7, %v6724_v35, %v6723_v24  ;;  %v18712_v21 = vpack.c.bf16 %v6501_v33, %v6501_v33  ;;  %v6671_v8 = vunpack.c.l.b16 %v18710_v62  ;;  %v6672_v22 = vunpack.c.l.b16 %v18711_v5 }
 0x527   :  { %v6727_v7 = vsel %vm2885_vm8, %v6726_v9, %v6725_v47  ;;  %v6714_v50 = vrot.slane %v6670_v4, 7  ;;  %v6185_v38 = vadd.f32 %v23016_v12, %v22958_v28  ;;  %v6953_v45 = vshrl.u32 %v23053_v42, 16 }
 0x528   :  { %v6747_v39 = vpack.c.b16 %v6727_v7, %v6727_v7  ;;  %v6673_v59 = vunpack.c.l.b16 %v18712_v21  ;;  %v6715_v10 = vrot.slane %v6671_v8, 6  ;;  %v6717_v46 = vrot.slane %v6672_v22, 5 }
 0x529   :  { %v6200_v37 = vmax.f32 %v6184_v41, 0.0  ;;  %v6201_v63 = vmax.f32 %v6185_v38, 0.0  ;;  %v6183_v58 = vadd.f32 %v22958_v28, %v23020_v3  ;;  %v6956_v60 = vshll.u32 %v23053_v42, 16  ;;  %v6773_v3 = vld [vmem:[#allocation3 + $0x1c] sm:$0x7] }
 0x52a   :  { %v6777_v0 = vsel %vm23000_vm12, %v6747_v39, %v6776_v26  ;;  %v6716_v12 = vsel %vm2879_vm6, %v6715_v10, %v6714_v50  ;;  %v6719_v18 = vrot.slane %v6673_v59, 4  ;;  %v6198_v36 = vmax.f32 %v6182_v15, 0.0 }
 0x52b   :  { %6778 = vst [vmem:[#allocation3 + $0x20] sm:$0x7] %v6777_v0  ;;  %v6718_v14 = vsel %vm2882_vm7, %v6717_v46, %v6716_v12  ;;  %v6209_v40 = vmax.f32 %v6200_v37, %v6201_v63  ;;  %v6199_v61 = vmax.f32 %v6183_v58, 0.0  ;;  %v6911_v56 = vshrl.u32 %v17470_v48, 16 }
 0x52c   :  { %v6720_v28 = vsel %vm2885_vm8, %v6719_v18, %v6718_v14  ;;  %v6840_v29 = vcombine.high %v17470_v48, %v17470_v48  ;;  %v6914_v2 = vshll.u32 %v17470_v48, 16  ;;  %v6925_v6 = vshrl.u32 %v23064_v53, 16 }
 0x52d   :  { %v6746_v30 = vpack.c.b16 %v6720_v28, %v6720_v28  ;;  %v6337_v32 = vcombine.high %v6209_v40, %v6209_v40  ;;  %v6344_v27 = vrot.slane %v6209_v40, %v21789_v57  ;;  %v6208_v51 = vmax.f32 %v6198_v36, %v6199_v61 }
 0x52e   :  { %v6848_v43 = vcombine.high %v23064_v53, %v23064_v53  ;;  %v6856_v25 = vcombine.high %v23074_v31, %v23074_v31  ;;  %v23083_v49 = vrot.slane %v6911_v56, 6  ;;  %v23085_v34 = vrot.slane %v6914_v2, 7 }
 0x52f   :  { %v6774_v16 = vsel %vm23000_vm12, %v6746_v30, %v6773_v3  ;;  %v6351_v23 = vrot.slane %v6337_v32, %v21789_v57  ;;  %v6352_v17 = vcombine.high %v6344_v27, %v6344_v27  ;;  %v17433_v52 = vrot.slane %v6344_v27, 9 }
 0x530   :  { %6775 = vst [vmem:[#allocation3 + $0x1c] sm:$0x7] %v6774_v16  ;;  %v6320_v11 = vcombine.high %v6208_v51, %v6208_v51  ;;  %v6327_v54 = vrot.slane %v6208_v51, %v21789_v57  ;;  %v23091_v55 = vshll.u32 %v6840_v29, 16  ;;  %v23093_v35 = vrot.slane %v6925_v6, 6 }
 0x531   :  { %v6353_v44 = vcombine.high %v6351_v23, %v6351_v23  ;;  %v17434_v33 = vrot.slane %v6352_v17, 9  ;;  %v17435_v62 = vrot.slane %v6351_v23, 9  ;;  %v6510_v5 = vmax.f32 %v6344_v27, %v17433_v52 }
 0x532   :  { %v6334_v41 = vrot.slane %v6320_v11, %v21789_v57  ;;  %v6335_v24 = vcombine.high %v6327_v54, %v6327_v54  ;;  %v17429_v9 = vrot.slane %v6327_v54, 9  ;;  %v6917_v4 = vor.u32 %v23085_v34, %v23083_v49  ;;  %v19718_v11 = vld [vmem:[#allocation14 + $0x420] ss:$8 sps:$4 sm:$0xff]  }
 0x533   :  { %v17436_v15 = vrot.slane %v6353_v44, 9  ;;  %v6511_v47 = vmax.f32 %v6352_v17, %v17434_v33  ;;  %v6512_v26 = vmax.f32 %v6351_v23, %v17435_v62  ;;  %v18721_v21 = vpack.c.bf16 %v6510_v5, %v6510_v5 }
 0x534   :  { %v6336_v8 = vcombine.high %v6334_v41, %v6334_v41  ;;  %v17430_v22 = vrot.slane %v6335_v24, 9  ;;  %v17431_v7 = vrot.slane %v6334_v41, 9  ;;  %v6506_v50 = vmax.f32 %v6327_v54, %v17429_v9  ;;  %v6779_v9 = vld [vmem:[#allocation3 + $0x24] sm:$0x7] }
 0x535   :  { %v6513_v38 = vmax.f32 %v6353_v44, %v17436_v15  ;;  %v18722_v48 = vpack.c.bf16 %v6511_v47, %v6511_v47  ;;  %v18723_v39 = vpack.c.bf16 %v6512_v26, %v6512_v26  ;;  %v6682_v59 = vunpack.c.l.b16 %v18721_v21  ;;  %v6782_v44 = vld [vmem:[#allocation3 + $0x28] sm:$0x7] }
 0x536   :  { %v17432_v10 = vrot.slane %v6336_v8, 9  ;;  %v6507_v46 = vmax.f32 %v6335_v24, %v17430_v22  ;;  %v6508_v37 = vmax.f32 %v6334_v41, %v17431_v7  ;;  %v18717_v63 = vpack.c.bf16 %v6506_v50, %v6506_v50  ;;  %v17475_v50 = vld.sshfl [vmem:[#allocation3 + $0x20] sm:$0x13 pattern:$0x76325410] }
 0x537   :  { %v18724_v58 = vpack.c.bf16 %v6513_v38, %v6513_v38  ;;  %v6683_v0 = vunpack.c.l.b16 %v18722_v48  ;;  %v6684_v12 = vunpack.c.l.b16 %v18723_v39  ;;  %v6928_v18 = vshll.u32 %v23064_v53, 16  ;;  %v17474_v21 = vld.sshfl [vmem:[#allocation3 + $0x1c] sm:$0x13 pattern:$0x76325410] }
 0x538   :  { %v6509_v36 = vmax.f32 %v6336_v8, %v17432_v10  ;;  %v18718_v14 = vpack.c.bf16 %v6507_v46, %v6507_v46  ;;  %v18719_v40 = vpack.c.bf16 %v6508_v37, %v6508_v37  ;;  %v6678_v61 = vunpack.c.l.b16 %v18717_v63 }
 0x539   :  { %v6685_v56 = vunpack.c.l.b16 %v18724_v58  ;;  %v6735_v28 = vrot.slane %v6682_v59, 7  ;;  %v6736_v3 = vrot.slane %v6683_v0, 6  ;;  %v6738_v29 = vrot.slane %v6684_v12, 5 }
 0x53a   :  { %v18720_v2 = vpack.c.bf16 %v6509_v36, %v6509_v36  ;;  %v6679_v6 = vunpack.c.l.b16 %v18718_v14  ;;  %v6680_v30 = vunpack.c.l.b16 %v18719_v40  ;;  %v6922_v32 = vrot.slane %v23091_v55, 7 }
 0x53b   :  { %v6737_v27 = vsel %vm2879_vm6, %v6736_v3, %v6735_v28  ;;  %v6740_v51 = vrot.slane %v6685_v56, 4  ;;  %v6728_v49 = vrot.slane %v6678_v61, 7  ;;  %v6930_v34 = vrot.slane %v6928_v18, 7 }
 0x53c   :  { %v6739_v16 = vsel %vm2882_vm7, %v6738_v29, %v6737_v27  ;;  %v6681_v23 = vunpack.c.l.b16 %v18720_v2  ;;  %v6729_v17 = vrot.slane %v6679_v6, 6  ;;  %v6731_v52 = vrot.slane %v6680_v30, 5  ;;  %v19532_v6 = vld [vmem:[#allocation14] ss:$8 sps:$4 sm:$0xff]   ;;  %v19537_v30 = vld [vmem:[#allocation14 + $0x14] ss:$8 sps:$4 sm:$0xff]  }
 0x53d   :  { %v6741_v54 = vsel %vm2885_vm8, %v6740_v51, %v6739_v16  ;;  %v6918_v33 = vrot.slane %v6917_v4, 2  ;;  %v6931_v55 = vor.u32 %v6930_v34, %v23093_v35  ;;  %v6939_v62 = vshrl.u32 %v23074_v31, 16 }
 0x53e   :  { %v6749_v5 = vpack.c.b16 %v6741_v54, %v6741_v54  ;;  %v6730_v41 = vsel %vm2879_vm6, %v6729_v17, %v6728_v49  ;;  %v6733_v24 = vrot.slane %v6681_v23, 4  ;;  %v6942_v15 = vshll.u32 %v23074_v31, 16 }
 0x53f   :  { %v6732_v47 = vsel %vm2882_vm7, %v6731_v52, %v6730_v41  ;;  %v6909_v26 = vsel %vm23106_vm3, %v23051_v20, %v6908_v19  ;;  %v6934_v35 = vshll.u32 %v6848_v43, 16  ;;  %v6941_v4 = vrot.slane %v6939_v62, 6 }
 0x540   :  { %v6783_v8 = vsel %vm23000_vm12, %v6749_v5, %v6782_v44  ;;  %v6734_v22 = vsel %vm2885_vm8, %v6733_v24, %v6732_v47  ;;  %v6944_v7 = vrot.slane %v6942_v15, 7  ;;  %v6948_v13 = vshll.u32 %v6856_v25, 16  ;;  %v19540_v24 = vld [vmem:[#allocation14 + $0x24] ss:$8 sps:$4 sm:$0xff]  }
 0x541   :  { %6784 = vst [vmem:[#allocation3 + $0x28] sm:$0x7] %v6783_v8  ;;  %v6748_v38 = vpack.c.b16 %v6734_v22, %v6734_v22  ;;  %v6864_v19 = vcombine.high %v23053_v42, %v23053_v42  ;;  %v6955_v20 = vrot.slane %v6953_v45, 6  ;;  %v6958_v53 = vrot.slane %v6956_v60, 7  ;;  %v19538_v8 = vld [vmem:[#allocation14 + $0x20] ss:$8 sps:$4 sm:$0xff]  }
 0x542   :  { %v23138_v43 = vsel %vm23106_vm3, %v6918_v33, %v6922_v32  ;;  %v6932_v48 = vrot.slane %v6931_v55, 2  ;;  %v6945_v39 = vor.u32 %v6944_v7, %v6941_v4  ;;  %v6967_v31 = vshrl.u32 %v17474_v21, 16  ;;  %v19535_v33 = vld [vmem:[#allocation14 + $0x10] ss:$8 sps:$4 sm:$0xff]  }
 0x543   :  { %v6780_v25 = vsel %vm23000_vm12, %v6748_v38, %v6779_v9  ;;  %v6936_v59 = vrot.slane %v6934_v35, 7  ;;  %v6970_v10 = vshll.u32 %v17474_v21, 16  ;;  %v6981_v46 = vshrl.u32 %v17475_v50, 16  ;;  %v19543_v38 = vld [vmem:[#allocation14 + $0x34] ss:$8 sps:$4 sm:$0xff]  }
 0x544   :  { %6781 = vst [vmem:[#allocation3 + $0x24] sm:$0x7] %v6780_v25  ;;  %v6946_v37 = vrot.slane %v6945_v39, 2  ;;  %v6950_v63 = vrot.slane %v6948_v13, 7  ;;  %v6969_v45 = vrot.slane %v6967_v31, 6  ;;  %v6984_v58 = vshll.u32 %v17475_v50, 16 }
 0x545   :  { %v7025_v42 = vcombine.low %v6909_v26, %v23138_v43  ;;  %v6872_v60 = vcombine.high %v17474_v21, %v17474_v21  ;;  %v6972_v0 = vrot.slane %v6970_v10, 7  ;;  %v23145_v12 = vsel %vm23106_vm3, %v6932_v48, %v6936_v59  ;;  %v17510_v9 = vld.sshfl [vmem:[#allocation3 + $0x4] sm:$0x12 pattern:$0x76325410] }
 0x546   :  { %v23149_v1 = vsel %vm23106_vm3, %v6946_v37, %v6950_v63  ;;  %v6959_v18 = vor.u32 %v6958_v53, %v6955_v20  ;;  %v6962_v36 = vshll.u32 %v6864_v19, 16  ;;  %v6983_v40 = vrot.slane %v6981_v46, 6  ;;  %v17511_v4 = vld.sshfl [vmem:[#allocation3 + $0x8] sm:$0x12 pattern:$0x76325410] }
 0x547   :  { %v7026_v14 = vcombine.low %v23145_v12, %v23149_v1  ;;  %v6986_v61 = vrot.slane %v6984_v58, 7  ;;  %v6973_v56 = vor.u32 %v6972_v0, %v6969_v45  ;;  %v7033_v28 = vrot.slane %v7025_v42, %v21789_v57  ;;  %v17512_v21 = vld.sshfl [vmem:[#allocation3 + $0xc] sm:$0x12 pattern:$0x76325410] }
 0x548   :  { %v6880_v29 = vcombine.high %v17475_v50, %v17475_v50  ;;  %v6976_v2 = vshll.u32 %v6872_v60, 16  ;;  %v6960_v32 = vrot.slane %v6959_v18, 2  ;;  %v6964_v27 = vrot.slane %v6962_v36, 7  ;;  %v19541_v25 = vld [vmem:[#allocation14 + $0x30] ss:$8 sps:$4 sm:$0xff]  }
 0x549   :  { %v7040_v3 = vrot.slane %v7026_v14, %v21789_v57  ;;  %v6987_v34 = vor.u32 %v6986_v61, %v6983_v40  ;;  %v6974_v23 = vrot.slane %v6973_v56, 2  ;;  %v23836_v55 = vmov 0   ;;  %v23173_v31 = vld.sshfl [vmem:[#allocation3 + $0x1c] sm:$0x12 pattern:$0x76325410] }
 0x54a   :  { %v6978_v54 = vrot.slane %v6976_v2, 7  ;;  %v6990_v44 = vshll.u32 %v6880_v29, 16  ;;  %vm7451_vm7 = vcmask 1040384   ;;  %v6965_v15 = vsel %vm23106_vm3, %v6960_v32, %v6964_v27  ;;  %v19546_v63 = vld [vmem:[#allocation14 + $0x44] ss:$8 sps:$4 sm:$0xff]  }
 0x54b   :  { %v7041_v51 = vcombine.low %v7033_v28, %v7040_v3  ;;  %v17476_v49 = vld.sshfl [vmem:[#allocation3 + $0x24] sm:$0x13 pattern:$0x76325410]  ;;  %v6988_v26 = vrot.slane %v6987_v34, 2  ;;  %vm7453_vm4 = vmor %vm7451_vm7, %vm2879_vm6  ;;  %v7402_v50 = vcombine.high %v17510_v9, %v17510_v9  ;;  %v7410_v48 = vcombine.high %v17511_v4, %v17511_v4 }
 0x54c   :  { %v6888_v16 = vcombine.high %v17476_v49, %v17476_v49  ;;  %v6995_v17 = vshrl.u32 %v17476_v49, 16  ;;  %v6998_v52 = vshll.u32 %v17476_v49, 16  ;;  %v23160_v47 = vsel %vm23106_vm3, %v6974_v23, %v6978_v54  ;;  %vm7455_vm9 = vmor %vm7453_vm4, %vm2885_vm8  ;;  %v17560_v10 = vld.sshfl [vmem:[#allocation3 + $0x10] sm:$0x13 pattern:$0x76325410] }
 0x54d   :  { %7174 = vmatmul.mubr.bf16.vlgmr.msra.gmra.mrb[40].mxu0 %v7041_v51  ;;  %v6992_v22 = vrot.slane %v6990_v44, 7  ;;  %v7042_v19 = vcombine.low %v6965_v15, %v23160_v47  ;;  %v7418_v39 = vcombine.high %v17512_v21, %v17512_v21  ;;  %v7464_v46 = vrot.slane %v7402_v50, 7  ;;  %v17515_v37 = vld.sshfl [vmem:[#allocation3 + $0x20] sm:$0x12 pattern:$0x76325410]  ;;  %vm23180_vm11 = vmor %vm7455_vm9, %vm2891_vm10 }
 0x54e   :  { %7319 = vmatpush1.bf16.msra.mxu0 %v19532_v6  ;;  %7183 = vmatprep.mubr.bf16.mxu0 %v23836_v55  ;;  %v6997_v62 = vrot.slane %v6995_v17, 6  ;;  %v7000_v5 = vrot.slane %v6998_v52, 7  ;;  %v7004_v41 = vshll.u32 %v6888_v16, 16  ;;  %v17518_v60 = vrot.slane %v17510_v9, 9  ;;  %v19544_v61 = vld [vmem:[#allocation14 + $0x40] ss:$8 sps:$4 sm:$0xff]  }
 0x54f   :  { %7320 = vmatprep.subr.bf16.mxu0 %v19537_v30  ;;  %v23166_v20 = vsel %vm23106_vm3, %v6988_v26, %v6992_v22  ;;  %v7050_v45 = vrot.slane %v7042_v19, %v21789_v57  ;;  %v7468_v0 = vrot.slane %v7410_v48, 7  ;;  %v7472_v18 = vrot.slane %v7418_v39, 7  ;;  %v17564_v40 = vld.sshfl [vmem:[#allocation3 + $0x28] sm:$0x13 pattern:$0x76325410] }
 0x550   :  { %v7001_v35 = vor.u32 %v7000_v5, %v6997_v62  ;;  %v7006_v13 = vrot.slane %v7004_v41, 7  ;;  %v7434_v36 = vcombine.high %v23173_v31, %v23173_v31  ;;  %v7941_v14 = vcombine.high %v17560_v10, %v17560_v10  ;;  %v17584_v27 = vld.sshfl [vmem:[#allocation3 + $0x10] sm:$0x12 pattern:$0x76325410] }
 0x551   :  { %v17519_v28 = vrot.slane %v17511_v4, 9  ;;  %v7442_v3 = vcombine.high %v17515_v37, %v17515_v37  ;;  %v8017_v29 = vshrl.u32 %v17560_v10, 16  ;;  %v23188_v2 = vsel %vm23180_vm11, %v17518_v60, %v7464_v46  ;;  %v19549_v51 = vld [vmem:[#allocation14 + $0x54] ss:$8 sps:$4 sm:$0xff]   ;;  %v19550_v48 = vld [vmem:[#allocation14 + $0x60] ss:$8 sps:$4 sm:$0xff]  }
 0x552   :  { %7321 = vmatpush1.bf16.msra.mxu0 %v19535_v33  ;;  %v7002_v7 = vrot.slane %v7001_v35, 2  ;;  %v17520_v6 = vrot.slane %v17512_v21, 9  ;;  %v8020_v30 = vshll.u32 %v17560_v10, 16  ;;  %v8103_v32 = vcombine.low %v23138_v43, %v23145_v12  ;;  %v19547_v12 = vld [vmem:[#allocation14 + $0x50] ss:$8 sps:$4 sm:$0xff]  }
 0x553   :  { %7322 = vmatprep.subr.bf16.mxu0 %v19540_v24  ;;  %v8019_v49 = vrot.slane %v8017_v29, 6  ;;  %v8026_v34 = vshll.u32 %v7941_v14, 16  ;;  %v7973_v16 = vcombine.high %v17564_v40, %v17564_v40  ;;  %v8073_v23 = vshrl.u32 %v17564_v40, 16  ;;  %v19552_v35 = vld [vmem:[#allocation14 + $0x64] ss:$8 sps:$4 sm:$0xff]  }
 0x554   :  { %v23170_v53 = vsel %vm23106_vm3, %v7002_v7, %v7006_v13  ;;  %v23195_v17 = vsel %vm23180_vm11, %v17519_v28, %v7468_v0  ;;  %v23199_v52 = vsel %vm23180_vm11, %v17520_v6, %v7472_v18  ;;  %v8022_v54 = vrot.slane %v8020_v30, 7  ;;  %v17516_v41 = vld.sshfl [vmem:[#allocation3 + $0x24] sm:$0x12 pattern:$0x76325410] }
 0x555   :  { %v7043_v59 = vcombine.low %v23166_v20, %v23170_v53  ;;  %v8076_v43 = vshll.u32 %v17564_v40, 16  ;;  %v7480_v44 = vrot.slane %v7434_v36, 7  ;;  %v7484_v33 = vrot.slane %v7442_v3, 7  ;;  %v19555_v46 = vld [vmem:[#allocation14 + $0x74] ss:$8 sps:$4 sm:$0xff]  }
 0x556   :  { %7323 = vmatpush1.bf16.msra.mxu0 %v19538_v8  ;;  %v8075_v62 = vrot.slane %v8073_v23, 6  ;;  %v8120_v5 = vcombine.low %v23160_v47, %v23166_v20  ;;  %v8023_v24 = vor.u32 %v8022_v54, %v8019_v49  ;;  %v8082_v15 = vshll.u32 %v7973_v16, 16  ;;  %v20910_v39 = vld.sshfl [vmem:[#allocation3 + $0x8] sm:$0xf pattern:$0x76325410] }
 0x557   :  { %7324 = vmatprep.subr.bf16.mxu0 %v19543_v38  ;;  %v7057_v58 = vrot.slane %v7043_v59, %v21789_v57  ;;  %v8078_v9 = vrot.slane %v8076_v43, 7  ;;  %v8327_v26 = vcombine.high %v17584_v27, %v17584_v27  ;;  %v17522_v4 = vrot.slane %v23173_v31, 9  ;;  %v20911_v0 = vld.sshfl [vmem:[#allocation3] sm:$0xf pattern:$0x76325410] }
 0x558   :  { %v17523_v21 = vrot.slane %v17515_v37, 9  ;;  %v8028_v8 = vrot.slane %v8026_v34, 7  ;;  %v8409_v22 = vcombine.low %v23188_v2, %v23195_v17  ;;  %v8024_v7 = vrot.slane %v8023_v24, 2  ;;  %v19553_v40 = vld [vmem:[#allocation14 + $0x70] ss:$8 sps:$4 sm:$0xff]  }
 0x559   :  { %v7058_v56 = vcombine.low %v7050_v45, %v7057_v58  ;;  %v8079_v13 = vor.u32 %v8078_v9, %v8075_v62  ;;  %v17592_v50 = vrot.slane %v17584_v27, 9  ;;  %v8374_v38 = vrot.slane %v8327_v26, 7  ;;  %v17588_v6 = vld.sshfl [vmem:[#allocation3 + $0x28] sm:$0x12 pattern:$0x76325410] }
 0x55a   :  { %7325 = vmatpush1.bf16.msra.mxu0 %v19541_v25  ;;  %v7450_v47 = vcombine.high %v17516_v41, %v17516_v41  ;;  %v23208_v19 = vsel %vm23180_vm11, %v17522_v4, %v7480_v44  ;;  %v23212_v20 = vsel %vm23180_vm11, %v17523_v21, %v7484_v33  ;;  %v23216_v31 = vsel %vm23106_vm3, %v8024_v7, %v8028_v8  ;;  %v19563_v54 = vld [vmem:[#allocation14 + $0x114] ss:$8 sps:$4 sm:$0xff]   ;;  %v19561_v62 = vld [vmem:[#allocation14 + $0x110] ss:$8 sps:$4 sm:$0xff]   ;;  %v19566_v26 = vld [vmem:[#allocation14 + $0x120] ss:$8 sps:$4 sm:$0xff]  }
 0x55b   :  { %7326 = vmatprep.subr.bf16.mxu0 %v19546_v63  ;;  %7184 = vmatmul.mubr.bf16.gmra.mrb[44].mxu0 %v7058_v56  ;;  %v8080_v25 = vrot.slane %v8079_v13, 2  ;;  %v8084_v59 = vrot.slane %v8082_v15, 7  ;;  %v23220_v10 = vsel %vm23180_vm11, %v17592_v50, %v8374_v38  ;;  %v8104_v37 = vcombine.low %v23149_v1, %v23216_v31  ;;  %v19560_v56 = vld [vmem:[#allocation14 + $0x104] ss:$8 sps:$4 sm:$0xff]   ;;  %v19571_v21 = vld [vmem:[#allocation14 + $0x134] ss:$8 sps:$4 sm:$0xff]  }
 0x55c   :  { %7350 = vmatprep.mubr.bf16.mxu0 %v23836_v55  ;;  %v8410_v63 = vcombine.low %v23199_v52, %v23220_v10  ;;  %v23227_v45 = vrot.slane %v8103_v32, %v21789_v57  ;;  %v23234_v60 = vrot.slane %v8409_v22, %v21789_v57  ;;  %v8426_v14 = vcombine.low %v23208_v19, %v23212_v20  ;;  %v20912_v43 = vld.sshfl [vmem:[#allocation3 + $0x20] sm:$0xf pattern:$0x76325410]  ;;  %v19569_v7 = vld [vmem:[#allocation14 + $0x130] ss:$8 sps:$4 sm:$0xff]  }
 0x55d   :  { %v23231_v58 = vsel %vm23106_vm3, %v8080_v25, %v8084_v59  ;;  %v23237_v18 = vrot.slane %v8104_v37, %v21789_v57  ;;  %v23249_v3 = vrot.slane %v8120_v5, %v21789_v57  ;;  %v17524_v30 = vrot.slane %v17516_v41, 9  ;;  %v20913_v44 = vld.sshfl [vmem:[#allocation3 + $0x18] sm:$0xf pattern:$0x76325410] }
 0x55e   :  { %7327 = vmatpush1.bf16.msra.mxu0 %v19544_v61  ;;  %v8121_v1 = vcombine.low %v23170_v53, %v23231_v58  ;;  %v23242_v36 = vrot.slane %v8410_v63, %v21789_v57  ;;  %v7488_v61 = vrot.slane %v7450_v47, 7  ;;  %v8359_v32 = vcombine.high %v17588_v6, %v17588_v6  ;;  %v19568_v5 = vld [vmem:[#allocation14 + $0x124] ss:$8 sps:$4 sm:$0xff]  }
 0x55f   :  { %7328 = vmatprep.subr.bf16.mxu0 %v19549_v51  ;;  %v8119_v28 = vcombine.low %v23227_v45, %v23237_v18  ;;  %v19558_v51 = vld [vmem:[#allocation14 + $0x100] ss:$8 sps:$4 sm:$0xff]   ;;  %v17596_v34 = vrot.slane %v17588_v6, 9  ;;  %v7218_v23 = vcombine.low %v20911_v0, %v20910_v39  ;;  %v23270_v41 = vrot.slane %v8426_v14, %v21789_v57  ;;  %v19574_v38 = vld [vmem:[#allocation14 + $0x144] ss:$8 sps:$4 sm:$0xff]  }
 0x560   :  { %v23252_v29 = vrot.slane %v8121_v1, %v21789_v57  ;;  %v8425_v53 = vcombine.low %v23234_v60, %v23242_v36  ;;  %v23260_v49 = vsel %vm23180_vm11, %v17524_v30, %v7488_v61  ;;  %v8390_v16 = vrot.slane %v8359_v32, 7  ;;  %v17653_v9 = vld.sshfl [vmem:[#allocation3 + $0x8] sm:$0x12 pattern:$0x76325410] }
 0x561   :  { %v7235_v4 = vcombine.low %v20913_v44, %v20912_v43  ;;  %v9206_v8 = vcombine.high %v17653_v9, %v17653_v9  ;;  %v17656_v22 = vld.sshfl [vmem:[#allocation3 + $0x14] sm:$0x12 pattern:$0x76325410]  ;;  %v17661_v37 = vrot.slane %v17653_v9, 9  ;;  %vm9958_vm8 = vcmask 1041408  }
 0x562   :  { %7329 = vmatpush1.bf16.msra.mxu0 %v19547_v12  ;;  %v8136_v27 = vcombine.low %v23249_v3, %v23252_v29  ;;  %v23264_v12 = vsel %vm23180_vm11, %v17596_v34, %v8390_v16  ;;  %v17657_v50 = vld.sshfl [vmem:[#allocation3 + $0x20] sm:$0x12 pattern:$0x76325410]  ;;  %v9230_v39 = vcombine.high %v17656_v22, %v17656_v22  ;;  %v19572_v14 = vld [vmem:[#allocation14 + $0x140] ss:$8 sps:$4 sm:$0xff]  }
 0x563   :  { %7330 = vmatprep.subr.bf16.mxu0 %v19552_v35  ;;  %v8427_v33 = vcombine.low %v23260_v49, %v23264_v12  ;;  %v17654_v35 = vld.sshfl [vmem:[#allocation3 + $0xc] sm:$0x12 pattern:$0x76325410]  ;;  %v9265_v25 = vrot.slane %v9206_v8, 7  ;;  %v17664_v61 = vrot.slane %v17656_v22, 9 }
 0x564   :  { %v9214_v13 = vcombine.high %v17654_v35, %v17654_v35  ;;  %v17658_v47 = vld.sshfl [vmem:[#allocation3 + $0x24] sm:$0x12 pattern:$0x76325410]  ;;  %v17662_v63 = vrot.slane %v17654_v35, 9  ;;  %v9277_v32 = vrot.slane %v9230_v39, 7 }
 0x565   :  { %v23273_v24 = vrot.slane %v8427_v33, %v21789_v57  ;;  %v17660_v59 = vld.sshfl [vmem:[#allocation3 + $0x2c] sm:$0x12 pattern:$0x76325410]  ;;  %v9246_v1 = vcombine.high %v17658_v47, %v17658_v47  ;;  %v9266_v6 = vsel %vm23180_vm11, %v17661_v37, %v9265_v25  ;;  %v17665_v44 = vrot.slane %v17657_v50, 9 }
 0x566   :  { %7331 = vmatpush1.bf16.msra.mxu0 %v19550_v48  ;;  %v17509_v48 = vld.sshfl [vmem:[#allocation3] sm:$0x12 pattern:$0x76325410]  ;;  %v9269_v0 = vrot.slane %v9214_v13, 7  ;;  %v9278_v43 = vsel %vm23180_vm11, %v17664_v61, %v9277_v32  ;;  %v17666_v33 = vrot.slane %v17658_v47, 9  ;;  %v7508_v37 = vcombine.low %v23195_v17, %v23199_v52 }
 0x567   :  { %7332 = vmatprep.subr.bf16.mxu0 %v19555_v46  ;;  %v8442_v15 = vcombine.low %v23270_v41, %v23273_v24  ;;  %v9238_v46 = vcombine.high %v17657_v50, %v17657_v50  ;;  %v17517_v34 = vrot.slane %v17509_v48, 9  ;;  %v17513_v9 = vld.sshfl [vmem:[#allocation3 + $0x18] sm:$0x12 pattern:$0x76325410]  ;;  %v7525_v32 = vcombine.low %v23212_v20, %v23260_v49 }
 0x568   :  { %v9270_v30 = vsel %vm23180_vm11, %v17662_v63, %v9269_v0  ;;  %v19578_v47 = vld [vmem:[#allocation14 + $0x160] ss:$8 sps:$4 sm:$0xff]   ;;  %v7522_v61 = vrot.slane %v7508_v37, %v21789_v57  ;;  %v19593_v20 = vld [vmem:[#allocation14 + $0x1b0] ss:$8 sps:$4 sm:$0xff]   ;;  %v19650_v45 = vld [vmem:[#allocation14 + $0x2c4] ss:$8 sps:$4 sm:$0xff]  }
 0x569   :  { %v9312_v16 = vcombine.low %v9266_v6, %v9270_v30  ;;  %v19584_v17 = vld [vmem:[#allocation14 + $0x180] ss:$8 sps:$4 sm:$0xff]   ;;  %v19657_v3 = vld [vmem:[#allocation14 + $0x2f0] ss:$8 sps:$4 sm:$0xff]   ;;  %v19662_v29 = vld [vmem:[#allocation14 + $0x304] ss:$8 sps:$4 sm:$0xff]  }
 0x56a   :  { %7333 = vmatpush1.bf16.msra.mxu0 %v19553_v40  ;;  %v7394_v40 = vcombine.high %v17509_v48, %v17509_v48  ;;  %v19596_v49 = vld [vmem:[#allocation14 + $0x1c0] ss:$8 sps:$4 sm:$0xff]   ;;  %v19674_v60 = vld [vmem:[#allocation14 + $0x344] ss:$8 sps:$4 sm:$0xff]   ;;  %vm9959_vm10 = vsmask.f32 1282 }
 0x56b   :  { %7623 = vmatprep.subr.bf16.mxu0 %v19560_v56  ;;  %v19577_v56 = vld [vmem:[#allocation14 + $0x154] ss:$8 sps:$4 sm:$0xff]   ;;  %v23286_v35 = vrot.slane %v9312_v16, %v21789_v57  ;;  %v7539_v16 = vrot.slane %v7525_v32, %v21789_v57  ;;  %v19636_v32 = vld [vmem:[#allocation14 + $0x280] ss:$8 sps:$4 sm:$0xff]   ;;  %vm9961_vm12 = vcmask 1043458   ;;  %vm23409_vm15 = vmand %vm9958_vm8, %vm9959_vm10 }
 0x56c   :  { %v19648_v18 = vld [vmem:[#allocation14 + $0x2c0] ss:$8 sps:$4 sm:$0xff]   ;;  %v20919_v24 = vld.sshfl [vmem:[#allocation3 + $0x10] sm:$0xf pattern:$0x76325410]  ;;  %vm9963_vm0 = vmand %vm9961_vm12, %vm9962_vm13 }
 0x56d   :  { %7351 = vmatmul.mubr.bf16.vlgmr.msra.gmra.mrb[40].mxu0 %v7218_v23  ;;  %v9281_v23 = vrot.slane %v9238_v46, 7  ;;  %v19583_v46 = vld [vmem:[#allocation14 + $0x174] ss:$8 sps:$4 sm:$0xff]   ;;  %v19672_v36 = vld [vmem:[#allocation14 + $0x340] ss:$8 sps:$4 sm:$0xff]   ;;  %vm23421_vm1 = vmor %vm9963_vm0, %vm23409_vm15 }
 0x56e   :  { %7624 = vmatpush1.bf16.msra.mxu0 %v19558_v51  ;;  %7360 = vmatprep.mubr.bf16.mxu0 %v23836_v55  ;;  %v9262_v51 = vcombine.high %v17660_v59, %v17660_v59  ;;  %v20918_v41 = vld.sshfl [vmem:[#allocation3 + $0x8] sm:$0xf pattern:$0x76325410]  ;;  %vm10121_vm7 = vsmask.f32 3340 }
 0x56f   :  { %7625 = vmatprep.subr.bf16.mxu0 %v19563_v54  ;;  %v19575_v54 = vld [vmem:[#allocation14 + $0x150] ss:$8 sps:$4 sm:$0xff]   ;;  %v9282_v8 = vsel %vm23180_vm11, %v17665_v44, %v9281_v23  ;;  %v19592_v23 = vld [vmem:[#allocation14 + $0x1a4] ss:$8 sps:$4 sm:$0xff]   ;;  %v19595_v44 = vld [vmem:[#allocation14 + $0x1b4] ss:$8 sps:$4 sm:$0xff]  }
 0x570   :  { %vm10123_vm9 = vsmask.f32 4368  ;;  %vm10127_vm10 = vsmask.f32 6424 }
 0x572   :  { %7626 = vmatpush1.bf16.msra.mxu0 %v19561_v62  ;;  %v9285_v62 = vrot.slane %v9246_v1, 7  ;;  %v19581_v1 = vld [vmem:[#allocation14 + $0x170] ss:$8 sps:$4 sm:$0xff]  }
 0x573   :  { %7627 = vmatprep.subr.bf16.mxu0 %v19568_v5  ;;  %v7460_v5 = vrot.slane %v7394_v40, 7 }
 0x574   :  { %v9286_v22 = vsel %vm23180_vm11, %v17666_v33, %v9285_v62  ;;  %v19601_v33 = vld [vmem:[#allocation14 + $0x1d4] ss:$8 sps:$4 sm:$0xff]   ;;  %v19599_v62 = vld [vmem:[#allocation14 + $0x1d0] ss:$8 sps:$4 sm:$0xff]  }
 0x575   :  { %7361 = vmatmul.mubr.bf16.gmra.mrb[44].mxu0 %v7235_v4  ;;  %v17668_v4 = vrot.slane %v17660_v59, 9  ;;  %v9329_v50 = vcombine.low %v9282_v8, %v9286_v22  ;;  %v7461_v48 = vsel %vm23180_vm11, %v17517_v34, %v7460_v5  ;;  %v19587_v34 = vld [vmem:[#allocation14 + $0x190] ss:$8 sps:$4 sm:$0xff]   ;;  %v19604_v5 = vld [vmem:[#allocation14 + $0x1e4] ss:$8 sps:$4 sm:$0xff]  }
 0x576   :  { %7628 = vmatpush1.bf16.msra.mxu0 %v19566_v26  ;;  %7655 = vmatprep.mubr.bf16.mxu0 %v23836_v55  ;;  %v9313_v26 = vcombine.low %v23220_v10, %v9278_v43  ;;  %v7507_v0 = vcombine.low %v7461_v48, %v23188_v2  ;;  %v19589_v2 = vld [vmem:[#allocation14 + $0x194] ss:$8 sps:$4 sm:$0xff]   ;;  %v19605_v8 = vld [vmem:[#allocation14 + $0x1f0] ss:$8 sps:$4 sm:$0xff]   ;;  %v19612_v22 = vld [vmem:[#allocation14 + $0x204] ss:$8 sps:$4 sm:$0xff]  }
 0x577   :  { %7629 = vmatprep.subr.bf16.mxu0 %v19571_v21  ;;  %v19580_v21 = vld [vmem:[#allocation14 + $0x164] ss:$8 sps:$4 sm:$0xff]   ;;  %v23303_v59 = vrot.slane %v9329_v50, %v21789_v57  ;;  %v19613_v48 = vld [vmem:[#allocation14 + $0x210] ss:$8 sps:$4 sm:$0xff]  }
 0x578   :  { %v23293_v13 = vrot.slane %v9313_v26, %v21789_v57  ;;  %v7515_v6 = vrot.slane %v7507_v0, %v21789_v57  ;;  %v19607_v26 = vld [vmem:[#allocation14 + $0x1f4] ss:$8 sps:$4 sm:$0xff]  }
 0x579   :  { %v19623_v0 = vld [vmem:[#allocation14 + $0x234] ss:$8 sps:$4 sm:$0xff]  }
 0x57a   :  { %7630 = vmatpush1.bf16.msra.mxu0 %v19569_v7  ;;  %v9293_v7 = vrot.slane %v9262_v51, 7  ;;  %v9328_v39 = vcombine.low %v23286_v35, %v23293_v13  ;;  %v7523_v30 = vcombine.low %v7515_v6, %v7522_v61  ;;  %v19629_v61 = vld [vmem:[#allocation14 + $0x254] ss:$8 sps:$4 sm:$0xff]   ;;  %v19632_v6 = vld [vmem:[#allocation14 + $0x264] ss:$8 sps:$4 sm:$0xff]  }
 0x57b   :  { %7631 = vmatprep.subr.bf16.mxu0 %v19574_v38  ;;  %v7426_v38 = vcombine.high %v17513_v9, %v17513_v9  ;;  %v19748_v35 = vld [vmem:[#allocation17 + $0x220] ss:$16 sps:$4 sm:$0xff]   ;;  %v19753_v13 = vld [vmem:[#allocation17 + $0x64] ss:$16 sps:$4 sm:$0xff]  }
 0x57c   :  { %v9294_v10 = vsel %vm23180_vm11, %v17668_v4, %v9293_v7  ;;  %v20914_v4 = vld.sshfl [vmem:[#allocation3 + $0xc] sm:$0xf pattern:$0x76325410] }
 0x57d   :  { %v9330_v25 = vcombine.low %v23264_v12, %v9294_v10  ;;  %v7476_v40 = vrot.slane %v7426_v38, 7  ;;  %v19610_v7 = vld [vmem:[#allocation14 + $0x200] ss:$8 sps:$4 sm:$0xff]   ;;  %v19615_v38 = vld [vmem:[#allocation14 + $0x214] ss:$8 sps:$4 sm:$0xff]  }
 0x57e   :  { %7632 = vmatpush1.bf16.msra.mxu0 %v19572_v14  ;;  %v17521_v14 = vrot.slane %v17513_v9, 9  ;;  %v19602_v9 = vld [vmem:[#allocation14 + $0x1e0] ss:$8 sps:$4 sm:$0xff]  }
 0x57f   :  { %7633 = vmatprep.subr.bf16.mxu0 %v19577_v56  ;;  %v23308_v63 = vrot.slane %v9330_v25, %v21789_v57  ;;  %v19586_v56 = vld [vmem:[#allocation14 + $0x184] ss:$8 sps:$4 sm:$0xff]  }
 0x580   :  { %v7477_v52 = vsel %vm23180_vm11, %v17521_v14, %v7476_v40  ;;  %v20916_v10 = vld.sshfl [vmem:[#allocation3 + $0x24] sm:$0xf pattern:$0x76325410]  ;;  %vm10125_vm11 = vsmask.f32 5396 }
 0x581   :  { %v9345_v12 = vcombine.low %v23303_v59, %v23308_v63  ;;  %v7524_v51 = vcombine.low %v7477_v52, %v23208_v19  ;;  %v19598_v19 = vld [vmem:[#allocation14 + $0x1c4] ss:$8 sps:$4 sm:$0xff]   ;;  %v19624_v40 = vld [vmem:[#allocation14 + $0x240] ss:$8 sps:$4 sm:$0xff]   ;;  %v19635_v52 = vld [vmem:[#allocation14 + $0x274] ss:$8 sps:$4 sm:$0xff]  }
 0x582   :  { %7634 = vmatpush1.bf16.msra.mxu0 %v19575_v54  ;;  %v19590_v54 = vld [vmem:[#allocation14 + $0x1a0] ss:$8 sps:$4 sm:$0xff]   ;;  %v19620_v25 = vld [vmem:[#allocation14 + $0x224] ss:$8 sps:$4 sm:$0xff]  }
 0x583   :  { %7635 = vmatprep.subr.bf16.mxu0 %v19580_v21  ;;  %v7532_v42 = vrot.slane %v7524_v51, %v21789_v57  ;;  %v20915_v21 = vld.sshfl [vmem:[#allocation3 + $0x4] sm:$0xf pattern:$0x76325410]  ;;  %v19641_v51 = vld [vmem:[#allocation14 + $0x294] ss:$8 sps:$4 sm:$0xff]  }
 0x584   :  { %v7733_v50 = vcombine.low %v20915_v21, %v20914_v4  ;;  %v19626_v14 = vld [vmem:[#allocation14 + $0x244] ss:$8 sps:$4 sm:$0xff]   ;;  %v19675_v4 = vld [vmem:[#allocation14 + $0x350] ss:$8 sps:$4 sm:$0xff]  }
 0x585   :  { %v7540_v43 = vcombine.low %v7532_v42, %v7539_v16  ;;  %v19644_v16 = vld [vmem:[#allocation14 + $0x2a4] ss:$8 sps:$4 sm:$0xff]   ;;  %v19647_v42 = vld [vmem:[#allocation14 + $0x2b4] ss:$8 sps:$4 sm:$0xff]  }
 0x586   :  { %7636 = vmatpush1.bf16.msra.mxu0 %v19578_v47  ;;  %v20917_v47 = vld.sshfl [vmem:[#allocation3 + $0x1c] sm:$0xf pattern:$0x76325410]  ;;  %v19680_v21 = vld [vmem:[#allocation14 + $0x364] ss:$8 sps:$4 sm:$0xff]  }
 0x587   :  { %7637 = vmatprep.subr.bf16.mxu0 %v19583_v46  ;;  %v19618_v46 = vld [vmem:[#allocation14 + $0x220] ss:$8 sps:$4 sm:$0xff]   ;;  %v7750_v37 = vcombine.low %v20917_v47, %v20916_v10  ;;  %v8636_v10 = vcombine.low %v20918_v41, %v20919_v24  ;;  %v19691_v47 = vld [vmem:[#allocation14 + $0x394] ss:$8 sps:$4 sm:$0xff]  }
 0x588   :  { %v19756_v59 = vld [vmem:[#allocation17 + $0x244] ss:$16 sps:$4 sm:$0xff]   ;;  %v19757_v63 = vld [vmem:[#allocation17 + $0x80] ss:$16 sps:$4 sm:$0xff]  }
 0x58a   :  { %7638 = vmatpush1.bf16.msra.mxu0 %v19581_v1  ;;  %v19621_v1 = vld [vmem:[#allocation14 + $0x230] ss:$8 sps:$4 sm:$0xff]  }
 0x58b   :  { %7833 = vmatprep.subr.bf16.mxu0 %v19586_v56  ;;  %v19627_v56 = vld [vmem:[#allocation14 + $0x250] ss:$8 sps:$4 sm:$0xff]  }
 0x58d   :  { %7656 = vmatmul.mubr.bf16.vlgmr.msra.gmra.mrb[40].mxu0 %v7523_v30  ;;  %v19633_v30 = vld [vmem:[#allocation14 + $0x270] ss:$8 sps:$4 sm:$0xff]  }
 0x58e   :  { %7834 = vmatpush1.bf16.msra.mxu0 %v19584_v17  ;;  %7665 = vmatprep.mubr.bf16.mxu0 %v23836_v55  ;;  %v19630_v17 = vld [vmem:[#allocation14 + $0x260] ss:$8 sps:$4 sm:$0xff]  }
 0x58f   :  { %7835 = vmatprep.subr.bf16.mxu0 %v19589_v2  ;;  %v19638_v2 = vld [vmem:[#allocation14 + $0x284] ss:$8 sps:$4 sm:$0xff]  }
 0x592   :  { %7836 = vmatpush1.bf16.msra.mxu0 %v19587_v34  ;;  %v19639_v34 = vld [vmem:[#allocation14 + $0x290] ss:$8 sps:$4 sm:$0xff]  }
 0x593   :  { %7837 = vmatprep.subr.bf16.mxu0 %v19592_v23  ;;  %v19642_v23 = vld [vmem:[#allocation14 + $0x2a0] ss:$8 sps:$4 sm:$0xff]  }
 0x595   :  { %7666 = vmatmul.mubr.bf16.gmra.mrb[44].mxu0 %v7540_v43  ;;  %v19651_v43 = vld [vmem:[#allocation14 + $0x2d0] ss:$8 sps:$4 sm:$0xff]  }
 0x596   :  { %7838 = vmatpush1.bf16.msra.mxu0 %v19590_v54  ;;  %7865 = vmatprep.mubr.bf16.mxu0 %v23836_v55  ;;  %v19645_v54 = vld [vmem:[#allocation14 + $0x2b0] ss:$8 sps:$4 sm:$0xff]  }
 0x597   :  { %7839 = vmatprep.subr.bf16.mxu0 %v19595_v44  ;;  %v19656_v44 = vld [vmem:[#allocation14 + $0x2e4] ss:$8 sps:$4 sm:$0xff]  }
 0x59a   :  { %7840 = vmatpush1.bf16.msra.mxu0 %v19593_v20  ;;  %v19654_v20 = vld [vmem:[#allocation14 + $0x2e0] ss:$8 sps:$4 sm:$0xff]  }
 0x59b   :  { %7841 = vmatprep.subr.bf16.mxu0 %v19598_v19  ;;  %v19659_v19 = vld [vmem:[#allocation14 + $0x2f4] ss:$8 sps:$4 sm:$0xff]  }
 0x59e   :  { %7842 = vmatpush1.bf16.msra.mxu0 %v19596_v49  ;;  %v19665_v49 = vld [vmem:[#allocation14 + $0x314] ss:$8 sps:$4 sm:$0xff]  }
 0x59f   :  { %7843 = vmatprep.subr.bf16.mxu0 %v19601_v33  ;;  %v19663_v33 = vld [vmem:[#allocation14 + $0x310] ss:$8 sps:$4 sm:$0xff]  }
 0x5a2   :  { %7844 = vmatpush1.bf16.msra.mxu0 %v19599_v62  ;;  %v19668_v62 = vld [vmem:[#allocation14 + $0x324] ss:$8 sps:$4 sm:$0xff]  }
 0x5a3   :  { %7845 = vmatprep.subr.bf16.mxu0 %v19604_v5  ;;  %v19666_v5 = vld [vmem:[#allocation14 + $0x320] ss:$8 sps:$4 sm:$0xff]  }
 0x5a6   :  { %7846 = vmatpush1.bf16.msra.mxu0 %v19602_v9  ;;  %v19671_v9 = vld [vmem:[#allocation14 + $0x334] ss:$8 sps:$4 sm:$0xff]  }
 0x5a7   :  { %7847 = vmatprep.subr.bf16.mxu0 %v19607_v26  ;;  %v19669_v26 = vld [vmem:[#allocation14 + $0x330] ss:$8 sps:$4 sm:$0xff]  }
 0x5aa   :  { %7848 = vmatpush1.bf16.msra.mxu0 %v19605_v8  ;;  %v19678_v8 = vld [vmem:[#allocation14 + $0x360] ss:$8 sps:$4 sm:$0xff]  }
 0x5ab   :  { %8219 = vmatprep.subr.bf16.mxu0 %v19612_v22  ;;  %v19683_v22 = vld [vmem:[#allocation14 + $0x374] ss:$8 sps:$4 sm:$0xff]  }
 0x5ad   :  { %7866 = vmatmul.mubr.bf16.vlgmr.msra.gmra.mrb[40].mxu0 %v7733_v50  ;;  %v19686_v50 = vld [vmem:[#allocation14 + $0x380] ss:$8 sps:$4 sm:$0xff]  }
 0x5ae   :  { %8220 = vmatpush1.bf16.msra.mxu0 %v19610_v7  ;;  %7875 = vmatprep.mubr.bf16.mxu0 %v23836_v55  ;;  %v19688_v7 = vld [vmem:[#allocation14 + $0x384] ss:$8 sps:$4 sm:$0xff]  }
 0x5af   :  { %8221 = vmatprep.subr.bf16.mxu0 %v19615_v38  ;;  %v17630_v38 = vld.sshfl [vmem:[#allocation3 + $0xc] sm:$0x13 pattern:$0x76325410] }
 0x5b2   :  { %8222 = vmatpush1.bf16.msra.mxu0 %v19613_v48  ;;  %v20920_v48 = vld.sshfl [vmem:[#allocation3 + $0x20] sm:$0xf pattern:$0x76325410] }
 0x5b3   :  { %8223 = vmatprep.subr.bf16.mxu0 %v19620_v25  ;;  %v20921_v25 = vld.sshfl [vmem:[#allocation3 + $0x28] sm:$0xf pattern:$0x76325410] }
 0x5b5   :  { %7876 = vmatmul.mubr.bf16.gmra.mrb[44].mxu0 %v7750_v37  ;;  %v17629_v37 = vld.sshfl [vmem:[#allocation3 + $0x8] sm:$0x13 pattern:$0x76325410] }
 0x5b6   :  { %8224 = vmatpush1.bf16.msra.mxu0 %v19618_v46  ;;  %8251 = vmatprep.mubr.bf16.mxu0 %v23836_v55  ;;  %v17632_v46 = vld.sshfl [vmem:[#allocation3 + $0x14] sm:$0x13 pattern:$0x76325410] }
 0x5b7   :  { %8225 = vmatprep.subr.bf16.mxu0 %v19623_v0  ;;  %v19689_v0 = vld [vmem:[#allocation14 + $0x390] ss:$8 sps:$4 sm:$0xff]  }
 0x5ba   :  { %8226 = vmatpush1.bf16.msra.mxu0 %v19621_v1  ;;  %v8892_v1 = vshrl.u32 %v17630_v38, 16 }
 0x5bb   :  { %8227 = vmatprep.subr.bf16.mxu0 %v19626_v14  ;;  %v8895_v14 = vshll.u32 %v17630_v38, 16 }
 0x5be   :  { %8228 = vmatpush1.bf16.msra.mxu0 %v19624_v40  ;;  %v19696_v40 = vld [vmem:[#allocation14 + $0x3a4] ss:$8 sps:$4 sm:$0xff]  }
 0x5bf   :  { %8229 = vmatprep.subr.bf16.mxu0 %v19629_v61  ;;  %v8920_v61 = vshrl.u32 %v17632_v46, 16 }
 0x5c2   :  { %8230 = vmatpush1.bf16.msra.mxu0 %v19627_v56  ;;  %v8923_v56 = vshll.u32 %v17632_v46, 16 }
 0x5c3   :  { %8231 = vmatprep.subr.bf16.mxu0 %v19632_v6  ;;  %v19694_v6 = vld [vmem:[#allocation14 + $0x3a0] ss:$8 sps:$4 sm:$0xff]  }
 0x5c6   :  { %8232 = vmatpush1.bf16.msra.mxu0 %v19630_v17  ;;  %v8844_v17 = vcombine.high %v17632_v46, %v17632_v46 }
 0x5c7   :  { %8233 = vmatprep.subr.bf16.mxu0 %v19635_v52  ;;  %v8878_v52 = vshrl.u32 %v17629_v37, 16 }
 0x5ca   :  { %8234 = vmatpush1.bf16.msra.mxu0 %v19633_v30  ;;  %v8881_v30 = vshll.u32 %v17629_v37, 16 }
 0x5cb   :  { %8525 = vmatprep.subr.bf16.mxu0 %v19638_v2  ;;  %v8894_v2 = vrot.slane %v8892_v1, 6 }
 0x5cd   :  { %8252 = vmatmul.mubr.bf16.vlgmr.msra.gmra.mrb[40].mxu0 %v8119_v28  ;;  %v19653_v28 = vld [vmem:[#allocation14 + $0x2d4] ss:$8 sps:$4 sm:$0xff]  }
 0x5ce   :  { %8526 = vmatpush1.bf16.msra.mxu0 %v19636_v32  ;;  %8261 = vmatprep.mubr.bf16.mxu0 %v23836_v55  ;;  %v8653_v32 = vcombine.low %v20920_v48, %v20921_v25 }
 0x5cf   :  { %8527 = vmatprep.subr.bf16.mxu0 %v19641_v51  ;;  %v19699_v51 = vld [vmem:[#allocation14 + $0x3b4] ss:$8 sps:$4 sm:$0xff]  }
 0x5d2   :  { %8528 = vmatpush1.bf16.msra.mxu0 %v19639_v34  ;;  %v8897_v34 = vrot.slane %v8895_v14, 7 }
 0x5d3   :  { %8529 = vmatprep.subr.bf16.mxu0 %v19644_v16  ;;  %v8922_v16 = vrot.slane %v8920_v61, 6 }
 0x5d5   :  { %8262 = vmatmul.mubr.bf16.gmra.mrb[44].mxu0 %v8136_v27  ;;  %v19660_v27 = vld [vmem:[#allocation14 + $0x300] ss:$8 sps:$4 sm:$0xff]  }
 0x5d6   :  { %8530 = vmatpush1.bf16.msra.mxu0 %v19642_v23  ;;  %8557 = vmatprep.mubr.bf16.mxu0 %v23836_v55  ;;  %v8925_v23 = vrot.slane %v8923_v56, 7 }
 0x5d7   :  { %8531 = vmatprep.subr.bf16.mxu0 %v19647_v42  ;;  %v17634_v42 = vld.sshfl [vmem:[#allocation3 + $0x24] sm:$0x13 pattern:$0x76325410] }
 0x5d8   :  { %v8860_v25 = vcombine.high %v17634_v42, %v17634_v42 }
 0x5da   :  { %8532 = vmatpush1.bf16.msra.mxu0 %v19645_v54  ;;  %v8828_v54 = vcombine.high %v17630_v38, %v17630_v38 }
 0x5db   :  { %8533 = vmatprep.subr.bf16.mxu0 %v19650_v45  ;;  %v17633_v45 = vld.sshfl [vmem:[#allocation3 + $0x20] sm:$0x13 pattern:$0x76325410] }
 0x5de   :  { %8534 = vmatpush1.bf16.msra.mxu0 %v19648_v18  ;;  %v17636_v18 = vld.sshfl [vmem:[#allocation3 + $0x2c] sm:$0x13 pattern:$0x76325410] }
 0x5df   :  { %8535 = vmatprep.subr.bf16.mxu0 %v19653_v28  ;;  %v19697_v28 = vld [vmem:[#allocation14 + $0x3b0] ss:$8 sps:$4 sm:$0xff]   ;;  %v8876_v24 = vcombine.high %v17636_v18, %v17636_v18 }
 0x5e2   :  { %8536 = vmatpush1.bf16.msra.mxu0 %v19651_v43  ;;  %v8820_v43 = vcombine.high %v17629_v37, %v17629_v37 }
 0x5e3   :  { %8537 = vmatprep.subr.bf16.mxu0 %v19656_v44  ;;  %v8880_v44 = vrot.slane %v8878_v52, 6  ;;  %v19706_v52 = vld [vmem:[#allocation14 + $0x3e0] ss:$8 sps:$4 sm:$0xff]  }
 0x5e6   :  { %8538 = vmatpush1.bf16.msra.mxu0 %v19654_v20  ;;  %v8883_v20 = vrot.slane %v8881_v30, 7 }
 0x5e7   :  { %8539 = vmatprep.subr.bf16.mxu0 %v19659_v19  ;;  %v19702_v19 = vld [vmem:[#allocation14 + $0x3c4] ss:$8 sps:$4 sm:$0xff]  }
 0x5ea   :  { %8540 = vmatpush1.bf16.msra.mxu0 %v19657_v3  ;;  %v8898_v3 = vor.u32 %v8897_v34, %v8894_v2 }
 0x5eb   :  { %8736 = vmatprep.subr.bf16.mxu0 %v19662_v29  ;;  %v8926_v29 = vor.u32 %v8925_v23, %v8922_v16 }
 0x5ed   :  { %8558 = vmatmul.mubr.bf16.vlgmr.msra.gmra.mrb[40].mxu0 %v8425_v53  ;;  %v19677_v53 = vld [vmem:[#allocation14 + $0x354] ss:$8 sps:$4 sm:$0xff]  }
 0x5ee   :  { %8737 = vmatpush1.bf16.msra.mxu0 %v19660_v27  ;;  %8567 = vmatprep.mubr.bf16.mxu0 %v23836_v55  ;;  %v8929_v27 = vshll.u32 %v8844_v17, 16  ;;  %v8985_v17 = vshll.u32 %v8876_v24, 16  ;;  %v19727_v24 = vld [vmem:[#allocation14 + $0x450] ss:$8 sps:$4 sm:$0xff]  }
 0x5ef   :  { %8738 = vmatprep.subr.bf16.mxu0 %v19665_v49  ;;  %v8948_v49 = vshrl.u32 %v17634_v42, 16 }
 0x5f0   :  { %v8931_v41 = vrot.slane %v8929_v27, 7  ;;  %v19712_v27 = vld [vmem:[#allocation14 + $0x400] ss:$8 sps:$4 sm:$0xff]  }
 0x5f2   :  { %8739 = vmatpush1.bf16.msra.mxu0 %v19663_v33  ;;  %v8951_v33 = vshll.u32 %v17634_v42, 16 }
 0x5f3   :  { %8740 = vmatprep.subr.bf16.mxu0 %v19668_v62  ;;  %v8976_v62 = vshrl.u32 %v17636_v18, 16 }
 0x5f5   :  { %8568 = vmatmul.mubr.bf16.gmra.mrb[44].mxu0 %v8442_v15  ;;  %v19681_v15 = vld [vmem:[#allocation14 + $0x370] ss:$8 sps:$4 sm:$0xff]  }
 0x5f6   :  { %8741 = vmatpush1.bf16.msra.mxu0 %v19666_v5  ;;  %8768 = vmatprep.mubr.bf16.mxu0 %v23836_v55  ;;  %v8979_v5 = vshll.u32 %v17636_v18, 16  ;;  %v19709_v18 = vld [vmem:[#allocation14 + $0x3f0] ss:$8 sps:$4 sm:$0xff]  }
 0x5f7   :  { %8742 = vmatprep.subr.bf16.mxu0 %v19671_v9  ;;  %v8901_v9 = vshll.u32 %v8828_v54, 16 }
 0x5f8   :  { %v8981_v38 = vrot.slane %v8979_v5, 7 }
 0x5fa   :  { %8743 = vmatpush1.bf16.msra.mxu0 %v19669_v26  ;;  %v19700_v26 = vld [vmem:[#allocation14 + $0x3c0] ss:$8 sps:$4 sm:$0xff]  }
 0x5fb   :  { %8744 = vmatprep.subr.bf16.mxu0 %v19674_v60  ;;  %v8884_v60 = vor.u32 %v8883_v20, %v8880_v44 }
 0x5fd   :  { %v8885_v48 = vrot.slane %v8884_v60, 2 }
 0x5fe   :  { %8745 = vmatpush1.bf16.msra.mxu0 %v19672_v36  ;;  %v8887_v36 = vshll.u32 %v8820_v43, 16 }
 0x5ff   :  { %8746 = vmatprep.subr.bf16.mxu0 %v19677_v53  ;;  %v8934_v53 = vshrl.u32 %v17633_v45, 16 }
 0x600   :  { %v8889_v1 = vrot.slane %v8887_v36, 7 }
 0x601   :  { %v8936_v46 = vrot.slane %v8934_v53, 6  ;;  %v19720_v53 = vld [vmem:[#allocation14 + $0x424] ss:$8 sps:$4 sm:$0xff]  }
 0x602   :  { %8747 = vmatpush1.bf16.msra.mxu0 %v19675_v4  ;;  %v8937_v4 = vshll.u32 %v17633_v45, 16  ;;  %v8890_v30 = vsel %vm23106_vm3, %v8885_v48, %v8889_v1  ;;  %v19739_v48 = vld [vmem:[#allocation17 + $0x20] ss:$16 sps:$4 sm:$0xff]   ;;  %v19747_v1 = vld [vmem:[#allocation17 + $0x44] ss:$16 sps:$4 sm:$0xff]  }
 0x603   :  { %8748 = vmatprep.subr.bf16.mxu0 %v19680_v21  ;;  %v19705_v21 = vld [vmem:[#allocation14 + $0x3d4] ss:$8 sps:$4 sm:$0xff]  }
 0x604   :  { %v8939_v37 = vrot.slane %v8937_v4, 7 }
 0x606   :  { %8749 = vmatpush1.bf16.msra.mxu0 %v19678_v8  ;;  %v8899_v8 = vrot.slane %v8898_v3, 2  ;;  %v8940_v2 = vor.u32 %v8939_v37, %v8936_v46  ;;  %v19742_v46 = vld [vmem:[#allocation17 + $0x200] ss:$16 sps:$4 sm:$0xff]   ;;  %v19744_v37 = vld [vmem:[#allocation17 + $0x204] ss:$16 sps:$4 sm:$0xff]  }
 0x607   :  { %8750 = vmatprep.subr.bf16.mxu0 %v19683_v22  ;;  %v8927_v22 = vrot.slane %v8926_v29, 2  ;;  %10586 = vmatprep.subr.bf16.mxu1 %v19744_v37  ;;  %v9489_v37 = vld [vmem:[#allocation16] sm:$0x3] }
 0x608   :  { %10587 = vmatpush1.bf16.msra.mxu1 %v19742_v46 }
 0x609   :  { %v8932_v61 = vsel %vm23106_vm3, %v8927_v22, %v8931_v41  ;;  %v19724_v22 = vld [vmem:[#allocation14 + $0x440] ss:$8 sps:$4 sm:$0xff]   ;;  %v19729_v41 = vld [vmem:[#allocation14 + $0x454] ss:$8 sps:$4 sm:$0xff]  }
 0x60a   :  { %8751 = vmatpush1.bf16.msra.mxu0 %v19681_v15  ;;  %v8950_v15 = vrot.slane %v8948_v49, 6  ;;  %v9007_v16 = vcombine.low %v23216_v31, %v8932_v61  ;;  %v19765_v61 = vld [vmem:[#allocation17 + $0xa4] ss:$16 sps:$4 sm:$0xff]  }
 0x60b   :  { %9122 = vmatprep.subr.bf16.mxu0 %v19688_v7  ;;  %v8953_v7 = vrot.slane %v8951_v33, 7 }
 0x60c   :  { %v9021_v20 = vrot.slane %v9007_v16, %v21789_v57  ;;  %v19775_v16 = vld [vmem:[#allocation17 + $0xe0] ss:$16 sps:$4 sm:$0xff]  }
 0x60d   :  { %8769 = vmatmul.mubr.bf16.vlgmr.msra.gmra.mrb[40].mxu0 %v8636_v10  ;;  %v8903_v10 = vrot.slane %v8901_v9, 7  ;;  %v8954_v56 = vor.u32 %v8953_v7, %v8950_v15  ;;  %v19732_v15 = vld [vmem:[#allocation14 + $0x464] ss:$8 sps:$4 sm:$0xff]   ;;  %v19730_v7 = vld [vmem:[#allocation14 + $0x460] ss:$8 sps:$4 sm:$0xff]  }
 0x60e   :  { %9123 = vmatpush1.bf16.msra.mxu0 %v19686_v50  ;;  %8778 = vmatprep.mubr.bf16.mxu0 %v23836_v55  ;;  %v8978_v50 = vrot.slane %v8976_v62, 6  ;;  %v19717_v62 = vld [vmem:[#allocation14 + $0x414] ss:$8 sps:$4 sm:$0xff]  }
 0x60f   :  { %9124 = vmatprep.subr.bf16.mxu0 %v19691_v47  ;;  %v19703_v47 = vld [vmem:[#allocation14 + $0x3d0] ss:$8 sps:$4 sm:$0xff]   ;;  %v8904_v14 = vsel %vm23106_vm3, %v8899_v8, %v8903_v10  ;;  %v8955_v42 = vrot.slane %v8954_v56, 2 }
 0x610   :  { %v9006_v34 = vcombine.low %v8890_v30, %v8904_v14  ;;  %v19721_v8 = vld [vmem:[#allocation14 + $0x430] ss:$8 sps:$4 sm:$0xff]  }
 0x611   :  { %v19738_v10 = vld [vmem:[#allocation17 + $0x4] ss:$16 sps:$4 sm:$0xff]   ;;  %v19760_v56 = vld [vmem:[#allocation17 + $0x260] ss:$16 sps:$4 sm:$0xff]  }
 0x612   :  { %9125 = vmatpush1.bf16.msra.mxu0 %v19689_v0  ;;  %v19708_v0 = vld [vmem:[#allocation14 + $0x3e4] ss:$8 sps:$4 sm:$0xff]   ;;  %v9014_v44 = vrot.slane %v9006_v34, %v21789_v57 }
 0x613   :  { %9126 = vmatprep.subr.bf16.mxu0 %v19696_v40  ;;  %v8852_v40 = vcombine.high %v17633_v45, %v17633_v45  ;;  %v8987_v45 = vrot.slane %v8985_v17, 7  ;;  %v19750_v14 = vld [vmem:[#allocation17 + $0x224] ss:$16 sps:$4 sm:$0xff]   ;;  %v19766_v30 = vld [vmem:[#allocation17 + $0x280] ss:$16 sps:$4 sm:$0xff]  }
 0x614   :  { %v9022_v33 = vcombine.low %v9014_v44, %v9021_v20  ;;  %10588 = vmatprep.subr.bf16.mxu1 %v19750_v14  ;;  %v19768_v17 = vld [vmem:[#allocation17 + $0x284] ss:$16 sps:$4 sm:$0xff]   ;;  %v19772_v34 = vld [vmem:[#allocation17 + $0x2a0] ss:$16 sps:$4 sm:$0xff]  }
 0x615   :  { %8779 = vmatmul.mubr.bf16.gmra.mrb[44].mxu0 %v8653_v32  ;;  %v8957_v32 = vshll.u32 %v8860_v25, 16  ;;  %v8943_v23 = vshll.u32 %v8852_v40, 16  ;;  %v19741_v25 = vld [vmem:[#allocation17 + $0x24] ss:$16 sps:$4 sm:$0xff]   ;;  %10589 = vmatpush1.bf16.msra.mxu1 %v19748_v35  ;;  %v19787_v44 = vld [vmem:[#allocation17 + $0x120] ss:$16 sps:$4 sm:$0xff]  }
 0x616   :  { %9127 = vmatpush1.bf16.msra.mxu0 %v19694_v6  ;;  %9154 = vmatprep.mubr.bf16.mxu0 %v23836_v55  ;;  %v8982_v6 = vor.u32 %v8981_v38, %v8978_v50  ;;  %v19735_v50 = vld [vmem:[#allocation14 + $0x474] ss:$8 sps:$4 sm:$0xff]   ;;  %v19733_v38 = vld [vmem:[#allocation14 + $0x470] ss:$8 sps:$4 sm:$0xff]  }
 0x617   :  { %9128 = vmatprep.subr.bf16.mxu0 %v19699_v51  ;;  %v19711_v51 = vld [vmem:[#allocation14 + $0x3f4] ss:$8 sps:$4 sm:$0xff]   ;;  %v8959_v43 = vrot.slane %v8957_v32, 7  ;;  %v8945_v3 = vrot.slane %v8943_v23, 7  ;;  %10590 = vmatprep.subr.bf16.mxu1 %v19756_v59 }
 0x618   :  { %v8983_v54 = vrot.slane %v8982_v6, 2  ;;  %v19762_v40 = vld [vmem:[#allocation17 + $0x264] ss:$16 sps:$4 sm:$0xff]   ;;  %v19763_v6 = vld [vmem:[#allocation17 + $0xa0] ss:$16 sps:$4 sm:$0xff]  }
 0x619   :  { %v8960_v29 = vsel %vm23106_vm3, %v8955_v42, %v8959_v43  ;;  %v19774_v32 = vld [vmem:[#allocation17 + $0x2a4] ss:$16 sps:$4 sm:$0xff]   ;;  %v19784_v43 = vld [vmem:[#allocation17 + $0x2e0] ss:$16 sps:$4 sm:$0xff]  }
 0x61a   :  { %9129 = vmatpush1.bf16.msra.mxu0 %v19697_v28  ;;  %v8941_v28 = vrot.slane %v8940_v2, 2  ;;  %v8988_v31 = vsel %vm23106_vm3, %v8983_v54, %v8987_v45  ;;  %v19769_v2 = vld [vmem:[#allocation17 + $0xc0] ss:$16 sps:$4 sm:$0xff]   ;;  %v19780_v23 = vld [vmem:[#allocation17 + $0x2c4] ss:$16 sps:$4 sm:$0xff]  }
 0x61b   :  { %9130 = vmatprep.subr.bf16.mxu0 %v19702_v19  ;;  %v19714_v19 = vld [vmem:[#allocation14 + $0x404] ss:$8 sps:$4 sm:$0xff]   ;;  %v9024_v9 = vcombine.low %v23231_v58, %v8988_v31 }
 0x61c   :  { %v8946_v49 = vsel %vm23106_vm3, %v8941_v28, %v8945_v3  ;;  %v19726_v58 = vld [vmem:[#allocation14 + $0x444] ss:$8 sps:$4 sm:$0xff]   ;;  %vm23433_vm3 = vmor %vm3163_vm5, %vm10117_vm14  ;;  %vm10129_vm14 = vsmask.f32 7452 }
 0x61d   :  { %v9023_v5 = vcombine.low %v8946_v49, %v8960_v29  ;;  %v9038_v36 = vrot.slane %v9024_v9, %v21789_v57  ;;  %v19783_v42 = vld [vmem:[#allocation17 + $0x104] ss:$16 sps:$4 sm:$0xff]   ;;  %v19778_v54 = vld [vmem:[#allocation17 + $0x2c0] ss:$16 sps:$4 sm:$0xff]   ;;  %vm10120_vm5 = vmor %vm23433_vm3, %vm10119_vm2 }
 0x61e   :  { %9131 = vmatpush1.bf16.msra.mxu0 %v19700_v26  ;;  %v19715_v26 = vld [vmem:[#allocation14 + $0x410] ss:$8 sps:$4 sm:$0xff]   ;;  %vm10122_vm4 = vmor %vm10120_vm5, %vm10121_vm7 }
 0x61f   :  { %9132 = vmatprep.subr.bf16.mxu0 %v19705_v21  ;;  %v9031_v60 = vrot.slane %v9023_v5, %v21789_v57  ;;  %v19723_v21 = vld [vmem:[#allocation14 + $0x434] ss:$8 sps:$4 sm:$0xff]   ;;  %vm10124_vm8 = vmor %vm10122_vm4, %vm10123_vm9 }
 0x620   :  { %v19781_v45 = vld [vmem:[#allocation17 + $0x100] ss:$16 sps:$4 sm:$0xff]   ;;  %v19789_v28 = vld [vmem:[#allocation17 + $0x124] ss:$16 sps:$4 sm:$0xff]   ;;  %vm10126_vm12 = vmor %vm10124_vm8, %vm10125_vm11 }
 0x621   :  { %v9039_v4 = vcombine.low %v9031_v60, %v9038_v36  ;;  %v19792_v20 = vld [vmem:[#allocation17 + $0x304] ss:$16 sps:$4 sm:$0xff]   ;;  %v19790_v3 = vld [vmem:[#allocation17 + $0x300] ss:$16 sps:$4 sm:$0xff]   ;;  %vm10128_vm13 = vmor %vm10126_vm12, %vm10127_vm10 }
 0x622   :  { %9133 = vmatpush1.bf16.msra.mxu0 %v19703_v47  ;;  %v19736_v47 = vld [vmem:[#allocation17] ss:$16 sps:$4 sm:$0xff]   ;;  %v19798_v31 = vld [vmem:[#allocation17 + $0x324] ss:$16 sps:$4 sm:$0xff]   ;;  %vm23471_vm15 = vmor %vm10128_vm13, %vm10129_vm14 }
 0x623   :  { %9134 = vmatprep.subr.bf16.mxu0 %v19708_v0  ;;  %v19745_v0 = vld [vmem:[#allocation17 + $0x40] ss:$16 sps:$4 sm:$0xff]   ;;  %v19807_v5 = vld [vmem:[#allocation17 + $0x184] ss:$16 sps:$4 sm:$0xff]  }
 0x624   :  { %v19793_v29 = vld [vmem:[#allocation17 + $0x140] ss:$16 sps:$4 sm:$0xff]   ;;  %v19810_v60 = vld [vmem:[#allocation17 + $0x364] ss:$16 sps:$4 sm:$0xff]  }
 0x625   :  { %v19796_v49 = vld [vmem:[#allocation17 + $0x320] ss:$16 sps:$4 sm:$0xff]   ;;  %v19813_v36 = vld [vmem:[#allocation17 + $0x1a4] ss:$16 sps:$4 sm:$0xff]  }
 0x626   :  { %9135 = vmatpush1.bf16.msra.mxu0 %v19706_v52  ;;  %v19771_v52 = vld [vmem:[#allocation17 + $0xc4] ss:$16 sps:$4 sm:$0xff]   ;;  %v19802_v9 = vld [vmem:[#allocation17 + $0x340] ss:$16 sps:$4 sm:$0xff]  }
 0x627   :  { %9136 = vmatprep.subr.bf16.mxu0 %v19711_v51  ;;  %v19777_v51 = vld [vmem:[#allocation17 + $0xe4] ss:$16 sps:$4 sm:$0xff]  }
 0x62a   :  { %9137 = vmatpush1.bf16.msra.mxu0 %v19709_v18  ;;  %v19786_v18 = vld [vmem:[#allocation17 + $0x2e4] ss:$16 sps:$4 sm:$0xff]  }
 0x62b   :  { %9428 = vmatprep.subr.bf16.mxu0 %v19714_v19  ;;  %v19795_v19 = vld [vmem:[#allocation17 + $0x144] ss:$16 sps:$4 sm:$0xff]  }
 0x62d   :  { %9155 = vmatmul.mubr.bf16.vlgmr.msra.gmra.mrb[40].mxu0 %v9022_v33  ;;  %v19799_v33 = vld [vmem:[#allocation17 + $0x160] ss:$16 sps:$4 sm:$0xff]  }
 0x62e   :  { %9429 = vmatpush1.bf16.msra.mxu0 %v19712_v27  ;;  %9164 = vmatprep.mubr.bf16.mxu0 %v23836_v55  ;;  %v19801_v27 = vld [vmem:[#allocation17 + $0x164] ss:$16 sps:$4 sm:$0xff]  }
 0x62f   :  { %9430 = vmatprep.subr.bf16.mxu0 %v19717_v62  ;;  %v19804_v62 = vld [vmem:[#allocation17 + $0x344] ss:$16 sps:$4 sm:$0xff]  }
 0x632   :  { %9431 = vmatpush1.bf16.msra.mxu0 %v19715_v26  ;;  %v19805_v26 = vld [vmem:[#allocation17 + $0x180] ss:$16 sps:$4 sm:$0xff]  }
 0x633   :  { %9432 = vmatprep.subr.bf16.mxu0 %v19720_v53  ;;  %v19808_v53 = vld [vmem:[#allocation17 + $0x360] ss:$16 sps:$4 sm:$0xff]  }
 0x635   :  { %9165 = vmatmul.mubr.bf16.gmra.mrb[44].mxu0 %v9039_v4  ;;  %v19816_v4 = vld [vmem:[#allocation17 + $0x384] ss:$16 sps:$4 sm:$0xff]  }
 0x636   :  { %9433 = vmatpush1.bf16.msra.mxu0 %v19718_v11  ;;  %9460 = vmatprep.mubr.bf16.mxu0 %v23836_v55  ;;  %v19811_v11 = vld [vmem:[#allocation17 + $0x1a0] ss:$16 sps:$4 sm:$0xff]  }
 0x637   :  { %9434 = vmatprep.subr.bf16.mxu0 %v19723_v21  ;;  %v19819_v21 = vld [vmem:[#allocation17 + $0x1c4] ss:$16 sps:$4 sm:$0xff]  }
 0x63a   :  { %9435 = vmatpush1.bf16.msra.mxu0 %v19721_v8  ;;  %v19814_v8 = vld [vmem:[#allocation17 + $0x380] ss:$16 sps:$4 sm:$0xff]  }
 0x63b   :  { %9436 = vmatprep.subr.bf16.mxu0 %v19726_v58  ;;  %v19817_v58 = vld [vmem:[#allocation17 + $0x1c0] ss:$16 sps:$4 sm:$0xff]  }
 0x63e   :  { %9437 = vmatpush1.bf16.msra.mxu0 %v19724_v22  ;;  %v19822_v22 = vld [vmem:[#allocation17 + $0x3a4] ss:$16 sps:$4 sm:$0xff]  }
 0x63f   :  { %9438 = vmatprep.subr.bf16.mxu0 %v19729_v41  ;;  %v19825_v41 = vld [vmem:[#allocation17 + $0x1e4] ss:$16 sps:$4 sm:$0xff]  }
 0x642   :  { %9439 = vmatpush1.bf16.msra.mxu0 %v19727_v24  ;;  %v19820_v24 = vld [vmem:[#allocation17 + $0x3a0] ss:$16 sps:$4 sm:$0xff]  }
 0x643   :  { %9440 = vmatprep.subr.bf16.mxu0 %v19732_v15  ;;  %v19823_v15 = vld [vmem:[#allocation17 + $0x1e0] ss:$16 sps:$4 sm:$0xff]  }
 0x646   :  { %9441 = vmatpush1.bf16.msra.mxu0 %v19730_v7  ;;  %v19828_v7 = vld [vmem:[#allocation17 + $0x3c4] ss:$16 sps:$4 sm:$0xff]  }
 0x647   :  { %9442 = vmatprep.subr.bf16.mxu0 %v19735_v50  ;;  %v19831_v50 = vld [vmem:[#allocation17 + $0x404] ss:$16 sps:$4 sm:$0xff]  }
 0x64a   :  { %9443 = vmatpush1.bf16.msra.mxu0 %v19733_v38  ;;  %v19826_v38 = vld [vmem:[#allocation17 + $0x3c0] ss:$16 sps:$4 sm:$0xff]  }
 0x64b   :  { %11022 = vmatprep.subr.bf16.mxu0 %v19738_v10  ;;  %v19834_v10 = vld [vmem:[#allocation17 + $0x3e4] ss:$16 sps:$4 sm:$0xff]  }
 0x64d   :  { %9461 = vmatmul.mubr.bf16.vlgmr.msra.gmra.mrb[40].mxu0 %v9328_v39  ;;  %v19754_v39 = vld [vmem:[#allocation17 + $0x240] ss:$16 sps:$4 sm:$0xff]  }
 0x64e   :  { %9470 = vmatprep.mubr.bf16.mxu0 %v23836_v55  ;;  %11023 = vmatpush1.bf16.msra.mxu0 %v19736_v47  ;;  %v19751_v55 = vld [vmem:[#allocation17 + $0x60] ss:$16 sps:$4 sm:$0xff]  }
 0x64f   :  { %11024 = vmatprep.subr.bf16.mxu0 %v19741_v25  ;;  %10591 = vmatpush1.bf16.msra.mxu1 %v19754_v39  ;;  %v19832_v47 = vld [vmem:[#allocation17 + $0x3e0] ss:$16 sps:$4 sm:$0xff]  }
 0x650   :  { %10592 = vmatprep.subr.bf16.mxu1 %v19762_v40  ;;  %v23839_v25 = vld [vmem:[#allocation42_spill] sm:$0xff] }
 0x651   :  { %v23372_v46 = vsub.s32 0, %v23839_v25 }
 0x652   :  { %11025 = vmatpush1.bf16.msra.mxu0 %v19739_v48  ;;  %v19840_v48 = vld [vmem:[#allocation17 + $0x20c] ss:$16 sps:$4 sm:$0xff]  }
 0x653   :  { %11026 = vmatprep.subr.bf16.mxu0 %v19747_v1  ;;  %10593 = vmatpush1.bf16.msra.mxu1 %v19760_v56  ;;  %v9494_v1 = vrot.slane %v9489_v37, %v23372_v46 }
 0x654   :  { %10594 = vmatprep.subr.bf16.mxu1 %v19768_v17 }
 0x655   :  { %9471 = vmatmul.mubr.bf16.gmra.mrb[44].mxu0 %v9345_v12  ;;  %v19759_v12 = vld [vmem:[#allocation17 + $0x84] ss:$16 sps:$4 sm:$0xff]  }
 0x656   :  { %11027 = vmatpush1.bf16.msra.mxu0 %v19745_v0  ;;  %v23375_v0 = vsub.s32 1, %v23839_v25 }
 0x657   :  { %11028 = vmatprep.subr.bf16.mxu0 %v19753_v13  ;;  %10595 = vmatpush1.bf16.msra.mxu1 %v19766_v30 }
 0x658   :  { %10596 = vmatprep.subr.bf16.mxu1 %v19774_v32  ;;  %v9498_v14 = vrot.slane %v9489_v37, %v23375_v0 }
 0x65a   :  { %11029 = vmatpush1.bf16.msra.mxu0 %v19751_v55 }
 0x65b   :  { %11030 = vmatprep.subr.bf16.mxu0 %v19759_v12  ;;  %10597 = vmatpush1.bf16.msra.mxu1 %v19772_v34 }
 0x65c   :  { %10598 = vmatprep.subr.bf16.mxu1 %v19780_v23 }
 0x65e   :  { %11031 = vmatpush1.bf16.msra.mxu0 %v19757_v63 }
 0x65f   :  { %11032 = vmatprep.subr.bf16.mxu0 %v19765_v61  ;;  %10599 = vmatpush1.bf16.msra.mxu1 %v19778_v54 }
 0x660   :  { %10600 = vmatprep.subr.bf16.mxu1 %v19786_v18 }
 0x662   :  { %11033 = vmatpush1.bf16.msra.mxu0 %v19763_v6 }
 0x663   :  { %11034 = vmatprep.subr.bf16.mxu0 %v19771_v52  ;;  %10601 = vmatpush1.bf16.msra.mxu1 %v19784_v43 }
 0x664   :  { %10602 = vmatprep.subr.bf16.mxu1 %v19792_v20 }
 0x666   :  { %11035 = vmatpush1.bf16.msra.mxu0 %v19769_v2 }
 0x667   :  { %11036 = vmatprep.subr.bf16.mxu0 %v19777_v51  ;;  %10603 = vmatpush1.bf16.msra.mxu1 %v19790_v3 }
 0x668   :  { %10604 = vmatprep.subr.bf16.mxu1 %v19798_v31 }
 0x66a   :  { %11037 = vmatpush1.bf16.msra.mxu0 %v19775_v16 }
 0x66b   :  { %11038 = vmatprep.subr.bf16.mxu0 %v19783_v42  ;;  %10605 = vmatpush1.bf16.msra.mxu1 %v19796_v49  ;;  %v23381_v49 = vsub.s32 2, %v23839_v25 }
 0x66c   :  { %10606 = vmatprep.subr.bf16.mxu1 %v19804_v62 }
 0x66e   :  { %11039 = vmatpush1.bf16.msra.mxu0 %v19781_v45 }
 0x66f   :  { %11040 = vmatprep.subr.bf16.mxu0 %v19789_v28  ;;  %10607 = vmatpush1.bf16.msra.mxu1 %v19802_v9 }
 0x670   :  { %10608 = vmatprep.subr.bf16.mxu1 %v19810_v60 }
 0x672   :  { %11041 = vmatpush1.bf16.msra.mxu0 %v19787_v44 }
 0x673   :  { %11042 = vmatprep.subr.bf16.mxu0 %v19795_v19  ;;  %10609 = vmatpush1.bf16.msra.mxu1 %v19808_v53 }
 0x674   :  { %10610 = vmatprep.subr.bf16.mxu1 %v19816_v4 }
 0x676   :  { %11043 = vmatpush1.bf16.msra.mxu0 %v19793_v29 }
 0x677   :  { %11044 = vmatprep.subr.bf16.mxu0 %v19801_v27  ;;  %10611 = vmatpush1.bf16.msra.mxu1 %v19814_v8 }
 0x678   :  { %10612 = vmatprep.subr.bf16.mxu1 %v19822_v22 }
 0x67a   :  { %11045 = vmatpush1.bf16.msra.mxu0 %v19799_v33 }
 0x67b   :  { %11046 = vmatprep.subr.bf16.mxu0 %v19807_v5  ;;  %10613 = vmatpush1.bf16.msra.mxu1 %v19820_v24 }
 0x67c   :  { %10614 = vmatprep.subr.bf16.mxu1 %v19828_v7 }
 0x67e   :  { %11047 = vmatpush1.bf16.msra.mxu0 %v19805_v26 }
 0x67f   :  { %11048 = vmatprep.subr.bf16.mxu0 %v19813_v36  ;;  %10615 = vmatpush1.bf16.msra.mxu1 %v19826_v38 }
 0x680   :  { %10616 = vmatprep.subr.bf16.mxu1 %v19834_v10 }
 0x682   :  { %11049 = vmatpush1.bf16.msra.mxu0 %v19811_v11 }
 0x683   :  { %11050 = vmatprep.subr.bf16.mxu0 %v19819_v21  ;;  %10617 = vmatpush1.bf16.msra.mxu1 %v19832_v47 }
 0x684   :  { %10627 = vmatprep.subr.bf16.mxu1 %v19840_v48 }
 0x686   :  { %11051 = vmatpush1.bf16.msra.mxu0 %v19817_v58 }
 0x687   :  { %11052 = vmatprep.subr.bf16.mxu0 %v19825_v41 }
 0x68a   :  { %11053 = vmatpush1.bf16.msra.mxu0 %v19823_v15 }
 0x68b   :  { %11563 = vmatprep.subr.bf16.mxu0 %v19831_v50 }
 0x720   :  { %v9462_v35 = vpop.f32.mrb[40].mxu0 }
 0x721   :  { %v9501_v55 = vadd.f32 %v9494_v1, %v9462_v35  ;;  %v9464_v13 = vpop.f32.mrb[41].mxu0 }
 0x722   :  { %v9502_v39 = vadd.f32 %v9498_v14, %v9464_v13  ;;  %v9466_v59 = vpop.f32.mrb[42].mxu0 }
 0x723   :  { %v9509_v63 = vmax.f32 %v9501_v55, 0.0  ;;  %v9503_v12 = vadd.f32 %v9494_v1, %v9466_v59  ;;  %v9468_v40 = vpop.f32.mrb[43].mxu0 }
 0x724   :  { %v9510_v61 = vmax.f32 %v9502_v39, 0.0  ;;  %v9504_v56 = vadd.f32 %v9498_v14, %v9468_v40 }
 0x725   :  { %v9525_v6 = vrot.slane %v9509_v63, 4  ;;  %v9511_v17 = vmax.f32 %v9503_v12, 0.0 }
 0x726   :  { %v9526_v52 = vrot.slane %v9510_v61, 4  ;;  %v9512_v30 = vmax.f32 %v9504_v56, 0.0 }
 0x727   :  { %v9541_v2 = vmax.f32 %v9509_v63, %v9525_v6  ;;  %v9527_v32 = vrot.slane %v9511_v17, 4 }
 0x728   :  { %v9542_v51 = vmax.f32 %v9510_v61, %v9526_v52  ;;  %v9528_v34 = vrot.slane %v9512_v30, 4  ;;  %v9472_v16 = vpop.f32.mrb[44].mxu0 }
 0x729   :  { %v9543_v23 = vmax.f32 %v9511_v17, %v9527_v32  ;;  %v9505_v42 = vadd.f32 %v9494_v1, %v9472_v16  ;;  %v9474_v54 = vpop.f32.mrb[45].mxu0 }
 0x72a   :  { %v9557_v45 = vcombine.low %v9541_v2, %v9542_v51  ;;  %v9544_v18 = vmax.f32 %v9512_v30, %v9528_v34  ;;  %v9506_v28 = vadd.f32 %v9498_v14, %v9474_v54  ;;  %v9476_v43 = vpop.f32.mrb[46].mxu0  ;;  %v21340_v51 = vmov 1966171168  }
 0x72b   :  { %v9513_v44 = vmax.f32 %v9505_v42, 0.0  ;;  %v9507_v20 = vadd.f32 %v9494_v1, %v9476_v43  ;;  %v9478_v19 = vpop.f32.mrb[47].mxu0  ;;  %v23397_v34 = vunpack.c.l.s4 %v21340_v51 }
 0x72c   :  { %v9564_v3 = vrot.slane %v9557_v45, %v21789_v57  ;;  %v9566_v29 = vcombine.low %v9543_v23, %v9544_v18  ;;  %v9514_v31 = vmax.f32 %v9506_v28, 0.0  ;;  %v9508_v27 = vadd.f32 %v9498_v14, %v9478_v19 }
 0x72d   :  { %v9529_v33 = vrot.slane %v9513_v44, 4  ;;  %v9515_v62 = vmax.f32 %v9507_v20, 0.0 }
 0x72e   :  { %v9565_v5 = vcombine.high %v9564_v3, %v9564_v3  ;;  %v17685_v9 = vrot.slane %v9564_v3, 9  ;;  %v9573_v26 = vrot.slane %v9566_v29, %v21789_v57  ;;  %v9530_v60 = vrot.slane %v9514_v31, 4 }
 0x72f   :  { %v9545_v36 = vmax.f32 %v9513_v44, %v9529_v33  ;;  %v9531_v53 = vrot.slane %v9515_v62, 4  ;;  %v9516_v11 = vmax.f32 %v9508_v27, 0.0 }
 0x730   :  { %v17686_v4 = vrot.slane %v9565_v5, 9  ;;  %v9625_v21 = vmax.f32 %v9564_v3, %v17685_v9  ;;  %v9574_v8 = vcombine.high %v9573_v26, %v9573_v26  ;;  %v17687_v58 = vrot.slane %v9573_v26, 9 }
 0x731   :  { %v9546_v22 = vmax.f32 %v9514_v31, %v9530_v60  ;;  %v9547_v41 = vmax.f32 %v9515_v62, %v9531_v53  ;;  %v9532_v24 = vrot.slane %v9516_v11, 4 }
 0x732   :  { %v9626_v15 = vmax.f32 %v9565_v5, %v17686_v4  ;;  %v9644_v7 = vrot.slane %v9625_v21, %v23372_v46  ;;  %v9648_v50 = vrot.slane %v9625_v21, %v23381_v49  ;;  %v17688_v38 = vrot.slane %v9574_v8, 9 }
 0x733   :  { %v9627_v10 = vmax.f32 %v9573_v26, %v17687_v58  ;;  %v9575_v47 = vcombine.low %v9545_v36, %v9546_v22  ;;  %v9548_v48 = vmax.f32 %v9516_v11, %v9532_v24 }
 0x734   :  { %v9652_v37 = vrot.slane %v9626_v15, %v23372_v46  ;;  %v9656_v1 = vrot.slane %v9626_v15, %v23381_v49  ;;  %v17693_v14 = vpack.c.bf16 %v9648_v50, %v9644_v7  ;;  %v9628_v35 = vmax.f32 %v9574_v8, %v17688_v38 }
 0x735   :  { %v9660_v55 = vrot.slane %v9627_v10, %v23372_v46  ;;  %v9664_v13 = vrot.slane %v9627_v10, %v23381_v49  ;;  %v9582_v39 = vrot.slane %v9575_v47, %v21789_v57  ;;  %v9584_v59 = vcombine.low %v9547_v41, %v9548_v48 }
 0x736   :  { %v9768_v63 = vrot.slane %v17693_v14, %v21789_v57  ;;  %v17694_v12 = vpack.c.bf16 %v9656_v1, %v9652_v37  ;;  %v9668_v40 = vrot.slane %v9628_v35, %v23372_v46  ;;  %v9672_v61 = vrot.slane %v9628_v35, %v23381_v49  ;;  %v9965_v37 = vld [vmem:[#allocation4 + $0x4] sm:$0xf] }
 0x737   :  { %v17695_v56 = vpack.c.bf16 %v9664_v13, %v9660_v55  ;;  %v9583_v6 = vcombine.high %v9582_v39, %v9582_v39  ;;  %v17689_v17 = vrot.slane %v9582_v39, 9  ;;  %v9591_v52 = vrot.slane %v9584_v59, %v21789_v57 }
 0x738   :  { %v9776_v30 = vrot.slane %v17694_v12, %v21789_v57  ;;  %v9831_v2 = vrot.slane %v9768_v63, %v21789_v57  ;;  %v17696_v32 = vpack.c.bf16 %v9672_v61, %v9668_v40 }
 0x739   :  { %v9784_v16 = vrot.slane %v17695_v56, %v21789_v57  ;;  %v17690_v23 = vrot.slane %v9583_v6, 9  ;;  %v9629_v42 = vmax.f32 %v9582_v39, %v17689_v17  ;;  %v9592_v54 = vcombine.high %v9591_v52, %v9591_v52  ;;  %v9968_v17 = vld [vmem:[#allocation4 + $0x8] sm:$0xf] }
 0x73a   :  { %v9838_v45 = vrot.slane %v9776_v30, %v21789_v57  ;;  %v9881_v18 = vunpack.c.l.b16 %v9831_v2  ;;  %v9882_v28 = vunpack.c.h.b16 %v9831_v2  ;;  %v9792_v43 = vrot.slane %v17696_v32, %v21789_v57 }
 0x73b   :  { %v9845_v44 = vrot.slane %v9784_v16, %v21789_v57  ;;  %v9630_v20 = vmax.f32 %v9583_v6, %v17690_v23  ;;  %v9676_v19 = vrot.slane %v9629_v42, %v23372_v46  ;;  %v9680_v3 = vrot.slane %v9629_v42, %v23381_v49 }
 0x73c   :  { %v9883_v29 = vunpack.c.l.b16 %v9838_v45  ;;  %v9884_v31 = vunpack.c.h.b16 %v9838_v45  ;;  %v9897_v27 = vrot.slane %v9881_v18, 7  ;;  %v9900_v33 = vrot.slane %v9882_v28, 7 }
 0x73d   :  { %v9852_v62 = vrot.slane %v9792_v43, %v21789_v57  ;;  %v9885_v5 = vunpack.c.l.b16 %v9845_v44  ;;  %v9886_v9 = vunpack.c.h.b16 %v9845_v44  ;;  %v9684_v26 = vrot.slane %v9630_v20, %v23372_v46 }
 0x73e   :  { %v9898_v60 = vrot.slane %v9883_v29, 6  ;;  %v9901_v36 = vrot.slane %v9884_v31, 6  ;;  %v9688_v11 = vrot.slane %v9630_v20, %v23381_v49  ;;  %v17697_v4 = vpack.c.bf16 %v9680_v3, %v9676_v19 }
 0x73f   :  { %v9887_v21 = vunpack.c.l.b16 %v9852_v62  ;;  %v9888_v8 = vunpack.c.h.b16 %v9852_v62  ;;  %v9903_v58 = vrot.slane %v9885_v5, 7  ;;  %v9906_v22 = vrot.slane %v9886_v9, 7  ;;  %v17705_v9 = vld.sshfl [vmem:[#allocation4] sm:$0x33 pattern:$0x75316420] }
 0x740   :  { %v9899_v41 = vsel %vm2879_vm6, %v9898_v60, %v9897_v27  ;;  %v9902_v24 = vsel %vm2879_vm6, %v9901_v36, %v9900_v33  ;;  %v9800_v15 = vrot.slane %v17697_v4, %v21789_v57  ;;  %v17698_v7 = vpack.c.bf16 %v9688_v11, %v9684_v26  ;;  %v9971_v27 = vld [vmem:[#allocation4 + $0x14] sm:$0xf]  ;;  %v17707_v11 = vld.sshfl [vmem:[#allocation4 + $0x10] sm:$0x33 pattern:$0x75316420] }
 0x741   :  { %v9921_v50 = vpack.c.b16 %v9902_v24, %v9899_v41  ;;  %v9904_v38 = vrot.slane %v9887_v21, 6  ;;  %v9907_v10 = vrot.slane %v9888_v8, 6  ;;  %v17691_v47 = vrot.slane %v9591_v52, 9 }
 0x742   :  { %v9808_v1 = vrot.slane %v17698_v7, %v21789_v57  ;;  %v9859_v14 = vrot.slane %v9800_v15, %v21789_v57  ;;  %v17692_v35 = vrot.slane %v9592_v54, 9  ;;  %v10236_v5 = vunpack.c.0.s8 %v23397_v34 }
 0x743   :  { %v9931_v55 = vrot.slane %v9921_v50, %v21789_v57  ;;  %v9905_v13 = vsel %vm2879_vm6, %v9904_v38, %v9903_v58  ;;  %v9908_v39 = vsel %vm2879_vm6, %v9907_v10, %v9906_v22  ;;  %v9631_v59 = vmax.f32 %v9591_v52, %v17691_v47  ;;  %v17701_v47 = vld.sshfl [vmem:[#allocation4] sm:$0x3 pattern:$0x75316420] }
 0x744   :  { %v9922_v63 = vpack.c.b16 %v9908_v39, %v9905_v13  ;;  %v9866_v12 = vrot.slane %v9808_v1, %v21789_v57  ;;  %v9889_v40 = vunpack.c.l.b16 %v9859_v14  ;;  %v9890_v61 = vunpack.c.h.b16 %v9859_v14 }
 0x745   :  { %v9966_v6 = vsel %vm23421_vm1, %v9931_v55, %v9965_v37  ;;  %v9632_v30 = vmax.f32 %v9592_v54, %v17692_v35  ;;  %v9692_v2 = vrot.slane %v9631_v59, %v23372_v46  ;;  %v9696_v52 = vrot.slane %v9631_v59, %v23381_v49  ;;  %v17841_v55 = vld.sshfl [vmem:[#allocation4] sm:$0x30 pattern:$0x75316420]  ;;  %v9974_v59 = vld [vmem:[#allocation4 + $0x18] sm:$0xf] }
 0x746   :  { %9967 = vst [vmem:[#allocation4 + $0x4] sm:$0xf] %v9966_v6  ;;  %v9938_v32 = vrot.slane %v9922_v63, %v21789_v57  ;;  %v9891_v51 = vunpack.c.l.b16 %v9866_v12  ;;  %v9892_v16 = vunpack.c.h.b16 %v9866_v12  ;;  %v9909_v23 = vrot.slane %v9889_v40, 7 }
 0x747   :  { %v9700_v42 = vrot.slane %v9632_v30, %v23372_v46  ;;  %v9704_v45 = vrot.slane %v9632_v30, %v23381_v49  ;;  %v17699_v18 = vpack.c.bf16 %v9696_v52, %v9692_v2  ;;  %v9912_v43 = vrot.slane %v9890_v61, 7  ;;  %v17703_v12 = vld.sshfl [vmem:[#allocation4 + $0x10] sm:$0x3 pattern:$0x75316420] }
 0x748   :  { %v9969_v54 = vsel %vm23421_vm1, %v9938_v32, %v9968_v17  ;;  %v9910_v28 = vrot.slane %v9891_v51, 6  ;;  %v9913_v44 = vrot.slane %v9892_v16, 6  ;;  %v23461_v41 = vsub.s32 %v10236_v5, %v23839_v25  ;;  %v17843_v17 = vld.sshfl [vmem:[#allocation4 + $0x10] sm:$0x30 pattern:$0x75316420] }
 0x749   :  { %9970 = vst [vmem:[#allocation4 + $0x8] sm:$0xf] %v9969_v54  ;;  %v9816_v20 = vrot.slane %v17699_v18, %v21789_v57  ;;  %v17700_v19 = vpack.c.bf16 %v9704_v45, %v9700_v42  ;;  %v10092_v24 = vcombine.high %v17705_v9, %v17705_v9  ;;  %v10108_v1 = vcombine.high %v17707_v11, %v17707_v11  ;;  %v20308_v30 = vld [vmem:[#allocation17 + $0x9cc] ss:$16 sps:$4 sm:$0xff]  }
 0x74a   :  { %v9911_v3 = vsel %vm2879_vm6, %v9910_v28, %v9909_v23  ;;  %v9914_v29 = vsel %vm2879_vm6, %v9913_v44, %v9912_v43  ;;  %v10132_v40 = vshrl.u32 %v17705_v9, 16  ;;  %v10150_v51 = vshrl.u32 %v17707_v11, 16 }
 0x74b   :  { %v9923_v31 = vpack.c.b16 %v9914_v29, %v9911_v3  ;;  %v9824_v33 = vrot.slane %v17700_v19, %v21789_v57  ;;  %v9873_v62 = vrot.slane %v9816_v20, %v21789_v57  ;;  %v10137_v61 = vshll.u32 %v10092_v24, 16 }
 0x74c   :  { %v10155_v16 = vshll.u32 %v10108_v1, 16 }
 0x74d   :  { %v9945_v26 = vrot.slane %v9923_v31, %v21789_v57  ;;  %v9880_v60 = vrot.slane %v9824_v33, %v21789_v57  ;;  %v9893_v36 = vunpack.c.l.b16 %v9873_v62  ;;  %v9894_v53 = vunpack.c.h.b16 %v9873_v62  ;;  %v17702_v4 = vld.sshfl [vmem:[#allocation4 + $0x4] sm:$0x3 pattern:$0x75316420] }
 0x74e   :  { %v17706_v22 = vld.sshfl [vmem:[#allocation4 + $0x4] sm:$0x33 pattern:$0x75316420]  ;;  %v10668_v6 = vcombine.low %v17701_v47, %v17702_v4  ;;  %v10139_v28 = vsel %vm23471_vm15, %v10132_v40, %v10137_v61  ;;  %v10157_v29 = vsel %vm23471_vm15, %v10150_v51, %v10155_v16  ;;  %v19843_v47 = vld [vmem:[#allocation17 + $0x444] ss:$16 sps:$4 sm:$0xff]  }
 0x74f   :  { %v9972_v21 = vsel %vm23421_vm1, %v9945_v26, %v9971_v27  ;;  %v9895_v8 = vunpack.c.l.b16 %v9880_v60  ;;  %v9896_v58 = vunpack.c.h.b16 %v9880_v60  ;;  %v9915_v34 = vrot.slane %v9893_v36, 7  ;;  %v17842_v63 = vld.sshfl [vmem:[#allocation4 + $0x4] sm:$0x30 pattern:$0x75316420] }
 0x750   :  { %9973 = vst [vmem:[#allocation4 + $0x14] sm:$0xf] %v9972_v21  ;;  %v17912_v15 = vld.sshfl [vmem:[#allocation4 + $0x8] sm:$0x3 pattern:$0x75316420]  ;;  %v10100_v37 = vcombine.high %v17706_v22, %v17706_v22  ;;  %v17845_v32 = vcombine.high %v17841_v55, %v17842_v63  ;;  %v10676_v43 = vrot.slane %v10668_v6, %v23461_v41 }
 0x751   :  { %v9916_v7 = vrot.slane %v9895_v8, 6  ;;  %v9918_v50 = vrot.slane %v9894_v53, 7  ;;  %v9919_v38 = vrot.slane %v9896_v58, 6  ;;  %v11750_v10 = vcombine.low %v17702_v4, %v17912_v15  ;;  %v19829_v36 = vld [vmem:[#allocation17 + $0x400] ss:$16 sps:$4 sm:$0xff]  }
 0x752   :  { %v10146_v2 = vshll.u32 %v10100_v37, 16  ;;  %v10141_v18 = vshrl.u32 %v17706_v22, 16  ;;  %v11217_v48 = vrot.slane %v17845_v32, %v23461_v41  ;;  %v19837_v4 = vld [vmem:[#allocation17 + $0x424] ss:$16 sps:$4 sm:$0xff]   ;;  %v19841_v63 = vld [vmem:[#allocation17 + $0x440] ss:$16 sps:$4 sm:$0xff]  }
 0x753   :  { %v9917_v14 = vsel %vm2879_vm6, %v9916_v7, %v9915_v34  ;;  %v9920_v35 = vsel %vm2879_vm6, %v9919_v38, %v9918_v50  ;;  %v23468_v13 = vrot.slane %v11750_v10, %v23461_v41  ;;  %v19835_v7 = vld [vmem:[#allocation17 + $0x420] ss:$16 sps:$4 sm:$0xff]   ;;  %v19846_v61 = vld [vmem:[#allocation17 + $0x22c] ss:$16 sps:$4 sm:$0xff]   ;;  %vm15305_vm6 = vcmask 1041409  }
 0x754   :  { %v9924_v39 = vpack.c.b16 %v9920_v35, %v9917_v14  ;;  %v23483_v19 = vsel %vm23471_vm15, %v10141_v18, %v10146_v2  ;;  %v17980_v50 = vld.sshfl [vmem:[#allocation4 + $0x8] sm:$0x33 pattern:$0x75316420] }
 0x755   :  { %v10232_v9 = vcombine.low %v10139_v28, %v23483_v19  ;;  %v12213_v14 = vcombine.high %v17980_v50, %v17980_v50  ;;  %v19847_v18 = vld [vmem:[#allocation17 + $0x460] ss:$16 sps:$4 sm:$0xff]  }
 0x756   :  { %v9952_v56 = vrot.slane %v9924_v39, %v21789_v57  ;;  %v19838_v39 = vld [vmem:[#allocation17 + $0x208] ss:$16 sps:$4 sm:$0xff]  }
 0x757   :  { %v17704_v52 = vld.sshfl [vmem:[#allocation4 + $0x14] sm:$0x3 pattern:$0x75316420]  ;;  %v10240_v34 = vrot.slane %v10232_v9, %v23461_v41  ;;  %v12245_v6 = vshll.u32 %v12213_v14, 16 }
 0x758   :  { %v9975_v23 = vsel %vm23421_vm1, %v9952_v56, %v9974_v59  ;;  %v10669_v42 = vcombine.low %v17703_v12, %v17704_v52  ;;  %v17844_v45 = vld.sshfl [vmem:[#allocation4 + $0x14] sm:$0x30 pattern:$0x75316420]  ;;  %v12240_v56 = vshrl.u32 %v17980_v50, 16 }
 0x759   :  { %9976 = vst [vmem:[#allocation4 + $0x18] sm:$0xf] %v9975_v23  ;;  %v17846_v54 = vcombine.high %v17843_v17, %v17844_v45  ;;  %v17708_v57 = vld.sshfl [vmem:[#allocation4 + $0x14] sm:$0x33 pattern:$0x75316420] }
 0x75a   :  { %v10683_v44 = vrot.slane %v10669_v42, %v23461_v41  ;;  %v10116_v20 = vcombine.high %v17708_v57, %v17708_v57  ;;  %v10159_v33 = vshrl.u32 %v17708_v57, 16  ;;  %v19844_v23 = vld [vmem:[#allocation17 + $0x228] ss:$16 sps:$4 sm:$0xff]   ;;  %v19855_v57 = vld [vmem:[#allocation17 + $0x484] ss:$16 sps:$4 sm:$0xff]  }
 0x75b   :  { %v11224_v3 = vrot.slane %v17846_v54, %v23461_v41  ;;  %v19852_v54 = vld [vmem:[#allocation17 + $0x24c] ss:$16 sps:$4 sm:$0xff]   ;;  %v19865_v9 = vld [vmem:[#allocation17 + $0x4c0] ss:$16 sps:$4 sm:$0xff]   ;;  %v19886_v14 = vld [vmem:[#allocation17 + $0x308] ss:$16 sps:$4 sm:$0xff]  }
 0x75c   :  { %v10684_v31 = vcombine.low %v10676_v43, %v10683_v44  ;;  %v10685_v27 = vcombine.high %v10676_v43, %v10683_v44  ;;  %v10164_v62 = vshll.u32 %v10116_v20, 16  ;;  %v19850_v44 = vld [vmem:[#allocation17 + $0x248] ss:$16 sps:$4 sm:$0xff]   ;;  %v19882_v50 = vld [vmem:[#allocation17 + $0x2ec] ss:$16 sps:$4 sm:$0xff]  }
 0x75d   :  { %v11226_v5 = vcombine.high %v11217_v48, %v11224_v3  ;;  %v11225_v26 = vcombine.low %v11217_v48, %v11224_v3  ;;  %v19853_v48 = vld [vmem:[#allocation17 + $0x480] ss:$16 sps:$4 sm:$0xff]   ;;  %v19858_v3 = vld [vmem:[#allocation17 + $0x26c] ss:$16 sps:$4 sm:$0xff]  }
 0x75e   :  { %v23491_v60 = vrot.slane %v10685_v27, %v23461_v41  ;;  %v23494_v53 = vrot.slane %v10684_v31, %v23461_v41  ;;  %v10166_v11 = vsel %vm23471_vm15, %v10159_v33, %v10164_v62  ;;  %v19856_v31 = vld [vmem:[#allocation17 + $0x268] ss:$16 sps:$4 sm:$0xff]   ;;  %v19859_v27 = vld [vmem:[#allocation17 + $0x4a0] ss:$16 sps:$4 sm:$0xff]   ;;  %v19864_v33 = vld [vmem:[#allocation17 + $0x28c] ss:$16 sps:$4 sm:$0xff]  }
 0x75f   :  { %v10233_v21 = vcombine.low %v10157_v29, %v10166_v11  ;;  %v23499_v8 = vrot.slane %v11225_v26, %v23461_v41  ;;  %v23503_v58 = vrot.slane %v11226_v5, %v23461_v41  ;;  %v19867_v62 = vld [vmem:[#allocation17 + $0x4c4] ss:$16 sps:$4 sm:$0xff]   ;;  %v19862_v5 = vld [vmem:[#allocation17 + $0x288] ss:$16 sps:$4 sm:$0xff]   ;;  %v19870_v26 = vld [vmem:[#allocation17 + $0x2ac] ss:$16 sps:$4 sm:$0xff]  }
 0x760   :  { %11054 = vmatprep.mubr.bf16.mxu0 %v23491_v60  ;;  %v17914_v22 = vld.sshfl [vmem:[#allocation4 + $0x18] sm:$0x3 pattern:$0x75316420] }
 0x761   :  { %11055 = vmatmul.mubr.bf16.vlgmr.msra.gmra.mrb[48].mxu0 %v23494_v53  ;;  %v10247_v24 = vrot.slane %v10233_v21, %v23461_v41  ;;  %v11751_v15 = vcombine.low %v17704_v52, %v17914_v22  ;;  %v17982_v1 = vld.sshfl [vmem:[#allocation4 + $0x18] sm:$0x33 pattern:$0x75316420]  ;;  %v19876_v21 = vld [vmem:[#allocation17 + $0x2cc] ss:$16 sps:$4 sm:$0xff]  }
 0x762   :  { %11564 = vmatpush1.bf16.msra.mxu0 %v19829_v36  ;;  %11595 = vmatprep.mubr.bf16.mxu0 %v23503_v58  ;;  %v12229_v35 = vcombine.high %v17982_v1, %v17982_v1  ;;  %v12258_v17 = vshrl.u32 %v17982_v1, 16  ;;  %v19849_v52 = vld [vmem:[#allocation17 + $0x464] ss:$16 sps:$4 sm:$0xff]  }
 0x763   :  { %11565 = vmatprep.subr.bf16.mxu0 %v19837_v4  ;;  %v10248_v38 = vcombine.low %v10240_v34, %v10247_v24  ;;  %v10249_v10 = vcombine.high %v10240_v34, %v10247_v24  ;;  %v11765_v37 = vrot.slane %v11751_v15, %v23461_v41  ;;  %v19873_v36 = vld [vmem:[#allocation17 + $0x4e4] ss:$16 sps:$4 sm:$0xff]   ;;  %v19871_v4 = vld [vmem:[#allocation17 + $0x4e0] ss:$16 sps:$4 sm:$0xff]   ;;  %v19874_v15 = vld [vmem:[#allocation17 + $0x2c8] ss:$16 sps:$4 sm:$0xff]  }
 0x764   :  { %v12263_v2 = vshll.u32 %v12229_v35, 16  ;;  %v19879_v34 = vld [vmem:[#allocation17 + $0x504] ss:$16 sps:$4 sm:$0xff]   ;;  %v19889_v35 = vld [vmem:[#allocation17 + $0x540] ss:$16 sps:$4 sm:$0xff]  }
 0x765   :  { %v10263_v55 = vrot.slane %v10249_v10, %v23461_v41  ;;  %v23512_v59 = vrot.slane %v10248_v38, %v23461_v41  ;;  %v11767_v12 = vcombine.high %v23468_v13, %v11765_v37  ;;  %v11766_v40 = vcombine.low %v23468_v13, %v11765_v37  ;;  %v19885_v38 = vld [vmem:[#allocation17 + $0x524] ss:$16 sps:$4 sm:$0xff]   ;;  %v19880_v10 = vld [vmem:[#allocation17 + $0x2e8] ss:$16 sps:$4 sm:$0xff]   ;;  %v19888_v37 = vld [vmem:[#allocation17 + $0x30c] ss:$16 sps:$4 sm:$0xff]  }
 0x766   :  { %11566 = vmatpush1.bf16.msra.mxu0 %v19835_v7  ;;  %v12247_v13 = vsel %vm23471_vm15, %v12240_v56, %v12245_v6  ;;  %v12265_v16 = vsel %vm23471_vm15, %v12258_v17, %v12263_v2  ;;  %v19877_v7 = vld [vmem:[#allocation17 + $0x500] ss:$16 sps:$4 sm:$0xff]   ;;  %v19891_v1 = vld [vmem:[#allocation17 + $0x544] ss:$16 sps:$4 sm:$0xff]   ;;  %v19898_v56 = vld [vmem:[#allocation17 + $0x348] ss:$16 sps:$4 sm:$0xff]  }
 0x767   :  { %10618 = vmatprep.mubr.bf16.mxu1 %v10263_v55  ;;  %11567 = vmatprep.subr.bf16.mxu0 %v19843_v47  ;;  %v23517_v32 = vrot.slane %v11767_v12, %v23461_v41  ;;  %v23520_v51 = vrot.slane %v11766_v40, %v23461_v41  ;;  %v12331_v42 = vcombine.low %v23483_v19, %v12247_v13  ;;  %v19861_v19 = vld [vmem:[#allocation17 + $0x4a4] ss:$16 sps:$4 sm:$0xff]   ;;  %v19883_v47 = vld [vmem:[#allocation17 + $0x520] ss:$16 sps:$4 sm:$0xff]   ;;  %v19900_v40 = vld [vmem:[#allocation17 + $0x34c] ss:$16 sps:$4 sm:$0xff]  }
 0x768   :  { %10619 = vmatmul.mubr.bf16.vlgmr.msra.gmra.mrb[40].mxu1 %v23512_v59  ;;  %v12332_v45 = vcombine.low %v10166_v11, %v12265_v16  ;;  %v19868_v11 = vld [vmem:[#allocation17 + $0x2a8] ss:$16 sps:$4 sm:$0xff]   ;;  %v19895_v12 = vld [vmem:[#allocation17 + $0x560] ss:$16 sps:$4 sm:$0xff]   ;;  %v19906_v17 = vld [vmem:[#allocation17 + $0x36c] ss:$16 sps:$4 sm:$0xff]  }
 0x769   :  { %10628 = vmatpush1.bf16.msra.mxu1 %v19838_v39  ;;  %10659 = vmatprep.mubr.bf16.mxu1 %v10263_v55  ;;  %v12339_v28 = vrot.slane %v12331_v42, %v23461_v41  ;;  %v19894_v55 = vld [vmem:[#allocation17 + $0x32c] ss:$16 sps:$4 sm:$0xff]   ;;  %v19897_v39 = vld [vmem:[#allocation17 + $0x564] ss:$16 sps:$4 sm:$0xff]   ;;  %v19901_v6 = vld [vmem:[#allocation17 + $0x580] ss:$16 sps:$4 sm:$0xff]  }
 0x76a   :  { %10629 = vmatprep.subr.bf16.mxu1 %v19846_v61  ;;  %11568 = vmatpush1.bf16.msra.mxu0 %v19841_v63  ;;  %v12346_v43 = vrot.slane %v12332_v45, %v23461_v41  ;;  %v19892_v63 = vld [vmem:[#allocation17 + $0x328] ss:$16 sps:$4 sm:$0xff]   ;;  %v19903_v61 = vld [vmem:[#allocation17 + $0x584] ss:$16 sps:$4 sm:$0xff]   ;;  %v19907_v13 = vld [vmem:[#allocation17 + $0x5a0] ss:$16 sps:$4 sm:$0xff]  }
 0x76b   :  { %11569 = vmatprep.subr.bf16.mxu0 %v19849_v52  ;;  %v19909_v2 = vld [vmem:[#allocation17 + $0x5a4] ss:$16 sps:$4 sm:$0xff]   ;;  %v19904_v52 = vld [vmem:[#allocation17 + $0x368] ss:$16 sps:$4 sm:$0xff]   ;;  %v19912_v16 = vld [vmem:[#allocation17 + $0x38c] ss:$16 sps:$4 sm:$0xff]  }
 0x76c   :  { %v12348_v20 = vcombine.high %v12339_v28, %v12346_v43  ;;  %v12347_v22 = vcombine.low %v12339_v28, %v12346_v43  ;;  %v19910_v42 = vld [vmem:[#allocation17 + $0x388] ss:$16 sps:$4 sm:$0xff]   ;;  %v19913_v45 = vld [vmem:[#allocation17 + $0x5c0] ss:$16 sps:$4 sm:$0xff]   ;;  %v19924_v43 = vld [vmem:[#allocation17 + $0x3cc] ss:$16 sps:$4 sm:$0xff]  }
 0x76d   :  { %10630 = vmatpush1.bf16.msra.mxu1 %v19844_v23  ;;  %v19915_v23 = vld [vmem:[#allocation17 + $0x5c4] ss:$16 sps:$4 sm:$0xff]   ;;  %v19919_v28 = vld [vmem:[#allocation17 + $0x5e0] ss:$16 sps:$4 sm:$0xff]  }
 0x76e   :  { %10631 = vmatprep.subr.bf16.mxu1 %v19852_v54  ;;  %11570 = vmatpush1.bf16.msra.mxu0 %v19847_v18  ;;  %v23531_v29 = vrot.slane %v12348_v20, %v23461_v41  ;;  %v23534_v24 = vrot.slane %v12347_v22, %v23461_v41  ;;  %v19918_v18 = vld [vmem:[#allocation17 + $0x3ac] ss:$16 sps:$4 sm:$0xff]   ;;  %v19921_v54 = vld [vmem:[#allocation17 + $0x5e4] ss:$16 sps:$4 sm:$0xff]   ;;  %v19922_v20 = vld [vmem:[#allocation17 + $0x3c8] ss:$16 sps:$4 sm:$0xff]  }
 0x76f   :  { %11571 = vmatprep.subr.bf16.mxu0 %v19855_v57  ;;  %v19916_v57 = vld [vmem:[#allocation17 + $0x3a8] ss:$16 sps:$4 sm:$0xff]   ;;  %v19951_v22 = vld [vmem:[#allocation17 + $0x684] ss:$16 sps:$4 sm:$0xff]  }
 0x771   :  { %10632 = vmatpush1.bf16.msra.mxu1 %v19850_v44  ;;  %v19927_v44 = vld [vmem:[#allocation17 + $0x604] ss:$16 sps:$4 sm:$0xff]  }
 0x772   :  { %10633 = vmatprep.subr.bf16.mxu1 %v19858_v3  ;;  %11572 = vmatpush1.bf16.msra.mxu0 %v19853_v48  ;;  %v19925_v48 = vld [vmem:[#allocation17 + $0x600] ss:$16 sps:$4 sm:$0xff]   ;;  %v19930_v3 = vld [vmem:[#allocation17 + $0x3ec] ss:$16 sps:$4 sm:$0xff]  }
 0x773   :  { %11573 = vmatprep.subr.bf16.mxu0 %v19861_v19  ;;  %v19933_v19 = vld [vmem:[#allocation17 + $0x624] ss:$16 sps:$4 sm:$0xff]  }
 0x775   :  { %10634 = vmatpush1.bf16.msra.mxu1 %v19856_v31  ;;  %v19928_v31 = vld [vmem:[#allocation17 + $0x3e8] ss:$16 sps:$4 sm:$0xff]  }
 0x776   :  { %10635 = vmatprep.subr.bf16.mxu1 %v19864_v33  ;;  %11574 = vmatpush1.bf16.msra.mxu0 %v19859_v27  ;;  %v19931_v27 = vld [vmem:[#allocation17 + $0x620] ss:$16 sps:$4 sm:$0xff]   ;;  %v19936_v33 = vld [vmem:[#allocation17 + $0xc] ss:$16 sps:$4 sm:$0xff]  }
 0x777   :  { %11575 = vmatprep.subr.bf16.mxu0 %v19867_v62  ;;  %v19939_v62 = vld [vmem:[#allocation17 + $0x644] ss:$16 sps:$4 sm:$0xff]  }
 0x779   :  { %10636 = vmatpush1.bf16.msra.mxu1 %v19862_v5  ;;  %v19934_v5 = vld [vmem:[#allocation17 + $0x8] ss:$16 sps:$4 sm:$0xff]  }
 0x77a   :  { %10637 = vmatprep.subr.bf16.mxu1 %v19870_v26  ;;  %11576 = vmatpush1.bf16.msra.mxu0 %v19865_v9  ;;  %v19937_v9 = vld [vmem:[#allocation17 + $0x640] ss:$16 sps:$4 sm:$0xff]   ;;  %v19942_v26 = vld [vmem:[#allocation17 + $0x2c] ss:$16 sps:$4 sm:$0xff]  }
 0x77b   :  { %11577 = vmatprep.subr.bf16.mxu0 %v19873_v36  ;;  %v19945_v36 = vld [vmem:[#allocation17 + $0x664] ss:$16 sps:$4 sm:$0xff]  }
 0x77d   :  { %10638 = vmatpush1.bf16.msra.mxu1 %v19868_v11  ;;  %v19940_v11 = vld [vmem:[#allocation17 + $0x28] ss:$16 sps:$4 sm:$0xff]  }
 0x77e   :  { %10639 = vmatprep.subr.bf16.mxu1 %v19876_v21  ;;  %11578 = vmatpush1.bf16.msra.mxu0 %v19871_v4  ;;  %v19943_v4 = vld [vmem:[#allocation17 + $0x660] ss:$16 sps:$4 sm:$0xff]   ;;  %v19948_v21 = vld [vmem:[#allocation17 + $0x4c] ss:$16 sps:$4 sm:$0xff]  }
 0x77f   :  { %11579 = vmatprep.subr.bf16.mxu0 %v19879_v34  ;;  %v19946_v34 = vld [vmem:[#allocation17 + $0x48] ss:$16 sps:$4 sm:$0xff]  }
 0x781   :  { %10640 = vmatpush1.bf16.msra.mxu1 %v19874_v15  ;;  %v19949_v15 = vld [vmem:[#allocation17 + $0x680] ss:$16 sps:$4 sm:$0xff]  }
 0x782   :  { %10641 = vmatprep.subr.bf16.mxu1 %v19882_v50  ;;  %11580 = vmatpush1.bf16.msra.mxu0 %v19877_v7  ;;  %v19954_v7 = vld [vmem:[#allocation17 + $0x6c] ss:$16 sps:$4 sm:$0xff]   ;;  %v19957_v50 = vld [vmem:[#allocation17 + $0x6a4] ss:$16 sps:$4 sm:$0xff]  }
 0x783   :  { %11581 = vmatprep.subr.bf16.mxu0 %v19885_v38  ;;  %v19960_v38 = vld [vmem:[#allocation17 + $0x8c] ss:$16 sps:$4 sm:$0xff]  }
 0x785   :  { %10642 = vmatpush1.bf16.msra.mxu1 %v19880_v10  ;;  %v19963_v10 = vld [vmem:[#allocation17 + $0x6c4] ss:$16 sps:$4 sm:$0xff]  }
 0x786   :  { %10643 = vmatprep.subr.bf16.mxu1 %v19888_v37  ;;  %11582 = vmatpush1.bf16.msra.mxu0 %v19883_v47  ;;  %v19958_v47 = vld [vmem:[#allocation17 + $0x88] ss:$16 sps:$4 sm:$0xff]   ;;  %v19961_v37 = vld [vmem:[#allocation17 + $0x6c0] ss:$16 sps:$4 sm:$0xff]  }
 0x787   :  { %11583 = vmatprep.subr.bf16.mxu0 %v19891_v1  ;;  %v19966_v1 = vld [vmem:[#allocation17 + $0xac] ss:$16 sps:$4 sm:$0xff]  }
 0x789   :  { %10644 = vmatpush1.bf16.msra.mxu1 %v19886_v14  ;;  %v19969_v14 = vld [vmem:[#allocation17 + $0x6e4] ss:$16 sps:$4 sm:$0xff]  }
 0x78a   :  { %10645 = vmatprep.subr.bf16.mxu1 %v19894_v55  ;;  %11584 = vmatpush1.bf16.msra.mxu0 %v19889_v35  ;;  %v19964_v35 = vld [vmem:[#allocation17 + $0xa8] ss:$16 sps:$4 sm:$0xff]   ;;  %v19967_v55 = vld [vmem:[#allocation17 + $0x6e0] ss:$16 sps:$4 sm:$0xff]  }
 0x78b   :  { %11585 = vmatprep.subr.bf16.mxu0 %v19897_v39  ;;  %v19972_v39 = vld [vmem:[#allocation17 + $0xcc] ss:$16 sps:$4 sm:$0xff]  }
 0x78d   :  { %10646 = vmatpush1.bf16.msra.mxu1 %v19892_v63  ;;  %v19975_v63 = vld [vmem:[#allocation17 + $0x704] ss:$16 sps:$4 sm:$0xff]  }
 0x78e   :  { %10647 = vmatprep.subr.bf16.mxu1 %v19900_v40  ;;  %11586 = vmatpush1.bf16.msra.mxu0 %v19895_v12  ;;  %v19970_v12 = vld [vmem:[#allocation17 + $0xc8] ss:$16 sps:$4 sm:$0xff]   ;;  %v19973_v40 = vld [vmem:[#allocation17 + $0x700] ss:$16 sps:$4 sm:$0xff]  }
 0x78f   :  { %11587 = vmatprep.subr.bf16.mxu0 %v19903_v61  ;;  %v19978_v61 = vld [vmem:[#allocation17 + $0xec] ss:$16 sps:$4 sm:$0xff]  }
 0x791   :  { %10648 = vmatpush1.bf16.msra.mxu1 %v19898_v56  ;;  %v19981_v56 = vld [vmem:[#allocation17 + $0x724] ss:$16 sps:$4 sm:$0xff]  }
 0x792   :  { %10649 = vmatprep.subr.bf16.mxu1 %v19906_v17  ;;  %11588 = vmatpush1.bf16.msra.mxu0 %v19901_v6  ;;  %v19976_v6 = vld [vmem:[#allocation17 + $0xe8] ss:$16 sps:$4 sm:$0xff]   ;;  %v19979_v17 = vld [vmem:[#allocation17 + $0x720] ss:$16 sps:$4 sm:$0xff]  }
 0x793   :  { %11589 = vmatprep.subr.bf16.mxu0 %v19909_v2  ;;  %v19984_v2 = vld [vmem:[#allocation17 + $0x10c] ss:$16 sps:$4 sm:$0xff]  }
 0x795   :  { %10650 = vmatpush1.bf16.msra.mxu1 %v19904_v52  ;;  %v19987_v52 = vld [vmem:[#allocation17 + $0x744] ss:$16 sps:$4 sm:$0xff]  }
 0x796   :  { %10651 = vmatprep.subr.bf16.mxu1 %v19912_v16  ;;  %11590 = vmatpush1.bf16.msra.mxu0 %v19907_v13  ;;  %v19982_v13 = vld [vmem:[#allocation17 + $0x108] ss:$16 sps:$4 sm:$0xff]   ;;  %v19985_v16 = vld [vmem:[#allocation17 + $0x740] ss:$16 sps:$4 sm:$0xff]  }
 0x797   :  { %11591 = vmatprep.subr.bf16.mxu0 %v19915_v23  ;;  %v19990_v23 = vld [vmem:[#allocation17 + $0x12c] ss:$16 sps:$4 sm:$0xff]  }
 0x799   :  { %10652 = vmatpush1.bf16.msra.mxu1 %v19910_v42  ;;  %v19993_v42 = vld [vmem:[#allocation17 + $0x764] ss:$16 sps:$4 sm:$0xff]  }
 0x79a   :  { %10653 = vmatprep.subr.bf16.mxu1 %v19918_v18  ;;  %11592 = vmatpush1.bf16.msra.mxu0 %v19913_v45  ;;  %v19988_v45 = vld [vmem:[#allocation17 + $0x128] ss:$16 sps:$4 sm:$0xff]   ;;  %v19991_v18 = vld [vmem:[#allocation17 + $0x760] ss:$16 sps:$4 sm:$0xff]  }
 0x79b   :  { %11593 = vmatprep.subr.bf16.mxu0 %v19921_v54  ;;  %v19996_v54 = vld [vmem:[#allocation17 + $0x14c] ss:$16 sps:$4 sm:$0xff]  }
 0x79d   :  { %10654 = vmatpush1.bf16.msra.mxu1 %v19916_v57  ;;  %v19999_v57 = vld [vmem:[#allocation17 + $0x784] ss:$16 sps:$4 sm:$0xff]  }
 0x79e   :  { %10655 = vmatprep.subr.bf16.mxu1 %v19924_v43  ;;  %11594 = vmatpush1.bf16.msra.mxu0 %v19919_v28  ;;  %v19994_v28 = vld [vmem:[#allocation17 + $0x148] ss:$16 sps:$4 sm:$0xff]   ;;  %v19997_v43 = vld [vmem:[#allocation17 + $0x780] ss:$16 sps:$4 sm:$0xff]  }
 0x79f   :  { %12104 = vmatprep.subr.bf16.mxu0 %v19927_v44  ;;  %v20002_v44 = vld [vmem:[#allocation17 + $0x16c] ss:$16 sps:$4 sm:$0xff]  }
 0x7a1   :  { %10656 = vmatpush1.bf16.msra.mxu1 %v19922_v20  ;;  %11596 = vmatmul.mubr.bf16.vlgmr.msra.gmra.mrb[52].mxu0 %v23499_v8  ;;  %v20005_v20 = vld [vmem:[#allocation17 + $0x7a4] ss:$16 sps:$4 sm:$0xff]  }
 0x7a2   :  { %10657 = vmatprep.subr.bf16.mxu1 %v19930_v3  ;;  %12105 = vmatpush1.bf16.msra.mxu0 %v19925_v48  ;;  %v20000_v48 = vld [vmem:[#allocation17 + $0x168] ss:$16 sps:$4 sm:$0xff]   ;;  %v20003_v3 = vld [vmem:[#allocation17 + $0x7a0] ss:$16 sps:$4 sm:$0xff]  }
 0x7a3   :  { %12136 = vmatprep.mubr.bf16.mxu0 %v23517_v32  ;;  %12106 = vmatprep.subr.bf16.mxu0 %v19933_v19  ;;  %v20008_v19 = vld [vmem:[#allocation17 + $0x18c] ss:$16 sps:$4 sm:$0xff]  }
 0x7a5   :  { %10658 = vmatpush1.bf16.msra.mxu1 %v19928_v31  ;;  %v20011_v31 = vld [vmem:[#allocation17 + $0x7c4] ss:$16 sps:$4 sm:$0xff]  }
 0x7a6   :  { %11063 = vmatprep.subr.bf16.mxu1 %v19936_v33  ;;  %12107 = vmatpush1.bf16.msra.mxu0 %v19931_v27  ;;  %v20006_v27 = vld [vmem:[#allocation17 + $0x188] ss:$16 sps:$4 sm:$0xff]   ;;  %v20009_v33 = vld [vmem:[#allocation17 + $0x7c0] ss:$16 sps:$4 sm:$0xff]  }
 0x7a7   :  { %12108 = vmatprep.subr.bf16.mxu0 %v19939_v62  ;;  %v20014_v62 = vld [vmem:[#allocation17 + $0x1ac] ss:$16 sps:$4 sm:$0xff]  }
 0x7a8   :  { %10660 = vmatmul.mubr.bf16.vlgmr.msra.gmra.mrb[44].mxu1 %v23512_v59  ;;  %v19952_v59 = vld [vmem:[#allocation17 + $0x68] ss:$16 sps:$4 sm:$0xff]  }
 0x7a9   :  { %11064 = vmatpush1.bf16.msra.mxu1 %v19934_v5  ;;  %11095 = vmatprep.mubr.bf16.mxu1 %v23491_v60  ;;  %v19955_v60 = vld [vmem:[#allocation17 + $0x6a0] ss:$16 sps:$4 sm:$0xff]   ;;  %v20017_v5 = vld [vmem:[#allocation17 + $0x7e4] ss:$16 sps:$4 sm:$0xff]  }
 0x7aa   :  { %11065 = vmatprep.subr.bf16.mxu1 %v19942_v26  ;;  %12109 = vmatpush1.bf16.msra.mxu0 %v19937_v9  ;;  %v20012_v9 = vld [vmem:[#allocation17 + $0x1a8] ss:$16 sps:$4 sm:$0xff]   ;;  %v20015_v26 = vld [vmem:[#allocation17 + $0x7e0] ss:$16 sps:$4 sm:$0xff]  }
 0x7ab   :  { %12110 = vmatprep.subr.bf16.mxu0 %v19945_v36  ;;  %v20020_v36 = vld [vmem:[#allocation17 + $0x1cc] ss:$16 sps:$4 sm:$0xff]  }
 0x7ad   :  { %11066 = vmatpush1.bf16.msra.mxu1 %v19940_v11  ;;  %v20023_v11 = vld [vmem:[#allocation17 + $0x804] ss:$16 sps:$4 sm:$0xff]  }
 0x7ae   :  { %11067 = vmatprep.subr.bf16.mxu1 %v19948_v21  ;;  %12111 = vmatpush1.bf16.msra.mxu0 %v19943_v4  ;;  %v20018_v4 = vld [vmem:[#allocation17 + $0x1c8] ss:$16 sps:$4 sm:$0xff]   ;;  %v20021_v21 = vld [vmem:[#allocation17 + $0x800] ss:$16 sps:$4 sm:$0xff]  }
 0x7af   :  { %12112 = vmatprep.subr.bf16.mxu0 %v19951_v22  ;;  %v20026_v22 = vld [vmem:[#allocation17 + $0x1ec] ss:$16 sps:$4 sm:$0xff]  }
 0x7b1   :  { %11068 = vmatpush1.bf16.msra.mxu1 %v19946_v34  ;;  %v20029_v34 = vld [vmem:[#allocation17 + $0x824] ss:$16 sps:$4 sm:$0xff]  }
 0x7b2   :  { %11069 = vmatprep.subr.bf16.mxu1 %v19954_v7  ;;  %12113 = vmatpush1.bf16.msra.mxu0 %v19949_v15  ;;  %v20024_v15 = vld [vmem:[#allocation17 + $0x1e8] ss:$16 sps:$4 sm:$0xff]   ;;  %v20027_v7 = vld [vmem:[#allocation17 + $0x820] ss:$16 sps:$4 sm:$0xff]  }
 0x7b3   :  { %12114 = vmatprep.subr.bf16.mxu0 %v19957_v50  ;;  %v20032_v50 = vld [vmem:[#allocation17 + $0x40c] ss:$16 sps:$4 sm:$0xff]  }
 0x7b5   :  { %11070 = vmatpush1.bf16.msra.mxu1 %v19952_v59  ;;  %v20035_v59 = vld [vmem:[#allocation17 + $0x844] ss:$16 sps:$4 sm:$0xff]  }
 0x7b6   :  { %11071 = vmatprep.subr.bf16.mxu1 %v19960_v38  ;;  %12115 = vmatpush1.bf16.msra.mxu0 %v19955_v60  ;;  %v20030_v60 = vld [vmem:[#allocation17 + $0x408] ss:$16 sps:$4 sm:$0xff]   ;;  %v20033_v38 = vld [vmem:[#allocation17 + $0x840] ss:$16 sps:$4 sm:$0xff]  }
 0x7b7   :  { %12116 = vmatprep.subr.bf16.mxu0 %v19963_v10  ;;  %v20038_v10 = vld [vmem:[#allocation17 + $0x42c] ss:$16 sps:$4 sm:$0xff]  }
 0x7b9   :  { %11072 = vmatpush1.bf16.msra.mxu1 %v19958_v47  ;;  %v20041_v47 = vld [vmem:[#allocation17 + $0x864] ss:$16 sps:$4 sm:$0xff]  }
 0x7ba   :  { %11073 = vmatprep.subr.bf16.mxu1 %v19966_v1  ;;  %12117 = vmatpush1.bf16.msra.mxu0 %v19961_v37  ;;  %v20036_v37 = vld [vmem:[#allocation17 + $0x428] ss:$16 sps:$4 sm:$0xff]   ;;  %v20039_v1 = vld [vmem:[#allocation17 + $0x860] ss:$16 sps:$4 sm:$0xff]  }
 0x7bb   :  { %12118 = vmatprep.subr.bf16.mxu0 %v19969_v14  ;;  %v20044_v14 = vld [vmem:[#allocation17 + $0x44c] ss:$16 sps:$4 sm:$0xff]  }
 0x7bd   :  { %11074 = vmatpush1.bf16.msra.mxu1 %v19964_v35  ;;  %v20047_v35 = vld [vmem:[#allocation17 + $0x884] ss:$16 sps:$4 sm:$0xff]  }
 0x7be   :  { %11075 = vmatprep.subr.bf16.mxu1 %v19972_v39  ;;  %12119 = vmatpush1.bf16.msra.mxu0 %v19967_v55  ;;  %v20042_v55 = vld [vmem:[#allocation17 + $0x448] ss:$16 sps:$4 sm:$0xff]   ;;  %v20045_v39 = vld [vmem:[#allocation17 + $0x880] ss:$16 sps:$4 sm:$0xff]  }
 0x7bf   :  { %12120 = vmatprep.subr.bf16.mxu0 %v19975_v63  ;;  %v20050_v63 = vld [vmem:[#allocation17 + $0x46c] ss:$16 sps:$4 sm:$0xff]  }
 0x7c1   :  { %11076 = vmatpush1.bf16.msra.mxu1 %v19970_v12  ;;  %v20053_v12 = vld [vmem:[#allocation17 + $0x8a4] ss:$16 sps:$4 sm:$0xff]  }
 0x7c2   :  { %11077 = vmatprep.subr.bf16.mxu1 %v19978_v61  ;;  %12121 = vmatpush1.bf16.msra.mxu0 %v19973_v40  ;;  %v20056_v40 = vld [vmem:[#allocation17 + $0x48c] ss:$16 sps:$4 sm:$0xff]   ;;  %v20059_v61 = vld [vmem:[#allocation17 + $0x8c4] ss:$16 sps:$4 sm:$0xff]  }
 0x7c3   :  { %12122 = vmatprep.subr.bf16.mxu0 %v19981_v56  ;;  %v20054_v56 = vld [vmem:[#allocation17 + $0x488] ss:$16 sps:$4 sm:$0xff]  }
 0x7c5   :  { %11078 = vmatpush1.bf16.msra.mxu1 %v19976_v6  ;;  %v20057_v6 = vld [vmem:[#allocation17 + $0x8c0] ss:$16 sps:$4 sm:$0xff]  }
 0x7c6   :  { %11079 = vmatprep.subr.bf16.mxu1 %v19984_v2  ;;  %12123 = vmatpush1.bf16.msra.mxu0 %v19979_v17  ;;  %v20062_v17 = vld [vmem:[#allocation17 + $0x4ac] ss:$16 sps:$4 sm:$0xff]   ;;  %v20065_v2 = vld [vmem:[#allocation17 + $0x8e4] ss:$16 sps:$4 sm:$0xff]  }
 0x7c7   :  { %12124 = vmatprep.subr.bf16.mxu0 %v19987_v52  ;;  %v20060_v52 = vld [vmem:[#allocation17 + $0x4a8] ss:$16 sps:$4 sm:$0xff]  }
 0x7c9   :  { %11080 = vmatpush1.bf16.msra.mxu1 %v19982_v13  ;;  %v20063_v13 = vld [vmem:[#allocation17 + $0x8e0] ss:$16 sps:$4 sm:$0xff]  }
 0x7ca   :  { %11081 = vmatprep.subr.bf16.mxu1 %v19990_v23  ;;  %12125 = vmatpush1.bf16.msra.mxu0 %v19985_v16  ;;  %v20068_v16 = vld [vmem:[#allocation17 + $0x4cc] ss:$16 sps:$4 sm:$0xff]   ;;  %v20071_v23 = vld [vmem:[#allocation17 + $0x904] ss:$16 sps:$4 sm:$0xff]  }
 0x7cb   :  { %12126 = vmatprep.subr.bf16.mxu0 %v19993_v42  ;;  %v20066_v42 = vld [vmem:[#allocation17 + $0x4c8] ss:$16 sps:$4 sm:$0xff]  }
 0x7cd   :  { %11082 = vmatpush1.bf16.msra.mxu1 %v19988_v45  ;;  %v20069_v45 = vld [vmem:[#allocation17 + $0x900] ss:$16 sps:$4 sm:$0xff]  }
 0x7ce   :  { %11083 = vmatprep.subr.bf16.mxu1 %v19996_v54  ;;  %12127 = vmatpush1.bf16.msra.mxu0 %v19991_v18  ;;  %v20074_v18 = vld [vmem:[#allocation17 + $0x4ec] ss:$16 sps:$4 sm:$0xff]   ;;  %v20077_v54 = vld [vmem:[#allocation17 + $0x924] ss:$16 sps:$4 sm:$0xff]  }
 0x7cf   :  { %12128 = vmatprep.subr.bf16.mxu0 %v19999_v57  ;;  %v20072_v57 = vld [vmem:[#allocation17 + $0x4e8] ss:$16 sps:$4 sm:$0xff]  }
 0x7d1   :  { %11084 = vmatpush1.bf16.msra.mxu1 %v19994_v28  ;;  %v20075_v28 = vld [vmem:[#allocation17 + $0x920] ss:$16 sps:$4 sm:$0xff]  }
 0x7d2   :  { %11085 = vmatprep.subr.bf16.mxu1 %v20002_v44  ;;  %12129 = vmatpush1.bf16.msra.mxu0 %v19997_v43  ;;  %v20080_v43 = vld [vmem:[#allocation17 + $0x50c] ss:$16 sps:$4 sm:$0xff]   ;;  %v20083_v44 = vld [vmem:[#allocation17 + $0x944] ss:$16 sps:$4 sm:$0xff]  }
 0x7d3   :  { %12130 = vmatprep.subr.bf16.mxu0 %v20005_v20  ;;  %v20078_v20 = vld [vmem:[#allocation17 + $0x508] ss:$16 sps:$4 sm:$0xff]  }
 0x7d5   :  { %11086 = vmatpush1.bf16.msra.mxu1 %v20000_v48  ;;  %v20081_v48 = vld [vmem:[#allocation17 + $0x940] ss:$16 sps:$4 sm:$0xff]  }
 0x7d6   :  { %11087 = vmatprep.subr.bf16.mxu1 %v20008_v19  ;;  %12131 = vmatpush1.bf16.msra.mxu0 %v20003_v3  ;;  %v20086_v3 = vld [vmem:[#allocation17 + $0x52c] ss:$16 sps:$4 sm:$0xff]   ;;  %v20089_v19 = vld [vmem:[#allocation17 + $0x964] ss:$16 sps:$4 sm:$0xff]  }
 0x7d7   :  { %12132 = vmatprep.subr.bf16.mxu0 %v20011_v31  ;;  %v20084_v31 = vld [vmem:[#allocation17 + $0x528] ss:$16 sps:$4 sm:$0xff]  }
 0x7d9   :  { %11088 = vmatpush1.bf16.msra.mxu1 %v20006_v27  ;;  %v20087_v27 = vld [vmem:[#allocation17 + $0x960] ss:$16 sps:$4 sm:$0xff]  }
 0x7da   :  { %11089 = vmatprep.subr.bf16.mxu1 %v20014_v62  ;;  %12133 = vmatpush1.bf16.msra.mxu0 %v20009_v33  ;;  %v20092_v33 = vld [vmem:[#allocation17 + $0x54c] ss:$16 sps:$4 sm:$0xff]   ;;  %v20095_v62 = vld [vmem:[#allocation17 + $0x984] ss:$16 sps:$4 sm:$0xff]  }
 0x7db   :  { %12134 = vmatprep.subr.bf16.mxu0 %v20017_v5  ;;  %v20090_v5 = vld [vmem:[#allocation17 + $0x548] ss:$16 sps:$4 sm:$0xff]  }
 0x7dd   :  { %11090 = vmatpush1.bf16.msra.mxu1 %v20012_v9  ;;  %v20093_v9 = vld [vmem:[#allocation17 + $0x980] ss:$16 sps:$4 sm:$0xff]  }
 0x7de   :  { %11091 = vmatprep.subr.bf16.mxu1 %v20020_v36  ;;  %12135 = vmatpush1.bf16.msra.mxu0 %v20015_v26  ;;  %v20098_v26 = vld [vmem:[#allocation17 + $0x56c] ss:$16 sps:$4 sm:$0xff]   ;;  %v20101_v36 = vld [vmem:[#allocation17 + $0x9a4] ss:$16 sps:$4 sm:$0xff]  }
 0x7df   :  { %12685 = vmatprep.subr.bf16.mxu0 %v20023_v11  ;;  %v20096_v11 = vld [vmem:[#allocation17 + $0x568] ss:$16 sps:$4 sm:$0xff]  }
 0x7e1   :  { %11092 = vmatpush1.bf16.msra.mxu1 %v20018_v4  ;;  %12137 = vmatmul.mubr.bf16.vlgmr.msra.gmra.mrb[56].mxu0 %v23520_v51  ;;  %v18054_v4 = vld.sshfl [vmem:[#allocation4 + $0x18] sm:$0x30 pattern:$0x75316420] }
 0x7e2   :  { %11093 = vmatprep.subr.bf16.mxu1 %v20026_v22  ;;  %12686 = vmatpush1.bf16.msra.mxu0 %v20021_v21  ;;  %v20099_v21 = vld [vmem:[#allocation17 + $0x9a0] ss:$16 sps:$4 sm:$0xff]   ;;  %v20104_v22 = vld [vmem:[#allocation17 + $0x58c] ss:$16 sps:$4 sm:$0xff]  }
 0x7e3   :  { %12717 = vmatprep.mubr.bf16.mxu0 %v23531_v29  ;;  %12687 = vmatprep.subr.bf16.mxu0 %v20029_v34  ;;  %v20107_v34 = vld [vmem:[#allocation17 + $0x9c4] ss:$16 sps:$4 sm:$0xff]  }
 0x7e5   :  { %11094 = vmatpush1.bf16.msra.mxu1 %v20024_v15  ;;  %v18052_v15 = vld.sshfl [vmem:[#allocation4 + $0x8] sm:$0x30 pattern:$0x75316420] }
 0x7e6   :  { %11604 = vmatprep.subr.bf16.mxu1 %v20032_v50  ;;  %12688 = vmatpush1.bf16.msra.mxu0 %v20027_v7  ;;  %v18053_v7 = vld.sshfl [vmem:[#allocation4 + $0x14] sm:$0x30 pattern:$0x75316420]  ;;  %v20102_v50 = vld [vmem:[#allocation17 + $0x588] ss:$16 sps:$4 sm:$0xff]  }
 0x7e7   :  { %12689 = vmatprep.subr.bf16.mxu0 %v20035_v59  ;;  %v18051_v59 = vld.sshfl [vmem:[#allocation4 + $0x4] sm:$0x30 pattern:$0x75316420] }
 0x7e8   :  { %11096 = vmatmul.mubr.bf16.vlgmr.msra.gmra.mrb[48].mxu1 %v23494_v53  ;;  %v20048_v53 = vld [vmem:[#allocation17 + $0x468] ss:$16 sps:$4 sm:$0xff]  }
 0x7e9   :  { %11605 = vmatpush1.bf16.msra.mxu1 %v20030_v60  ;;  %11636 = vmatprep.mubr.bf16.mxu1 %v23503_v58  ;;  %v20051_v58 = vld [vmem:[#allocation17 + $0x8a0] ss:$16 sps:$4 sm:$0xff]   ;;  %v18056_v60 = vcombine.high %v18053_v7, %v18054_v4  ;;  %v20164_v4 = vld [vmem:[#allocation17 + $0x6cc] ss:$16 sps:$4 sm:$0xff]  }
 0x7ea   :  { %11606 = vmatprep.subr.bf16.mxu1 %v20038_v10  ;;  %12690 = vmatpush1.bf16.msra.mxu0 %v20033_v38  ;;  %v20105_v38 = vld [vmem:[#allocation17 + $0x9c0] ss:$16 sps:$4 sm:$0xff]   ;;  %v20110_v10 = vld [vmem:[#allocation17 + $0x5ac] ss:$16 sps:$4 sm:$0xff]  }
 0x7eb   :  { %12691 = vmatprep.subr.bf16.mxu0 %v20041_v47  ;;  %v20113_v47 = vld [vmem:[#allocation17 + $0x9e4] ss:$16 sps:$4 sm:$0xff]  }
 0x7ed   :  { %11607 = vmatpush1.bf16.msra.mxu1 %v20036_v37  ;;  %v18055_v37 = vcombine.high %v18051_v59, %v18052_v15  ;;  %v20162_v59 = vld [vmem:[#allocation17 + $0x6c8] ss:$16 sps:$4 sm:$0xff]  }
 0x7ee   :  { %11608 = vmatprep.subr.bf16.mxu1 %v20044_v14  ;;  %12692 = vmatpush1.bf16.msra.mxu0 %v20039_v1  ;;  %v20108_v1 = vld [vmem:[#allocation17 + $0x5a8] ss:$16 sps:$4 sm:$0xff]   ;;  %v23545_v14 = vrot.slane %v18056_v60, %v23461_v41 }
 0x7ef   :  { %12693 = vmatprep.subr.bf16.mxu0 %v20047_v35  ;;  %v20111_v35 = vld [vmem:[#allocation17 + $0x9e0] ss:$16 sps:$4 sm:$0xff]  }
 0x7f1   :  { %11609 = vmatpush1.bf16.msra.mxu1 %v20042_v55  ;;  %v20116_v55 = vld [vmem:[#allocation17 + $0x5cc] ss:$16 sps:$4 sm:$0xff]  }
 0x7f2   :  { %11610 = vmatprep.subr.bf16.mxu1 %v20050_v63  ;;  %12694 = vmatpush1.bf16.msra.mxu0 %v20045_v39  ;;  %v20119_v39 = vld [vmem:[#allocation17 + $0xa04] ss:$16 sps:$4 sm:$0xff]   ;;  %v23548_v63 = vrot.slane %v18055_v37, %v23461_v41  ;;  %v20168_v37 = vld [vmem:[#allocation17 + $0x6e8] ss:$16 sps:$4 sm:$0xff]  }
 0x7f3   :  { %12695 = vmatprep.subr.bf16.mxu0 %v20053_v12  ;;  %v20114_v12 = vld [vmem:[#allocation17 + $0x5c8] ss:$16 sps:$4 sm:$0xff]  }
 0x7f5   :  { %11611 = vmatpush1.bf16.msra.mxu1 %v20048_v53  ;;  %v12893_v53 = vcombine.high %v23548_v63, %v23545_v14 }
 0x7f6   :  { %11612 = vmatprep.subr.bf16.mxu1 %v20056_v40  ;;  %12696 = vmatpush1.bf16.msra.mxu0 %v20051_v58  ;;  %v20117_v58 = vld [vmem:[#allocation17 + $0xa00] ss:$16 sps:$4 sm:$0xff]   ;;  %v20122_v40 = vld [vmem:[#allocation17 + $0x5ec] ss:$16 sps:$4 sm:$0xff]  }
 0x7f7   :  { %12697 = vmatprep.subr.bf16.mxu0 %v20059_v61  ;;  %v20125_v61 = vld [vmem:[#allocation17 + $0xa24] ss:$16 sps:$4 sm:$0xff]  }
 0x7f9   :  { %11613 = vmatpush1.bf16.msra.mxu1 %v20054_v56  ;;  %v20120_v56 = vld [vmem:[#allocation17 + $0x5e8] ss:$16 sps:$4 sm:$0xff]  }
 0x7fa   :  { %11614 = vmatprep.subr.bf16.mxu1 %v20062_v17  ;;  %12698 = vmatpush1.bf16.msra.mxu0 %v20057_v6  ;;  %v23554_v6 = vrot.slane %v12893_v53, %v23461_v41  ;;  %v20123_v17 = vld [vmem:[#allocation17 + $0xa20] ss:$16 sps:$4 sm:$0xff]   ;;  %v20182_v53 = vld [vmem:[#allocation17 + $0x72c] ss:$16 sps:$4 sm:$0xff]  }
 0x7fb   :  { %12699 = vmatprep.subr.bf16.mxu0 %v20065_v2  ;;  %v20128_v2 = vld [vmem:[#allocation17 + $0x60c] ss:$16 sps:$4 sm:$0xff]  }
 0x7fd   :  { %11615 = vmatpush1.bf16.msra.mxu1 %v20060_v52  ;;  %v20131_v52 = vld [vmem:[#allocation17 + $0xa44] ss:$16 sps:$4 sm:$0xff]  }
 0x7fe   :  { %11616 = vmatprep.subr.bf16.mxu1 %v20068_v16  ;;  %12700 = vmatpush1.bf16.msra.mxu0 %v20063_v13  ;;  %v20126_v13 = vld [vmem:[#allocation17 + $0x608] ss:$16 sps:$4 sm:$0xff]   ;;  %v20129_v16 = vld [vmem:[#allocation17 + $0xa40] ss:$16 sps:$4 sm:$0xff]  }
 0x7ff   :  { %12701 = vmatprep.subr.bf16.mxu0 %v20071_v23  ;;  %v20134_v23 = vld [vmem:[#allocation17 + $0x62c] ss:$16 sps:$4 sm:$0xff]  }
 0x801   :  { %11617 = vmatpush1.bf16.msra.mxu1 %v20066_v42  ;;  %v20137_v42 = vld [vmem:[#allocation17 + $0xa64] ss:$16 sps:$4 sm:$0xff]  }
 0x802   :  { %11618 = vmatprep.subr.bf16.mxu1 %v20074_v18  ;;  %12702 = vmatpush1.bf16.msra.mxu0 %v20069_v45  ;;  %v20132_v45 = vld [vmem:[#allocation17 + $0x628] ss:$16 sps:$4 sm:$0xff]   ;;  %v20135_v18 = vld [vmem:[#allocation17 + $0xa60] ss:$16 sps:$4 sm:$0xff]  }
 0x803   :  { %12703 = vmatprep.subr.bf16.mxu0 %v20077_v54  ;;  %v20140_v54 = vld [vmem:[#allocation17 + $0x64c] ss:$16 sps:$4 sm:$0xff]  }
 0x805   :  { %11619 = vmatpush1.bf16.msra.mxu1 %v20072_v57  ;;  %v20143_v57 = vld [vmem:[#allocation17 + $0xa84] ss:$16 sps:$4 sm:$0xff]  }
 0x806   :  { %11620 = vmatprep.subr.bf16.mxu1 %v20080_v43  ;;  %12704 = vmatpush1.bf16.msra.mxu0 %v20075_v28  ;;  %v20138_v28 = vld [vmem:[#allocation17 + $0x648] ss:$16 sps:$4 sm:$0xff]   ;;  %v20141_v43 = vld [vmem:[#allocation17 + $0xa80] ss:$16 sps:$4 sm:$0xff]  }
 0x807   :  { %12705 = vmatprep.subr.bf16.mxu0 %v20083_v44  ;;  %v20146_v44 = vld [vmem:[#allocation17 + $0x66c] ss:$16 sps:$4 sm:$0xff]  }
 0x809   :  { %11621 = vmatpush1.bf16.msra.mxu1 %v20078_v20  ;;  %v20149_v20 = vld [vmem:[#allocation17 + $0xaa4] ss:$16 sps:$4 sm:$0xff]  }
 0x80a   :  { %11622 = vmatprep.subr.bf16.mxu1 %v20086_v3  ;;  %12706 = vmatpush1.bf16.msra.mxu0 %v20081_v48  ;;  %v20152_v48 = vld [vmem:[#allocation17 + $0x68c] ss:$16 sps:$4 sm:$0xff]   ;;  %v20155_v3 = vld [vmem:[#allocation17 + $0xac4] ss:$16 sps:$4 sm:$0xff]  }
 0x80b   :  { %12707 = vmatprep.subr.bf16.mxu0 %v20089_v19 }
 0x80d   :  { %11623 = vmatpush1.bf16.msra.mxu1 %v20084_v31 }
 0x80e   :  { %11624 = vmatprep.subr.bf16.mxu1 %v20092_v33  ;;  %12708 = vmatpush1.bf16.msra.mxu0 %v20087_v27  ;;  %v20150_v27 = vld [vmem:[#allocation17 + $0x688] ss:$16 sps:$4 sm:$0xff]  }
 0x80f   :  { %12709 = vmatprep.subr.bf16.mxu0 %v20095_v62  ;;  %v20153_v62 = vld [vmem:[#allocation17 + $0xac0] ss:$16 sps:$4 sm:$0xff]  }
 0x811   :  { %11625 = vmatpush1.bf16.msra.mxu1 %v20090_v5  ;;  %v20158_v5 = vld [vmem:[#allocation17 + $0x6ac] ss:$16 sps:$4 sm:$0xff]  }
 0x812   :  { %11626 = vmatprep.subr.bf16.mxu1 %v20098_v26  ;;  %12710 = vmatpush1.bf16.msra.mxu0 %v20093_v9  ;;  %v20161_v26 = vld [vmem:[#allocation17 + $0xae4] ss:$16 sps:$4 sm:$0xff]  }
 0x813   :  { %12711 = vmatprep.subr.bf16.mxu0 %v20101_v36  ;;  %v20156_v36 = vld [vmem:[#allocation17 + $0x6a8] ss:$16 sps:$4 sm:$0xff]  }
 0x815   :  { %11627 = vmatpush1.bf16.msra.mxu1 %v20096_v11  ;;  %v20159_v11 = vld [vmem:[#allocation17 + $0xae0] ss:$16 sps:$4 sm:$0xff]  }
 0x816   :  { %11628 = vmatprep.subr.bf16.mxu1 %v20104_v22  ;;  %12712 = vmatpush1.bf16.msra.mxu0 %v20099_v21  ;;  %v20167_v22 = vld [vmem:[#allocation17 + $0xb04] ss:$16 sps:$4 sm:$0xff]  }
 0x817   :  { %12713 = vmatprep.subr.bf16.mxu0 %v20107_v34 }
 0x819   :  { %11629 = vmatpush1.bf16.msra.mxu1 %v20102_v50 }
 0x81a   :  { %11630 = vmatprep.subr.bf16.mxu1 %v20110_v10  ;;  %12714 = vmatpush1.bf16.msra.mxu0 %v20105_v38  ;;  %v20165_v38 = vld [vmem:[#allocation17 + $0xb00] ss:$16 sps:$4 sm:$0xff]   ;;  %v20170_v10 = vld [vmem:[#allocation17 + $0x6ec] ss:$16 sps:$4 sm:$0xff]  }
 0x81b   :  { %12715 = vmatprep.subr.bf16.mxu0 %v20113_v47  ;;  %v20173_v47 = vld [vmem:[#allocation17 + $0xb24] ss:$16 sps:$4 sm:$0xff]  }
 0x81d   :  { %11631 = vmatpush1.bf16.msra.mxu1 %v20108_v1  ;;  %v20171_v1 = vld [vmem:[#allocation17 + $0xb20] ss:$16 sps:$4 sm:$0xff]  }
 0x81e   :  { %11632 = vmatprep.subr.bf16.mxu1 %v20116_v55  ;;  %12716 = vmatpush1.bf16.msra.mxu0 %v20111_v35  ;;  %v20176_v35 = vld [vmem:[#allocation17 + $0x70c] ss:$16 sps:$4 sm:$0xff]   ;;  %v20179_v55 = vld [vmem:[#allocation17 + $0xb44] ss:$16 sps:$4 sm:$0xff]  }
 0x81f   :  { %13230 = vmatprep.subr.bf16.mxu0 %v20119_v39  ;;  %v20174_v39 = vld [vmem:[#allocation17 + $0x708] ss:$16 sps:$4 sm:$0xff]  }
 0x821   :  { %11633 = vmatpush1.bf16.msra.mxu1 %v20114_v12  ;;  %12718 = vmatmul.mubr.bf16.vlgmr.msra.gmra.mrb[60].mxu0 %v23534_v24  ;;  %v20177_v12 = vld [vmem:[#allocation17 + $0xb40] ss:$16 sps:$4 sm:$0xff]  }
 0x822   :  { %11634 = vmatprep.subr.bf16.mxu1 %v20122_v40  ;;  %13231 = vmatpush1.bf16.msra.mxu0 %v20117_v58  ;;  %v20185_v58 = vld [vmem:[#allocation17 + $0xb64] ss:$16 sps:$4 sm:$0xff]   ;;  %v20180_v40 = vld [vmem:[#allocation17 + $0x728] ss:$16 sps:$4 sm:$0xff]  }
 0x823   :  { %13262 = vmatprep.mubr.bf16.mxu0 %v23554_v6  ;;  %13232 = vmatprep.subr.bf16.mxu0 %v20125_v61  ;;  %v20183_v61 = vld [vmem:[#allocation17 + $0xb60] ss:$16 sps:$4 sm:$0xff]  }
 0x825   :  { %11635 = vmatpush1.bf16.msra.mxu1 %v20120_v56  ;;  %v20188_v56 = vld [vmem:[#allocation17 + $0x74c] ss:$16 sps:$4 sm:$0xff]  }
 0x826   :  { %12145 = vmatprep.subr.bf16.mxu1 %v20128_v2  ;;  %13233 = vmatpush1.bf16.msra.mxu0 %v20123_v17  ;;  %v20191_v17 = vld [vmem:[#allocation17 + $0xb84] ss:$16 sps:$4 sm:$0xff]   ;;  %v20186_v2 = vld [vmem:[#allocation17 + $0x748] ss:$16 sps:$4 sm:$0xff]  }
 0x827   :  { %13234 = vmatprep.subr.bf16.mxu0 %v20131_v52  ;;  %v20189_v52 = vld [vmem:[#allocation17 + $0xb80] ss:$16 sps:$4 sm:$0xff]  }
 0x828   :  { %11637 = vmatmul.mubr.bf16.vlgmr.msra.gmra.mrb[52].mxu1 %v23499_v8  ;;  %v20144_v8 = vld [vmem:[#allocation17 + $0x668] ss:$16 sps:$4 sm:$0xff]  }
 0x829   :  { %12146 = vmatpush1.bf16.msra.mxu1 %v20126_v13  ;;  %12177 = vmatprep.mubr.bf16.mxu1 %v23517_v32  ;;  %v20147_v32 = vld [vmem:[#allocation17 + $0xaa0] ss:$16 sps:$4 sm:$0xff]   ;;  %v20194_v13 = vld [vmem:[#allocation17 + $0x76c] ss:$16 sps:$4 sm:$0xff]  }
 0x82a   :  { %12147 = vmatprep.subr.bf16.mxu1 %v20134_v23  ;;  %13235 = vmatpush1.bf16.msra.mxu0 %v20129_v16  ;;  %v20197_v16 = vld [vmem:[#allocation17 + $0xba4] ss:$16 sps:$4 sm:$0xff]  }
 0x82b   :  { %13236 = vmatprep.subr.bf16.mxu0 %v20137_v42  ;;  %v18123_v23 = vld.sshfl [vmem:[#allocation4 + $0x18] sm:$0x3 pattern:$0x75316420]  ;;  %v20192_v42 = vld [vmem:[#allocation17 + $0x768] ss:$16 sps:$4 sm:$0xff]  }
 0x82d   :  { %12148 = vmatpush1.bf16.msra.mxu1 %v20132_v45  ;;  %v18124_v45 = vld.sshfl [vmem:[#allocation4 + $0x1c] sm:$0x3 pattern:$0x75316420] }
 0x82e   :  { %12149 = vmatprep.subr.bf16.mxu1 %v20140_v54  ;;  %13237 = vmatpush1.bf16.msra.mxu0 %v20135_v18  ;;  %v20195_v18 = vld [vmem:[#allocation17 + $0xba0] ss:$16 sps:$4 sm:$0xff]   ;;  %v20200_v54 = vld [vmem:[#allocation17 + $0x78c] ss:$16 sps:$4 sm:$0xff]  }
 0x82f   :  { %13238 = vmatprep.subr.bf16.mxu0 %v20143_v57  ;;  %v20203_v57 = vld [vmem:[#allocation17 + $0xbc4] ss:$16 sps:$4 sm:$0xff]  }
 0x831   :  { %12150 = vmatpush1.bf16.msra.mxu1 %v20138_v28  ;;  %v18121_v28 = vld.sshfl [vmem:[#allocation4 + $0x8] sm:$0x3 pattern:$0x75316420] }
 0x832   :  { %12151 = vmatprep.subr.bf16.mxu1 %v20146_v44  ;;  %13239 = vmatpush1.bf16.msra.mxu0 %v20141_v43  ;;  %v18122_v43 = vld.sshfl [vmem:[#allocation4 + $0xc] sm:$0x3 pattern:$0x75316420] }
 0x833   :  { %13240 = vmatprep.subr.bf16.mxu0 %v20149_v20  ;;  %v20198_v44 = vld [vmem:[#allocation17 + $0x788] ss:$16 sps:$4 sm:$0xff]   ;;  %v13419_v20 = vcombine.low %v18123_v23, %v18124_v45  ;;  %v20249_v23 = vld [vmem:[#allocation17 + $0xcc0] ss:$16 sps:$4 sm:$0xff]  }
 0x834   :  { %v11056_v19 = vpop.f32.mrb[48].mxu0 }
 0x835   :  { %12152 = vmatpush1.bf16.msra.mxu1 %v20144_v8  ;;  %v11058_v31 = vpop.f32.mrb[49].mxu0  ;;  %v20201_v8 = vld [vmem:[#allocation17 + $0xbc0] ss:$16 sps:$4 sm:$0xff]  }
 0x836   :  { %12153 = vmatprep.subr.bf16.mxu1 %v20152_v48  ;;  %13241 = vmatpush1.bf16.msra.mxu0 %v20147_v32  ;;  %v11060_v33 = vpop.f32.mrb[50].mxu0  ;;  %v20206_v32 = vld [vmem:[#allocation17 + $0x7ac] ss:$16 sps:$4 sm:$0xff]   ;;  %v20209_v48 = vld [vmem:[#allocation17 + $0xbe4] ss:$16 sps:$4 sm:$0xff]  }
 0x837   :  { %v11061_v9 = vpop.f32.mrb[51].mxu0  ;;  %13242 = vmatprep.subr.bf16.mxu0 %v20155_v3  ;;  %v13418_v3 = vcombine.low %v18121_v28, %v18122_v43  ;;  %v20212_v33 = vld [vmem:[#allocation17 + $0x7cc] ss:$16 sps:$4 sm:$0xff]   ;;  %v20263_v43 = vld [vmem:[#allocation17 + $0xd04] ss:$16 sps:$4 sm:$0xff]  }
 0x839   :  { %12154 = vmatpush1.bf16.msra.mxu1 %v20150_v27  ;;  %v20207_v27 = vld [vmem:[#allocation17 + $0xbe0] ss:$16 sps:$4 sm:$0xff]   ;;  %v23569_v9 = vrot.slane %v13418_v3, %v23461_v41  ;;  %v20269_v3 = vld [vmem:[#allocation17 + $0xd24] ss:$16 sps:$4 sm:$0xff]  }
 0x83a   :  { %12155 = vmatprep.subr.bf16.mxu1 %v20158_v5  ;;  %13243 = vmatpush1.bf16.msra.mxu0 %v20153_v62  ;;  %v12892_v62 = vcombine.low %v23548_v63, %v23545_v14  ;;  %v20215_v5 = vld [vmem:[#allocation17 + $0xc04] ss:$16 sps:$4 sm:$0xff]   ;;  %v20216_v14 = vld [vmem:[#allocation17 + $0x7e8] ss:$16 sps:$4 sm:$0xff]  }
 0x83b   :  { %v10620_v21 = vpop.f32.mrb[40].mxu1  ;;  %13244 = vmatprep.subr.bf16.mxu0 %v20161_v26  ;;  %v20210_v26 = vld [vmem:[#allocation17 + $0x7c8] ss:$16 sps:$4 sm:$0xff]  }
 0x83c   :  { %v23559_v34 = vadd.f32 %v11056_v19, %v10620_v21  ;;  %v10622_v15 = vpop.f32.mrb[41].mxu1  ;;  %v20204_v19 = vld [vmem:[#allocation17 + $0x7a8] ss:$16 sps:$4 sm:$0xff]   ;;  %v23574_v21 = vrot.slane %v12892_v62, %v23461_v41  ;;  %v20275_v62 = vld [vmem:[#allocation17 + $0xd44] ss:$16 sps:$4 sm:$0xff]  }
 0x83d   :  { %v23561_v7 = vadd.f32 %v11058_v31, %v10622_v15  ;;  %12156 = vmatpush1.bf16.msra.mxu1 %v20156_v36  ;;  %v10624_v50 = vpop.f32.mrb[42].mxu1  ;;  %v23564_v31 = vrot.slane %v13419_v20, %v23461_v41  ;;  %v20219_v15 = vld [vmem:[#allocation17 + $0xc20] ss:$16 sps:$4 sm:$0xff]   ;;  %v20258_v20 = vld [vmem:[#allocation17 + $0x8c8] ss:$16 sps:$4 sm:$0xff]  }
 0x83e   :  { %v10625_v60 = vpop.f32.mrb[43].mxu1  ;;  %12157 = vmatprep.subr.bf16.mxu1 %v20164_v4  ;;  %13245 = vmatpush1.bf16.msra.mxu0 %v20159_v11  ;;  %v20213_v11 = vld [vmem:[#allocation17 + $0xc00] ss:$16 sps:$4 sm:$0xff]   ;;  %v20218_v4 = vld [vmem:[#allocation17 + $0x7ec] ss:$16 sps:$4 sm:$0xff]  }
 0x83f   :  { %13246 = vmatprep.subr.bf16.mxu0 %v20167_v22  ;;  %v13435_v36 = vcombine.high %v23569_v9, %v23564_v31  ;;  %v20221_v22 = vld [vmem:[#allocation17 + $0xc24] ss:$16 sps:$4 sm:$0xff]   ;;  %v20224_v50 = vld [vmem:[#allocation17 + $0x80c] ss:$16 sps:$4 sm:$0xff]   ;;  %v20222_v60 = vld [vmem:[#allocation17 + $0x808] ss:$16 sps:$4 sm:$0xff]  }
 0x841   :  { %12158 = vmatpush1.bf16.msra.mxu1 %v20162_v59  ;;  %v23578_v63 = vrot.slane %v13435_v36, %v23461_v41  ;;  %v20227_v59 = vld [vmem:[#allocation17 + $0xc44] ss:$16 sps:$4 sm:$0xff]   ;;  %v20273_v36 = vld [vmem:[#allocation17 + $0xd40] ss:$16 sps:$4 sm:$0xff]  }
 0x842   :  { %12159 = vmatprep.subr.bf16.mxu1 %v20170_v10  ;;  %13247 = vmatpush1.bf16.msra.mxu0 %v20165_v38  ;;  %v20225_v38 = vld [vmem:[#allocation17 + $0xc40] ss:$16 sps:$4 sm:$0xff]   ;;  %v20230_v10 = vld [vmem:[#allocation17 + $0x82c] ss:$16 sps:$4 sm:$0xff]  }
 0x843   :  { %13248 = vmatprep.subr.bf16.mxu0 %v20173_v47  ;;  %v20233_v47 = vld [vmem:[#allocation17 + $0xc64] ss:$16 sps:$4 sm:$0xff]  }
 0x845   :  { %12160 = vmatpush1.bf16.msra.mxu1 %v20168_v37  ;;  %v20228_v37 = vld [vmem:[#allocation17 + $0x828] ss:$16 sps:$4 sm:$0xff]  }
 0x846   :  { %12161 = vmatprep.subr.bf16.mxu1 %v20176_v35  ;;  %13249 = vmatpush1.bf16.msra.mxu0 %v20171_v1  ;;  %v20231_v1 = vld [vmem:[#allocation17 + $0xc60] ss:$16 sps:$4 sm:$0xff]   ;;  %v20236_v35 = vld [vmem:[#allocation17 + $0x84c] ss:$16 sps:$4 sm:$0xff]  }
 0x847   :  { %13250 = vmatprep.subr.bf16.mxu0 %v20179_v55  ;;  %v20239_v55 = vld [vmem:[#allocation17 + $0xc84] ss:$16 sps:$4 sm:$0xff]  }
 0x849   :  { %12162 = vmatpush1.bf16.msra.mxu1 %v20174_v39  ;;  %v20234_v39 = vld [vmem:[#allocation17 + $0x848] ss:$16 sps:$4 sm:$0xff]  }
 0x84a   :  { %12163 = vmatprep.subr.bf16.mxu1 %v20182_v53  ;;  %13251 = vmatpush1.bf16.msra.mxu0 %v20177_v12  ;;  %v20237_v12 = vld [vmem:[#allocation17 + $0xc80] ss:$16 sps:$4 sm:$0xff]   ;;  %v20242_v53 = vld [vmem:[#allocation17 + $0x86c] ss:$16 sps:$4 sm:$0xff]  }
 0x84b   :  { %13252 = vmatprep.subr.bf16.mxu0 %v20185_v58  ;;  %v20245_v58 = vld [vmem:[#allocation17 + $0xca4] ss:$16 sps:$4 sm:$0xff]  }
 0x84d   :  { %12164 = vmatpush1.bf16.msra.mxu1 %v20180_v40  ;;  %v20248_v40 = vld [vmem:[#allocation17 + $0x88c] ss:$16 sps:$4 sm:$0xff]  }
 0x84e   :  { %12165 = vmatprep.subr.bf16.mxu1 %v20188_v56  ;;  %13253 = vmatpush1.bf16.msra.mxu0 %v20183_v61  ;;  %v20251_v61 = vld [vmem:[#allocation17 + $0xcc4] ss:$16 sps:$4 sm:$0xff]  }
 0x84f   :  { %13254 = vmatprep.subr.bf16.mxu0 %v20191_v17 }
 0x851   :  { %12166 = vmatpush1.bf16.msra.mxu1 %v20186_v2 }
 0x852   :  { %12167 = vmatprep.subr.bf16.mxu1 %v20194_v13  ;;  %13255 = vmatpush1.bf16.msra.mxu0 %v20189_v52  ;;  %v20246_v52 = vld [vmem:[#allocation17 + $0x888] ss:$16 sps:$4 sm:$0xff]  }
 0x853   :  { %13256 = vmatprep.subr.bf16.mxu0 %v20197_v16 }
 0x855   :  { %12168 = vmatpush1.bf16.msra.mxu1 %v20192_v42  ;;  %v20254_v42 = vld [vmem:[#allocation17 + $0x8ac] ss:$16 sps:$4 sm:$0xff]  }
 0x856   :  { %12169 = vmatprep.subr.bf16.mxu1 %v20200_v54  ;;  %13257 = vmatpush1.bf16.msra.mxu0 %v20195_v18  ;;  %v20257_v18 = vld [vmem:[#allocation17 + $0xce4] ss:$16 sps:$4 sm:$0xff]   ;;  %v20252_v54 = vld [vmem:[#allocation17 + $0x8a8] ss:$16 sps:$4 sm:$0xff]  }
 0x857   :  { %13258 = vmatprep.subr.bf16.mxu0 %v20203_v57  ;;  %v20255_v57 = vld [vmem:[#allocation17 + $0xce0] ss:$16 sps:$4 sm:$0xff]  }
 0x859   :  { %12170 = vmatpush1.bf16.msra.mxu1 %v20198_v44 }
 0x85a   :  { %12171 = vmatprep.subr.bf16.mxu1 %v20206_v32  ;;  %13259 = vmatpush1.bf16.msra.mxu0 %v20201_v8  ;;  %v20261_v32 = vld [vmem:[#allocation17 + $0xd00] ss:$16 sps:$4 sm:$0xff]  }
 0x85b   :  { %13260 = vmatprep.subr.bf16.mxu0 %v20209_v48  ;;  %v20266_v48 = vld [vmem:[#allocation17 + $0x8ec] ss:$16 sps:$4 sm:$0xff]  }
 0x85d   :  { %12172 = vmatpush1.bf16.msra.mxu1 %v20204_v19  ;;  %v20264_v19 = vld [vmem:[#allocation17 + $0x8e8] ss:$16 sps:$4 sm:$0xff]  }
 0x85e   :  { %12173 = vmatprep.subr.bf16.mxu1 %v20212_v33  ;;  %13261 = vmatpush1.bf16.msra.mxu0 %v20207_v27  ;;  %v20267_v27 = vld [vmem:[#allocation17 + $0xd20] ss:$16 sps:$4 sm:$0xff]   ;;  %v20272_v33 = vld [vmem:[#allocation17 + $0x90c] ss:$16 sps:$4 sm:$0xff]  }
 0x85f   :  { %13772 = vmatprep.subr.bf16.mxu0 %v20215_v5  ;;  %v20270_v5 = vld [vmem:[#allocation17 + $0x908] ss:$16 sps:$4 sm:$0xff]  }
 0x861   :  { %12174 = vmatpush1.bf16.msra.mxu1 %v20210_v26  ;;  %13263 = vmatmul.mubr.bf16.vlgmr.msra.gmra.mrb[64].mxu0 %v23574_v21  ;;  %v18191_v26 = vld.sshfl [vmem:[#allocation4 + $0x18] sm:$0x33 pattern:$0x75316420] }
 0x862   :  { %12175 = vmatprep.subr.bf16.mxu1 %v20218_v4  ;;  %13773 = vmatpush1.bf16.msra.mxu0 %v20213_v11  ;;  %v20278_v11 = vld [vmem:[#allocation17 + $0x92c] ss:$16 sps:$4 sm:$0xff]   ;;  %v20281_v4 = vld [vmem:[#allocation17 + $0xd64] ss:$16 sps:$4 sm:$0xff]  }
 0x863   :  { %13804 = vmatprep.mubr.bf16.mxu0 %v23578_v63  ;;  %13774 = vmatprep.subr.bf16.mxu0 %v20221_v22  ;;  %v18192_v22 = vld.sshfl [vmem:[#allocation4 + $0x1c] sm:$0x33 pattern:$0x75316420] }
 0x865   :  { %12176 = vmatpush1.bf16.msra.mxu1 %v20216_v14  ;;  %v18189_v14 = vld.sshfl [vmem:[#allocation4 + $0x8] sm:$0x33 pattern:$0x75316420] }
 0x866   :  { %12726 = vmatprep.subr.bf16.mxu1 %v20224_v50  ;;  %13775 = vmatpush1.bf16.msra.mxu0 %v20219_v15  ;;  %v20276_v15 = vld [vmem:[#allocation17 + $0x928] ss:$16 sps:$4 sm:$0xff]  }
 0x867   :  { %13776 = vmatprep.subr.bf16.mxu0 %v20227_v59  ;;  %v18190_v50 = vld.sshfl [vmem:[#allocation4 + $0xc] sm:$0x33 pattern:$0x75316420]  ;;  %v13889_v59 = vcombine.high %v18191_v26, %v18191_v26 }
 0x868   :  { %12178 = vmatmul.mubr.bf16.vlgmr.msra.gmra.mrb[56].mxu1 %v23520_v51  ;;  %v20240_v51 = vld [vmem:[#allocation17 + $0x868] ss:$16 sps:$4 sm:$0xff]  }
 0x869   :  { %12727 = vmatpush1.bf16.msra.mxu1 %v20222_v60  ;;  %12758 = vmatprep.mubr.bf16.mxu1 %v23531_v29  ;;  %v20243_v29 = vld [vmem:[#allocation17 + $0xca0] ss:$16 sps:$4 sm:$0xff]  }
 0x86a   :  { %12728 = vmatprep.subr.bf16.mxu1 %v20230_v10  ;;  %13777 = vmatpush1.bf16.msra.mxu0 %v20225_v38  ;;  %v20279_v60 = vld [vmem:[#allocation17 + $0xd60] ss:$16 sps:$4 sm:$0xff]   ;;  %v20284_v38 = vld [vmem:[#allocation17 + $0x94c] ss:$16 sps:$4 sm:$0xff]   ;;  %v13897_v10 = vcombine.high %v18192_v22, %v18192_v22 }
 0x86b   :  { %13778 = vmatprep.subr.bf16.mxu0 %v20233_v47  ;;  %v20287_v47 = vld [vmem:[#allocation17 + $0xd84] ss:$16 sps:$4 sm:$0xff]  }
 0x86d   :  { %12729 = vmatpush1.bf16.msra.mxu1 %v20228_v37  ;;  %v13873_v37 = vcombine.high %v18189_v14, %v18189_v14 }
 0x86e   :  { %12730 = vmatprep.subr.bf16.mxu1 %v20236_v35  ;;  %13779 = vmatpush1.bf16.msra.mxu0 %v20231_v1  ;;  %v13881_v1 = vcombine.high %v18190_v50, %v18190_v50  ;;  %v20282_v35 = vld [vmem:[#allocation17 + $0x948] ss:$16 sps:$4 sm:$0xff]  }
 0x86f   :  { %13780 = vmatprep.subr.bf16.mxu0 %v20239_v55  ;;  %v13922_v55 = vshll.u32 %v13889_v59, 16  ;;  %v20318_v59 = vld [vmem:[#allocation17 + $0xa08] ss:$16 sps:$4 sm:$0xff]  }
 0x871   :  { %12731 = vmatpush1.bf16.msra.mxu1 %v20234_v39  ;;  %v20285_v39 = vld [vmem:[#allocation17 + $0xd80] ss:$16 sps:$4 sm:$0xff]  }
 0x872   :  { %12732 = vmatprep.subr.bf16.mxu1 %v20242_v53  ;;  %13781 = vmatpush1.bf16.msra.mxu0 %v20237_v12  ;;  %v20290_v12 = vld [vmem:[#allocation17 + $0x96c] ss:$16 sps:$4 sm:$0xff]   ;;  %v13926_v53 = vshrl.u32 %v18192_v22, 16  ;;  %v20317_v22 = vld [vmem:[#allocation17 + $0xe24] ss:$16 sps:$4 sm:$0xff]  }
 0x873   :  { %13782 = vmatprep.subr.bf16.mxu0 %v20245_v58  ;;  %v13931_v58 = vshll.u32 %v13897_v10, 16  ;;  %v20329_v10 = vld [vmem:[#allocation17 + $0xe64] ss:$16 sps:$4 sm:$0xff]  }
 0x874   :  { %v11597_v56 = vpop.f32.mrb[52].mxu0 }
 0x875   :  { %12733 = vmatpush1.bf16.msra.mxu1 %v20240_v51  ;;  %v23584_v17 = vadd.f32 %v11597_v56, %v23559_v34  ;;  %v11599_v2 = vpop.f32.mrb[53].mxu0  ;;  %v20260_v34 = vld [vmem:[#allocation17 + $0x8cc] ss:$16 sps:$4 sm:$0xff]   ;;  %v20293_v51 = vld [vmem:[#allocation17 + $0xda4] ss:$16 sps:$4 sm:$0xff]   ;;  %v13917_v56 = vshrl.u32 %v18191_v26, 16 }
 0x876   :  { %v23587_v13 = vadd.f32 %v11599_v2, %v23561_v7  ;;  %v11601_v16 = vpop.f32.mrb[54].mxu0  ;;  %12734 = vmatprep.subr.bf16.mxu1 %v20248_v40  ;;  %13783 = vmatpush1.bf16.msra.mxu0 %v20243_v29  ;;  %v13904_v29 = vshll.u32 %v13873_v37, 16  ;;  %v13908_v40 = vshrl.u32 %v18190_v50, 16  ;;  %v20288_v2 = vld [vmem:[#allocation17 + $0x968] ss:$16 sps:$4 sm:$0xff]  }
 0x877   :  { %v11602_v45 = vpop.f32.mrb[55].mxu0  ;;  %13784 = vmatprep.subr.bf16.mxu0 %v20251_v61  ;;  %v13913_v61 = vshll.u32 %v13881_v1, 16  ;;  %v20296_v16 = vld [vmem:[#allocation17 + $0x98c] ss:$16 sps:$4 sm:$0xff]   ;;  %v20323_v50 = vld [vmem:[#allocation17 + $0xe44] ss:$16 sps:$4 sm:$0xff]  }
 0x878   :  { %v13933_v45 = vsel %vm23471_vm15, %v13926_v53, %v13931_v58  ;;  %v20327_v37 = vld [vmem:[#allocation17 + $0xe60] ss:$16 sps:$4 sm:$0xff]   ;;  %v20332_v1 = vld [vmem:[#allocation17 + $0xa4c] ss:$16 sps:$4 sm:$0xff]   ;;  %v20341_v53 = vld [vmem:[#allocation17 + $0xea4] ss:$16 sps:$4 sm:$0xff]  }
 0x879   :  { %12735 = vmatpush1.bf16.msra.mxu1 %v20246_v52  ;;  %v20291_v52 = vld [vmem:[#allocation17 + $0xda0] ss:$16 sps:$4 sm:$0xff]   ;;  %v20344_v58 = vld [vmem:[#allocation17 + $0xa8c] ss:$16 sps:$4 sm:$0xff]  }
 0x87a   :  { %12736 = vmatprep.subr.bf16.mxu1 %v20254_v42  ;;  %13785 = vmatpush1.bf16.msra.mxu0 %v20249_v23  ;;  %v13899_v23 = vshrl.u32 %v18189_v14, 16  ;;  %v13924_v42 = vsel %vm23471_vm15, %v13917_v56, %v13922_v55  ;;  %v20315_v14 = vld [vmem:[#allocation17 + $0xe20] ss:$16 sps:$4 sm:$0xff]   ;;  %v20330_v55 = vld [vmem:[#allocation17 + $0xa48] ss:$16 sps:$4 sm:$0xff]  }
 0x87b   :  { %v23589_v28 = vpop.f32.mrb[44].mxu1  ;;  %13786 = vmatprep.subr.bf16.mxu0 %v20257_v18  ;;  %v20299_v18 = vld [vmem:[#allocation17 + $0xdc4] ss:$16 sps:$4 sm:$0xff]   ;;  %v20342_v56 = vld [vmem:[#allocation17 + $0xa88] ss:$16 sps:$4 sm:$0xff]  }
 0x87c   :  { %v23591_v7 = vpop.f32.mrb[45].mxu1 }
 0x87d   :  { %v10665_v44 = vpop.f32.mrb[46].mxu1  ;;  %12737 = vmatpush1.bf16.msra.mxu1 %v20252_v54  ;;  %v13906_v54 = vsel %vm23471_vm15, %v13899_v23, %v13904_v29  ;;  %v20350_v23 = vld [vmem:[#allocation17 + $0xaac] ss:$16 sps:$4 sm:$0xff]  }
 0x87e   :  { %v10666_v8 = vpop.f32.mrb[47].mxu1  ;;  %12738 = vmatprep.subr.bf16.mxu1 %v20260_v34  ;;  %13787 = vmatpush1.bf16.msra.mxu0 %v20255_v57  ;;  %v13915_v57 = vsel %vm23471_vm15, %v13908_v40, %v13913_v61  ;;  %v20294_v34 = vld [vmem:[#allocation17 + $0x988] ss:$16 sps:$4 sm:$0xff]   ;;  %v20297_v44 = vld [vmem:[#allocation17 + $0xdc0] ss:$16 sps:$4 sm:$0xff]  }
 0x87f   :  { %13788 = vmatprep.subr.bf16.mxu0 %v20263_v43  ;;  %v14000_v43 = vcombine.low %v13924_v42, %v13933_v45  ;;  %v20305_v8 = vld [vmem:[#allocation17 + $0xde4] ss:$16 sps:$4 sm:$0xff]  }
 0x880   :  { %v20353_v45 = vld [vmem:[#allocation17 + $0xee4] ss:$16 sps:$4 sm:$0xff]  }
 0x881   :  { %12739 = vmatpush1.bf16.msra.mxu1 %v20258_v20  ;;  %v20302_v20 = vld [vmem:[#allocation17 + $0x9ac] ss:$16 sps:$4 sm:$0xff]  }
 0x882   :  { %12740 = vmatprep.subr.bf16.mxu1 %v20266_v48  ;;  %13789 = vmatpush1.bf16.msra.mxu0 %v20261_v32  ;;  %v13999_v32 = vcombine.low %v13906_v54, %v13915_v57  ;;  %v20300_v48 = vld [vmem:[#allocation17 + $0x9a8] ss:$16 sps:$4 sm:$0xff]   ;;  %v20351_v54 = vld [vmem:[#allocation17 + $0xee0] ss:$16 sps:$4 sm:$0xff]  }
 0x883   :  { %13790 = vmatprep.subr.bf16.mxu0 %v20269_v3  ;;  %v23602_v3 = vrot.slane %v14000_v43, %v23461_v41 }
 0x885   :  { %12741 = vmatpush1.bf16.msra.mxu1 %v20264_v19  ;;  %v20303_v19 = vld [vmem:[#allocation17 + $0xde0] ss:$16 sps:$4 sm:$0xff]  }
 0x886   :  { %12742 = vmatprep.subr.bf16.mxu1 %v20272_v33  ;;  %13791 = vmatpush1.bf16.msra.mxu0 %v20267_v27  ;;  %v13434_v27 = vcombine.low %v23569_v9, %v23564_v31  ;;  %v20311_v33 = vld [vmem:[#allocation17 + $0xe04] ss:$16 sps:$4 sm:$0xff]   ;;  %v20312_v31 = vld [vmem:[#allocation17 + $0x9e8] ss:$16 sps:$4 sm:$0xff]  }
 0x887   :  { %13792 = vmatprep.subr.bf16.mxu0 %v20275_v62  ;;  %v23607_v62 = vrot.slane %v13999_v32, %v23461_v41 }
 0x889   :  { %12743 = vmatpush1.bf16.msra.mxu1 %v20270_v5  ;;  %v20306_v5 = vld [vmem:[#allocation17 + $0x9c8] ss:$16 sps:$4 sm:$0xff]   ;;  %v14016_v26 = vcombine.high %v23607_v62, %v23602_v3 }
 0x88a   :  { %12744 = vmatprep.subr.bf16.mxu1 %v20278_v11  ;;  %13793 = vmatpush1.bf16.msra.mxu0 %v20273_v36  ;;  %v20309_v36 = vld [vmem:[#allocation17 + $0xe00] ss:$16 sps:$4 sm:$0xff]   ;;  %v20314_v11 = vld [vmem:[#allocation17 + $0x9ec] ss:$16 sps:$4 sm:$0xff]  }
 0x88b   :  { %13794 = vmatprep.subr.bf16.mxu0 %v20281_v4  ;;  %v23612_v4 = vrot.slane %v13434_v27, %v23461_v41  ;;  %v23616_v9 = vrot.slane %v14016_v26, %v23461_v41  ;;  %v20360_v27 = vld [vmem:[#allocation17 + $0xae8] ss:$16 sps:$4 sm:$0xff]   ;;  %v20369_v26 = vld [vmem:[#allocation17 + $0xf40] ss:$16 sps:$4 sm:$0xff]  }
 0x88d   :  { %12745 = vmatpush1.bf16.msra.mxu1 %v20276_v15  ;;  %v20320_v15 = vld [vmem:[#allocation17 + $0xa0c] ss:$16 sps:$4 sm:$0xff]  }
 0x88e   :  { %12746 = vmatprep.subr.bf16.mxu1 %v20284_v38  ;;  %13795 = vmatpush1.bf16.msra.mxu0 %v20279_v60  ;;  %v20321_v60 = vld [vmem:[#allocation17 + $0xe40] ss:$16 sps:$4 sm:$0xff]   ;;  %v20326_v38 = vld [vmem:[#allocation17 + $0xa2c] ss:$16 sps:$4 sm:$0xff]  }
 0x88f   :  { %13796 = vmatprep.subr.bf16.mxu0 %v20287_v47  ;;  %v20324_v47 = vld [vmem:[#allocation17 + $0xa28] ss:$16 sps:$4 sm:$0xff]  }
 0x891   :  { %12747 = vmatpush1.bf16.msra.mxu1 %v20282_v35  ;;  %v20335_v35 = vld [vmem:[#allocation17 + $0xe84] ss:$16 sps:$4 sm:$0xff]  }
 0x892   :  { %12748 = vmatprep.subr.bf16.mxu1 %v20290_v12  ;;  %13797 = vmatpush1.bf16.msra.mxu0 %v20285_v39  ;;  %v20333_v39 = vld [vmem:[#allocation17 + $0xe80] ss:$16 sps:$4 sm:$0xff]   ;;  %v20338_v12 = vld [vmem:[#allocation17 + $0xa6c] ss:$16 sps:$4 sm:$0xff]  }
 0x893   :  { %13798 = vmatprep.subr.bf16.mxu0 %v20293_v51  ;;  %v20347_v51 = vld [vmem:[#allocation17 + $0xec4] ss:$16 sps:$4 sm:$0xff]  }
 0x895   :  { %12749 = vmatpush1.bf16.msra.mxu1 %v20288_v2 }
 0x896   :  { %12750 = vmatprep.subr.bf16.mxu1 %v20296_v16  ;;  %13799 = vmatpush1.bf16.msra.mxu0 %v20291_v52  ;;  %v20345_v16 = vld [vmem:[#allocation17 + $0xec0] ss:$16 sps:$4 sm:$0xff]  }
 0x897   :  { %13800 = vmatprep.subr.bf16.mxu0 %v20299_v18  ;;  %v20348_v18 = vld [vmem:[#allocation17 + $0xaa8] ss:$16 sps:$4 sm:$0xff]  }
 0x899   :  { %12751 = vmatpush1.bf16.msra.mxu1 %v20294_v34  ;;  %v20359_v34 = vld [vmem:[#allocation17 + $0xf04] ss:$16 sps:$4 sm:$0xff]  }
 0x89a   :  { %12752 = vmatprep.subr.bf16.mxu1 %v20302_v20  ;;  %13801 = vmatpush1.bf16.msra.mxu0 %v20297_v44 }
 0x89b   :  { %13802 = vmatprep.subr.bf16.mxu0 %v20305_v8  ;;  %v20354_v8 = vld [vmem:[#allocation17 + $0xac8] ss:$16 sps:$4 sm:$0xff]  }
 0x89d   :  { %12753 = vmatpush1.bf16.msra.mxu1 %v20300_v48  ;;  %v20357_v48 = vld [vmem:[#allocation17 + $0xf00] ss:$16 sps:$4 sm:$0xff]  }
 0x89e   :  { %12754 = vmatprep.subr.bf16.mxu1 %v20308_v30  ;;  %13803 = vmatpush1.bf16.msra.mxu0 %v20303_v19  ;;  %v20362_v19 = vld [vmem:[#allocation17 + $0xaec] ss:$16 sps:$4 sm:$0xff]   ;;  %v20365_v30 = vld [vmem:[#allocation17 + $0xf24] ss:$16 sps:$4 sm:$0xff]  }
 0x89f   :  { %14353 = vmatprep.subr.bf16.mxu0 %v20311_v33  ;;  %v20368_v33 = vld [vmem:[#allocation17 + $0xb0c] ss:$16 sps:$4 sm:$0xff]  }
 0x8a1   :  { %12755 = vmatpush1.bf16.msra.mxu1 %v20306_v5  ;;  %13805 = vmatmul.mubr.bf16.vlgmr.msra.gmra.mrb[68].mxu0 %v23612_v4  ;;  %v20371_v5 = vld [vmem:[#allocation17 + $0xf44] ss:$16 sps:$4 sm:$0xff]  }
 0x8a2   :  { %12756 = vmatprep.subr.bf16.mxu1 %v20314_v11  ;;  %14354 = vmatpush1.bf16.msra.mxu0 %v20309_v36  ;;  %v20374_v36 = vld [vmem:[#allocation17 + $0xb2c] ss:$16 sps:$4 sm:$0xff]   ;;  %v20377_v11 = vld [vmem:[#allocation17 + $0xf64] ss:$16 sps:$4 sm:$0xff]  }
 0x8a3   :  { %14385 = vmatprep.mubr.bf16.mxu0 %v23616_v9  ;;  %14355 = vmatprep.subr.bf16.mxu0 %v20317_v22  ;;  %v20372_v22 = vld [vmem:[#allocation17 + $0xb28] ss:$16 sps:$4 sm:$0xff]  }
 0x8a5   :  { %12757 = vmatpush1.bf16.msra.mxu1 %v20312_v31  ;;  %v20375_v31 = vld [vmem:[#allocation17 + $0xf60] ss:$16 sps:$4 sm:$0xff]  }
 0x8a6   :  { %13271 = vmatprep.subr.bf16.mxu1 %v20320_v15  ;;  %14356 = vmatpush1.bf16.msra.mxu0 %v20315_v14  ;;  %v20380_v14 = vld [vmem:[#allocation17 + $0xb4c] ss:$16 sps:$4 sm:$0xff]   ;;  %v20383_v15 = vld [vmem:[#allocation17 + $0xf84] ss:$16 sps:$4 sm:$0xff]  }
 0x8a7   :  { %14357 = vmatprep.subr.bf16.mxu0 %v20323_v50  ;;  %v20378_v50 = vld [vmem:[#allocation17 + $0xb48] ss:$16 sps:$4 sm:$0xff]  }
 0x8a8   :  { %12759 = vmatmul.mubr.bf16.vlgmr.msra.gmra.mrb[60].mxu1 %v23534_v24  ;;  %v20336_v24 = vld [vmem:[#allocation17 + $0xa68] ss:$16 sps:$4 sm:$0xff]  }
 0x8a9   :  { %13272 = vmatpush1.bf16.msra.mxu1 %v20318_v59  ;;  %13303 = vmatprep.mubr.bf16.mxu1 %v23554_v6  ;;  %v20339_v6 = vld [vmem:[#allocation17 + $0xea0] ss:$16 sps:$4 sm:$0xff]  }
 0x8aa   :  { %13273 = vmatprep.subr.bf16.mxu1 %v20326_v38  ;;  %14358 = vmatpush1.bf16.msra.mxu0 %v20321_v60  ;;  %v20381_v59 = vld [vmem:[#allocation17 + $0xf80] ss:$16 sps:$4 sm:$0xff]   ;;  %v20386_v60 = vld [vmem:[#allocation17 + $0xb6c] ss:$16 sps:$4 sm:$0xff]   ;;  %v20389_v38 = vld [vmem:[#allocation17 + $0xfa4] ss:$16 sps:$4 sm:$0xff]  }
 0x8ab   :  { %14359 = vmatprep.subr.bf16.mxu0 %v20329_v10  ;;  %v18263_v10 = vld.sshfl [vmem:[#allocation4 + $0x18] sm:$0x30 pattern:$0x75316420] }
 0x8ad   :  { %13274 = vmatpush1.bf16.msra.mxu1 %v20324_v47  ;;  %v20384_v47 = vld [vmem:[#allocation17 + $0xb68] ss:$16 sps:$4 sm:$0xff]  }
 0x8ae   :  { %13275 = vmatprep.subr.bf16.mxu1 %v20332_v1  ;;  %14360 = vmatpush1.bf16.msra.mxu0 %v20327_v37  ;;  %v18264_v37 = vld.sshfl [vmem:[#allocation4 + $0x1c] sm:$0x30 pattern:$0x75316420]  ;;  %v20387_v1 = vld [vmem:[#allocation17 + $0xfa0] ss:$16 sps:$4 sm:$0xff]  }
 0x8af   :  { %14361 = vmatprep.subr.bf16.mxu0 %v20335_v35  ;;  %v20392_v35 = vld [vmem:[#allocation17 + $0xb8c] ss:$16 sps:$4 sm:$0xff]  }
 0x8b1   :  { %13276 = vmatpush1.bf16.msra.mxu1 %v20330_v55  ;;  %v20395_v55 = vld [vmem:[#allocation17 + $0xfc4] ss:$16 sps:$4 sm:$0xff]  }
 0x8b2   :  { %13277 = vmatprep.subr.bf16.mxu1 %v20338_v12  ;;  %14362 = vmatpush1.bf16.msra.mxu0 %v20333_v39  ;;  %v18261_v39 = vld.sshfl [vmem:[#allocation4 + $0x8] sm:$0x30 pattern:$0x75316420] }
 0x8b3   :  { %14363 = vmatprep.subr.bf16.mxu0 %v20341_v53  ;;  %v18262_v12 = vld.sshfl [vmem:[#allocation4 + $0xc] sm:$0x30 pattern:$0x75316420] }
 0x8b4   :  { %v12138_v29 = vpop.f32.mrb[56].mxu0  ;;  %v20390_v53 = vld [vmem:[#allocation17 + $0xb88] ss:$16 sps:$4 sm:$0xff]  }
 0x8b5   :  { %13278 = vmatpush1.bf16.msra.mxu1 %v20336_v24  ;;  %v23622_v40 = vadd.f32 %v12138_v29, %v23584_v17  ;;  %v12140_v61 = vpop.f32.mrb[57].mxu0  ;;  %v20356_v17 = vld [vmem:[#allocation17 + $0xacc] ss:$16 sps:$4 sm:$0xff]   ;;  %v18266_v24 = vcombine.high %v18263_v10, %v18264_v37  ;;  %v18265_v29 = vcombine.high %v18261_v39, %v18262_v12  ;;  %v20447_v39 = vld [vmem:[#allocation17 + $0x10e0] ss:$16 sps:$4 sm:$0xff]  }
 0x8b6   :  { %v23625_v2 = vadd.f32 %v12140_v61, %v23587_v13  ;;  %v12142_v52 = vpop.f32.mrb[58].mxu0  ;;  %13279 = vmatprep.subr.bf16.mxu1 %v20344_v58  ;;  %14364 = vmatpush1.bf16.msra.mxu0 %v20339_v6  ;;  %v20393_v6 = vld [vmem:[#allocation17 + $0xfc0] ss:$16 sps:$4 sm:$0xff]   ;;  %v20398_v58 = vld [vmem:[#allocation17 + $0xbac] ss:$16 sps:$4 sm:$0xff]  }
 0x8b7   :  { %v12143_v42 = vpop.f32.mrb[59].mxu0  ;;  %14365 = vmatprep.subr.bf16.mxu0 %v20347_v51  ;;  %v20401_v51 = vld [vmem:[#allocation17 + $0xfe4] ss:$16 sps:$4 sm:$0xff]   ;;  %v20396_v61 = vld [vmem:[#allocation17 + $0xba8] ss:$16 sps:$4 sm:$0xff]  }
 0x8b8   :  { %v20399_v52 = vld [vmem:[#allocation17 + $0xfe0] ss:$16 sps:$4 sm:$0xff]   ;;  %v20407_v42 = vld [vmem:[#allocation17 + $0x1004] ss:$16 sps:$4 sm:$0xff]   ;;  %v20446_v37 = vld [vmem:[#allocation17 + $0xcac] ss:$16 sps:$4 sm:$0xff]  }
 0x8b9   :  { %13280 = vmatpush1.bf16.msra.mxu1 %v20342_v56  ;;  %v23634_v56 = vrot.slane %v18266_v24, %v23461_v41 }
 0x8ba   :  { %13281 = vmatprep.subr.bf16.mxu1 %v20350_v23  ;;  %14366 = vmatpush1.bf16.msra.mxu0 %v20345_v16  ;;  %v20404_v16 = vld [vmem:[#allocation17 + $0xbcc] ss:$16 sps:$4 sm:$0xff]   ;;  %v14015_v23 = vcombine.low %v23607_v62, %v23602_v3  ;;  %v20408_v3 = vld [vmem:[#allocation17 + $0xbe8] ss:$16 sps:$4 sm:$0xff]  }
 0x8bb   :  { %v11097_v57 = vpop.f32.mrb[48].mxu1  ;;  %14367 = vmatprep.subr.bf16.mxu0 %v20353_v45  ;;  %v23639_v45 = vrot.slane %v18265_v29, %v23461_v41 }
 0x8bc   :  { %v23628_v13 = vadd.f32 %v11097_v57, %v23589_v28  ;;  %v11099_v43 = vpop.f32.mrb[49].mxu1  ;;  %v20363_v28 = vld [vmem:[#allocation17 + $0xf20] ss:$16 sps:$4 sm:$0xff]   ;;  %v20410_v57 = vld [vmem:[#allocation17 + $0xbec] ss:$16 sps:$4 sm:$0xff]  }
 0x8bd   :  { %v23631_v44 = vadd.f32 %v11099_v43, %v23591_v7  ;;  %v11101_v20 = vpop.f32.mrb[50].mxu1  ;;  %13282 = vmatpush1.bf16.msra.mxu1 %v20348_v18  ;;  %v20366_v7 = vld [vmem:[#allocation17 + $0xb08] ss:$16 sps:$4 sm:$0xff]   ;;  %v20413_v43 = vld [vmem:[#allocation17 + $0x1024] ss:$16 sps:$4 sm:$0xff]  }
 0x8be   :  { %v11102_v32 = vpop.f32.mrb[51].mxu1  ;;  %13283 = vmatprep.subr.bf16.mxu1 %v20356_v17  ;;  %14368 = vmatpush1.bf16.msra.mxu0 %v20351_v54  ;;  %v20402_v18 = vld [vmem:[#allocation17 + $0xbc8] ss:$16 sps:$4 sm:$0xff]   ;;  %v14561_v54 = vcombine.high %v23639_v45, %v23634_v56  ;;  %v20405_v17 = vld [vmem:[#allocation17 + $0x1000] ss:$16 sps:$4 sm:$0xff]  }
 0x8bf   :  { %14369 = vmatprep.subr.bf16.mxu0 %v20359_v34  ;;  %v23644_v34 = vrot.slane %v14015_v23, %v23461_v41  ;;  %v20411_v20 = vld [vmem:[#allocation17 + $0x1020] ss:$16 sps:$4 sm:$0xff]   ;;  %v20419_v32 = vld [vmem:[#allocation17 + $0x1044] ss:$16 sps:$4 sm:$0xff]   ;;  %v20456_v23 = vld [vmem:[#allocation17 + $0xce8] ss:$16 sps:$4 sm:$0xff]  }
 0x8c0   :  { %v23648_v62 = vrot.slane %v14561_v54, %v23461_v41  ;;  %v20465_v54 = vld [vmem:[#allocation17 + $0x1140] ss:$16 sps:$4 sm:$0xff]  }
 0x8c1   :  { %13284 = vmatpush1.bf16.msra.mxu1 %v20354_v8  ;;  %v20416_v8 = vld [vmem:[#allocation17 + $0xc0c] ss:$16 sps:$4 sm:$0xff]  }
 0x8c2   :  { %13285 = vmatprep.subr.bf16.mxu1 %v20362_v19  ;;  %14370 = vmatpush1.bf16.msra.mxu0 %v20357_v48  ;;  %v20414_v48 = vld [vmem:[#allocation17 + $0xc08] ss:$16 sps:$4 sm:$0xff]   ;;  %v20417_v19 = vld [vmem:[#allocation17 + $0x1040] ss:$16 sps:$4 sm:$0xff]  }
 0x8c3   :  { %14371 = vmatprep.subr.bf16.mxu0 %v20365_v30  ;;  %v20422_v30 = vld [vmem:[#allocation17 + $0xc2c] ss:$16 sps:$4 sm:$0xff]  }
 0x8c5   :  { %13286 = vmatpush1.bf16.msra.mxu1 %v20360_v27  ;;  %v20425_v27 = vld [vmem:[#allocation17 + $0x1064] ss:$16 sps:$4 sm:$0xff]  }
 0x8c6   :  { %13287 = vmatprep.subr.bf16.mxu1 %v20368_v33  ;;  %14372 = vmatpush1.bf16.msra.mxu0 %v20363_v28  ;;  %v20420_v28 = vld [vmem:[#allocation17 + $0xc28] ss:$16 sps:$4 sm:$0xff]   ;;  %v20423_v33 = vld [vmem:[#allocation17 + $0x1060] ss:$16 sps:$4 sm:$0xff]  }
 0x8c7   :  { %14373 = vmatprep.subr.bf16.mxu0 %v20371_v5  ;;  %v20428_v5 = vld [vmem:[#allocation17 + $0xc4c] ss:$16 sps:$4 sm:$0xff]  }
 0x8c9   :  { %13288 = vmatpush1.bf16.msra.mxu1 %v20366_v7  ;;  %v20431_v7 = vld [vmem:[#allocation17 + $0x1084] ss:$16 sps:$4 sm:$0xff]  }
 0x8ca   :  { %13289 = vmatprep.subr.bf16.mxu1 %v20374_v36  ;;  %14374 = vmatpush1.bf16.msra.mxu0 %v20369_v26  ;;  %v20426_v26 = vld [vmem:[#allocation17 + $0xc48] ss:$16 sps:$4 sm:$0xff]   ;;  %v20429_v36 = vld [vmem:[#allocation17 + $0x1080] ss:$16 sps:$4 sm:$0xff]  }
 0x8cb   :  { %14375 = vmatprep.subr.bf16.mxu0 %v20377_v11  ;;  %v20434_v11 = vld [vmem:[#allocation17 + $0xc6c] ss:$16 sps:$4 sm:$0xff]  }
 0x8cd   :  { %13290 = vmatpush1.bf16.msra.mxu1 %v20372_v22  ;;  %v20437_v22 = vld [vmem:[#allocation17 + $0x10a4] ss:$16 sps:$4 sm:$0xff]  }
 0x8ce   :  { %13291 = vmatprep.subr.bf16.mxu1 %v20380_v14  ;;  %14376 = vmatpush1.bf16.msra.mxu0 %v20375_v31  ;;  %v20440_v31 = vld [vmem:[#allocation17 + $0xc8c] ss:$16 sps:$4 sm:$0xff]   ;;  %v20443_v14 = vld [vmem:[#allocation17 + $0x10c4] ss:$16 sps:$4 sm:$0xff]  }
 0x8cf   :  { %14377 = vmatprep.subr.bf16.mxu0 %v20383_v15 }
 0x8d1   :  { %13292 = vmatpush1.bf16.msra.mxu1 %v20378_v50 }
 0x8d2   :  { %13293 = vmatprep.subr.bf16.mxu1 %v20386_v60  ;;  %14378 = vmatpush1.bf16.msra.mxu0 %v20381_v59  ;;  %v20438_v60 = vld [vmem:[#allocation17 + $0xc88] ss:$16 sps:$4 sm:$0xff]  }
 0x8d3   :  { %14379 = vmatprep.subr.bf16.mxu0 %v20389_v38 }
 0x8d5   :  { %13294 = vmatpush1.bf16.msra.mxu1 %v20384_v47  ;;  %v20441_v47 = vld [vmem:[#allocation17 + $0x10c0] ss:$16 sps:$4 sm:$0xff]  }
 0x8d6   :  { %13295 = vmatprep.subr.bf16.mxu1 %v20392_v35  ;;  %14380 = vmatpush1.bf16.msra.mxu0 %v20387_v1  ;;  %v20449_v35 = vld [vmem:[#allocation17 + $0x10e4] ss:$16 sps:$4 sm:$0xff]  }
 0x8d7   :  { %14381 = vmatprep.subr.bf16.mxu0 %v20395_v55  ;;  %v20444_v55 = vld [vmem:[#allocation17 + $0xca8] ss:$16 sps:$4 sm:$0xff]  }
 0x8d9   :  { %13296 = vmatpush1.bf16.msra.mxu1 %v20390_v53  ;;  %v20455_v53 = vld [vmem:[#allocation17 + $0x1104] ss:$16 sps:$4 sm:$0xff]  }
 0x8da   :  { %13297 = vmatprep.subr.bf16.mxu1 %v20398_v58  ;;  %14382 = vmatpush1.bf16.msra.mxu0 %v20393_v6 }
 0x8db   :  { %14383 = vmatprep.subr.bf16.mxu0 %v20401_v51  ;;  %v20450_v51 = vld [vmem:[#allocation17 + $0xcc8] ss:$16 sps:$4 sm:$0xff]  }
 0x8dd   :  { %13298 = vmatpush1.bf16.msra.mxu1 %v20396_v61  ;;  %v20453_v61 = vld [vmem:[#allocation17 + $0x1100] ss:$16 sps:$4 sm:$0xff]  }
 0x8de   :  { %13299 = vmatprep.subr.bf16.mxu1 %v20404_v16  ;;  %14384 = vmatpush1.bf16.msra.mxu0 %v20399_v52  ;;  %v20458_v52 = vld [vmem:[#allocation17 + $0xcec] ss:$16 sps:$4 sm:$0xff]   ;;  %v20461_v16 = vld [vmem:[#allocation17 + $0x1124] ss:$16 sps:$4 sm:$0xff]  }
 0x8df   :  { %14898 = vmatprep.subr.bf16.mxu0 %v20407_v42  ;;  %v20464_v42 = vld [vmem:[#allocation17 + $0xd0c] ss:$16 sps:$4 sm:$0xff]  }
 0x8e1   :  { %13300 = vmatpush1.bf16.msra.mxu1 %v20402_v18  ;;  %14386 = vmatmul.mubr.bf16.vlgmr.msra.gmra.mrb[72].mxu0 %v23644_v34  ;;  %v20467_v18 = vld [vmem:[#allocation17 + $0x1144] ss:$16 sps:$4 sm:$0xff]  }
 0x8e2   :  { %13301 = vmatprep.subr.bf16.mxu1 %v20410_v57  ;;  %14899 = vmatpush1.bf16.msra.mxu0 %v20405_v17  ;;  %v20470_v17 = vld [vmem:[#allocation17 + $0xd2c] ss:$16 sps:$4 sm:$0xff]   ;;  %v20473_v57 = vld [vmem:[#allocation17 + $0x1164] ss:$16 sps:$4 sm:$0xff]  }
 0x8e3   :  { %14930 = vmatprep.mubr.bf16.mxu0 %v23648_v62  ;;  %14900 = vmatprep.subr.bf16.mxu0 %v20413_v43  ;;  %v20468_v43 = vld [vmem:[#allocation17 + $0xd28] ss:$16 sps:$4 sm:$0xff]  }
 0x8e5   :  { %13302 = vmatpush1.bf16.msra.mxu1 %v20408_v3  ;;  %v20471_v3 = vld [vmem:[#allocation17 + $0x1160] ss:$16 sps:$4 sm:$0xff]  }
 0x8e6   :  { %13813 = vmatprep.subr.bf16.mxu1 %v20416_v8  ;;  %14901 = vmatpush1.bf16.msra.mxu0 %v20411_v20  ;;  %v20476_v20 = vld [vmem:[#allocation17 + $0xd4c] ss:$16 sps:$4 sm:$0xff]   ;;  %v20479_v8 = vld [vmem:[#allocation17 + $0x1184] ss:$16 sps:$4 sm:$0xff]  }
 0x8e7   :  { %14902 = vmatprep.subr.bf16.mxu0 %v20419_v32  ;;  %v20474_v32 = vld [vmem:[#allocation17 + $0xd48] ss:$16 sps:$4 sm:$0xff]  }
 0x8e8   :  { %13304 = vmatmul.mubr.bf16.vlgmr.msra.gmra.mrb[64].mxu1 %v23574_v21  ;;  %v20432_v21 = vld [vmem:[#allocation17 + $0xc68] ss:$16 sps:$4 sm:$0xff]  }
 0x8e9   :  { %13814 = vmatpush1.bf16.msra.mxu1 %v20414_v48  ;;  %13845 = vmatprep.mubr.bf16.mxu1 %v23578_v63  ;;  %v20435_v63 = vld [vmem:[#allocation17 + $0x10a0] ss:$16 sps:$4 sm:$0xff]  }
 0x8ea   :  { %13815 = vmatprep.subr.bf16.mxu1 %v20422_v30  ;;  %14903 = vmatpush1.bf16.msra.mxu0 %v20417_v19  ;;  %v20477_v48 = vld [vmem:[#allocation17 + $0x1180] ss:$16 sps:$4 sm:$0xff]   ;;  %v20482_v19 = vld [vmem:[#allocation17 + $0xd6c] ss:$16 sps:$4 sm:$0xff]   ;;  %v20485_v30 = vld [vmem:[#allocation17 + $0x11a4] ss:$16 sps:$4 sm:$0xff]  }
 0x8eb   :  { %14904 = vmatprep.subr.bf16.mxu0 %v20425_v27  ;;  %v20480_v27 = vld [vmem:[#allocation17 + $0xd68] ss:$16 sps:$4 sm:$0xff]  }
 0x8ed   :  { %13816 = vmatpush1.bf16.msra.mxu1 %v20420_v28  ;;  %v20483_v28 = vld [vmem:[#allocation17 + $0x11a0] ss:$16 sps:$4 sm:$0xff]  }
 0x8ee   :  { %13817 = vmatprep.subr.bf16.mxu1 %v20428_v5  ;;  %14905 = vmatpush1.bf16.msra.mxu0 %v20423_v33  ;;  %v20488_v33 = vld [vmem:[#allocation17 + $0xd8c] ss:$16 sps:$4 sm:$0xff]   ;;  %v20491_v5 = vld [vmem:[#allocation17 + $0x11c4] ss:$16 sps:$4 sm:$0xff]  }
 0x8ef   :  { %14906 = vmatprep.subr.bf16.mxu0 %v20431_v7  ;;  %v20486_v7 = vld [vmem:[#allocation17 + $0xd88] ss:$16 sps:$4 sm:$0xff]  }
 0x8f1   :  { %13818 = vmatpush1.bf16.msra.mxu1 %v20426_v26  ;;  %v20489_v26 = vld [vmem:[#allocation17 + $0x11c0] ss:$16 sps:$4 sm:$0xff]  }
 0x8f2   :  { %13819 = vmatprep.subr.bf16.mxu1 %v20434_v11  ;;  %14907 = vmatpush1.bf16.msra.mxu0 %v20429_v36  ;;  %v20494_v36 = vld [vmem:[#allocation17 + $0xdac] ss:$16 sps:$4 sm:$0xff]   ;;  %v20497_v11 = vld [vmem:[#allocation17 + $0x11e4] ss:$16 sps:$4 sm:$0xff]  }
 0x8f3   :  { %14908 = vmatprep.subr.bf16.mxu0 %v20437_v22  ;;  %v20492_v22 = vld [vmem:[#allocation17 + $0xda8] ss:$16 sps:$4 sm:$0xff]  }
 0x8f4   :  { %v12719_v15 = vpop.f32.mrb[60].mxu0 }
 0x8f5   :  { %13820 = vmatpush1.bf16.msra.mxu1 %v20432_v21  ;;  %v23654_v50 = vadd.f32 %v12719_v15, %v23622_v40  ;;  %v12721_v59 = vpop.f32.mrb[61].mxu0  ;;  %v20452_v40 = vld [vmem:[#allocation17 + $0xccc] ss:$16 sps:$4 sm:$0xff]   ;;  %v20495_v21 = vld [vmem:[#allocation17 + $0x11e0] ss:$16 sps:$4 sm:$0xff]  }
 0x8f6   :  { %v23657_v38 = vadd.f32 %v12721_v59, %v23625_v2  ;;  %v12723_v10 = vpop.f32.mrb[62].mxu0  ;;  %13821 = vmatprep.subr.bf16.mxu1 %v20440_v31  ;;  %14909 = vmatpush1.bf16.msra.mxu0 %v20435_v63  ;;  %v20500_v63 = vld [vmem:[#allocation17 + $0xdcc] ss:$16 sps:$4 sm:$0xff]   ;;  %v14560_v31 = vcombine.low %v23639_v45, %v23634_v56  ;;  %v20507_v56 = vld [vmem:[#allocation17 + $0xe28] ss:$16 sps:$4 sm:$0xff]  }
 0x8f7   :  { %v12724_v1 = vpop.f32.mrb[63].mxu0  ;;  %14910 = vmatprep.subr.bf16.mxu0 %v20443_v14  ;;  %v20498_v14 = vld [vmem:[#allocation17 + $0xdc8] ss:$16 sps:$4 sm:$0xff]   ;;  %v20503_v15 = vld [vmem:[#allocation17 + $0xdec] ss:$16 sps:$4 sm:$0xff]  }
 0x8f8   :  { %v23668_v59 = vrot.slane %v14560_v31, %v23461_v41  ;;  %v20506_v10 = vld [vmem:[#allocation17 + $0xe0c] ss:$16 sps:$4 sm:$0xff]   ;;  %v20510_v41 = vld [vmem:[#allocation17 + $0xe48] ss:$16 sps:$4 sm:$0xff]  }
 0x8f9   :  { %13822 = vmatpush1.bf16.msra.mxu1 %v20438_v60  ;;  %v20501_v60 = vld [vmem:[#allocation17 + $0xde8] ss:$16 sps:$4 sm:$0xff]   ;;  %v20512_v45 = vld [vmem:[#allocation17 + $0xe4c] ss:$16 sps:$4 sm:$0xff]  }
 0x8fa   :  { %13823 = vmatprep.subr.bf16.mxu1 %v20446_v37  ;;  %14911 = vmatpush1.bf16.msra.mxu0 %v20441_v47  ;;  %v20504_v47 = vld [vmem:[#allocation17 + $0xe08] ss:$16 sps:$4 sm:$0xff]   ;;  %v20509_v37 = vld [vmem:[#allocation17 + $0xe2c] ss:$16 sps:$4 sm:$0xff]  }
 0x8fb   :  { %v11638_v12 = vpop.f32.mrb[52].mxu1  ;;  %14912 = vmatprep.subr.bf16.mxu0 %v20449_v35  ;;  %v20515_v1 = vld [vmem:[#allocation17 + $0xe6c] ss:$16 sps:$4 sm:$0xff]   ;;  %v20513_v35 = vld [vmem:[#allocation17 + $0xe68] ss:$16 sps:$4 sm:$0xff]  }
 0x8fc   :  { %v23660_v2 = vadd.f32 %v11638_v12, %v23628_v13  ;;  %v11640_v24 = vpop.f32.mrb[53].mxu1  ;;  %v20459_v13 = vld [vmem:[#allocation17 + $0x1120] ss:$16 sps:$4 sm:$0xff]   ;;  %v20516_v12 = vld [vmem:[#allocation17 + $0xe88] ss:$16 sps:$4 sm:$0xff]  }
 0x8fd   :  { %v23663_v6 = vadd.f32 %v11640_v24, %v23631_v44  ;;  %v11642_v58 = vpop.f32.mrb[54].mxu1  ;;  %13824 = vmatpush1.bf16.msra.mxu1 %v20444_v55  ;;  %v20462_v44 = vld [vmem:[#allocation17 + $0xd08] ss:$16 sps:$4 sm:$0xff]   ;;  %v20518_v55 = vld [vmem:[#allocation17 + $0xe8c] ss:$16 sps:$4 sm:$0xff]  }
 0x8fe   :  { %v11643_v29 = vpop.f32.mrb[55].mxu1  ;;  %13825 = vmatprep.subr.bf16.mxu1 %v20452_v40  ;;  %14913 = vmatpush1.bf16.msra.mxu0 %v20447_v39  ;;  %v20521_v24 = vld [vmem:[#allocation17 + $0xeac] ss:$16 sps:$4 sm:$0xff]   ;;  %v20644_v31 = vld [vmem:[#allocation20 + $0xe4] ss:$16 sps:$4 sm:$0xff]  }
 0x8ff   :  { %14914 = vmatprep.subr.bf16.mxu0 %v20455_v53  ;;  %v20524_v29 = vld [vmem:[#allocation17 + $0xecc] ss:$16 sps:$4 sm:$0xff]  }
 0x901   :  { %13826 = vmatpush1.bf16.msra.mxu1 %v20450_v51  ;;  %v20519_v51 = vld [vmem:[#allocation17 + $0xea8] ss:$16 sps:$4 sm:$0xff]  }
 0x902   :  { %13827 = vmatprep.subr.bf16.mxu1 %v20458_v52  ;;  %14915 = vmatpush1.bf16.msra.mxu0 %v20453_v61 }
 0x903   :  { %14916 = vmatprep.subr.bf16.mxu0 %v20461_v16 }
 0x905   :  { %13828 = vmatpush1.bf16.msra.mxu1 %v20456_v23 }
 0x906   :  { %13829 = vmatprep.subr.bf16.mxu1 %v20464_v42  ;;  %14917 = vmatpush1.bf16.msra.mxu0 %v20459_v13  ;;  %v20527_v13 = vld [vmem:[#allocation17 + $0xeec] ss:$16 sps:$4 sm:$0xff]  }
 0x907   :  { %14918 = vmatprep.subr.bf16.mxu0 %v20467_v18  ;;  %v20600_v18 = vld [vmem:[#allocation20] ss:$16 sps:$4 sm:$0xff]  }
 0x909   :  { %13830 = vmatpush1.bf16.msra.mxu1 %v20462_v44  ;;  %v20602_v44 = vld [vmem:[#allocation20 + $0x4] ss:$16 sps:$4 sm:$0xff]  }
 0x90a   :  { %13831 = vmatprep.subr.bf16.mxu1 %v20470_v17  ;;  %14919 = vmatpush1.bf16.msra.mxu0 %v20465_v54  ;;  %v20608_v54 = vld [vmem:[#allocation20 + $0x24] ss:$16 sps:$4 sm:$0xff]  }
 0x90b   :  { %14920 = vmatprep.subr.bf16.mxu0 %v20473_v57  ;;  %v20525_v17 = vld [vmem:[#allocation17 + $0xee8] ss:$16 sps:$4 sm:$0xff]   ;;  %v20606_v57 = vld [vmem:[#allocation20 + $0x20] ss:$16 sps:$4 sm:$0xff]  }
 0x90d   :  { %13832 = vmatpush1.bf16.msra.mxu1 %v20468_v43  ;;  %v20614_v43 = vld [vmem:[#allocation20 + $0x44] ss:$16 sps:$4 sm:$0xff]  }
 0x90e   :  { %13833 = vmatprep.subr.bf16.mxu1 %v20476_v20  ;;  %14921 = vmatpush1.bf16.msra.mxu0 %v20471_v3  ;;  %v20612_v3 = vld [vmem:[#allocation20 + $0x40] ss:$16 sps:$4 sm:$0xff]   ;;  %v20533_v20 = vld [vmem:[#allocation17 + $0xf2c] ss:$16 sps:$4 sm:$0xff]  }
 0x90f   :  { %14922 = vmatprep.subr.bf16.mxu0 %v20479_v8  ;;  %v20620_v8 = vld [vmem:[#allocation20 + $0x64] ss:$16 sps:$4 sm:$0xff]  }
 0x911   :  { %13834 = vmatpush1.bf16.msra.mxu1 %v20474_v32  ;;  %v20531_v32 = vld [vmem:[#allocation17 + $0xf28] ss:$16 sps:$4 sm:$0xff]  }
 0x912   :  { %13835 = vmatprep.subr.bf16.mxu1 %v20482_v19  ;;  %14923 = vmatpush1.bf16.msra.mxu0 %v20477_v48  ;;  %v20618_v48 = vld [vmem:[#allocation20 + $0x60] ss:$16 sps:$4 sm:$0xff]   ;;  %v20536_v19 = vld [vmem:[#allocation17 + $0xf4c] ss:$16 sps:$4 sm:$0xff]  }
 0x913   :  { %14924 = vmatprep.subr.bf16.mxu0 %v20485_v30  ;;  %v20626_v30 = vld [vmem:[#allocation20 + $0x84] ss:$16 sps:$4 sm:$0xff]  }
 0x915   :  { %13836 = vmatpush1.bf16.msra.mxu1 %v20480_v27  ;;  %v20534_v27 = vld [vmem:[#allocation17 + $0xf48] ss:$16 sps:$4 sm:$0xff]  }
 0x916   :  { %13837 = vmatprep.subr.bf16.mxu1 %v20488_v33  ;;  %14925 = vmatpush1.bf16.msra.mxu0 %v20483_v28  ;;  %v20624_v28 = vld [vmem:[#allocation20 + $0x80] ss:$16 sps:$4 sm:$0xff]   ;;  %v20539_v33 = vld [vmem:[#allocation17 + $0xf6c] ss:$16 sps:$4 sm:$0xff]  }
 0x917   :  { %14926 = vmatprep.subr.bf16.mxu0 %v20491_v5  ;;  %v20632_v5 = vld [vmem:[#allocation20 + $0xa4] ss:$16 sps:$4 sm:$0xff]  }
 0x919   :  { %13838 = vmatpush1.bf16.msra.mxu1 %v20486_v7  ;;  %v20537_v7 = vld [vmem:[#allocation17 + $0xf68] ss:$16 sps:$4 sm:$0xff]  }
 0x91a   :  { %13839 = vmatprep.subr.bf16.mxu1 %v20494_v36  ;;  %14927 = vmatpush1.bf16.msra.mxu0 %v20489_v26  ;;  %v20630_v26 = vld [vmem:[#allocation20 + $0xa0] ss:$16 sps:$4 sm:$0xff]   ;;  %v20542_v36 = vld [vmem:[#allocation17 + $0xf8c] ss:$16 sps:$4 sm:$0xff]  }
 0x91b   :  { %14928 = vmatprep.subr.bf16.mxu0 %v20497_v11  ;;  %v20638_v11 = vld [vmem:[#allocation20 + $0xc4] ss:$16 sps:$4 sm:$0xff]  }
 0x91d   :  { %13840 = vmatpush1.bf16.msra.mxu1 %v20492_v22  ;;  %v20540_v22 = vld [vmem:[#allocation17 + $0xf88] ss:$16 sps:$4 sm:$0xff]  }
 0x91e   :  { %13841 = vmatprep.subr.bf16.mxu1 %v20500_v63  ;;  %14929 = vmatpush1.bf16.msra.mxu0 %v20495_v21  ;;  %v20636_v21 = vld [vmem:[#allocation20 + $0xc0] ss:$16 sps:$4 sm:$0xff]   ;;  %v20545_v63 = vld [vmem:[#allocation17 + $0xfac] ss:$16 sps:$4 sm:$0xff]  }
 0x91f   :  { %15961 = vmatprep.subr.bf16.mxu0 %v20602_v44 }
 0x921   :  { %13842 = vmatpush1.bf16.msra.mxu1 %v20498_v14  ;;  %14931 = vmatmul.mubr.bf16.vlgmr.msra.gmra.mrb[76].mxu0 %v23668_v59  ;;  %v20543_v14 = vld [vmem:[#allocation17 + $0xfa8] ss:$16 sps:$4 sm:$0xff]  }
 0x922   :  { %13843 = vmatprep.subr.bf16.mxu1 %v20503_v15  ;;  %15962 = vmatpush1.bf16.msra.mxu0 %v20600_v18  ;;  %v20642_v15 = vld [vmem:[#allocation20 + $0xe0] ss:$16 sps:$4 sm:$0xff]  }
 0x923   :  { %15963 = vmatprep.subr.bf16.mxu0 %v20608_v54 }
 0x925   :  { %13844 = vmatpush1.bf16.msra.mxu1 %v20501_v60  ;;  %v20548_v60 = vld [vmem:[#allocation17 + $0xfcc] ss:$16 sps:$4 sm:$0xff]  }
 0x926   :  { %14394 = vmatprep.subr.bf16.mxu1 %v20506_v10  ;;  %15964 = vmatpush1.bf16.msra.mxu0 %v20606_v57  ;;  %v20650_v10 = vld [vmem:[#allocation20 + $0x104] ss:$16 sps:$4 sm:$0xff]   ;;  %v20575_v57 = vld [vmem:[#allocation17 + $0x10ec] ss:$16 sps:$4 sm:$0xff]  }
 0x927   :  { %15965 = vmatprep.subr.bf16.mxu0 %v20614_v43  ;;  %v20578_v43 = vld [vmem:[#allocation17 + $0x110c] ss:$16 sps:$4 sm:$0xff]  }
 0x928   :  { %13846 = vmatmul.mubr.bf16.vlgmr.msra.gmra.mrb[68].mxu1 %v23612_v4 }
 0x929   :  { %14395 = vmatpush1.bf16.msra.mxu1 %v20504_v47  ;;  %14426 = vmatprep.mubr.bf16.mxu1 %v23616_v9  ;;  %v20546_v47 = vld [vmem:[#allocation17 + $0xfc8] ss:$16 sps:$4 sm:$0xff]  }
 0x92a   :  { %14396 = vmatprep.subr.bf16.mxu1 %v20509_v37  ;;  %15966 = vmatpush1.bf16.msra.mxu0 %v20612_v3  ;;  %v20648_v37 = vld [vmem:[#allocation20 + $0x100] ss:$16 sps:$4 sm:$0xff]   ;;  %v20581_v3 = vld [vmem:[#allocation17 + $0x112c] ss:$16 sps:$4 sm:$0xff]  }
 0x92b   :  { %15967 = vmatprep.subr.bf16.mxu0 %v20620_v8  ;;  %v20656_v8 = vld [vmem:[#allocation20 + $0x124] ss:$16 sps:$4 sm:$0xff]  }
 0x92d   :  { %14397 = vmatpush1.bf16.msra.mxu1 %v20507_v56  ;;  %v20551_v56 = vld [vmem:[#allocation17 + $0xfec] ss:$16 sps:$4 sm:$0xff]  }
 0x92e   :  { %14398 = vmatprep.subr.bf16.mxu1 %v20512_v45  ;;  %15968 = vmatpush1.bf16.msra.mxu0 %v20618_v48  ;;  %v20549_v45 = vld [vmem:[#allocation17 + $0xfe8] ss:$16 sps:$4 sm:$0xff]  }
 0x92f   :  { %15969 = vmatprep.subr.bf16.mxu0 %v20626_v30  ;;  %v20582_v48 = vld [vmem:[#allocation17 + $0x1148] ss:$16 sps:$4 sm:$0xff]   ;;  %v20587_v30 = vld [vmem:[#allocation17 + $0x116c] ss:$16 sps:$4 sm:$0xff]  }
 0x931   :  { %14399 = vmatpush1.bf16.msra.mxu1 %v20510_v41  ;;  %v20554_v41 = vld [vmem:[#allocation17 + $0x100c] ss:$16 sps:$4 sm:$0xff]  }
 0x932   :  { %14400 = vmatprep.subr.bf16.mxu1 %v20515_v1  ;;  %15970 = vmatpush1.bf16.msra.mxu0 %v20624_v28  ;;  %v20552_v1 = vld [vmem:[#allocation17 + $0x1008] ss:$16 sps:$4 sm:$0xff]  }
 0x933   :  { %15971 = vmatprep.subr.bf16.mxu0 %v20632_v5  ;;  %v20585_v28 = vld [vmem:[#allocation17 + $0x1168] ss:$16 sps:$4 sm:$0xff]   ;;  %v20590_v5 = vld [vmem:[#allocation17 + $0x118c] ss:$16 sps:$4 sm:$0xff]  }
 0x934   :  { %v13264_v39 = vpop.f32.mrb[64].mxu0 }
 0x935   :  { %14401 = vmatpush1.bf16.msra.mxu1 %v20513_v35  ;;  %v23674_v40 = vadd.f32 %v13264_v39, %v23654_v50  ;;  %v13266_v4 = vpop.f32.mrb[65].mxu0  ;;  %v20557_v35 = vld [vmem:[#allocation17 + $0x102c] ss:$16 sps:$4 sm:$0xff]  }
 0x936   :  { %v23677_v9 = vadd.f32 %v13266_v4, %v23657_v38  ;;  %v13268_v53 = vpop.f32.mrb[66].mxu0  ;;  %14402 = vmatprep.subr.bf16.mxu1 %v20518_v55  ;;  %v20522_v38 = vld [vmem:[#allocation17 + $0xec8] ss:$16 sps:$4 sm:$0xff]   ;;  %15972 = vmatpush1.bf16.msra.mxu0 %v20630_v26  ;;  %v20560_v39 = vld [vmem:[#allocation17 + $0x104c] ss:$16 sps:$4 sm:$0xff]  }
 0x937   :  { %v13269_v58 = vpop.f32.mrb[67].mxu0  ;;  %15973 = vmatprep.subr.bf16.mxu0 %v20638_v11  ;;  %v20555_v55 = vld [vmem:[#allocation17 + $0x1028] ss:$16 sps:$4 sm:$0xff]   ;;  %v20593_v11 = vld [vmem:[#allocation17 + $0x11ac] ss:$16 sps:$4 sm:$0xff]  }
 0x938   :  { %v20558_v4 = vld [vmem:[#allocation17 + $0x1048] ss:$16 sps:$4 sm:$0xff]  }
 0x939   :  { %14403 = vmatpush1.bf16.msra.mxu1 %v20516_v12  ;;  %v20563_v12 = vld [vmem:[#allocation17 + $0x106c] ss:$16 sps:$4 sm:$0xff]   ;;  %v20561_v53 = vld [vmem:[#allocation17 + $0x1068] ss:$16 sps:$4 sm:$0xff]  }
 0x93a   :  { %14404 = vmatprep.subr.bf16.mxu1 %v20521_v24  ;;  %15974 = vmatpush1.bf16.msra.mxu0 %v20636_v21  ;;  %v20566_v24 = vld [vmem:[#allocation17 + $0x108c] ss:$16 sps:$4 sm:$0xff]   ;;  %v20588_v26 = vld [vmem:[#allocation17 + $0x1188] ss:$16 sps:$4 sm:$0xff]  }
 0x93b   :  { %v12179_v61 = vpop.f32.mrb[56].mxu1  ;;  %15975 = vmatprep.subr.bf16.mxu0 %v20644_v31  ;;  %v20591_v21 = vld [vmem:[#allocation17 + $0x11a8] ss:$16 sps:$4 sm:$0xff]   ;;  %v20596_v31 = vld [vmem:[#allocation17 + $0x11cc] ss:$16 sps:$4 sm:$0xff]  }
 0x93c   :  { %v23680_v52 = vadd.f32 %v12179_v61, %v23660_v2  ;;  %v12181_v16 = vpop.f32.mrb[57].mxu1  ;;  %v20530_v2 = vld [vmem:[#allocation17 + $0xf0c] ss:$16 sps:$4 sm:$0xff]  }
 0x93d   :  { %v23683_v50 = vadd.f32 %v12181_v16, %v23663_v6  ;;  %v12183_v23 = vpop.f32.mrb[58].mxu1  ;;  %14405 = vmatpush1.bf16.msra.mxu1 %v20519_v51  ;;  %v20528_v6 = vld [vmem:[#allocation17 + $0xf08] ss:$16 sps:$4 sm:$0xff]   ;;  %v20569_v16 = vld [vmem:[#allocation17 + $0x10ac] ss:$16 sps:$4 sm:$0xff]  }
 0x93e   :  { %v12184_v42 = vpop.f32.mrb[59].mxu1  ;;  %14406 = vmatprep.subr.bf16.mxu1 %v20524_v29  ;;  %15976 = vmatpush1.bf16.msra.mxu0 %v20642_v15  ;;  %v20564_v29 = vld [vmem:[#allocation17 + $0x1088] ss:$16 sps:$4 sm:$0xff]  }
 0x93f   :  { %15977 = vmatprep.subr.bf16.mxu0 %v20650_v10  ;;  %v20594_v15 = vld [vmem:[#allocation17 + $0x11c8] ss:$16 sps:$4 sm:$0xff]   ;;  %v20599_v10 = vld [vmem:[#allocation17 + $0x11ec] ss:$16 sps:$4 sm:$0xff]  }
 0x941   :  { %14407 = vmatpush1.bf16.msra.mxu1 %v20522_v38  ;;  %v20567_v38 = vld [vmem:[#allocation17 + $0x10a8] ss:$16 sps:$4 sm:$0xff]  }
 0x942   :  { %14408 = vmatprep.subr.bf16.mxu1 %v20527_v13  ;;  %15978 = vmatpush1.bf16.msra.mxu0 %v20648_v37  ;;  %v20572_v13 = vld [vmem:[#allocation17 + $0x10cc] ss:$16 sps:$4 sm:$0xff]   ;;  %v20597_v37 = vld [vmem:[#allocation17 + $0x11e8] ss:$16 sps:$4 sm:$0xff]  }
 0x943   :  { %15979 = vmatprep.subr.bf16.mxu0 %v20656_v8  ;;  %v20669_v8 = vld [vmem:[#allocation20 + $0x168] ss:$16 sps:$4 sm:$0xff]  }
 0x945   :  { %14409 = vmatpush1.bf16.msra.mxu1 %v20525_v17 }
 0x946   :  { %14410 = vmatprep.subr.bf16.mxu1 %v20530_v2  ;;  %v20573_v2 = vld [vmem:[#allocation17 + $0x10e8] ss:$16 sps:$4 sm:$0xff]  }
 0x949   :  { %14411 = vmatpush1.bf16.msra.mxu1 %v20528_v6  ;;  %v20576_v6 = vld [vmem:[#allocation17 + $0x1108] ss:$16 sps:$4 sm:$0xff]  }
 0x94a   :  { %14412 = vmatprep.subr.bf16.mxu1 %v20533_v20  ;;  %v20584_v20 = vld [vmem:[#allocation17 + $0x114c] ss:$16 sps:$4 sm:$0xff]  }
 0x94d   :  { %14413 = vmatpush1.bf16.msra.mxu1 %v20531_v32  ;;  %v20662_v32 = vld [vmem:[#allocation20 + $0x144] ss:$16 sps:$4 sm:$0xff]  }
 0x94e   :  { %14414 = vmatprep.subr.bf16.mxu1 %v20536_v19  ;;  %v20660_v19 = vld [vmem:[#allocation20 + $0x140] ss:$16 sps:$4 sm:$0xff]  }
 0x951   :  { %14415 = vmatpush1.bf16.msra.mxu1 %v20534_v27  ;;  %v20668_v27 = vld [vmem:[#allocation20 + $0x164] ss:$16 sps:$4 sm:$0xff]  }
 0x952   :  { %14416 = vmatprep.subr.bf16.mxu1 %v20539_v33  ;;  %v20666_v33 = vld [vmem:[#allocation20 + $0x160] ss:$16 sps:$4 sm:$0xff]  }
 0x955   :  { %14417 = vmatpush1.bf16.msra.mxu1 %v20537_v7  ;;  %v20674_v7 = vld [vmem:[#allocation20 + $0x184] ss:$16 sps:$4 sm:$0xff]  }
 0x956   :  { %14418 = vmatprep.subr.bf16.mxu1 %v20542_v36  ;;  %v20672_v36 = vld [vmem:[#allocation20 + $0x180] ss:$16 sps:$4 sm:$0xff]  }
 0x959   :  { %14419 = vmatpush1.bf16.msra.mxu1 %v20540_v22  ;;  %v20680_v22 = vld [vmem:[#allocation20 + $0x1a4] ss:$16 sps:$4 sm:$0xff]  }
 0x95a   :  { %14420 = vmatprep.subr.bf16.mxu1 %v20545_v63  ;;  %v20678_v63 = vld [vmem:[#allocation20 + $0x1a0] ss:$16 sps:$4 sm:$0xff]  }
 0x95d   :  { %14421 = vmatpush1.bf16.msra.mxu1 %v20543_v14  ;;  %v20686_v14 = vld [vmem:[#allocation20 + $0x1c4] ss:$16 sps:$4 sm:$0xff]  }
 0x95e   :  { %14422 = vmatprep.subr.bf16.mxu1 %v20548_v60  ;;  %v20684_v60 = vld [vmem:[#allocation20 + $0x1c0] ss:$16 sps:$4 sm:$0xff]  }
 0x961   :  { %14423 = vmatpush1.bf16.msra.mxu1 %v20546_v47  ;;  %v20692_v47 = vld [vmem:[#allocation20 + $0x1e4] ss:$16 sps:$4 sm:$0xff]  }
 0x962   :  { %14424 = vmatprep.subr.bf16.mxu1 %v20551_v56  ;;  %v20690_v56 = vld [vmem:[#allocation20 + $0x1e0] ss:$16 sps:$4 sm:$0xff]  }
 0x965   :  { %14425 = vmatpush1.bf16.msra.mxu1 %v20549_v45  ;;  %v20605_v45 = vld [vmem:[#allocation20 + $0xc] ss:$16 sps:$4 sm:$0xff]  }
 0x966   :  { %14939 = vmatprep.subr.bf16.mxu1 %v20554_v41  ;;  %v20603_v41 = vld [vmem:[#allocation20 + $0x8] ss:$16 sps:$4 sm:$0xff]  }
 0x968   :  { %14427 = vmatmul.mubr.bf16.vlgmr.msra.gmra.mrb[72].mxu1 %v23644_v34 }
 0x969   :  { %14940 = vmatpush1.bf16.msra.mxu1 %v20552_v1  ;;  %14971 = vmatprep.mubr.bf16.mxu1 %v23648_v62  ;;  %v20611_v1 = vld [vmem:[#allocation20 + $0x2c] ss:$16 sps:$4 sm:$0xff]  }
 0x96a   :  { %14941 = vmatprep.subr.bf16.mxu1 %v20557_v35  ;;  %v20609_v35 = vld [vmem:[#allocation20 + $0x28] ss:$16 sps:$4 sm:$0xff]  }
 0x96d   :  { %14942 = vmatpush1.bf16.msra.mxu1 %v20555_v55  ;;  %v20617_v55 = vld [vmem:[#allocation20 + $0x4c] ss:$16 sps:$4 sm:$0xff]  }
 0x96e   :  { %14943 = vmatprep.subr.bf16.mxu1 %v20560_v39  ;;  %v20615_v39 = vld [vmem:[#allocation20 + $0x48] ss:$16 sps:$4 sm:$0xff]  }
 0x971   :  { %14944 = vmatpush1.bf16.msra.mxu1 %v20558_v4  ;;  %v20623_v4 = vld [vmem:[#allocation20 + $0x6c] ss:$16 sps:$4 sm:$0xff]  }
 0x972   :  { %14945 = vmatprep.subr.bf16.mxu1 %v20563_v12  ;;  %v20621_v12 = vld [vmem:[#allocation20 + $0x68] ss:$16 sps:$4 sm:$0xff]  }
 0x974   :  { %v13806_v58 = vpop.f32.mrb[68].mxu0 }
 0x975   :  { %14946 = vmatpush1.bf16.msra.mxu1 %v20561_v53  ;;  %v23688_v51 = vadd.f32 %v13806_v58, %v23674_v40  ;;  %v13808_v34 = vpop.f32.mrb[69].mxu0  ;;  %v20629_v53 = vld [vmem:[#allocation20 + $0x8c] ss:$16 sps:$4 sm:$0xff]  }
 0x976   :  { %v23691_v62 = vadd.f32 %v13808_v34, %v23677_v9  ;;  %v13810_v61 = vpop.f32.mrb[70].mxu0  ;;  %14947 = vmatprep.subr.bf16.mxu1 %v20566_v24  ;;  %v20570_v9 = vld [vmem:[#allocation17 + $0x10c8] ss:$16 sps:$4 sm:$0xff]  }
 0x977   :  { %v13811_v23 = vpop.f32.mrb[71].mxu0 }
 0x979   :  { %14948 = vmatpush1.bf16.msra.mxu1 %v20564_v29  ;;  %v20627_v29 = vld [vmem:[#allocation20 + $0x88] ss:$16 sps:$4 sm:$0xff]  }
 0x97a   :  { %14949 = vmatprep.subr.bf16.mxu1 %v20569_v16  ;;  %v20635_v16 = vld [vmem:[#allocation20 + $0xac] ss:$16 sps:$4 sm:$0xff]  }
 0x97b   :  { %v12760_v42 = vpop.f32.mrb[60].mxu1 }
 0x97c   :  { %v23694_v18 = vadd.f32 %v12760_v42, %v23680_v52  ;;  %v12762_v44 = vpop.f32.mrb[61].mxu1  ;;  %v20579_v52 = vld [vmem:[#allocation17 + $0x1128] ss:$16 sps:$4 sm:$0xff]  }
 0x97d   :  { %v23697_v40 = vadd.f32 %v12762_v44, %v23683_v50  ;;  %v12764_v54 = vpop.f32.mrb[62].mxu1  ;;  %14950 = vmatpush1.bf16.msra.mxu1 %v20567_v38  ;;  %v20654_v50 = vld [vmem:[#allocation20 + $0x120] ss:$16 sps:$4 sm:$0xff]   ;;  %v20633_v38 = vld [vmem:[#allocation20 + $0xa8] ss:$16 sps:$4 sm:$0xff]  }
 0x97e   :  { %v12765_v17 = vpop.f32.mrb[63].mxu1  ;;  %14951 = vmatprep.subr.bf16.mxu1 %v20572_v13  ;;  %15980 = vmatpush1.bf16.msra.mxu0 %v20654_v50  ;;  %v20641_v13 = vld [vmem:[#allocation20 + $0xcc] ss:$16 sps:$4 sm:$0xff]  }
 0x97f   :  { %15981 = vmatprep.subr.bf16.mxu0 %v20662_v32  ;;  %v20671_v50 = vld [vmem:[#allocation20 + $0x16c] ss:$16 sps:$4 sm:$0xff]  }
 0x980   :  { %v20677_v32 = vld [vmem:[#allocation20 + $0x18c] ss:$16 sps:$4 sm:$0xff]  }
 0x981   :  { %14952 = vmatpush1.bf16.msra.mxu1 %v20570_v9 }
 0x982   :  { %14953 = vmatprep.subr.bf16.mxu1 %v20575_v57  ;;  %15982 = vmatpush1.bf16.msra.mxu0 %v20660_v19  ;;  %v20647_v57 = vld [vmem:[#allocation20 + $0xec] ss:$16 sps:$4 sm:$0xff]  }
 0x983   :  { %15983 = vmatprep.subr.bf16.mxu0 %v20668_v27  ;;  %v20683_v19 = vld [vmem:[#allocation20 + $0x1ac] ss:$16 sps:$4 sm:$0xff]  }
 0x984   :  { %v20689_v27 = vld [vmem:[#allocation20 + $0x1cc] ss:$16 sps:$4 sm:$0xff]  }
 0x985   :  { %14954 = vmatpush1.bf16.msra.mxu1 %v20573_v2  ;;  %v20698_v2 = vld [vmem:[#allocation20 + $0x204] ss:$16 sps:$4 sm:$0xff]  }
 0x986   :  { %14955 = vmatprep.subr.bf16.mxu1 %v20578_v43  ;;  %15984 = vmatpush1.bf16.msra.mxu0 %v20666_v33  ;;  %v20645_v43 = vld [vmem:[#allocation20 + $0xe8] ss:$16 sps:$4 sm:$0xff]   ;;  %v20695_v33 = vld [vmem:[#allocation20 + $0x1ec] ss:$16 sps:$4 sm:$0xff]  }
 0x987   :  { %15985 = vmatprep.subr.bf16.mxu0 %v20674_v7  ;;  %v20701_v7 = vld [vmem:[#allocation20 + $0x20c] ss:$16 sps:$4 sm:$0xff]  }
 0x989   :  { %14956 = vmatpush1.bf16.msra.mxu1 %v20576_v6  ;;  %v20653_v6 = vld [vmem:[#allocation20 + $0x10c] ss:$16 sps:$4 sm:$0xff]  }
 0x98a   :  { %14957 = vmatprep.subr.bf16.mxu1 %v20581_v3  ;;  %15986 = vmatpush1.bf16.msra.mxu0 %v20672_v36  ;;  %v20651_v3 = vld [vmem:[#allocation20 + $0x108] ss:$16 sps:$4 sm:$0xff]  }
 0x98b   :  { %15987 = vmatprep.subr.bf16.mxu0 %v20680_v22 }
 0x98d   :  { %14958 = vmatpush1.bf16.msra.mxu1 %v20579_v52  ;;  %v20657_v52 = vld [vmem:[#allocation20 + $0x128] ss:$16 sps:$4 sm:$0xff]  }
 0x98e   :  { %14959 = vmatprep.subr.bf16.mxu1 %v20584_v20  ;;  %15988 = vmatpush1.bf16.msra.mxu0 %v20678_v63  ;;  %v20663_v20 = vld [vmem:[#allocation20 + $0x148] ss:$16 sps:$4 sm:$0xff]  }
 0x98f   :  { %15989 = vmatprep.subr.bf16.mxu0 %v20686_v14 }
 0x991   :  { %14960 = vmatpush1.bf16.msra.mxu1 %v20582_v48  ;;  %v20675_v48 = vld [vmem:[#allocation20 + $0x188] ss:$16 sps:$4 sm:$0xff]  }
 0x992   :  { %14961 = vmatprep.subr.bf16.mxu1 %v20587_v30  ;;  %15990 = vmatpush1.bf16.msra.mxu0 %v20684_v60  ;;  %v20681_v30 = vld [vmem:[#allocation20 + $0x1a8] ss:$16 sps:$4 sm:$0xff]  }
 0x993   :  { %15991 = vmatprep.subr.bf16.mxu0 %v20692_v47 }
 0x995   :  { %14962 = vmatpush1.bf16.msra.mxu1 %v20585_v28  ;;  %v20687_v28 = vld [vmem:[#allocation20 + $0x1c8] ss:$16 sps:$4 sm:$0xff]  }
 0x996   :  { %14963 = vmatprep.subr.bf16.mxu1 %v20590_v5  ;;  %15992 = vmatpush1.bf16.msra.mxu0 %v20690_v56  ;;  %v20693_v5 = vld [vmem:[#allocation20 + $0x1e8] ss:$16 sps:$4 sm:$0xff]  }
 0x997   :  { %16002 = vmatprep.subr.bf16.mxu0 %v20698_v2 }
 0x999   :  { %14964 = vmatpush1.bf16.msra.mxu1 %v20588_v26  ;;  %v23712_v26 = vld [vmem:[#allocation19] sm:$0xf] }
 0x99a   :  { %14965 = vmatprep.subr.bf16.mxu1 %v20593_v11  ;;  %v14989_v36 = vrot.slane %v23712_v26, %v23372_v46  ;;  %v14993_v22 = vrot.slane %v23712_v26, %v23375_v0 }
 0x99d   :  { %14966 = vmatpush1.bf16.msra.mxu1 %v20591_v21 }
 0x99e   :  { %14967 = vmatprep.subr.bf16.mxu1 %v20596_v31 }
 0x9a1   :  { %14968 = vmatpush1.bf16.msra.mxu1 %v20594_v15 }
 0x9a2   :  { %14969 = vmatprep.subr.bf16.mxu1 %v20599_v10 }
 0x9a5   :  { %14970 = vmatpush1.bf16.msra.mxu1 %v20597_v37 }
 0x9a6   :  { %16043 = vmatprep.subr.bf16.mxu1 %v20605_v45 }
 0x9a8   :  { %14972 = vmatmul.mubr.bf16.vlgmr.msra.gmra.mrb[76].mxu1 %v23668_v59 }
 0x9a9   :  { %16044 = vmatpush1.bf16.msra.mxu1 %v20603_v41 }
 0x9aa   :  { %16045 = vmatprep.subr.bf16.mxu1 %v20611_v1 }
 0x9ad   :  { %16046 = vmatpush1.bf16.msra.mxu1 %v20609_v35 }
 0x9ae   :  { %16047 = vmatprep.subr.bf16.mxu1 %v20617_v55 }
 0x9b1   :  { %16048 = vmatpush1.bf16.msra.mxu1 %v20615_v39 }
 0x9b2   :  { %16049 = vmatprep.subr.bf16.mxu1 %v20623_v4 }
 0x9b4   :  { %v14387_v24 = vpop.f32.mrb[72].mxu0 }
 0x9b5   :  { %v23701_v58 = vadd.f32 %v14387_v24, %v23688_v51  ;;  %v14389_v34 = vpop.f32.mrb[73].mxu0  ;;  %16050 = vmatpush1.bf16.msra.mxu1 %v20621_v12 }
 0x9b6   :  { %v23704_v59 = vadd.f32 %v14389_v34, %v23691_v62  ;;  %v14391_v61 = vpop.f32.mrb[74].mxu0  ;;  %16051 = vmatprep.subr.bf16.mxu1 %v20629_v53  ;;  %v20639_v62 = vld [vmem:[#allocation20 + $0xc8] ss:$16 sps:$4 sm:$0xff]  }
 0x9b7   :  { %v14392_v23 = vpop.f32.mrb[75].mxu0 }
 0x9b9   :  { %16052 = vmatpush1.bf16.msra.mxu1 %v20627_v29 }
 0x9ba   :  { %16053 = vmatprep.subr.bf16.mxu1 %v20635_v16 }
 0x9bb   :  { %v13305_v42 = vpop.f32.mrb[64].mxu1 }
 0x9bc   :  { %v23707_v44 = vadd.f32 %v13305_v42, %v23694_v18  ;;  %v13307_v51 = vpop.f32.mrb[65].mxu1  ;;  %v20659_v18 = vld [vmem:[#allocation20 + $0x12c] ss:$16 sps:$4 sm:$0xff]  }
 0x9bd   :  { %v23710_v54 = vadd.f32 %v13307_v51, %v23697_v40  ;;  %v13309_v9 = vpop.f32.mrb[66].mxu1  ;;  %16054 = vmatpush1.bf16.msra.mxu1 %v20633_v38  ;;  %v20665_v40 = vld [vmem:[#allocation20 + $0x14c] ss:$16 sps:$4 sm:$0xff]  }
 0x9be   :  { %v13310_v17 = vpop.f32.mrb[67].mxu1  ;;  %16055 = vmatprep.subr.bf16.mxu1 %v20641_v13 }
 0x9c1   :  { %16056 = vmatpush1.bf16.msra.mxu1 %v20639_v62 }
 0x9c2   :  { %16057 = vmatprep.subr.bf16.mxu1 %v20647_v57 }
 0x9c5   :  { %16058 = vmatpush1.bf16.msra.mxu1 %v20645_v43 }
 0x9c6   :  { %16059 = vmatprep.subr.bf16.mxu1 %v20653_v6 }
 0x9c9   :  { %16060 = vmatpush1.bf16.msra.mxu1 %v20651_v3 }
 0x9ca   :  { %16061 = vmatprep.subr.bf16.mxu1 %v20659_v18 }
 0x9cd   :  { %16062 = vmatpush1.bf16.msra.mxu1 %v20657_v52 }
 0x9ce   :  { %16063 = vmatprep.subr.bf16.mxu1 %v20665_v40 }
 0x9d1   :  { %16064 = vmatpush1.bf16.msra.mxu1 %v20663_v20  ;;  %v20696_v20 = vld [vmem:[#allocation20 + $0x200] ss:$16 sps:$4 sm:$0xff]  }
 0x9d2   :  { %16065 = vmatprep.subr.bf16.mxu1 %v20671_v50  ;;  %v20699_v50 = vld [vmem:[#allocation20 + $0x208] ss:$16 sps:$4 sm:$0xff]  }
 0x9d5   :  { %16066 = vmatpush1.bf16.msra.mxu1 %v20669_v8  ;;  %v20704_v8 = vld [vmem:[#allocation20 + $0x224] ss:$16 sps:$4 sm:$0xff]  }
 0x9d6   :  { %16067 = vmatprep.subr.bf16.mxu1 %v20677_v32  ;;  %v20707_v32 = vld [vmem:[#allocation20 + $0x22c] ss:$16 sps:$4 sm:$0xff]  }
 0x9d9   :  { %16068 = vmatpush1.bf16.msra.mxu1 %v20675_v48  ;;  %v20702_v48 = vld [vmem:[#allocation20 + $0x220] ss:$16 sps:$4 sm:$0xff]  }
 0x9da   :  { %16069 = vmatprep.subr.bf16.mxu1 %v20683_v19  ;;  %v20705_v19 = vld [vmem:[#allocation20 + $0x228] ss:$16 sps:$4 sm:$0xff]  }
 0x9dd   :  { %16070 = vmatpush1.bf16.msra.mxu1 %v20681_v30  ;;  %v20710_v30 = vld [vmem:[#allocation20 + $0x244] ss:$16 sps:$4 sm:$0xff]  }
 0x9de   :  { %16071 = vmatprep.subr.bf16.mxu1 %v20689_v27  ;;  %v20713_v27 = vld [vmem:[#allocation20 + $0x24c] ss:$16 sps:$4 sm:$0xff]  }
 0x9e1   :  { %16072 = vmatpush1.bf16.msra.mxu1 %v20687_v28  ;;  %v20708_v28 = vld [vmem:[#allocation20 + $0x240] ss:$16 sps:$4 sm:$0xff]  }
 0x9e2   :  { %16073 = vmatprep.subr.bf16.mxu1 %v20695_v33  ;;  %v20711_v33 = vld [vmem:[#allocation20 + $0x248] ss:$16 sps:$4 sm:$0xff]  }
 0x9e5   :  { %16074 = vmatpush1.bf16.msra.mxu1 %v20693_v5  ;;  %v20716_v5 = vld [vmem:[#allocation20 + $0x264] ss:$16 sps:$4 sm:$0xff]  }
 0x9e6   :  { %16084 = vmatprep.subr.bf16.mxu1 %v20701_v7  ;;  %v20719_v7 = vld [vmem:[#allocation20 + $0x26c] ss:$16 sps:$4 sm:$0xff]  }
 0x9f4   :  { %v14932_v11 = vpop.f32.mrb[76].mxu0 }
 0x9f5   :  { %v14980_v21 = vadd.f32 %v14932_v11, %v23701_v58  ;;  %v14934_v63 = vpop.f32.mrb[77].mxu0  ;;  %v20717_v11 = vld [vmem:[#allocation20 + $0x268] ss:$16 sps:$4 sm:$0xff]  }
 0x9f6   :  { %v14981_v31 = vadd.f32 %v14934_v63, %v23704_v59  ;;  %v14936_v14 = vpop.f32.mrb[78].mxu0  ;;  %v23727_v59 = vsub.s32 4, %v23839_v25  ;;  %v20720_v63 = vld [vmem:[#allocation20 + $0x280] ss:$16 sps:$4 sm:$0xff]  }
 0x9f7   :  { %v15006_v15 = vadd.f32 %v14989_v36, %v14980_v21  ;;  %v14937_v60 = vpop.f32.mrb[79].mxu0  ;;  %v20714_v36 = vld [vmem:[#allocation20 + $0x260] ss:$16 sps:$4 sm:$0xff]   ;;  %v20725_v21 = vld [vmem:[#allocation20 + $0x28c] ss:$16 sps:$4 sm:$0xff]  }
 0x9f8   :  { %v15007_v10 = vadd.f32 %v14993_v22, %v14981_v31  ;;  %v20722_v22 = vld [vmem:[#allocation20 + $0x284] ss:$16 sps:$4 sm:$0xff]   ;;  %v20723_v31 = vld [vmem:[#allocation20 + $0x288] ss:$16 sps:$4 sm:$0xff]   ;;  %v20726_v60 = vld [vmem:[#allocation20 + $0x2a0] ss:$16 sps:$4 sm:$0xff]  }
 0x9f9   :  { %v15010_v47 = vmax.f32 %v15006_v15, 0.0  ;;  %v20728_v14 = vld [vmem:[#allocation20 + $0x2a4] ss:$16 sps:$4 sm:$0xff]   ;;  %v20731_v15 = vld [vmem:[#allocation20 + $0x2ac] ss:$16 sps:$4 sm:$0xff]  }
 0x9fa   :  { %v15011_v37 = vmax.f32 %v15007_v10, 0.0  ;;  %v20729_v10 = vld [vmem:[#allocation20 + $0x2a8] ss:$16 sps:$4 sm:$0xff]  }
 0x9fb   :  { %v13847_v56 = vpop.f32.mrb[68].mxu1 }
 0x9fc   :  { %v15018_v45 = vcombine.low %v15010_v47, %v15011_v37  ;;  %v15019_v41 = vcombine.high %v15010_v47, %v15011_v37  ;;  %v23721_v1 = vadd.f32 %v13847_v56, %v23707_v44  ;;  %v13849_v35 = vpop.f32.mrb[69].mxu1  ;;  %v20734_v47 = vld [vmem:[#allocation20 + $0x2c4] ss:$16 sps:$4 sm:$0xff]   ;;  %v20737_v37 = vld [vmem:[#allocation20 + $0x2cc] ss:$16 sps:$4 sm:$0xff]  }
 0x9fd   :  { %v23724_v55 = vadd.f32 %v13849_v35, %v23710_v54  ;;  %v13851_v39 = vpop.f32.mrb[70].mxu1  ;;  %v20732_v56 = vld [vmem:[#allocation20 + $0x2c0] ss:$16 sps:$4 sm:$0xff]   ;;  %v20743_v35 = vld [vmem:[#allocation20 + $0x2ec] ss:$16 sps:$4 sm:$0xff]  }
 0x9fe   :  { %v18331_v4 = vrot.slane %v15018_v45, 10  ;;  %v18333_v12 = vrot.slane %v15019_v41, 10  ;;  %v13852_v53 = vpop.f32.mrb[71].mxu1  ;;  %v20738_v39 = vld [vmem:[#allocation20 + $0x2e0] ss:$16 sps:$4 sm:$0xff]  }
 0x9ff   :  { %v20749_v53 = vld [vmem:[#allocation20 + $0x30c] ss:$16 sps:$4 sm:$0xff]  }
 0xa00   :  { %v15038_v24 = vmax.f32 %v15018_v45, %v18331_v4  ;;  %v15040_v58 = vmax.f32 %v15019_v41, %v18333_v12  ;;  %v20735_v45 = vld [vmem:[#allocation20 + $0x2c8] ss:$16 sps:$4 sm:$0xff]   ;;  %v20740_v41 = vld [vmem:[#allocation20 + $0x2e4] ss:$16 sps:$4 sm:$0xff]  }
 0xa01   :  { %v20741_v4 = vld [vmem:[#allocation20 + $0x2e8] ss:$16 sps:$4 sm:$0xff]   ;;  %v20746_v12 = vld [vmem:[#allocation20 + $0x304] ss:$16 sps:$4 sm:$0xff]  }
 0xa02   :  { %v18335_v34 = vrot.slane %v15038_v24, 9  ;;  %v18337_v29 = vrot.slane %v15040_v58, 9 }
 0xa04   :  { %v15058_v61 = vmax.f32 %v15038_v24, %v18335_v34  ;;  %v15060_v16 = vmax.f32 %v15040_v58, %v18337_v29  ;;  %v20744_v24 = vld [vmem:[#allocation20 + $0x300] ss:$16 sps:$4 sm:$0xff]   ;;  %v20747_v58 = vld [vmem:[#allocation20 + $0x308] ss:$16 sps:$4 sm:$0xff]   ;;  %v20752_v34 = vld [vmem:[#allocation20 + $0x324] ss:$16 sps:$4 sm:$0xff]  }
 0xa05   :  { %v20755_v29 = vld [vmem:[#allocation20 + $0x32c] ss:$16 sps:$4 sm:$0xff]  }
 0xa06   :  { %v15069_v23 = vrot.slane %v15058_v61, %v23372_v46  ;;  %v15085_v38 = vrot.slane %v15060_v16, %v23372_v46  ;;  %v15073_v13 = vrot.slane %v15058_v61, %v23727_v59  ;;  %v15089_v42 = vrot.slane %v15060_v16, %v23727_v59  ;;  %v20750_v61 = vld [vmem:[#allocation20 + $0x320] ss:$16 sps:$4 sm:$0xff]   ;;  %v20753_v16 = vld [vmem:[#allocation20 + $0x328] ss:$16 sps:$4 sm:$0xff]  }
 0xa08   :  { %v15130_v44 = vpack.c.bf16 %v15069_v23, %v15069_v23  ;;  %v15134_v51 = vpack.c.bf16 %v15085_v38, %v15085_v38  ;;  %v15131_v54 = vpack.c.bf16 %v15073_v13, %v15073_v13  ;;  %v15135_v9 = vpack.c.bf16 %v15089_v42, %v15089_v42  ;;  %v20758_v23 = vld [vmem:[#allocation20 + $0x344] ss:$16 sps:$4 sm:$0xff]   ;;  %v20761_v38 = vld [vmem:[#allocation20 + $0x34c] ss:$16 sps:$4 sm:$0xff]   ;;  %v20756_v13 = vld [vmem:[#allocation20 + $0x340] ss:$16 sps:$4 sm:$0xff]  }
 0xa09   :  { %v20759_v42 = vld [vmem:[#allocation20 + $0x348] ss:$16 sps:$4 sm:$0xff]  }
 0xa0a   :  { %v15300_v62 = vunpack.c.l.b16 %v15134_v51  ;;  %v15301_v17 = vunpack.c.l.b16 %v15135_v9  ;;  %v15296_v57 = vunpack.c.l.b16 %v15130_v44  ;;  %v15297_v2 = vunpack.c.l.b16 %v15131_v54  ;;  %v20764_v44 = vld [vmem:[#allocation20 + $0x364] ss:$16 sps:$4 sm:$0xff]   ;;  %v20767_v51 = vld [vmem:[#allocation20 + $0x36c] ss:$16 sps:$4 sm:$0xff]   ;;  %v20762_v9 = vld [vmem:[#allocation20 + $0x360] ss:$16 sps:$4 sm:$0xff]  }
 0xa0c   :  { %v15307_v43 = vrot.slane %v15301_v17, 7  ;;  %v15304_v6 = vrot.slane %v15300_v62, 7  ;;  %v20765_v62 = vld [vmem:[#allocation20 + $0x368] ss:$16 sps:$4 sm:$0xff]  }
 0xa0e   :  { %v15308_v3 = vsel %vm15305_vm6, %v15307_v43, %v15297_v2  ;;  %v15306_v18 = vsel %vm15305_vm6, %v15304_v6, %v15296_v57  ;;  %v20770_v2 = vld [vmem:[#allocation20 + $0x384] ss:$16 sps:$4 sm:$0xff]   ;;  %v20773_v43 = vld [vmem:[#allocation20 + $0x38c] ss:$16 sps:$4 sm:$0xff]  }
 0xa0f   :  { %v15314_v52 = vpack.c.b16 %v15308_v3, %v15308_v3  ;;  %v15313_v40 = vpack.c.b16 %v15306_v18, %v15306_v18 }
 0xa11   :  { %15993 = vmatprep.mubr.bf16.mxu0 %v15314_v52  ;;  %16075 = vmatprep.mubr.bf16.mxu1 %v15314_v52  ;;  %v20768_v52 = vld [vmem:[#allocation20 + $0x380] ss:$16 sps:$4 sm:$0xff]  }
 0xa12   :  { %15994 = vmatmul.mubr.bf16.vlgmr.msra.gmra.mrb[80].mxu0 %v15313_v40  ;;  %16076 = vmatmul.mubr.bf16.vlgmr.msra.gmra.mrb[80].mxu1 %v15313_v40  ;;  %v20771_v40 = vld [vmem:[#allocation20 + $0x388] ss:$16 sps:$4 sm:$0xff]  }
 0xa13   :  { %16003 = vmatpush1.bf16.msra.mxu0 %v20696_v20  ;;  %16085 = vmatpush1.bf16.msra.mxu1 %v20699_v50  ;;  %v20776_v20 = vld [vmem:[#allocation20 + $0x3a4] ss:$16 sps:$4 sm:$0xff]   ;;  %v20779_v50 = vld [vmem:[#allocation20 + $0x3ac] ss:$16 sps:$4 sm:$0xff]  }
 0xa14   :  { %16004 = vmatprep.subr.bf16.mxu0 %v20704_v8  ;;  %16086 = vmatprep.subr.bf16.mxu1 %v20707_v32  ;;  %v20777_v8 = vld [vmem:[#allocation20 + $0x3a8] ss:$16 sps:$4 sm:$0xff]   ;;  %v20782_v32 = vld [vmem:[#allocation20 + $0x3c4] ss:$16 sps:$4 sm:$0xff]  }
 0xa17   :  { %16005 = vmatpush1.bf16.msra.mxu0 %v20702_v48  ;;  %16087 = vmatpush1.bf16.msra.mxu1 %v20705_v19  ;;  %v20785_v48 = vld [vmem:[#allocation20 + $0x3cc] ss:$16 sps:$4 sm:$0xff]   ;;  %v20783_v19 = vld [vmem:[#allocation20 + $0x3c8] ss:$16 sps:$4 sm:$0xff]  }
 0xa18   :  { %16006 = vmatprep.subr.bf16.mxu0 %v20710_v30  ;;  %16088 = vmatprep.subr.bf16.mxu1 %v20713_v27  ;;  %v20788_v30 = vld [vmem:[#allocation20 + $0x3e4] ss:$16 sps:$4 sm:$0xff]   ;;  %v20791_v27 = vld [vmem:[#allocation20 + $0x3ec] ss:$16 sps:$4 sm:$0xff]  }
 0xa1b   :  { %16007 = vmatpush1.bf16.msra.mxu0 %v20708_v28  ;;  %16089 = vmatpush1.bf16.msra.mxu1 %v20711_v33  ;;  %v20786_v28 = vld [vmem:[#allocation20 + $0x3e0] ss:$16 sps:$4 sm:$0xff]   ;;  %v20789_v33 = vld [vmem:[#allocation20 + $0x3e8] ss:$16 sps:$4 sm:$0xff]  }
 0xa1c   :  { %16008 = vmatprep.subr.bf16.mxu0 %v20716_v5  ;;  %16090 = vmatprep.subr.bf16.mxu1 %v20719_v7  ;;  %v20794_v5 = vld [vmem:[#allocation23 + $0x4] ss:$8 sps:$4 sm:$0xff]   ;;  %v15000_v7 = vsub.s32 3, %v23839_v25 }
 0xa1f   :  { %16009 = vmatpush1.bf16.msra.mxu0 %v20714_v36  ;;  %16091 = vmatpush1.bf16.msra.mxu1 %v20717_v11  ;;  %v14997_v36 = vrot.slane %v23712_v26, %v23381_v49 }
 0xa20   :  { %16010 = vmatprep.subr.bf16.mxu0 %v20722_v22  ;;  %16092 = vmatprep.subr.bf16.mxu1 %v20725_v21  ;;  %v15001_v22 = vrot.slane %v23712_v26, %v15000_v7 }
 0xa23   :  { %16011 = vmatpush1.bf16.msra.mxu0 %v20720_v63  ;;  %16093 = vmatpush1.bf16.msra.mxu1 %v20723_v31 }
 0xa24   :  { %16012 = vmatprep.subr.bf16.mxu0 %v20728_v14  ;;  %16094 = vmatprep.subr.bf16.mxu1 %v20731_v15 }
 0xa27   :  { %16013 = vmatpush1.bf16.msra.mxu0 %v20726_v60  ;;  %16095 = vmatpush1.bf16.msra.mxu1 %v20729_v10 }
 0xa28   :  { %16014 = vmatprep.subr.bf16.mxu0 %v20734_v47  ;;  %16096 = vmatprep.subr.bf16.mxu1 %v20737_v37 }
 0xa2b   :  { %16015 = vmatpush1.bf16.msra.mxu0 %v20732_v56  ;;  %16097 = vmatpush1.bf16.msra.mxu1 %v20735_v45 }
 0xa2c   :  { %16016 = vmatprep.subr.bf16.mxu0 %v20740_v41  ;;  %16098 = vmatprep.subr.bf16.mxu1 %v20743_v35 }
 0xa2f   :  { %16017 = vmatpush1.bf16.msra.mxu0 %v20738_v39  ;;  %16099 = vmatpush1.bf16.msra.mxu1 %v20741_v4 }
 0xa30   :  { %16018 = vmatprep.subr.bf16.mxu0 %v20746_v12  ;;  %16100 = vmatprep.subr.bf16.mxu1 %v20749_v53 }
 0xa33   :  { %16019 = vmatpush1.bf16.msra.mxu0 %v20744_v24  ;;  %16101 = vmatpush1.bf16.msra.mxu1 %v20747_v58 }
 0xa34   :  { %16020 = vmatprep.subr.bf16.mxu0 %v20752_v34  ;;  %16102 = vmatprep.subr.bf16.mxu1 %v20755_v29 }
 0xa37   :  { %16021 = vmatpush1.bf16.msra.mxu0 %v20750_v61  ;;  %16103 = vmatpush1.bf16.msra.mxu1 %v20753_v16 }
 0xa38   :  { %16022 = vmatprep.subr.bf16.mxu0 %v20758_v23  ;;  %16104 = vmatprep.subr.bf16.mxu1 %v20761_v38 }
 0xa3b   :  { %v14428_v54 = vpop.f32.mrb[72].mxu1  ;;  %16023 = vmatpush1.bf16.msra.mxu0 %v20756_v13  ;;  %16105 = vmatpush1.bf16.msra.mxu1 %v20759_v42 }
 0xa3c   :  { %v14437_v17 = vadd.f32 %v14428_v54, %v23721_v1  ;;  %v14430_v57 = vpop.f32.mrb[73].mxu1  ;;  %16024 = vmatprep.subr.bf16.mxu0 %v20764_v44  ;;  %16106 = vmatprep.subr.bf16.mxu1 %v20767_v51  ;;  %v20774_v1 = vld [vmem:[#allocation20 + $0x3a0] ss:$16 sps:$4 sm:$0xff]  }
 0xa3d   :  { %v14438_v6 = vadd.f32 %v14430_v57, %v23724_v55  ;;  %v14432_v3 = vpop.f32.mrb[74].mxu1  ;;  %v20780_v55 = vld [vmem:[#allocation20 + $0x3c0] ss:$16 sps:$4 sm:$0xff]  }
 0xa3e   :  { %v14433_v18 = vpop.f32.mrb[75].mxu1  ;;  %v20797_v3 = vld [vmem:[#allocation23 + $0x14] ss:$8 sps:$4 sm:$0xff]  }
 0xa3f   :  { %16025 = vmatpush1.bf16.msra.mxu0 %v20762_v9  ;;  %16107 = vmatpush1.bf16.msra.mxu1 %v20765_v62  ;;  %v20800_v18 = vld [vmem:[#allocation23 + $0x24] ss:$8 sps:$4 sm:$0xff]  }
 0xa40   :  { %16026 = vmatprep.subr.bf16.mxu0 %v20770_v2  ;;  %16108 = vmatprep.subr.bf16.mxu1 %v20773_v43 }
 0xa43   :  { %16027 = vmatpush1.bf16.msra.mxu0 %v20768_v52  ;;  %16109 = vmatpush1.bf16.msra.mxu1 %v20771_v40  ;;  %v20798_v52 = vld [vmem:[#allocation23 + $0x20] ss:$8 sps:$4 sm:$0xff]   ;;  %v20803_v40 = vld [vmem:[#allocation23 + $0x34] ss:$8 sps:$4 sm:$0xff]  }
 0xa44   :  { %16028 = vmatprep.subr.bf16.mxu0 %v20776_v20  ;;  %16110 = vmatprep.subr.bf16.mxu1 %v20779_v50  ;;  %v20801_v20 = vld [vmem:[#allocation23 + $0x30] ss:$8 sps:$4 sm:$0xff]   ;;  %v20806_v50 = vld [vmem:[#allocation23 + $0x44] ss:$8 sps:$4 sm:$0xff]  }
 0xa47   :  { %16029 = vmatpush1.bf16.msra.mxu0 %v20774_v1  ;;  %16111 = vmatpush1.bf16.msra.mxu1 %v20777_v8  ;;  %v20804_v1 = vld [vmem:[#allocation23 + $0x40] ss:$8 sps:$4 sm:$0xff]   ;;  %v20809_v8 = vld [vmem:[#allocation23 + $0x54] ss:$8 sps:$4 sm:$0xff]  }
 0xa48   :  { %16030 = vmatprep.subr.bf16.mxu0 %v20782_v32  ;;  %16112 = vmatprep.subr.bf16.mxu1 %v20785_v48  ;;  %v20807_v32 = vld [vmem:[#allocation23 + $0x50] ss:$8 sps:$4 sm:$0xff]   ;;  %v20812_v48 = vld [vmem:[#allocation23 + $0x64] ss:$8 sps:$4 sm:$0xff]  }
 0xa4b   :  { %16031 = vmatpush1.bf16.msra.mxu0 %v20780_v55  ;;  %16113 = vmatpush1.bf16.msra.mxu1 %v20783_v19  ;;  %v20810_v55 = vld [vmem:[#allocation23 + $0x60] ss:$8 sps:$4 sm:$0xff]   ;;  %v20815_v19 = vld [vmem:[#allocation23 + $0x74] ss:$8 sps:$4 sm:$0xff]  }
 0xa4c   :  { %16032 = vmatprep.subr.bf16.mxu0 %v20788_v30  ;;  %16114 = vmatprep.subr.bf16.mxu1 %v20791_v27  ;;  %v20813_v30 = vld [vmem:[#allocation23 + $0x70] ss:$8 sps:$4 sm:$0xff]   ;;  %v20818_v27 = vld [vmem:[#allocation23 + $0x84] ss:$8 sps:$4 sm:$0xff]  }
 0xa4f   :  { %16033 = vmatpush1.bf16.msra.mxu0 %v20786_v28  ;;  %16115 = vmatpush1.bf16.msra.mxu1 %v20789_v33  ;;  %v20816_v28 = vld [vmem:[#allocation23 + $0x80] ss:$8 sps:$4 sm:$0xff]   ;;  %v20821_v33 = vld [vmem:[#allocation23 + $0x94] ss:$8 sps:$4 sm:$0xff]  }
 0xa50   :  { %16529 = vmatprep.subr.bf16.mxu0 %v20794_v5  ;;  %v20819_v5 = vld [vmem:[#allocation23 + $0x90] ss:$8 sps:$4 sm:$0xff]  }
 0xa7b   :  { %v14973_v11 = vpop.f32.mrb[76].mxu1 }
 0xa7c   :  { %v14982_v21 = vadd.f32 %v14973_v11, %v14437_v17  ;;  %v14975_v63 = vpop.f32.mrb[77].mxu1  ;;  %v20822_v11 = vld [vmem:[#allocation23 + $0xa0] ss:$8 sps:$4 sm:$0xff]  }
 0xa7d   :  { %v14983_v31 = vadd.f32 %v14975_v63, %v14438_v6  ;;  %v14977_v14 = vpop.f32.mrb[78].mxu1  ;;  %v20792_v6 = vld [vmem:[#allocation23] ss:$8 sps:$4 sm:$0xff]   ;;  %v20830_v63 = vld [vmem:[#allocation23 + $0xc4] ss:$8 sps:$4 sm:$0xff]  }
 0xa7e   :  { %v15008_v15 = vadd.f32 %v14997_v36, %v14982_v21  ;;  %v14978_v60 = vpop.f32.mrb[79].mxu1  ;;  %v20824_v36 = vld [vmem:[#allocation23 + $0xa4] ss:$8 sps:$4 sm:$0xff]   ;;  %v20825_v21 = vld [vmem:[#allocation23 + $0xb0] ss:$8 sps:$4 sm:$0xff]  }
 0xa7f   :  { %v15009_v10 = vadd.f32 %v15001_v22, %v14983_v31  ;;  %v20827_v22 = vld [vmem:[#allocation23 + $0xb4] ss:$8 sps:$4 sm:$0xff]   ;;  %v20828_v31 = vld [vmem:[#allocation23 + $0xc0] ss:$8 sps:$4 sm:$0xff]  }
 0xa80   :  { %v15012_v47 = vmax.f32 %v15008_v15, 0.0  ;;  %v20833_v14 = vld [vmem:[#allocation23 + $0xd4] ss:$8 sps:$4 sm:$0xff]   ;;  %v20831_v15 = vld [vmem:[#allocation23 + $0xd0] ss:$8 sps:$4 sm:$0xff]  }
 0xa81   :  { %v15013_v37 = vmax.f32 %v15009_v10, 0.0  ;;  %v20834_v60 = vld [vmem:[#allocation23 + $0xe0] ss:$8 sps:$4 sm:$0xff]   ;;  %v20836_v10 = vld [vmem:[#allocation23 + $0xe4] ss:$8 sps:$4 sm:$0xff]  }
 0xa83   :  { %v15020_v56 = vcombine.low %v15012_v47, %v15013_v37  ;;  %v15021_v45 = vcombine.high %v15012_v47, %v15013_v37  ;;  %v20839_v47 = vld [vmem:[#allocation23 + $0xf4] ss:$8 sps:$4 sm:$0xff]   ;;  %v20837_v37 = vld [vmem:[#allocation23 + $0xf0] ss:$8 sps:$4 sm:$0xff]  }
 0xa85   :  { %v18332_v41 = vrot.slane %v15020_v56, 10  ;;  %v18334_v35 = vrot.slane %v15021_v45, 10 }
 0xa87   :  { %v15039_v39 = vmax.f32 %v15020_v56, %v18332_v41  ;;  %v15041_v4 = vmax.f32 %v15021_v45, %v18334_v35  ;;  %v20842_v56 = vld [vmem:[#allocation23 + $0x104] ss:$8 sps:$4 sm:$0xff]  }
 0xa88   :  { %v20888_v45 = vld [vmem:[#allocation26 + $0x40] sm:$0xff]   ;;  %v20890_v35 = vld [vmem:[#allocation26 + $0x48] sm:$0xff]  }
 0xa89   :  { %v18336_v12 = vrot.slane %v15039_v39, 9  ;;  %v18338_v53 = vrot.slane %v15041_v4, 9  ;;  %v20889_v41 = vld [vmem:[#allocation26] sm:$0xff]   ;;  %18867 = vmatprep.subr.bf16.mxu1 %v20888_v45 }
 0xa8b   :  { %v15059_v24 = vmax.f32 %v15039_v39, %v18336_v12  ;;  %v15061_v58 = vmax.f32 %v15041_v4, %v18338_v53  ;;  %v20891_v39 = vld [vmem:[#allocation26 + $0x8] sm:$0xff]   ;;  %v20892_v4 = vld [vmem:[#allocation26 + $0x50] sm:$0xff]   ;;  %v20894_v53 = vld [vmem:[#allocation26 + $0x58] sm:$0xff]  }
 0xa8c   :  { %v20893_v12 = vld [vmem:[#allocation26 + $0x10] sm:$0xff]  }
 0xa8d   :  { %v15077_v26 = vrot.slane %v15059_v24, %v23372_v46  ;;  %v15093_v34 = vrot.slane %v15061_v58, %v23372_v46  ;;  %v15081_v29 = vrot.slane %v15059_v24, %v23727_v59  ;;  %v15097_v61 = vrot.slane %v15061_v58, %v23727_v59  ;;  %v20795_v59 = vld [vmem:[#allocation23 + $0x10] ss:$8 sps:$4 sm:$0xff]   ;;  %v20896_v58 = vld [vmem:[#allocation26 + $0x60] sm:$0xff]  }
 0xa8e   :  { %v20895_v24 = vld [vmem:[#allocation26 + $0x18] sm:$0xff]  }
 0xa8f   :  { %v15132_v16 = vpack.c.bf16 %v15077_v26, %v15077_v26  ;;  %v15136_v23 = vpack.c.bf16 %v15093_v34, %v15093_v34  ;;  %v15133_v38 = vpack.c.bf16 %v15081_v29, %v15081_v29  ;;  %v15137_v13 = vpack.c.bf16 %v15097_v61, %v15097_v61  ;;  %v20897_v26 = vld [vmem:[#allocation26 + $0x20] sm:$0xff]   ;;  %v20898_v34 = vld [vmem:[#allocation26 + $0x68] sm:$0xff]   ;;  %v20900_v61 = vld [vmem:[#allocation26 + $0x70] sm:$0xff]  }
 0xa90   :  { %v20899_v29 = vld [vmem:[#allocation26 + $0x28] sm:$0xff]  }
 0xa91   :  { %v15302_v42 = vunpack.c.l.b16 %v15136_v23  ;;  %v15303_v44 = vunpack.c.l.b16 %v15137_v13  ;;  %v15298_v51 = vunpack.c.l.b16 %v15132_v16  ;;  %v15299_v54 = vunpack.c.l.b16 %v15133_v38  ;;  %v23749_v16 = vld [vmem:[#allocation22] sm:$0xf] }
 0xa92   :  { %v15271_v23 = vrot.slane %v23749_v16, %v23372_v46  ;;  %v15275_v38 = vrot.slane %v23749_v16, %v23375_v0  ;;  %v15283_v13 = vrot.slane %v23749_v16, %v15000_v7  ;;  %v15279_v45 = vrot.slane %v23749_v16, %v23381_v49  ;;  %v16197_v49 = vld [vmem:[#allocation25] sm:$0x3] }
 0xa93   :  { %v15311_v9 = vrot.slane %v15303_v44, 7  ;;  %v15309_v62 = vrot.slane %v15302_v42, 7 }
 0xa95   :  { %v15312_v17 = vsel %vm15305_vm6, %v15311_v9, %v15299_v54  ;;  %v15310_v57 = vsel %vm15305_vm6, %v15309_v62, %v15298_v51 }
 0xa96   :  { %v15316_v2 = vpack.c.b16 %v15312_v17, %v15312_v17  ;;  %v15315_v43 = vpack.c.b16 %v15310_v57, %v15310_v57 }
 0xa98   :  { %16034 = vmatprep.mubr.bf16.mxu0 %v15316_v2  ;;  %16116 = vmatprep.mubr.bf16.mxu1 %v15316_v2 }
 0xa99   :  { %16035 = vmatmul.mubr.bf16.vlgmr.msra.gmra.mrb[80].mxu0 %v15315_v43  ;;  %16117 = vmatmul.mubr.bf16.vlgmr.msra.gmra.mrb[80].mxu1 %v15315_v43 }
 0xa9a   :  { %16530 = vmatpush1.bf16.msra.mxu0 %v20792_v6  ;;  %18868 = vmatpush3.bf16.msra.mxu1 %v20889_v41  ;;  %v20884_v41 = vld [vmem:[#allocation23 + $0x1e4] ss:$8 sps:$4 sm:$0xff]  }
 0xa9b   :  { %16531 = vmatprep.subr.bf16.mxu0 %v20797_v3  ;;  %18869 = vmatprep.subr.bf16.mxu1 %v20890_v35  ;;  %v20882_v35 = vld [vmem:[#allocation23 + $0x1e0] ss:$8 sps:$4 sm:$0xff]  }
 0xa9e   :  { %16532 = vmatpush1.bf16.msra.mxu0 %v20795_v59  ;;  %18870 = vmatpush3.bf16.msra.mxu1 %v20891_v39 }
 0xa9f   :  { %16533 = vmatprep.subr.bf16.mxu0 %v20800_v18  ;;  %18871 = vmatprep.subr.bf16.mxu1 %v20892_v4  ;;  %v20887_v4 = vld [vmem:[#allocation23 + $0x1f4] ss:$8 sps:$4 sm:$0xff]  }
 0xaa2   :  { %16534 = vmatpush1.bf16.msra.mxu0 %v20798_v52  ;;  %18872 = vmatpush3.bf16.msra.mxu1 %v20893_v12  ;;  %v20885_v12 = vld [vmem:[#allocation23 + $0x1f0] ss:$8 sps:$4 sm:$0xff]  }
 0xaa3   :  { %16535 = vmatprep.subr.bf16.mxu0 %v20803_v40  ;;  %18873 = vmatprep.subr.bf16.mxu1 %v20894_v53  ;;  %v20840_v40 = vld [vmem:[#allocation23 + $0x100] ss:$8 sps:$4 sm:$0xff]  }
 0xaa6   :  { %16536 = vmatpush1.bf16.msra.mxu0 %v20801_v20  ;;  %18874 = vmatpush3.bf16.msra.mxu1 %v20895_v24  ;;  %v20845_v20 = vld [vmem:[#allocation23 + $0x114] ss:$8 sps:$4 sm:$0xff]  }
 0xaa7   :  { %16537 = vmatprep.subr.bf16.mxu0 %v20806_v50  ;;  %18875 = vmatprep.subr.bf16.mxu1 %v20896_v58  ;;  %v20843_v50 = vld [vmem:[#allocation23 + $0x110] ss:$8 sps:$4 sm:$0xff]  }
 0xaa8   :  { %v20901_v58 = vld [vmem:[#allocation26 + $0x30] sm:$0xff]  }
 0xaaa   :  { %16538 = vmatpush1.bf16.msra.mxu0 %v20804_v1  ;;  %18876 = vmatpush3.bf16.msra.mxu1 %v20897_v26  ;;  %v20848_v1 = vld [vmem:[#allocation23 + $0x124] ss:$8 sps:$4 sm:$0xff]   ;;  %v20902_v26 = vld [vmem:[#allocation26 + $0x78] sm:$0xff]  }
 0xaab   :  { %16539 = vmatprep.subr.bf16.mxu0 %v20809_v8  ;;  %18877 = vmatprep.subr.bf16.mxu1 %v20898_v34  ;;  %v20846_v8 = vld [vmem:[#allocation23 + $0x120] ss:$8 sps:$4 sm:$0xff]  }
 0xaac   :  { %v20903_v34 = vld [vmem:[#allocation26 + $0x38] sm:$0xff]  }
 0xaae   :  { %16540 = vmatpush1.bf16.msra.mxu0 %v20807_v32  ;;  %18878 = vmatpush3.bf16.msra.mxu1 %v20899_v29  ;;  %v20851_v32 = vld [vmem:[#allocation23 + $0x134] ss:$8 sps:$4 sm:$0xff]   ;;  %v16202_v29 = vrot.slane %v16197_v49, %v23372_v46 }
 0xaaf   :  { %16541 = vmatprep.subr.bf16.mxu0 %v20812_v48  ;;  %18879 = vmatprep.subr.bf16.mxu1 %v20900_v61  ;;  %v20849_v48 = vld [vmem:[#allocation23 + $0x130] ss:$8 sps:$4 sm:$0xff]   ;;  %v16206_v61 = vrot.slane %v16197_v49, %v23375_v0 }
 0xab2   :  { %16542 = vmatpush1.bf16.msra.mxu0 %v20810_v55  ;;  %v20854_v55 = vld [vmem:[#allocation23 + $0x144] ss:$8 sps:$4 sm:$0xff]   ;;  %18880 = vmatpush3.bf16.msra.mxu1 %v20901_v58 }
 0xab3   :  { %16543 = vmatprep.subr.bf16.mxu0 %v20815_v19  ;;  %v20852_v19 = vld [vmem:[#allocation23 + $0x140] ss:$8 sps:$4 sm:$0xff]   ;;  %18881 = vmatprep.subr.bf16.mxu1 %v20902_v26 }
 0xab6   :  { %16544 = vmatpush1.bf16.msra.mxu0 %v20813_v30  ;;  %v20857_v30 = vld [vmem:[#allocation23 + $0x154] ss:$8 sps:$4 sm:$0xff]   ;;  %18882 = vmatpush3.bf16.msra.mxu1 %v20903_v34 }
 0xab7   :  { %16545 = vmatprep.subr.bf16.mxu0 %v20818_v27  ;;  %v20855_v27 = vld [vmem:[#allocation23 + $0x150] ss:$8 sps:$4 sm:$0xff]  }
 0xaba   :  { %16546 = vmatpush1.bf16.msra.mxu0 %v20816_v28  ;;  %v20860_v28 = vld [vmem:[#allocation23 + $0x164] ss:$8 sps:$4 sm:$0xff]  }
 0xabb   :  { %16547 = vmatprep.subr.bf16.mxu0 %v20821_v33  ;;  %v20858_v33 = vld [vmem:[#allocation23 + $0x160] ss:$8 sps:$4 sm:$0xff]  }
 0xabe   :  { %16548 = vmatpush1.bf16.msra.mxu0 %v20819_v5  ;;  %v20863_v5 = vld [vmem:[#allocation23 + $0x174] ss:$8 sps:$4 sm:$0xff]  }
 0xabf   :  { %16549 = vmatprep.subr.bf16.mxu0 %v20824_v36  ;;  %v20861_v36 = vld [vmem:[#allocation23 + $0x170] ss:$8 sps:$4 sm:$0xff]  }
 0xac2   :  { %16550 = vmatpush1.bf16.msra.mxu0 %v20822_v11  ;;  %v20866_v11 = vld [vmem:[#allocation23 + $0x184] ss:$8 sps:$4 sm:$0xff]  }
 0xac3   :  { %16551 = vmatprep.subr.bf16.mxu0 %v20827_v22  ;;  %v20864_v22 = vld [vmem:[#allocation23 + $0x180] ss:$8 sps:$4 sm:$0xff]  }
 0xac6   :  { %16552 = vmatpush1.bf16.msra.mxu0 %v20825_v21  ;;  %v20869_v21 = vld [vmem:[#allocation23 + $0x194] ss:$8 sps:$4 sm:$0xff]  }
 0xac7   :  { %16553 = vmatprep.subr.bf16.mxu0 %v20830_v63  ;;  %v20867_v63 = vld [vmem:[#allocation23 + $0x190] ss:$8 sps:$4 sm:$0xff]  }
 0xaca   :  { %16554 = vmatpush1.bf16.msra.mxu0 %v20828_v31  ;;  %v20872_v31 = vld [vmem:[#allocation23 + $0x1a4] ss:$8 sps:$4 sm:$0xff]  }
 0xacb   :  { %16555 = vmatprep.subr.bf16.mxu0 %v20833_v14  ;;  %v20870_v14 = vld [vmem:[#allocation23 + $0x1a0] ss:$8 sps:$4 sm:$0xff]  }
 0xace   :  { %16556 = vmatpush1.bf16.msra.mxu0 %v20831_v15  ;;  %v20875_v15 = vld [vmem:[#allocation23 + $0x1b4] ss:$8 sps:$4 sm:$0xff]  }
 0xacf   :  { %16557 = vmatprep.subr.bf16.mxu0 %v20836_v10  ;;  %v20878_v10 = vld [vmem:[#allocation23 + $0x1c4] ss:$8 sps:$4 sm:$0xff]  }
 0xad2   :  { %16558 = vmatpush1.bf16.msra.mxu0 %v20834_v60  ;;  %v20873_v60 = vld [vmem:[#allocation23 + $0x1b0] ss:$8 sps:$4 sm:$0xff]  }
 0xad3   :  { %16559 = vmatprep.subr.bf16.mxu0 %v20839_v47  ;;  %v20876_v47 = vld [vmem:[#allocation23 + $0x1c0] ss:$8 sps:$4 sm:$0xff]  }
 0xad6   :  { %16560 = vmatpush1.bf16.msra.mxu0 %v20837_v37  ;;  %v20881_v37 = vld [vmem:[#allocation23 + $0x1d4] ss:$8 sps:$4 sm:$0xff]  }
 0xad7   :  { %16570 = vmatprep.subr.bf16.mxu0 %v20842_v56  ;;  %v20879_v56 = vld [vmem:[#allocation23 + $0x1d0] ss:$8 sps:$4 sm:$0xff]  }
 0xb6c   :  { %v16036_v42 = vpop.f32.mrb[80].mxu0  ;;  %v23758_v44 = vpop.f32.mrb[80].mxu1 }
 0xb6d   :  { %v19177_v51 = vadd.f32 %v16036_v42, %v15271_v23  ;;  %v16038_v54 = vpop.f32.mrb[81].mxu0  ;;  %v16120_v9 = vpop.f32.mrb[81].mxu1  ;;  %v19179_v39 = vadd.f32 %v23758_v44, %v15279_v45 }
 0xb6e   :  { %v19178_v62 = vadd.f32 %v16038_v54, %v15275_v38  ;;  %v19180_v17 = vadd.f32 %v16120_v9, %v15283_v13  ;;  %v16040_v57 = vpop.f32.mrb[82].mxu0  ;;  %v16122_v2 = vpop.f32.mrb[82].mxu1 }
 0xb6f   :  { %v16125_v43 = vmax.f32 %v19177_v51, 0.0  ;;  %v16041_v6 = vpop.f32.mrb[83].mxu0  ;;  %v16123_v3 = vpop.f32.mrb[83].mxu1  ;;  %v16127_v53 = vmax.f32 %v19179_v39, 0.0 }
 0xb70   :  { %v16126_v59 = vmax.f32 %v19178_v62, 0.0  ;;  %v16128_v18 = vmax.f32 %v19180_v17, 0.0 }
 0xb71   :  { %v16129_v25 = vpack.c.bf16 %v16125_v43, %v16125_v43  ;;  %v16131_v24 = vpack.c.bf16 %v16127_v53, %v16127_v53 }
 0xb72   :  { %v16130_v52 = vpack.c.bf16 %v16126_v59, %v16126_v59  ;;  %v16132_v7 = vpack.c.bf16 %v16128_v18, %v16128_v18 }
 0xb74   :  { %16561 = vmatprep.mubr.bf16.mxu0 %v16130_v52 }
 0xb75   :  { %16562 = vmatmul.mubr.bf16.vlgmr.msra.gmra.mrb[84].mxu0 %v16129_v25 }
 0xb76   :  { %16571 = vmatpush1.bf16.msra.mxu0 %v20840_v40  ;;  %16602 = vmatprep.mubr.bf16.mxu0 %v16132_v7 }
 0xb77   :  { %16572 = vmatprep.subr.bf16.mxu0 %v20845_v20 }
 0xb7a   :  { %16573 = vmatpush1.bf16.msra.mxu0 %v20843_v50 }
 0xb7b   :  { %16574 = vmatprep.subr.bf16.mxu0 %v20848_v1 }
 0xb7e   :  { %16575 = vmatpush1.bf16.msra.mxu0 %v20846_v8 }
 0xb7f   :  { %16576 = vmatprep.subr.bf16.mxu0 %v20851_v32 }
 0xb82   :  { %16577 = vmatpush1.bf16.msra.mxu0 %v20849_v48 }
 0xb83   :  { %16578 = vmatprep.subr.bf16.mxu0 %v20854_v55 }
 0xb86   :  { %16579 = vmatpush1.bf16.msra.mxu0 %v20852_v19 }
 0xb87   :  { %16580 = vmatprep.subr.bf16.mxu0 %v20857_v30 }
 0xb8a   :  { %16581 = vmatpush1.bf16.msra.mxu0 %v20855_v27 }
 0xb8b   :  { %16582 = vmatprep.subr.bf16.mxu0 %v20860_v28 }
 0xb8e   :  { %16583 = vmatpush1.bf16.msra.mxu0 %v20858_v33 }
 0xb8f   :  { %16584 = vmatprep.subr.bf16.mxu0 %v20863_v5 }
 0xb92   :  { %16585 = vmatpush1.bf16.msra.mxu0 %v20861_v36 }
 0xb93   :  { %16586 = vmatprep.subr.bf16.mxu0 %v20866_v11 }
 0xb96   :  { %16587 = vmatpush1.bf16.msra.mxu0 %v20864_v22 }
 0xb97   :  { %16588 = vmatprep.subr.bf16.mxu0 %v20869_v21 }
 0xb9a   :  { %16589 = vmatpush1.bf16.msra.mxu0 %v20867_v63 }
 0xb9b   :  { %16590 = vmatprep.subr.bf16.mxu0 %v20872_v31 }
 0xb9e   :  { %16591 = vmatpush1.bf16.msra.mxu0 %v20870_v14 }
 0xb9f   :  { %16592 = vmatprep.subr.bf16.mxu0 %v20875_v15 }
 0xba2   :  { %16593 = vmatpush1.bf16.msra.mxu0 %v20873_v60 }
 0xba3   :  { %16594 = vmatprep.subr.bf16.mxu0 %v20878_v10 }
 0xba6   :  { %16595 = vmatpush1.bf16.msra.mxu0 %v20876_v47 }
 0xba7   :  { %16596 = vmatprep.subr.bf16.mxu0 %v20881_v37 }
 0xbaa   :  { %16597 = vmatpush1.bf16.msra.mxu0 %v20879_v56 }
 0xbab   :  { %16598 = vmatprep.subr.bf16.mxu0 %v20884_v41 }
 0xbae   :  { %16599 = vmatpush1.bf16.msra.mxu0 %v20882_v35 }
 0xbaf   :  { %16600 = vmatprep.subr.bf16.mxu0 %v20887_v4 }
 0xbb2   :  { %16601 = vmatpush1.bf16.msra.mxu0 %v20885_v12 }
 0xbb5   :  { %16603 = vmatmul.mubr.bf16.vlgmr.msra.gmra.mrb[84].mxu0 %v16131_v24 }
 0xc88   :  { %v16604_v16 = vpop.f32.mrb[84].mxu0 }
 0xc89   :  { %v19181_v23 = vadd.f32 %v16604_v16, %v16202_v29  ;;  %v16606_v38 = vpop.f32.mrb[85].mxu0 }
 0xc8a   :  { %v19182_v13 = vadd.f32 %v16606_v38, %v16206_v61  ;;  %v16608_v42 = vpop.f32.mrb[86].mxu0 }
 0xc8b   :  { %v16609_v44 = vpop.f32.mrb[87].mxu0  ;;  %v16611_v9 = vpack.c.bf16 %v19181_v23, %v19181_v23 }
 0xc8c   :  { %v16612_v51 = vpack.c.bf16 %v19182_v13, %v19182_v13  ;;  %v16790_v54 = vcombine.low %v19181_v23, %v19182_v13 }
 0xc8e   :  { %18548 = vst.sshfl [vmem:[#allocation29] sm:$0x33 pattern:$0x76325410] %v16790_v54  ;;  %16780 = vmatprep.mubr.bf16.mxu1 %v16612_v51 }
 0xc8f   :  { %16781 = vmatmul.mubr.bf16.vlgmr.msra.gmra.mrb[84].mxu1 %v16611_v9 }
 0xc90   :  { %21263 = shalt.err (!%p21260_p12)
}
 0xc91   :  { %s21264_s4 = scalar_lea.hbm %s23804_s15, 64 }
 0xc92   :  { %p21265_p13 = scmp.ne.s32.totalorder %s23804_s15, %s21264_s4  ;;  %p21268_p0 = scmp.lt.u32.totalorder %s21264_s4, %s23804_s15 }
 0xc94   :  { %p21270_p1 = pnand %p21268_p0, %p21265_p13 }
 0xc96   :  { %21273 = shalt.err (!%p21270_p1)
}
 0xc97   :  { %16810 = dma.vmem_to_hbm [thread:$0]  %s16808_s24, 64, %s23804_s15, [#allocation7]   ;;  %v18531_v0 = vld [vmem:[#allocation28] ss:$0 sm:$0xff] }
 0xc98   :  { %s21342_s13 = smov [#allocation30]  }
 0xc99   :  { %s16817_s21 = sshll.u32 %s21342_s13, 4  ;;  %s16818_s21 = int_to_ptr.vmem [resolvable:$true] %s16817_s21 }
 0xc9a   :  { %s21274_s10 = scalar_lea.vmem %s16818_s21, 32  ;;  %p21279_p3 = scmp.lt.s32.totalorder %s16818_s21, %s16818_s21 }
 0xc9b   :  { %p21275_p2 = scmp.ne.s32.totalorder %s16818_s21, %s21274_s10  ;;  %p21280_p4 = scmp.lt.s32.totalorder %s21274_s10, %s21274_s10 }
 0xc9d   :  { %p21281_p5 = por %p21280_p4, %p21279_p3 }
 0xc9f   :  { %p21282_p6 = pnand %p21281_p5, %p21275_p2 }
 0xd62   :  { %v18883_v46 = vpop.f32.mrb[84].mxu1 }
 0xd63   :  { %v18884_v62 = vpop.f32.mrb[85].mxu1 }
 0xd64   :  { %v18885_v17 = vadd.f32 %v18884_v62, %v18883_v46  ;;  %v18886_v57 = vpop.f32.mrb[86].mxu1 }
 0xd65   :  { %v18887_v2 = vpop.f32.mrb[87].mxu1 }
 0xd66   :  { %v16783_v43 = vadd.f32 %v18885_v17, %v18531_v0 }
 0xd68   :  { %16800 = vst [vmem:[#allocation30] sm:$0x3] %v16783_v43 }
 0xd69   :  { %21285 = shalt.err (!%p21282_p6)
}
 0xd6a   :  { %s21286_s22 = scalar_lea.hbm %s23805_s16, 32 }
 0xd6b   :  { %p21287_p7 = scmp.ne.s32.totalorder %s23805_s16, %s21286_s22  ;;  %p21290_p8 = scmp.lt.u32.totalorder %s21286_s22, %s23805_s16 }
 0xd6d   :  { %p21292_p9 = pnand %p21290_p8, %p21287_p7 }
 0xd6f   :  { %21295 = shalt.err (!%p21292_p9)
}
 0xd70   :  { %16820 = dma.vmem_to_hbm [thread:$0]  %s16818_s21, 32, %s23805_s16, [#allocation31]  }
 0xd71   :  { %21312 = dma.done.wait [#allocation7], 64  }
 0xd72   :  { %21313 = vsyncadd [#allocation7], 4294967232 }
 0xd73   :  { %21314 = dma.done.wait [#allocation31], 32  }
 0xd74   :  { %21315 = vsyncadd [#allocation31], 4294967264 }
 0xd75   :  { %16827 = vsyncpa [#allocation6], 1 }
 0xd76   :  { %16828 = vsyncpa [#allocation9], 1 }
 0xd77   :  { %16829 = vsyncpa [#allocation12], 1 }
 0xd78   :  { %16830 = vsyncpa [#allocation15], 1 }
 0xd79   :  { %16831 = vsyncpa [#allocation18], 1 }
 0xd7a   :  { %16832 = vsyncpa [#allocation21], 1 }
 0xd7b   :  { %16833 = vsyncpa [#allocation24], 1 }
 0xd7c   :  { %16834 = vsyncpa [#allocation27], 1 }
 0xd7d   :  { %16835 = vsyncpa [#allocation7], 1 }
 0xd7e   :  { %16836 = vsyncpa [#allocation31], 1 }

</bundles_post_ra>
